<compile_context>
chip_gen: v6e
topology: v6e:2x2x1
jax: 0.10.0
libtpu: 0.0.40
codegen_flags: <defaults>
</compile_context>

<pallas_src>
import functools

import jax
import jax.numpy as jnp
from jax import lax
from jax.experimental import pallas as pl
from jax.experimental.pallas import tpu as pltpu  # noqa: F401  (TPU backend)


# ------------------------------ fused kernel --------------------------------


def _bilstm_c_fused_kernel(tok_ref, emb_lstm_ref, emb_cnn_ref,
                           wif_ref, wib_ref, whf_ref, whb_ref,
                           bf_ref, bb_ref,
                           wconv_ref, bconv_ref, wfc_ref, bfc_ref,
                           out_ref, *, Bp, S, Vp, Hp, Cp):
    """Entire Bilstm_C forward in one grid-less kernel; everything stays in VMEM.

    tok_ref      : (S*Bp, 1) int32  token ids, time-major, batch padded to Bp
    emb_*_ref    : (Vp, D)          embedding tables (LSTM path / CNN path)
    wif/wib_ref  : (D, 4*Hp)        W_ih^T per direction, gate-padded
    whf/whb_ref  : (Hp, 4*Hp)       W_hh^T per direction, gate-padded
    bf/bb_ref    : (1, 4*Hp)        combined (b_ih + b_hh) per direction
    wconv_ref    : (3, D, Cp)       Conv2d(1, C, (3, D)) weights, channel-padded
    bconv_ref    : (1, Cp)
    wfc_ref      : (Cp + 2*Hp, Np)  fc1 weight^T laid out on the padded features
    bfc_ref      : (1, Np)
    out_ref      : (Bp, Np)         padded logits (real classes in [:B, :2])
    """
    f32 = jnp.float32
    N = S * Bp

    # --- embedding lookup: one one-hot (full 128-lane width), two tiny matmuls
    iota = lax.broadcasted_iota(jnp.int32, (N, Vp), 1)
    onehot = (tok_ref[...] == iota).astype(f32)                      # (N, Vp)
    x_lstm = jnp.dot(onehot, emb_lstm_ref[...],
                     preferred_element_type=f32)                     # (N, D)
    x_cnn = jnp.dot(onehot, emb_cnn_ref[...],
                    preferred_element_type=f32)                      # (N, D)

    # --- BiLSTM: hoisted input projections, restricted to the steps each
    #     direction actually reads (fwd: t=0,1; bwd: t=1..S-1). 8-row aligned.
    xp_f = jnp.dot(x_lstm[0:2 * Bp, :], wif_ref[...],
                   preferred_element_type=f32) + bf_ref[...]         # (2*Bp, 4Hp)
    xp_b = jnp.dot(x_lstm[Bp:N, :], wib_ref[...],
                   preferred_element_type=f32) + bb_ref[...]         # ((S-1)*Bp, 4Hp)

    def lstm_step(gpre, h, c, wh_ref):
        # TODO(synk): W_hh could be held resident in the MXU across steps via
        # pltpu.matmul_push_rhs / matmul_acc_lhs / matmul_pop (biggest lever on
        # v5e); kept as jnp.dot for portable lowering across v5e/v6e/v7x.
        g = gpre + jnp.dot(h, wh_ref[...], preferred_element_type=f32)
        i = jax.nn.sigmoid(g[:, 0 * Hp:1 * Hp])
        f = jax.nn.sigmoid(g[:, 1 * Hp:2 * Hp])
        gg = jnp.tanh(g[:, 2 * Hp:3 * Hp])
        o = jax.nn.sigmoid(g[:, 3 * Hp:4 * Hp])
        c_new = f * c + i * gg
        return o * jnp.tanh(c_new), c_new

    zeros = jnp.zeros((Bp, Hp), f32)

    # forward direction: lstm_out[:, 1, :H] only depends on t = 0, 1.
    h_f, c_f = zeros, zeros
    for t in range(2):
        h_f, c_f = lstm_step(xp_f[t * Bp:(t + 1) * Bp, :], h_f, c_f, whf_ref)

    # backward direction: hidden state after consuming t = S-1 .. 1.
    h_b, c_b = zeros, zeros
    for t in range(S - 1, 0, -1):
        h_b, c_b = lstm_step(xp_b[(t - 1) * Bp:t * Bp, :], h_b, c_b, whb_ref)

    # --- Conv2d(1, C, (3, D)) + ReLU + global max-pool over time --------------
    # Time-major adjacency: tap kh is a whole-slab matmul with row shift kh*Bp.
    T = S - 2
    acc = jnp.dot(x_cnn[0:T * Bp, :], wconv_ref[0],
                  preferred_element_type=f32)                        # (T*Bp, Cp)
    for kh in range(1, 3):
        acc = acc + jnp.dot(x_cnn[kh * Bp:kh * Bp + T * Bp, :], wconv_ref[kh],
                            preferred_element_type=f32)
    acc = jnp.maximum(acc + bconv_ref[...], 0.0)                     # (T*Bp, Cp)

    conv_feat = acc[0:Bp, :]                                         # (Bp, Cp)
    for t in range(1, T):
        conv_feat = jnp.maximum(conv_feat, acc[t * Bp:(t + 1) * Bp, :])

    # --- fc1 on the fused feature vector (all concat boundaries 128-aligned) --
    # TODO(synk): dropout is identity at inference; not implemented for training.
    feat = jnp.concatenate([conv_feat, h_f, h_b], axis=1)            # (Bp, Cp+2Hp)
    out_ref[...] = (jnp.dot(feat, wfc_ref[...], preferred_element_type=f32)
                    + bfc_ref[...])


# ------------------------------ JAX wrapper ----------------------------------


def bilstm_c_forward(x, kp, n_classes=2):
    tokens = x[0]                                    # (B, S) int
    B, S = tokens.shape
    if S < 3:
        raise ValueError("Bilstm_C requires S >= 3 (conv height 3, lstm_out[:, 1, :]).")
    Vp = kp["embed"].shape[0]
    Hp = kp["whf"].shape[0]
    Cp = kp["w_conv"].shape[-1]
    Np = kp["w_fc"].shape[-1]
    Bp = max(8, ((B + 7) // 8) * 8)                  # sublane-aligned batch pad

    # trivially cheap int pad/transpose; all float work happens inside the kernel
    tok_pad = jnp.zeros((Bp, S), jnp.int32).at[:B].set(tokens.astype(jnp.int32))
    tok_tm = jnp.transpose(tok_pad, (1, 0)).reshape(S * Bp, 1)

    kernel = functools.partial(_bilstm_c_fused_kernel,
                               Bp=Bp, S=S, Vp=Vp, Hp=Hp, Cp=Cp)
    out = pl.pallas_call(
        kernel,
        out_shape=jax.ShapeDtypeStruct((Bp, Np), jnp.float32),
    )(tok_tm, kp["embed"], kp["embedding"],
      kp["wif"], kp["wib"], kp["whf"], kp["whb"], kp["bf"], kp["bb"],
      kp["w_conv"], kp["b_conv"], kp["w_fc"], kp["b_fc"])
    return out[:B, :n_classes]


# --------------------------- params: init + padding --------------------------


def init_params(key, V, D, H, C=100, n_classes=2):
    """Real-sized (unpadded) parameters, PyTorch layout conventions."""
    ks = jax.random.split(key, 12)

    def norm(k, shape, scale=0.1):
        return (scale * jax.random.normal(k, shape)).astype(jnp.float32)

    return dict(
        embed=norm(ks[0], (V, D), 1.0),        # LSTM-path embedding table
        embedding=norm(ks[1], (V, D), 1.0),    # CNN-path embedding table
        wif=norm(ks[2], (D, 4 * H)),           # forward  W_ih^T, gates [i,f,g,o]
        whf=norm(ks[3], (H, 4 * H)),           # forward  W_hh^T
        bf=norm(ks[4], (1, 4 * H)),            # forward  b_ih + b_hh
        wib=norm(ks[5], (D, 4 * H)),           # backward W_ih^T
        whb=norm(ks[6], (H, 4 * H)),           # backward W_hh^T
        bb=norm(ks[7], (1, 4 * H)),            # backward b_ih + b_hh
        w_conv=norm(ks[8], (3, D, C)),         # Conv2d(1, 100, (3, D)) reshaped
        b_conv=norm(ks[9], (1, C)),
        w_fc=norm(ks[10], (C + 2 * H, n_classes)),   # Linear(500, 2) weight^T
        b_fc=norm(ks[11], (1, n_classes)),
    )


def pad_params(p, H, C, Hp=256, Cp=128, Vp=128, n_classes=2, Np=128):
    """Zero-pad params to 128-lane aligned shapes expected by the fused kernel."""
    V, D = p["embed"].shape
    assert Hp >= H and Cp >= C and Np >= n_classes and Vp >= V

    def pad_gates(w):                      # (..., 4H) -> (..., 4Hp), per gate
        out = jnp.zeros(w.shape[:-1] + (4 * Hp,), jnp.float32)
        for k in range(4):
            out = out.at[..., k * Hp:k * Hp + H].set(w[..., k * H:(k + 1) * H])
        return out

    def pad_hh(w):                         # (H, 4H) -> (Hp, 4Hp)
        out = jnp.zeros((Hp, 4 * Hp), jnp.float32)
        for k in range(4):
            out = out.at[:H, k * Hp:k * Hp + H].set(w[:, k * H:(k + 1) * H])
        return out

    def pad_vocab(t):                      # (V, D) -> (Vp, D)
        return jnp.zeros((Vp, D), jnp.float32).at[:V].set(t)

    w_conv = jnp.zeros((3, D, Cp), jnp.float32).at[:, :, :C].set(p["w_conv"])
    b_conv = jnp.zeros((1, Cp), jnp.float32).at[:, :C].set(p["b_conv"])

    w_fc = jnp.zeros((Cp + 2 * Hp, Np), jnp.float32)
    w_fc = w_fc.at[0:C, :n_classes].set(p["w_fc"][0:C])
    w_fc = w_fc.at[Cp:Cp + H, :n_classes].set(p["w_fc"][C:C + H])
    w_fc = w_fc.at[Cp + Hp:Cp + Hp + H, :n_classes].set(p["w_fc"][C + H:C + 2 * H])
    b_fc = jnp.zeros((1, Np), jnp.float32).at[:, :n_classes].set(p["b_fc"])

    return dict(embed=pad_vocab(p["embed"]), embedding=pad_vocab(p["embedding"]),
                wif=pad_gates(p["wif"]), wib=pad_gates(p["wib"]),
                whf=pad_hh(p["whf"]), whb=pad_hh(p["whb"]),
                bf=pad_gates(p["bf"]), bb=pad_gates(p["bb"]),
                w_conv=w_conv, b_conv=b_conv, w_fc=w_fc, b_fc=b_fc)


# ------------------------- pure-JAX reference (unpadded) ---------------------


def bilstm_c_reference(tokens, p):
    emb_lstm = jnp.take(p["embed"], tokens, axis=0)      # (B, S, D)
    emb_cnn = jnp.take(p["embedding"], tokens, axis=0)
    B, S, _ = emb_lstm.shape
    H = p["whf"].shape[0]

    def cell(x_t, h, c, wi, wh, b):
        g = x_t @ wi + h @ wh + b
        i = jax.nn.sigmoid(g[:, :H])
        f = jax.nn.sigmoid(g[:, H:2 * H])
        gg = jnp.tanh(g[:, 2 * H:3 * H])
        o = jax.nn.sigmoid(g[:, 3 * H:4 * H])
        c = f * c + i * gg
        return o * jnp.tanh(c), c

    h = c = jnp.zeros((B, H), jnp.float32)
    h1_fwd = h
    for t in range(S):
        h, c = cell(emb_lstm[:, t, :], h, c, p["wif"], p["whf"], p["bf"])
        if t == 1:
            h1_fwd = h
    h = c = jnp.zeros((B, H), jnp.float32)
    h1_bwd = h
    for t in range(S - 1, -1, -1):
        h, c = cell(emb_lstm[:, t, :], h, c, p["wib"], p["whb"], p["bb"])
        if t == 1:
            h1_bwd = h

    T = S - 2
    C = p["w_conv"].shape[-1]
    acc = jnp.zeros((B, T, C), jnp.float32)
    for kh in range(3):
        acc = acc + jnp.einsum("btd,dc->btc", emb_cnn[:, kh:kh + T, :], p["w_conv"][kh])
    conv = jnp.max(jnp.maximum(acc + p["b_conv"], 0.0), axis=1)   # (B, C)

    feat = jnp.concatenate([conv, h1_fwd, h1_bwd], axis=1)
    return feat @ p["w_fc"] + p["b_fc"]


# ----------------------------------- main ------------------------------------


if __name__ == "__main__":
    # H = 200 is forced by fc1 = Linear(500, 2): 100 conv features + 2H = 500.
    V, D, H, C = 64, 32, 200, 100
    B, S = 2, 8

    key = jax.random.PRNGKey(0)
    k_tok, k_par = jax.random.split(key)
    tokens = jax.random.randint(k_tok, (B, S), 0, V, dtype=jnp.int32)
    params = init_params(k_par, V, D, H, C)
    kparams = pad_params(params, H=H, C=C)

    fwd = jax.jit(lambda toks, kp: bilstm_c_forward((toks,), kp))
    logits = fwd(tokens, kparams)
    jax.block_until_ready(logits)

    assert logits.shape == (B, 2), logits.shape
    assert bool(jnp.all(jnp.isfinite(logits)))

    ref = bilstm_c_reference(tokens, params)
    assert bool(jnp.max(jnp.abs(logits - ref)) < 1e-3), "kernel/reference mismatch"

    print("KERNEL_OK")
</pallas_src>

<mosaic_0001>
module attributes {stable_mosaic.version = 11 : i64} {
  func.func @_bilstm_c_fused_kernel(%arg0: memref<64x1xi32, #tpu.memory_space<vmem>>, %arg1: memref<128x32xf32, #tpu.memory_space<vmem>>, %arg2: memref<128x32xf32, #tpu.memory_space<vmem>>, %arg3: memref<32x1024xf32, #tpu.memory_space<vmem>>, %arg4: memref<32x1024xf32, #tpu.memory_space<vmem>>, %arg5: memref<256x1024xf32, #tpu.memory_space<vmem>>, %arg6: memref<256x1024xf32, #tpu.memory_space<vmem>>, %arg7: memref<1x1024xf32, #tpu.memory_space<vmem>>, %arg8: memref<1x1024xf32, #tpu.memory_space<vmem>>, %arg9: memref<3x32x128xf32, #tpu.memory_space<vmem>>, %arg10: memref<1x128xf32, #tpu.memory_space<vmem>>, %arg11: memref<640x128xf32, #tpu.memory_space<vmem>>, %arg12: memref<1x128xf32, #tpu.memory_space<vmem>>, %arg13: memref<8x128xf32, #tpu.memory_space<vmem>>) attributes {dimension_semantics = [], scalar_prefetch = 0 : i64, scratch_operands = 0 : i64, tpu.core_type = #tpu.core_type<tc>} {
    %0 = tpu.iota {dimensions = array<i32: 1>} : vector<64x128xi32>
    %c0 = arith.constant 0 : index
    %c0_0 = arith.constant 0 : index
    %1 = vector.load %arg0[%c0, %c0_0] : memref<64x1xi32, #tpu.memory_space<vmem>>, vector<64x1xi32>
    %2 = vector.broadcast %1 : vector<64x1xi32> to vector<64x128xi32>
    %3 = arith.cmpi eq, %2, %0 : vector<64x128xi32>
    %4 = arith.extui %3 : vector<64x128xi1> to vector<64x128xi32>
    %5 = arith.sitofp %4 : vector<64x128xi32> to vector<64x128xf32>
    %c0_1 = arith.constant 0 : index
    %c0_2 = arith.constant 0 : index
    %6 = vector.load %arg1[%c0_1, %c0_2] : memref<128x32xf32, #tpu.memory_space<vmem>>, vector<128x32xf32>
    %cst = arith.constant dense<0.000000e+00> : vector<64x32xf32>
    %7 = tpu.matmul %5, %6, %cst {dimension_numbers = #tpu.dot_dimension_numbers<[1], [0], [0], [1], [0, 0, 1, 1], [], []>} : vector<64x128xf32>, vector<128x32xf32>, vector<64x32xf32> -> vector<64x32xf32>
    %c0_3 = arith.constant 0 : index
    %c0_4 = arith.constant 0 : index
    %8 = vector.load %arg2[%c0_3, %c0_4] : memref<128x32xf32, #tpu.memory_space<vmem>>, vector<128x32xf32>
    %cst_5 = arith.constant dense<0.000000e+00> : vector<64x32xf32>
    %9 = tpu.matmul %5, %8, %cst_5 {dimension_numbers = #tpu.dot_dimension_numbers<[1], [0], [0], [1], [0, 0, 1, 1], [], []>} : vector<64x128xf32>, vector<128x32xf32>, vector<64x32xf32> -> vector<64x32xf32>
    %10 = vector.extract_strided_slice %7 {offsets = [0, 0], sizes = [16, 32], strides = [1, 1]} : vector<64x32xf32> to vector<16x32xf32>
    %c0_6 = arith.constant 0 : index
    %c0_7 = arith.constant 0 : index
    %11 = vector.load %arg3[%c0_6, %c0_7] : memref<32x1024xf32, #tpu.memory_space<vmem>>, vector<32x1024xf32>
    %cst_8 = arith.constant dense<0.000000e+00> : vector<16x1024xf32>
    %12 = tpu.matmul %10, %11, %cst_8 {dimension_numbers = #tpu.dot_dimension_numbers<[1], [0], [0], [1], [0, 0, 1, 1], [], []>} : vector<16x32xf32>, vector<32x1024xf32>, vector<16x1024xf32> -> vector<16x1024xf32>
    %c0_9 = arith.constant 0 : index
    %c0_10 = arith.constant 0 : index
    %13 = vector.load %arg7[%c0_9, %c0_10] : memref<1x1024xf32, #tpu.memory_space<vmem>>, vector<1x1024xf32>
    %14 = vector.broadcast %13 : vector<1x1024xf32> to vector<16x1024xf32>
    %15 = arith.addf %12, %14 : vector<16x1024xf32>
    %16 = vector.extract_strided_slice %7 {offsets = [8, 0], sizes = [56, 32], strides = [1, 1]} : vector<64x32xf32> to vector<56x32xf32>
    %c0_11 = arith.constant 0 : index
    %c0_12 = arith.constant 0 : index
    %17 = vector.load %arg4[%c0_11, %c0_12] : memref<32x1024xf32, #tpu.memory_space<vmem>>, vector<32x1024xf32>
    %cst_13 = arith.constant dense<0.000000e+00> : vector<56x1024xf32>
    %18 = tpu.matmul %16, %17, %cst_13 {dimension_numbers = #tpu.dot_dimension_numbers<[1], [0], [0], [1], [0, 0, 1, 1], [], []>} : vector<56x32xf32>, vector<32x1024xf32>, vector<56x1024xf32> -> vector<56x1024xf32>
    %c0_14 = arith.constant 0 : index
    %c0_15 = arith.constant 0 : index
    %19 = vector.load %arg8[%c0_14, %c0_15] : memref<1x1024xf32, #tpu.memory_space<vmem>>, vector<1x1024xf32>
    %20 = vector.broadcast %19 : vector<1x1024xf32> to vector<56x1024xf32>
    %21 = arith.addf %18, %20 : vector<56x1024xf32>
    %cst_16 = arith.constant 0.000000e+00 : f32
    %22 = vector.broadcast %cst_16 : f32 to vector<8x256xf32>
    %23 = vector.extract_strided_slice %15 {offsets = [0, 0], sizes = [8, 1024], strides = [1, 1]} : vector<16x1024xf32> to vector<8x1024xf32>
    %c0_17 = arith.constant 0 : index
    %c0_18 = arith.constant 0 : index
    %24 = vector.load %arg5[%c0_17, %c0_18] : memref<256x1024xf32, #tpu.memory_space<vmem>>, vector<256x1024xf32>
    %cst_19 = arith.constant dense<0.000000e+00> : vector<8x1024xf32>
    %25 = tpu.matmul %22, %24, %cst_19 {dimension_numbers = #tpu.dot_dimension_numbers<[1], [0], [0], [1], [0, 0, 1, 1], [], []>} : vector<8x256xf32>, vector<256x1024xf32>, vector<8x1024xf32> -> vector<8x1024xf32>
    %26 = arith.addf %23, %25 : vector<8x1024xf32>
    %27 = vector.extract_strided_slice %26 {offsets = [0, 0], sizes = [8, 256], strides = [1, 1]} : vector<8x1024xf32> to vector<8x256xf32>
    %28 = arith.negf %27 : vector<8x256xf32>
    %29 = math.exp %28 : vector<8x256xf32>
    %cst_20 = arith.constant 1.000000e+00 : f32
    %30 = vector.broadcast %cst_20 : f32 to vector<8x256xf32>
    %31 = arith.addf %30, %29 : vector<8x256xf32>
    %32 = arith.divf %30, %31 : vector<8x256xf32>
    %33 = vector.extract_strided_slice %26 {offsets = [0, 256], sizes = [8, 256], strides = [1, 1]} : vector<8x1024xf32> to vector<8x256xf32>
    %34 = arith.negf %33 : vector<8x256xf32>
    %35 = math.exp %34 : vector<8x256xf32>
    %cst_21 = arith.constant 1.000000e+00 : f32
    %36 = vector.broadcast %cst_21 : f32 to vector<8x256xf32>
    %37 = arith.addf %36, %35 : vector<8x256xf32>
    %38 = arith.divf %36, %37 : vector<8x256xf32>
    %39 = vector.extract_strided_slice %26 {offsets = [0, 512], sizes = [8, 256], strides = [1, 1]} : vector<8x1024xf32> to vector<8x256xf32>
    %40 = math.tanh %39 : vector<8x256xf32>
    %41 = vector.extract_strided_slice %26 {offsets = [0, 768], sizes = [8, 256], strides = [1, 1]} : vector<8x1024xf32> to vector<8x256xf32>
    %42 = arith.negf %41 : vector<8x256xf32>
    %43 = math.exp %42 : vector<8x256xf32>
    %cst_22 = arith.constant 1.000000e+00 : f32
    %44 = vector.broadcast %cst_22 : f32 to vector<8x256xf32>
    %45 = arith.addf %44, %43 : vector<8x256xf32>
    %46 = arith.divf %44, %45 : vector<8x256xf32>
    %47 = arith.mulf %38, %22 : vector<8x256xf32>
    %48 = arith.mulf %32, %40 : vector<8x256xf32>
    %49 = arith.addf %47, %48 : vector<8x256xf32>
    %50 = math.tanh %49 : vector<8x256xf32>
    %51 = arith.mulf %46, %50 : vector<8x256xf32>
    %52 = vector.extract_strided_slice %15 {offsets = [8, 0], sizes = [8, 1024], strides = [1, 1]} : vector<16x1024xf32> to vector<8x1024xf32>
    %c0_23 = arith.constant 0 : index
    %c0_24 = arith.constant 0 : index
    %53 = vector.load %arg5[%c0_23, %c0_24] : memref<256x1024xf32, #tpu.memory_space<vmem>>, vector<256x1024xf32>
    %cst_25 = arith.constant dense<0.000000e+00> : vector<8x1024xf32>
    %54 = tpu.matmul %51, %53, %cst_25 {dimension_numbers = #tpu.dot_dimension_numbers<[1], [0], [0], [1], [0, 0, 1, 1], [], []>} : vector<8x256xf32>, vector<256x1024xf32>, vector<8x1024xf32> -> vector<8x1024xf32>
    %55 = arith.addf %52, %54 : vector<8x1024xf32>
    %56 = vector.extract_strided_slice %55 {offsets = [0, 0], sizes = [8, 256], strides = [1, 1]} : vector<8x1024xf32> to vector<8x256xf32>
    %57 = arith.negf %56 : vector<8x256xf32>
    %58 = math.exp %57 : vector<8x256xf32>
    %cst_26 = arith.constant 1.000000e+00 : f32
    %59 = vector.broadcast %cst_26 : f32 to vector<8x256xf32>
    %60 = arith.addf %59, %58 : vector<8x256xf32>
    %61 = arith.divf %59, %60 : vector<8x256xf32>
    %62 = vector.extract_strided_slice %55 {offsets = [0, 256], sizes = [8, 256], strides = [1, 1]} : vector<8x1024xf32> to vector<8x256xf32>
    %63 = arith.negf %62 : vector<8x256xf32>
    %64 = math.exp %63 : vector<8x256xf32>
    %cst_27 = arith.constant 1.000000e+00 : f32
    %65 = vector.broadcast %cst_27 : f32 to vector<8x256xf32>
    %66 = arith.addf %65, %64 : vector<8x256xf32>
    %67 = arith.divf %65, %66 : vector<8x256xf32>
    %68 = vector.extract_strided_slice %55 {offsets = [0, 512], sizes = [8, 256], strides = [1, 1]} : vector<8x1024xf32> to vector<8x256xf32>
    %69 = math.tanh %68 : vector<8x256xf32>
    %70 = vector.extract_strided_slice %55 {offsets = [0, 768], sizes = [8, 256], strides = [1, 1]} : vector<8x1024xf32> to vector<8x256xf32>
    %71 = arith.negf %70 : vector<8x256xf32>
    %72 = math.exp %71 : vector<8x256xf32>
    %cst_28 = arith.constant 1.000000e+00 : f32
    %73 = vector.broadcast %cst_28 : f32 to vector<8x256xf32>
    %74 = arith.addf %73, %72 : vector<8x256xf32>
    %75 = arith.divf %73, %74 : vector<8x256xf32>
    %76 = arith.mulf %67, %49 : vector<8x256xf32>
    %77 = arith.mulf %61, %69 : vector<8x256xf32>
    %78 = arith.addf %76, %77 : vector<8x256xf32>
    %79 = math.tanh %78 : vector<8x256xf32>
    %80 = arith.mulf %75, %79 : vector<8x256xf32>
    %81 = vector.extract_strided_slice %21 {offsets = [48, 0], sizes = [8, 1024], strides = [1, 1]} : vector<56x1024xf32> to vector<8x1024xf32>
    %c0_29 = arith.constant 0 : index
    %c0_30 = arith.constant 0 : index
    %82 = vector.load %arg6[%c0_29, %c0_30] : memref<256x1024xf32, #tpu.memory_space<vmem>>, vector<256x1024xf32>
    %cst_31 = arith.constant dense<0.000000e+00> : vector<8x1024xf32>
    %83 = tpu.matmul %22, %82, %cst_31 {dimension_numbers = #tpu.dot_dimension_numbers<[1], [0], [0], [1], [0, 0, 1, 1], [], []>} : vector<8x256xf32>, vector<256x1024xf32>, vector<8x1024xf32> -> vector<8x1024xf32>
    %84 = arith.addf %81, %83 : vector<8x1024xf32>
    %85 = vector.extract_strided_slice %84 {offsets = [0, 0], sizes = [8, 256], strides = [1, 1]} : vector<8x1024xf32> to vector<8x256xf32>
    %86 = arith.negf %85 : vector<8x256xf32>
    %87 = math.exp %86 : vector<8x256xf32>
    %cst_32 = arith.constant 1.000000e+00 : f32
    %88 = vector.broadcast %cst_32 : f32 to vector<8x256xf32>
    %89 = arith.addf %88, %87 : vector<8x256xf32>
    %90 = arith.divf %88, %89 : vector<8x256xf32>
    %91 = vector.extract_strided_slice %84 {offsets = [0, 256], sizes = [8, 256], strides = [1, 1]} : vector<8x1024xf32> to vector<8x256xf32>
    %92 = arith.negf %91 : vector<8x256xf32>
    %93 = math.exp %92 : vector<8x256xf32>
    %cst_33 = arith.constant 1.000000e+00 : f32
    %94 = vector.broadcast %cst_33 : f32 to vector<8x256xf32>
    %95 = arith.addf %94, %93 : vector<8x256xf32>
    %96 = arith.divf %94, %95 : vector<8x256xf32>
    %97 = vector.extract_strided_slice %84 {offsets = [0, 512], sizes = [8, 256], strides = [1, 1]} : vector<8x1024xf32> to vector<8x256xf32>
    %98 = math.tanh %97 : vector<8x256xf32>
    %99 = vector.extract_strided_slice %84 {offsets = [0, 768], sizes = [8, 256], strides = [1, 1]} : vector<8x1024xf32> to vector<8x256xf32>
    %100 = arith.negf %99 : vector<8x256xf32>
    %101 = math.exp %100 : vector<8x256xf32>
    %cst_34 = arith.constant 1.000000e+00 : f32
    %102 = vector.broadcast %cst_34 : f32 to vector<8x256xf32>
    %103 = arith.addf %102, %101 : vector<8x256xf32>
    %104 = arith.divf %102, %103 : vector<8x256xf32>
    %105 = arith.mulf %96, %22 : vector<8x256xf32>
    %106 = arith.mulf %90, %98 : vector<8x256xf32>
    %107 = arith.addf %105, %106 : vector<8x256xf32>
    %108 = math.tanh %107 : vector<8x256xf32>
    %109 = arith.mulf %104, %108 : vector<8x256xf32>
    %110 = vector.extract_strided_slice %21 {offsets = [40, 0], sizes = [8, 1024], strides = [1, 1]} : vector<56x1024xf32> to vector<8x1024xf32>
    %c0_35 = arith.constant 0 : index
    %c0_36 = arith.constant 0 : index
    %111 = vector.load %arg6[%c0_35, %c0_36] : memref<256x1024xf32, #tpu.memory_space<vmem>>, vector<256x1024xf32>
    %cst_37 = arith.constant dense<0.000000e+00> : vector<8x1024xf32>
    %112 = tpu.matmul %109, %111, %cst_37 {dimension_numbers = #tpu.dot_dimension_numbers<[1], [0], [0], [1], [0, 0, 1, 1], [], []>} : vector<8x256xf32>, vector<256x1024xf32>, vector<8x1024xf32> -> vector<8x1024xf32>
    %113 = arith.addf %110, %112 : vector<8x1024xf32>
    %114 = vector.extract_strided_slice %113 {offsets = [0, 0], sizes = [8, 256], strides = [1, 1]} : vector<8x1024xf32> to vector<8x256xf32>
    %115 = arith.negf %114 : vector<8x256xf32>
    %116 = math.exp %115 : vector<8x256xf32>
    %cst_38 = arith.constant 1.000000e+00 : f32
    %117 = vector.broadcast %cst_38 : f32 to vector<8x256xf32>
    %118 = arith.addf %117, %116 : vector<8x256xf32>
    %119 = arith.divf %117, %118 : vector<8x256xf32>
    %120 = vector.extract_strided_slice %113 {offsets = [0, 256], sizes = [8, 256], strides = [1, 1]} : vector<8x1024xf32> to vector<8x256xf32>
    %121 = arith.negf %120 : vector<8x256xf32>
    %122 = math.exp %121 : vector<8x256xf32>
    %cst_39 = arith.constant 1.000000e+00 : f32
    %123 = vector.broadcast %cst_39 : f32 to vector<8x256xf32>
    %124 = arith.addf %123, %122 : vector<8x256xf32>
    %125 = arith.divf %123, %124 : vector<8x256xf32>
    %126 = vector.extract_strided_slice %113 {offsets = [0, 512], sizes = [8, 256], strides = [1, 1]} : vector<8x1024xf32> to vector<8x256xf32>
    %127 = math.tanh %126 : vector<8x256xf32>
    %128 = vector.extract_strided_slice %113 {offsets = [0, 768], sizes = [8, 256], strides = [1, 1]} : vector<8x1024xf32> to vector<8x256xf32>
    %129 = arith.negf %128 : vector<8x256xf32>
    %130 = math.exp %129 : vector<8x256xf32>
    %cst_40 = arith.constant 1.000000e+00 : f32
    %131 = vector.broadcast %cst_40 : f32 to vector<8x256xf32>
    %132 = arith.addf %131, %130 : vector<8x256xf32>
    %133 = arith.divf %131, %132 : vector<8x256xf32>
    %134 = arith.mulf %125, %107 : vector<8x256xf32>
    %135 = arith.mulf %119, %127 : vector<8x256xf32>
    %136 = arith.addf %134, %135 : vector<8x256xf32>
    %137 = math.tanh %136 : vector<8x256xf32>
    %138 = arith.mulf %133, %137 : vector<8x256xf32>
    %139 = vector.extract_strided_slice %21 {offsets = [32, 0], sizes = [8, 1024], strides = [1, 1]} : vector<56x1024xf32> to vector<8x1024xf32>
    %c0_41 = arith.constant 0 : index
    %c0_42 = arith.constant 0 : index
    %140 = vector.load %arg6[%c0_41, %c0_42] : memref<256x1024xf32, #tpu.memory_space<vmem>>, vector<256x1024xf32>
    %cst_43 = arith.constant dense<0.000000e+00> : vector<8x1024xf32>
    %141 = tpu.matmul %138, %140, %cst_43 {dimension_numbers = #tpu.dot_dimension_numbers<[1], [0], [0], [1], [0, 0, 1, 1], [], []>} : vector<8x256xf32>, vector<256x1024xf32>, vector<8x1024xf32> -> vector<8x1024xf32>
    %142 = arith.addf %139, %141 : vector<8x1024xf32>
    %143 = vector.extract_strided_slice %142 {offsets = [0, 0], sizes = [8, 256], strides = [1, 1]} : vector<8x1024xf32> to vector<8x256xf32>
    %144 = arith.negf %143 : vector<8x256xf32>
    %145 = math.exp %144 : vector<8x256xf32>
    %cst_44 = arith.constant 1.000000e+00 : f32
    %146 = vector.broadcast %cst_44 : f32 to vector<8x256xf32>
    %147 = arith.addf %146, %145 : vector<8x256xf32>
    %148 = arith.divf %146, %147 : vector<8x256xf32>
    %149 = vector.extract_strided_slice %142 {offsets = [0, 256], sizes = [8, 256], strides = [1, 1]} : vector<8x1024xf32> to vector<8x256xf32>
    %150 = arith.negf %149 : vector<8x256xf32>
    %151 = math.exp %150 : vector<8x256xf32>
    %cst_45 = arith.constant 1.000000e+00 : f32
    %152 = vector.broadcast %cst_45 : f32 to vector<8x256xf32>
    %153 = arith.addf %152, %151 : vector<8x256xf32>
    %154 = arith.divf %152, %153 : vector<8x256xf32>
    %155 = vector.extract_strided_slice %142 {offsets = [0, 512], sizes = [8, 256], strides = [1, 1]} : vector<8x1024xf32> to vector<8x256xf32>
    %156 = math.tanh %155 : vector<8x256xf32>
    %157 = vector.extract_strided_slice %142 {offsets = [0, 768], sizes = [8, 256], strides = [1, 1]} : vector<8x1024xf32> to vector<8x256xf32>
    %158 = arith.negf %157 : vector<8x256xf32>
    %159 = math.exp %158 : vector<8x256xf32>
    %cst_46 = arith.constant 1.000000e+00 : f32
    %160 = vector.broadcast %cst_46 : f32 to vector<8x256xf32>
    %161 = arith.addf %160, %159 : vector<8x256xf32>
    %162 = arith.divf %160, %161 : vector<8x256xf32>
    %163 = arith.mulf %154, %136 : vector<8x256xf32>
    %164 = arith.mulf %148, %156 : vector<8x256xf32>
    %165 = arith.addf %163, %164 : vector<8x256xf32>
    %166 = math.tanh %165 : vector<8x256xf32>
    %167 = arith.mulf %162, %166 : vector<8x256xf32>
    %168 = vector.extract_strided_slice %21 {offsets = [24, 0], sizes = [8, 1024], strides = [1, 1]} : vector<56x1024xf32> to vector<8x1024xf32>
    %c0_47 = arith.constant 0 : index
    %c0_48 = arith.constant 0 : index
    %169 = vector.load %arg6[%c0_47, %c0_48] : memref<256x1024xf32, #tpu.memory_space<vmem>>, vector<256x1024xf32>
    %cst_49 = arith.constant dense<0.000000e+00> : vector<8x1024xf32>
    %170 = tpu.matmul %167, %169, %cst_49 {dimension_numbers = #tpu.dot_dimension_numbers<[1], [0], [0], [1], [0, 0, 1, 1], [], []>} : vector<8x256xf32>, vector<256x1024xf32>, vector<8x1024xf32> -> vector<8x1024xf32>
    %171 = arith.addf %168, %170 : vector<8x1024xf32>
    %172 = vector.extract_strided_slice %171 {offsets = [0, 0], sizes = [8, 256], strides = [1, 1]} : vector<8x1024xf32> to vector<8x256xf32>
    %173 = arith.negf %172 : vector<8x256xf32>
    %174 = math.exp %173 : vector<8x256xf32>
    %cst_50 = arith.constant 1.000000e+00 : f32
    %175 = vector.broadcast %cst_50 : f32 to vector<8x256xf32>
    %176 = arith.addf %175, %174 : vector<8x256xf32>
    %177 = arith.divf %175, %176 : vector<8x256xf32>
    %178 = vector.extract_strided_slice %171 {offsets = [0, 256], sizes = [8, 256], strides = [1, 1]} : vector<8x1024xf32> to vector<8x256xf32>
    %179 = arith.negf %178 : vector<8x256xf32>
    %180 = math.exp %179 : vector<8x256xf32>
    %cst_51 = arith.constant 1.000000e+00 : f32
    %181 = vector.broadcast %cst_51 : f32 to vector<8x256xf32>
    %182 = arith.addf %181, %180 : vector<8x256xf32>
    %183 = arith.divf %181, %182 : vector<8x256xf32>
    %184 = vector.extract_strided_slice %171 {offsets = [0, 512], sizes = [8, 256], strides = [1, 1]} : vector<8x1024xf32> to vector<8x256xf32>
    %185 = math.tanh %184 : vector<8x256xf32>
    %186 = vector.extract_strided_slice %171 {offsets = [0, 768], sizes = [8, 256], strides = [1, 1]} : vector<8x1024xf32> to vector<8x256xf32>
    %187 = arith.negf %186 : vector<8x256xf32>
    %188 = math.exp %187 : vector<8x256xf32>
    %cst_52 = arith.constant 1.000000e+00 : f32
    %189 = vector.broadcast %cst_52 : f32 to vector<8x256xf32>
    %190 = arith.addf %189, %188 : vector<8x256xf32>
    %191 = arith.divf %189, %190 : vector<8x256xf32>
    %192 = arith.mulf %183, %165 : vector<8x256xf32>
    %193 = arith.mulf %177, %185 : vector<8x256xf32>
    %194 = arith.addf %192, %193 : vector<8x256xf32>
    %195 = math.tanh %194 : vector<8x256xf32>
    %196 = arith.mulf %191, %195 : vector<8x256xf32>
    %197 = vector.extract_strided_slice %21 {offsets = [16, 0], sizes = [8, 1024], strides = [1, 1]} : vector<56x1024xf32> to vector<8x1024xf32>
    %c0_53 = arith.constant 0 : index
    %c0_54 = arith.constant 0 : index
    %198 = vector.load %arg6[%c0_53, %c0_54] : memref<256x1024xf32, #tpu.memory_space<vmem>>, vector<256x1024xf32>
    %cst_55 = arith.constant dense<0.000000e+00> : vector<8x1024xf32>
    %199 = tpu.matmul %196, %198, %cst_55 {dimension_numbers = #tpu.dot_dimension_numbers<[1], [0], [0], [1], [0, 0, 1, 1], [], []>} : vector<8x256xf32>, vector<256x1024xf32>, vector<8x1024xf32> -> vector<8x1024xf32>
    %200 = arith.addf %197, %199 : vector<8x1024xf32>
    %201 = vector.extract_strided_slice %200 {offsets = [0, 0], sizes = [8, 256], strides = [1, 1]} : vector<8x1024xf32> to vector<8x256xf32>
    %202 = arith.negf %201 : vector<8x256xf32>
    %203 = math.exp %202 : vector<8x256xf32>
    %cst_56 = arith.constant 1.000000e+00 : f32
    %204 = vector.broadcast %cst_56 : f32 to vector<8x256xf32>
    %205 = arith.addf %204, %203 : vector<8x256xf32>
    %206 = arith.divf %204, %205 : vector<8x256xf32>
    %207 = vector.extract_strided_slice %200 {offsets = [0, 256], sizes = [8, 256], strides = [1, 1]} : vector<8x1024xf32> to vector<8x256xf32>
    %208 = arith.negf %207 : vector<8x256xf32>
    %209 = math.exp %208 : vector<8x256xf32>
    %cst_57 = arith.constant 1.000000e+00 : f32
    %210 = vector.broadcast %cst_57 : f32 to vector<8x256xf32>
    %211 = arith.addf %210, %209 : vector<8x256xf32>
    %212 = arith.divf %210, %211 : vector<8x256xf32>
    %213 = vector.extract_strided_slice %200 {offsets = [0, 512], sizes = [8, 256], strides = [1, 1]} : vector<8x1024xf32> to vector<8x256xf32>
    %214 = math.tanh %213 : vector<8x256xf32>
    %215 = vector.extract_strided_slice %200 {offsets = [0, 768], sizes = [8, 256], strides = [1, 1]} : vector<8x1024xf32> to vector<8x256xf32>
    %216 = arith.negf %215 : vector<8x256xf32>
    %217 = math.exp %216 : vector<8x256xf32>
    %cst_58 = arith.constant 1.000000e+00 : f32
    %218 = vector.broadcast %cst_58 : f32 to vector<8x256xf32>
    %219 = arith.addf %218, %217 : vector<8x256xf32>
    %220 = arith.divf %218, %219 : vector<8x256xf32>
    %221 = arith.mulf %212, %194 : vector<8x256xf32>
    %222 = arith.mulf %206, %214 : vector<8x256xf32>
    %223 = arith.addf %221, %222 : vector<8x256xf32>
    %224 = math.tanh %223 : vector<8x256xf32>
    %225 = arith.mulf %220, %224 : vector<8x256xf32>
    %226 = vector.extract_strided_slice %21 {offsets = [8, 0], sizes = [8, 1024], strides = [1, 1]} : vector<56x1024xf32> to vector<8x1024xf32>
    %c0_59 = arith.constant 0 : index
    %c0_60 = arith.constant 0 : index
    %227 = vector.load %arg6[%c0_59, %c0_60] : memref<256x1024xf32, #tpu.memory_space<vmem>>, vector<256x1024xf32>
    %cst_61 = arith.constant dense<0.000000e+00> : vector<8x1024xf32>
    %228 = tpu.matmul %225, %227, %cst_61 {dimension_numbers = #tpu.dot_dimension_numbers<[1], [0], [0], [1], [0, 0, 1, 1], [], []>} : vector<8x256xf32>, vector<256x1024xf32>, vector<8x1024xf32> -> vector<8x1024xf32>
    %229 = arith.addf %226, %228 : vector<8x1024xf32>
    %230 = vector.extract_strided_slice %229 {offsets = [0, 0], sizes = [8, 256], strides = [1, 1]} : vector<8x1024xf32> to vector<8x256xf32>
    %231 = arith.negf %230 : vector<8x256xf32>
    %232 = math.exp %231 : vector<8x256xf32>
    %cst_62 = arith.constant 1.000000e+00 : f32
    %233 = vector.broadcast %cst_62 : f32 to vector<8x256xf32>
    %234 = arith.addf %233, %232 : vector<8x256xf32>
    %235 = arith.divf %233, %234 : vector<8x256xf32>
    %236 = vector.extract_strided_slice %229 {offsets = [0, 256], sizes = [8, 256], strides = [1, 1]} : vector<8x1024xf32> to vector<8x256xf32>
    %237 = arith.negf %236 : vector<8x256xf32>
    %238 = math.exp %237 : vector<8x256xf32>
    %cst_63 = arith.constant 1.000000e+00 : f32
    %239 = vector.broadcast %cst_63 : f32 to vector<8x256xf32>
    %240 = arith.addf %239, %238 : vector<8x256xf32>
    %241 = arith.divf %239, %240 : vector<8x256xf32>
    %242 = vector.extract_strided_slice %229 {offsets = [0, 512], sizes = [8, 256], strides = [1, 1]} : vector<8x1024xf32> to vector<8x256xf32>
    %243 = math.tanh %242 : vector<8x256xf32>
    %244 = vector.extract_strided_slice %229 {offsets = [0, 768], sizes = [8, 256], strides = [1, 1]} : vector<8x1024xf32> to vector<8x256xf32>
    %245 = arith.negf %244 : vector<8x256xf32>
    %246 = math.exp %245 : vector<8x256xf32>
    %cst_64 = arith.constant 1.000000e+00 : f32
    %247 = vector.broadcast %cst_64 : f32 to vector<8x256xf32>
    %248 = arith.addf %247, %246 : vector<8x256xf32>
    %249 = arith.divf %247, %248 : vector<8x256xf32>
    %250 = arith.mulf %241, %223 : vector<8x256xf32>
    %251 = arith.mulf %235, %243 : vector<8x256xf32>
    %252 = arith.addf %250, %251 : vector<8x256xf32>
    %253 = math.tanh %252 : vector<8x256xf32>
    %254 = arith.mulf %249, %253 : vector<8x256xf32>
    %255 = vector.extract_strided_slice %21 {offsets = [0, 0], sizes = [8, 1024], strides = [1, 1]} : vector<56x1024xf32> to vector<8x1024xf32>
    %c0_65 = arith.constant 0 : index
    %c0_66 = arith.constant 0 : index
    %256 = vector.load %arg6[%c0_65, %c0_66] : memref<256x1024xf32, #tpu.memory_space<vmem>>, vector<256x1024xf32>
    %cst_67 = arith.constant dense<0.000000e+00> : vector<8x1024xf32>
    %257 = tpu.matmul %254, %256, %cst_67 {dimension_numbers = #tpu.dot_dimension_numbers<[1], [0], [0], [1], [0, 0, 1, 1], [], []>} : vector<8x256xf32>, vector<256x1024xf32>, vector<8x1024xf32> -> vector<8x1024xf32>
    %258 = arith.addf %255, %257 : vector<8x1024xf32>
    %259 = vector.extract_strided_slice %258 {offsets = [0, 0], sizes = [8, 256], strides = [1, 1]} : vector<8x1024xf32> to vector<8x256xf32>
    %260 = arith.negf %259 : vector<8x256xf32>
    %261 = math.exp %260 : vector<8x256xf32>
    %cst_68 = arith.constant 1.000000e+00 : f32
    %262 = vector.broadcast %cst_68 : f32 to vector<8x256xf32>
    %263 = arith.addf %262, %261 : vector<8x256xf32>
    %264 = arith.divf %262, %263 : vector<8x256xf32>
    %265 = vector.extract_strided_slice %258 {offsets = [0, 256], sizes = [8, 256], strides = [1, 1]} : vector<8x1024xf32> to vector<8x256xf32>
    %266 = arith.negf %265 : vector<8x256xf32>
    %267 = math.exp %266 : vector<8x256xf32>
    %cst_69 = arith.constant 1.000000e+00 : f32
    %268 = vector.broadcast %cst_69 : f32 to vector<8x256xf32>
    %269 = arith.addf %268, %267 : vector<8x256xf32>
    %270 = arith.divf %268, %269 : vector<8x256xf32>
    %271 = vector.extract_strided_slice %258 {offsets = [0, 512], sizes = [8, 256], strides = [1, 1]} : vector<8x1024xf32> to vector<8x256xf32>
    %272 = math.tanh %271 : vector<8x256xf32>
    %273 = vector.extract_strided_slice %258 {offsets = [0, 768], sizes = [8, 256], strides = [1, 1]} : vector<8x1024xf32> to vector<8x256xf32>
    %274 = arith.negf %273 : vector<8x256xf32>
    %275 = math.exp %274 : vector<8x256xf32>
    %cst_70 = arith.constant 1.000000e+00 : f32
    %276 = vector.broadcast %cst_70 : f32 to vector<8x256xf32>
    %277 = arith.addf %276, %275 : vector<8x256xf32>
    %278 = arith.divf %276, %277 : vector<8x256xf32>
    %279 = arith.mulf %270, %252 : vector<8x256xf32>
    %280 = arith.mulf %264, %272 : vector<8x256xf32>
    %281 = arith.addf %279, %280 : vector<8x256xf32>
    %282 = math.tanh %281 : vector<8x256xf32>
    %283 = arith.mulf %278, %282 : vector<8x256xf32>
    %284 = vector.extract_strided_slice %9 {offsets = [0, 0], sizes = [48, 32], strides = [1, 1]} : vector<64x32xf32> to vector<48x32xf32>
    %c0_71 = arith.constant 0 : index
    %c0_72 = arith.constant 0 : index
    %c0_73 = arith.constant 0 : index
    %285 = vector.load %arg9[%c0_71, %c0_72, %c0_73] : memref<3x32x128xf32, #tpu.memory_space<vmem>>, vector<1x32x128xf32>
    %286 = vector.shape_cast %285 : vector<1x32x128xf32> to vector<32x128xf32>
    %cst_74 = arith.constant dense<0.000000e+00> : vector<48x128xf32>
    %287 = tpu.matmul %284, %286, %cst_74 {dimension_numbers = #tpu.dot_dimension_numbers<[1], [0], [0], [1], [0, 0, 1, 1], [], []>} : vector<48x32xf32>, vector<32x128xf32>, vector<48x128xf32> -> vector<48x128xf32>
    %288 = vector.extract_strided_slice %9 {offsets = [8, 0], sizes = [48, 32], strides = [1, 1]} : vector<64x32xf32> to vector<48x32xf32>
    %c1 = arith.constant 1 : index
    %c0_75 = arith.constant 0 : index
    %c0_76 = arith.constant 0 : index
    %289 = vector.load %arg9[%c1, %c0_75, %c0_76] : memref<3x32x128xf32, #tpu.memory_space<vmem>>, vector<1x32x128xf32>
    %290 = vector.shape_cast %289 : vector<1x32x128xf32> to vector<32x128xf32>
    %cst_77 = arith.constant dense<0.000000e+00> : vector<48x128xf32>
    %291 = tpu.matmul %288, %290, %cst_77 {dimension_numbers = #tpu.dot_dimension_numbers<[1], [0], [0], [1], [0, 0, 1, 1], [], []>} : vector<48x32xf32>, vector<32x128xf32>, vector<48x128xf32> -> vector<48x128xf32>
    %292 = arith.addf %287, %291 : vector<48x128xf32>
    %293 = vector.extract_strided_slice %9 {offsets = [16, 0], sizes = [48, 32], strides = [1, 1]} : vector<64x32xf32> to vector<48x32xf32>
    %c2 = arith.constant 2 : index
    %c0_78 = arith.constant 0 : index
    %c0_79 = arith.constant 0 : index
    %294 = vector.load %arg9[%c2, %c0_78, %c0_79] : memref<3x32x128xf32, #tpu.memory_space<vmem>>, vector<1x32x128xf32>
    %295 = vector.shape_cast %294 : vector<1x32x128xf32> to vector<32x128xf32>
    %cst_80 = arith.constant dense<0.000000e+00> : vector<48x128xf32>
    %296 = tpu.matmul %293, %295, %cst_80 {dimension_numbers = #tpu.dot_dimension_numbers<[1], [0], [0], [1], [0, 0, 1, 1], [], []>} : vector<48x32xf32>, vector<32x128xf32>, vector<48x128xf32> -> vector<48x128xf32>
    %297 = arith.addf %292, %296 : vector<48x128xf32>
    %c0_81 = arith.constant 0 : index
    %c0_82 = arith.constant 0 : index
    %298 = vector.load %arg10[%c0_81, %c0_82] : memref<1x128xf32, #tpu.memory_space<vmem>>, vector<1x128xf32>
    %299 = vector.broadcast %298 : vector<1x128xf32> to vector<48x128xf32>
    %300 = arith.addf %297, %299 : vector<48x128xf32>
    %cst_83 = arith.constant 0.000000e+00 : f32
    %301 = vector.broadcast %cst_83 : f32 to vector<48x128xf32>
    %302 = arith.maximumf %300, %301 : vector<48x128xf32>
    %303 = vector.extract_strided_slice %302 {offsets = [0, 0], sizes = [8, 128], strides = [1, 1]} : vector<48x128xf32> to vector<8x128xf32>
    %304 = vector.extract_strided_slice %302 {offsets = [8, 0], sizes = [8, 128], strides = [1, 1]} : vector<48x128xf32> to vector<8x128xf32>
    %305 = arith.maximumf %303, %304 : vector<8x128xf32>
    %306 = vector.extract_strided_slice %302 {offsets = [16, 0], sizes = [8, 128], strides = [1, 1]} : vector<48x128xf32> to vector<8x128xf32>
    %307 = arith.maximumf %305, %306 : vector<8x128xf32>
    %308 = vector.extract_strided_slice %302 {offsets = [24, 0], sizes = [8, 128], strides = [1, 1]} : vector<48x128xf32> to vector<8x128xf32>
    %309 = arith.maximumf %307, %308 : vector<8x128xf32>
    %310 = vector.extract_strided_slice %302 {offsets = [32, 0], sizes = [8, 128], strides = [1, 1]} : vector<48x128xf32> to vector<8x128xf32>
    %311 = arith.maximumf %309, %310 : vector<8x128xf32>
    %312 = vector.extract_strided_slice %302 {offsets = [40, 0], sizes = [8, 128], strides = [1, 1]} : vector<48x128xf32> to vector<8x128xf32>
    %313 = arith.maximumf %311, %312 : vector<8x128xf32>
    %314 = tpu.concatenate %313, %80, %283 in 1 : vector<8x128xf32>, vector<8x256xf32>, vector<8x256xf32> -> vector<8x640xf32>
    %c0_84 = arith.constant 0 : index
    %c0_85 = arith.constant 0 : index
    %315 = vector.load %arg11[%c0_84, %c0_85] : memref<640x128xf32, #tpu.memory_space<vmem>>, vector<640x128xf32>
    %cst_86 = arith.constant dense<0.000000e+00> : vector<8x128xf32>
    %316 = tpu.matmul %314, %315, %cst_86 {dimension_numbers = #tpu.dot_dimension_numbers<[1], [0], [0], [1], [0, 0, 1, 1], [], []>} : vector<8x640xf32>, vector<640x128xf32>, vector<8x128xf32> -> vector<8x128xf32>
    %c0_87 = arith.constant 0 : index
    %c0_88 = arith.constant 0 : index
    %317 = vector.load %arg12[%c0_87, %c0_88] : memref<1x128xf32, #tpu.memory_space<vmem>>, vector<1x128xf32>
    %318 = vector.broadcast %317 : vector<1x128xf32> to vector<8x128xf32>
    %319 = arith.addf %316, %318 : vector<8x128xf32>
    %c0_89 = arith.constant 0 : index
    %c0_90 = arith.constant 0 : index
    %320 = vector.load %arg13[%c0_89, %c0_90] : memref<8x128xf32, #tpu.memory_space<vmem>>, vector<8x128xf32>
    tpu.vector_store %arg13[%c0_89, %c0_90], %319 {strides = array<i32>} : memref<8x128xf32, #tpu.memory_space<vmem>>, vector<8x128xf32>,
    return
  }
}

</mosaic_0001>

<bundles_post_ra>
// kernel: _lambda_.1
= control target key start
LH: loop header
LB: loop body
LE: loop exit
PB: predicated region body
PF: predicated region fallthrough
CT: control target
= control target key end

     0   :  { %18 = vsyncpa [#allocation3], 0  ;;  %s11613_s0 = inlined_call_operand.vmem [shape: s32[64,1], index: 0, kind: input, shape index: {}]   ;;  %s11614_s1 = inlined_call_operand.vmem [shape: f32[128,32], index: 1, kind: input, shape index: {}]   ;;  %s11615_s2 = inlined_call_operand.vmem [shape: f32[128,32], index: 2, kind: input, shape index: {}]   ;;  %s11616_s3 = inlined_call_operand.vmem [shape: f32[32,1024], index: 3, kind: input, shape index: {}]   ;;  %s11617_s4 = inlined_call_operand.hbm [shape: f32[32,1024], index: 4, kind: input, shape index: {}]   ;;  %s11618_s5 = inlined_call_operand.hbm [shape: f32[256,1024], index: 5, kind: input, shape index: {}]   ;;  %s11619_s6 = inlined_call_operand.hbm [shape: f32[256,1024], index: 6, kind: input, shape index: {}]   ;;  %s11620_s7 = inlined_call_operand.vmem [shape: f32[1,1024], index: 7, kind: input, shape index: {}]   ;;  %s11621_s8 = inlined_call_operand.vmem [shape: f32[1,1024], index: 8, kind: input, shape index: {}]   ;;  %s11622_s9 = inlined_call_operand.vmem [shape: f32[3,32,128], index: 9, kind: input, shape index: {}]   ;;  %s11623_s10 = inlined_call_operand.vmem [shape: f32[1,128], index: 10, kind: input, shape index: {}]   ;;  %s11624_s11 = inlined_call_operand.hbm [shape: f32[640,128], index: 11, kind: input, shape index: {}]   ;;  %s11625_s12 = inlined_call_operand.vmem [shape: f32[1,128], index: 12, kind: input, shape index: {}]   ;;  %s11626_s13 = inlined_call_operand.vmem [shape: f32[8,128], index: 13, kind: output, shape index: {}]  }
   0x1   :  { %19 = vsyncpa [#allocation5], 0 }
   0x2   :  { %20 = vsyncpa [#allocation8], 0  ;;  %s7415_s25 = smov [#allocation4]   ;;  %s7416_s27 = smov [#allocation2]  }
   0x3   :  { %s46_s26 = sshll.u32 %s7415_s25, 4  ;;  %s34_s28 = sshll.u32 %s7416_s27, 4  ;;  %s47_s26 = int_to_ptr.vmem [resolvable:$true] %s46_s26  ;;  %s35_s28 = int_to_ptr.vmem [resolvable:$true] %s34_s28 }
   0x4   :  { %s7337_s29 = scalar_lea.vmem %s47_s26, 32768  ;;  %p7342_p1 = scmp.lt.s32.totalorder %s47_s26, %s47_s26 }
   0x5   :  { %p7338_p0 = scmp.ne.s32.totalorder %s47_s26, %s7337_s29  ;;  %p7343_p2 = scmp.lt.s32.totalorder %s7337_s29, %s7337_s29 }
   0x7   :  { %p7344_p3 = por %p7343_p2, %p7342_p1 }
   0x9   :  { %p7345_p4 = pnand %p7344_p3, %p7338_p0 }
   0xb   :  { %7348 = shalt.err (!%p7345_p4)
}
   0xc   :  { %s7417_s30 = smov 1024   ;;  %s7418_s14 = smov 64  }
   0xd   :  { %52 = dma.hbm_to_vmem [thread:$0]  %s11618_s5, 32768, %s47_s26, [#allocation5], %s7417_s30, %s7417_s30, %s7418_s14  }
   0xe   :  { %s7357_s17 = scalar_lea.vmem %s35_s28, 4096  ;;  %p7362_p6 = scmp.lt.s32.totalorder %s35_s28, %s35_s28 }
   0xf   :  { %p7358_p5 = scmp.ne.s32.totalorder %s35_s28, %s7357_s17  ;;  %p7363_p7 = scmp.lt.s32.totalorder %s7357_s17, %s7357_s17 }
  0x11   :  { %p7364_p8 = por %p7363_p7, %p7362_p6 }
  0x13   :  { %p7365_p9 = pnand %p7364_p8, %p7358_p5 }
  0x15   :  { %7368 = shalt.err (!%p7365_p9)
}
  0x16   :  { %40 = dma.hbm_to_vmem [thread:$0]  %s11617_s4, 4096, %s35_s28, [#allocation3], %s7417_s30, %s7417_s30, %s7418_s14  }
  0x17   :  { %s7419_s20 = smov [#allocation6]   ;;  %s7420_s22 = smov [#allocation7]  }
  0x18   :  { %s58_s21 = sshll.u32 %s7419_s20, 4  ;;  %s78_s23 = sshll.u32 %s7420_s22, 4  ;;  %s59_s21 = int_to_ptr.vmem [resolvable:$true] %s58_s21  ;;  %s79_s23 = int_to_ptr.vmem [resolvable:$true] %s78_s23 }
  0x19   :  { %s7377_s24 = scalar_lea.vmem %s59_s21, 32768  ;;  %p7382_p11 = scmp.lt.s32.totalorder %s59_s21, %s59_s21 }
  0x1a   :  { %p7378_p10 = scmp.ne.s32.totalorder %s59_s21, %s7377_s24  ;;  %p7383_p12 = scmp.lt.s32.totalorder %s7377_s24, %s7377_s24 }
  0x1c   :  { %p7384_p13 = por %p7383_p12, %p7382_p11 }
  0x1e   :  { %p7385_p0 = pnand %p7384_p13, %p7378_p10 }
  0x20   :  { %7388 = shalt.err (!%p7385_p0)
}
  0x21   :  { %64 = dma.hbm_to_vmem [thread:$0]  %s11619_s6, 32768, %s59_s21, [#allocation5], %s7417_s30, %s7417_s30, %s7418_s14  }
  0x22   :  { %s7397_s26 = scalar_lea.vmem %s79_s23, 10240  ;;  %p7402_p2 = scmp.lt.s32.totalorder %s79_s23, %s79_s23 }
  0x23   :  { %p7398_p1 = scmp.ne.s32.totalorder %s79_s23, %s7397_s26  ;;  %p7403_p3 = scmp.lt.s32.totalorder %s7397_s26, %s7397_s26 }
  0x25   :  { %p7404_p4 = por %p7403_p3, %p7402_p2 }
  0x27   :  { %p7405_p5 = pnand %p7404_p4, %p7398_p1 }
  0x29   :  { %7408 = shalt.err (!%p7405_p5)
}
  0x2a   :  { %s7421_s4 = smov 128   ;;  %s7422_s27 = smov 8  }
  0x2b   :  { %84 = dma.hbm_to_vmem [thread:$0]  %s11624_s11, 10240, %s79_s23, [#allocation8], %s7421_s4, %s7421_s4, %s7422_s27  }
  0x2c   :  { %7409 = dma.done.wait [#allocation3], 4096  }
  0x2d   :  { %7410 = vsyncadd [#allocation3], 4294963200 }
  0x2e   :  { %7411 = dma.done.wait [#allocation5], 65536  }
  0x2f   :  { %7412 = vsyncadd [#allocation5], 4294901760 }
  0x30   :  { %7413 = dma.done.wait [#allocation8], 10240  }
  0x31   :  { %7414 = vsyncadd [#allocation8], 4294957056  ;;  %v7423_v0 = vmov 0   ;;  %v101_v1 = vld [vmem:[%s11613_s0] sm:$0xff]  ;;  %v103_v2 = vld [vmem:[%s11613_s0 + $0x10] sm:$0xff]  ;;  %v99_v43 = vlaneseq  ;;  %v7424_v47 = vmov 1.0  }
  0x32   :  { %6031 = vset.pattern.permute.xlu0 %v7423_v0  ;;  %6032 = vset.pattern.permute.xlu1 %v7423_v0  ;;  %v102_v3 = vld [vmem:[%s11613_s0 + $0x8] sm:$0xff]  ;;  %v104_v4 = vld [vmem:[%s11613_s0 + $0x18] sm:$0xff]  ;;  %v171_v7 = vld [vmem:[%s11614_s1 + $0x70] sm:$0xff]  ;;  %vm473_vm8 = vcmask 261120   ;;  %vm7426_vm9 = vmmov 0  }
  0x33   :  { %110 = vperm.xlu0 %6031, %v101_v1   ;;  %116 = vperm.xlu1 %6032, %v103_v2   ;;  %v172_v5 = vld [vmem:[%s11614_s1 + $0x78] sm:$0xff]  ;;  %v292_v8 = vld [vmem:[%s11615_s2 + $0x70] sm:$0xff]  ;;  %v170_v9 = vld [vmem:[%s11614_s1 + $0x68] sm:$0xff]  ;;  %v100_v44 = vand.u32 127, %v99_v43 }
  0x34   :  { %5845 = vmatprep.subr.mxu0 %v172_v5  ;;  %v293_v6 = vld [vmem:[%s11615_s2 + $0x78] sm:$0xff]  ;;  %v105_v10 = vld [vmem:[%s11613_s0 + $0x20] sm:$0xff]  ;;  %v106_v11 = vld [vmem:[%s11613_s0 + $0x28] sm:$0xff] }
  0x35   :  { %5889 = vmatprep.subr.mxu1 %v293_v6  ;;  %5846 = vmatpush3.msra.mxu0 %v172_v5  ;;  %v291_v12 = vld [vmem:[%s11615_s2 + $0x68] sm:$0xff]  ;;  %v169_v13 = vld [vmem:[%s11614_s1 + $0x60] sm:$0xff]  ;;  %v107_v15 = vld [vmem:[%s11613_s0 + $0x30] sm:$0xff] }
  0x36   :  { %5890 = vmatpush3.msra.mxu1 %v293_v6  ;;  %5847 = vmatprep.subr.mxu0 %v171_v7  ;;  %v290_v14 = vld [vmem:[%s11615_s2 + $0x60] sm:$0xff]  ;;  %v108_v16 = vld [vmem:[%s11613_s0 + $0x38] sm:$0xff]  ;;  %v167_v19 = vld [vmem:[%s11614_s1 + $0x50] sm:$0xff] }
  0x37   :  { %113 = vperm.xlu0 %6031, %v102_v3   ;;  %119 = vperm.xlu1 %6032, %v104_v4   ;;  %v168_v17 = vld [vmem:[%s11614_s1 + $0x58] sm:$0xff]  ;;  %v288_v20 = vld [vmem:[%s11615_s2 + $0x50] sm:$0xff]  ;;  %v166_v21 = vld [vmem:[%s11614_s1 + $0x48] sm:$0xff]  ;;  %v11627_v4 = vmov 0.0  }
  0x38   :  { %5891 = vmatprep.subr.mxu1 %v292_v8  ;;  %5848 = vmatpush3.msra.mxu0 %v171_v7  ;;  %v289_v18 = vld [vmem:[%s11615_s2 + $0x58] sm:$0xff]  ;;  %v287_v22 = vld [vmem:[%s11615_s2 + $0x48] sm:$0xff]  ;;  %v165_v23 = vld [vmem:[%s11614_s1 + $0x40] sm:$0xff] }
  0x39   :  { %5892 = vmatpush3.msra.mxu1 %v292_v8  ;;  %5849 = vmatprep.subr.mxu0 %v170_v9  ;;  %v286_v24 = vld [vmem:[%s11615_s2 + $0x40] sm:$0xff]  ;;  %v164_v25 = vld [vmem:[%s11614_s1 + $0x38] sm:$0xff]  ;;  %v163_v27 = vld [vmem:[%s11614_s1 + $0x30] sm:$0xff] }
  0x3a   :  { %5893 = vmatprep.subr.mxu1 %v291_v12  ;;  %5850 = vmatpush3.msra.mxu0 %v170_v9  ;;  %v285_v26 = vld [vmem:[%s11615_s2 + $0x38] sm:$0xff]  ;;  %v284_v28 = vld [vmem:[%s11615_s2 + $0x30] sm:$0xff]  ;;  %v162_v29 = vld [vmem:[%s11614_s1 + $0x28] sm:$0xff] }
  0x3b   :  { %122 = vperm.xlu0 %6031, %v105_v10   ;;  %125 = vperm.xlu1 %6032, %v106_v11   ;;  %v283_v30 = vld [vmem:[%s11615_s2 + $0x28] sm:$0xff]  ;;  %v161_v31 = vld [vmem:[%s11614_s1 + $0x20] sm:$0xff]  ;;  %v160_v33 = vld [vmem:[%s11614_s1 + $0x18] sm:$0xff] }
  0x3c   :  { %5894 = vmatpush3.msra.mxu1 %v291_v12  ;;  %5851 = vmatprep.subr.mxu0 %v169_v13  ;;  %v282_v32 = vld [vmem:[%s11615_s2 + $0x20] sm:$0xff]  ;;  %v281_v34 = vld [vmem:[%s11615_s2 + $0x18] sm:$0xff]  ;;  %v159_v35 = vld [vmem:[%s11614_s1 + $0x10] sm:$0xff] }
  0x3d   :  { %5895 = vmatprep.subr.mxu1 %v290_v14  ;;  %5852 = vmatpush3.msra.mxu0 %v169_v13  ;;  %v280_v36 = vld [vmem:[%s11615_s2 + $0x10] sm:$0xff]  ;;  %v158_v37 = vld [vmem:[%s11614_s1 + $0x8] sm:$0xff]  ;;  %v157_v39 = vld [vmem:[%s11614_s1] sm:$0xff] }
  0x3e   :  { %5896 = vmatpush3.msra.mxu1 %v290_v14  ;;  %5853 = vmatprep.subr.mxu0 %v168_v17  ;;  %v279_v38 = vld [vmem:[%s11615_s2 + $0x8] sm:$0xff]  ;;  %v278_v40 = vld [vmem:[%s11615_s2] sm:$0xff]  ;;  %v430_v42 = vld [vmem:[%s11616_s3 + $0xf8] sm:$0xff] }
  0x3f   :  { %128 = vperm.xlu0 %6031, %v107_v15   ;;  %131 = vperm.xlu1 %6032, %v108_v16   ;;  %v424_v41 = vld [vmem:[%s11616_s3 + $0xc8] sm:$0xff]  ;;  %v423_v50 = vld [vmem:[%s11616_s3 + $0xc0] sm:$0xff]  ;;  %v429_v51 = vld [vmem:[%s11616_s3 + $0xf0] sm:$0xff] }
  0x40   :  { %5897 = vmatprep.subr.mxu1 %v289_v18  ;;  %5854 = vmatpush3.msra.mxu0 %v168_v17  ;;  %v416_v52 = vld [vmem:[%s11616_s3 + $0x88] sm:$0xff]  ;;  %v422_v53 = vld [vmem:[%s11616_s3 + $0xb8] sm:$0xff]  ;;  %v415_v56 = vld [vmem:[%s11616_s3 + $0x80] sm:$0xff] }
  0x41   :  { %5898 = vmatpush3.msra.mxu1 %v289_v18  ;;  %5855 = vmatprep.subr.mxu0 %v167_v19  ;;  %v421_v57 = vld [vmem:[%s11616_s3 + $0xb0] sm:$0xff]  ;;  %v408_v58 = vld [vmem:[%s11616_s3 + $0x48] sm:$0xff]  ;;  %v414_v59 = vld [vmem:[%s11616_s3 + $0x78] sm:$0xff] }
  0x42   :  { %5899 = vmatprep.subr.mxu1 %v288_v20  ;;  %5856 = vmatpush3.msra.mxu0 %v167_v19  ;;  %v407_v62 = vld [vmem:[%s11616_s3 + $0x40] sm:$0xff]  ;;  %v400_v63 = vld [vmem:[%s11616_s3 + $0x8] sm:$0xff]  ;;  %v413_v0 = vld [vmem:[%s11616_s3 + $0x70] sm:$0xff] }
  0x43   :  { %5900 = vmatpush3.msra.mxu1 %v288_v20  ;;  %5857 = vmatprep.subr.mxu0 %v166_v21  ;;  %v399_v1 = vld [vmem:[%s11616_s3] sm:$0xff]  ;;  %v406_v2 = vld [vmem:[%s11616_s3 + $0x38] sm:$0xff]  ;;  %v405_v3 = vld [vmem:[%s11616_s3 + $0x30] sm:$0xff] }
  0x44   :  { %5901 = vmatprep.subr.mxu1 %v287_v22  ;;  %5858 = vmatpush3.msra.mxu0 %v166_v21  ;;  %v426_v5 = vld [vmem:[%s11616_s3 + $0xd8] sm:$0xff]  ;;  %v425_v8 = vld [vmem:[%s11616_s3 + $0xd0] sm:$0xff] }
  0x45   :  { %5902 = vmatpush3.msra.mxu1 %v287_v22  ;;  %5859 = vmatprep.subr.mxu0 %v165_v23  ;;  %v815_v6 = vld [vmem:[#allocation2 + $0xd8] sm:$0xff]  ;;  %v814_v9 = vld [vmem:[#allocation2 + $0xd0] sm:$0xff] }
  0x46   :  { %5903 = vmatprep.subr.mxu1 %v286_v24  ;;  %5860 = vmatpush3.msra.mxu0 %v165_v23  ;;  %v418_v11 = vld [vmem:[%s11616_s3 + $0x98] sm:$0xff]  ;;  %v417_v13 = vld [vmem:[%s11616_s3 + $0x90] sm:$0xff]  ;;  %v428_v23 = vld [vmem:[%s11616_s3 + $0xe8] sm:$0xff] }
  0x47   :  { %5904 = vmatpush3.msra.mxu1 %v286_v24  ;;  %5861 = vmatprep.subr.mxu0 %v164_v25  ;;  %v807_v12 = vld [vmem:[#allocation2 + $0x98] sm:$0xff]  ;;  %v806_v14 = vld [vmem:[#allocation2 + $0x90] sm:$0xff] }
  0x48   :  { %5905 = vmatprep.subr.mxu1 %v285_v26  ;;  %5862 = vmatpush3.msra.mxu0 %v164_v25  ;;  %v410_v15 = vld [vmem:[%s11616_s3 + $0x58] sm:$0xff]  ;;  %v409_v17 = vld [vmem:[%s11616_s3 + $0x50] sm:$0xff]  ;;  %v427_v25 = vld [vmem:[%s11616_s3 + $0xe0] sm:$0xff] }
  0x49   :  { %5906 = vmatpush3.msra.mxu1 %v285_v26  ;;  %5863 = vmatprep.subr.mxu0 %v163_v27  ;;  %v799_v16 = vld [vmem:[#allocation2 + $0x58] sm:$0xff]  ;;  %v798_v18 = vld [vmem:[#allocation2 + $0x50] sm:$0xff]  ;;  %v420_v26 = vld [vmem:[%s11616_s3 + $0xa8] sm:$0xff] }
  0x4a   :  { %5907 = vmatprep.subr.mxu1 %v284_v28  ;;  %5864 = vmatpush3.msra.mxu0 %v163_v27  ;;  %v402_v19 = vld [vmem:[%s11616_s3 + $0x18] sm:$0xff]  ;;  %v401_v21 = vld [vmem:[%s11616_s3 + $0x10] sm:$0xff]  ;;  %v419_v27 = vld [vmem:[%s11616_s3 + $0xa0] sm:$0xff] }
  0x4b   :  { %5908 = vmatpush3.msra.mxu1 %v284_v28  ;;  %5865 = vmatprep.subr.mxu0 %v162_v29  ;;  %v791_v20 = vld [vmem:[#allocation2 + $0x18] sm:$0xff]  ;;  %v790_v22 = vld [vmem:[#allocation2 + $0x10] sm:$0xff]  ;;  %v412_v28 = vld [vmem:[%s11616_s3 + $0x68] sm:$0xff] }
  0x4c   :  { %5909 = vmatprep.subr.mxu1 %v283_v30  ;;  %5866 = vmatpush3.msra.mxu0 %v162_v29 }
  0x4d   :  { %5910 = vmatpush3.msra.mxu1 %v283_v30  ;;  %5867 = vmatprep.subr.mxu0 %v161_v31  ;;  %v411_v30 = vld [vmem:[%s11616_s3 + $0x60] sm:$0xff] }
  0x4e   :  { %5911 = vmatprep.subr.mxu1 %v282_v32  ;;  %5868 = vmatpush3.msra.mxu0 %v161_v31  ;;  %v404_v31 = vld [vmem:[%s11616_s3 + $0x28] sm:$0xff] }
  0x4f   :  { %5912 = vmatpush3.msra.mxu1 %v282_v32  ;;  %5869 = vmatprep.subr.mxu0 %v160_v33  ;;  %v403_v32 = vld [vmem:[%s11616_s3 + $0x20] sm:$0xff] }
  0x50   :  { %5913 = vmatprep.subr.mxu1 %v281_v34  ;;  %5870 = vmatpush3.msra.mxu0 %v160_v33  ;;  %v813_v33 = vld [vmem:[#allocation2 + $0xc8] sm:$0xff] }
  0x51   :  { %5914 = vmatpush3.msra.mxu1 %v281_v34  ;;  %5871 = vmatprep.subr.mxu0 %v159_v35  ;;  %v812_v34 = vld [vmem:[#allocation2 + $0xc0] sm:$0xff] }
  0x52   :  { %5915 = vmatprep.subr.mxu1 %v280_v36  ;;  %5872 = vmatpush3.msra.mxu0 %v159_v35  ;;  %v805_v35 = vld [vmem:[#allocation2 + $0x88] sm:$0xff] }
  0x53   :  { %5916 = vmatpush3.msra.mxu1 %v280_v36  ;;  %5873 = vmatprep.subr.mxu0 %v158_v37 }
  0x54   :  { %5917 = vmatprep.subr.mxu1 %v279_v38  ;;  %5874 = vmatpush3.msra.mxu0 %v158_v37  ;;  %v804_v37 = vld [vmem:[#allocation2 + $0x80] sm:$0xff] }
  0x55   :  { %5918 = vmatpush3.msra.mxu1 %v279_v38  ;;  %5875 = vmatprep.subr.mxu0 %v157_v39  ;;  %v797_v38 = vld [vmem:[#allocation2 + $0x48] sm:$0xff] }
  0x56   :  { %5919 = vmatprep.subr.mxu1 %v278_v40  ;;  %5876 = vmatpush3.msra.mxu0 %v157_v39  ;;  %v796_v39 = vld [vmem:[#allocation2 + $0x40] sm:$0xff] }
  0x57   :  { %5920 = vmatpush3.msra.mxu1 %v278_v40  ;;  %504 = vmatprep.subr.mxu0 %v424_v41  ;;  %v789_v40 = vld [vmem:[#allocation2 + $0x8] sm:$0xff] }
  0x58   :  { %735 = vmatprep.subr.mxu1 %v430_v42  ;;  %v788_v42 = vld [vmem:[#allocation2] sm:$0xff] }
  0xae   :  { %v111_v45 = vpop.permute.xlu0 %110  ;;  %v117_v46 = vpop.permute.xlu1 %116 }
  0xaf   :  { %vm133_vm0 = vcmp.eq.s32.totalorder %v111_v45, %v100_v44  ;;  %vm135_vm1 = vcmp.eq.s32.totalorder %v117_v46, %v100_v44  ;;  %v819_v45 = vld [vmem:[#allocation2 + $0xf8] sm:$0xff]  ;;  %v816_v46 = vld [vmem:[#allocation2 + $0xe0] sm:$0xff] }
  0xb0   :  { %5877 = vmatprep.mubr.msk.f32.mxu0 %vm133_vm0, %v7424_v47  ;;  %5921 = vmatprep.mubr.msk.f32.mxu1 %vm133_vm0, %v7424_v47 }
  0xb2   :  { %v114_v48 = vpop.permute.xlu0 %113  ;;  %v120_v49 = vpop.permute.xlu1 %119 }
  0xb3   :  { %vm134_vm2 = vcmp.eq.s32.totalorder %v114_v48, %v100_v44  ;;  %vm136_vm3 = vcmp.eq.s32.totalorder %v120_v49, %v100_v44  ;;  %v811_v49 = vld [vmem:[#allocation2 + $0xb8] sm:$0xff] }
  0xb4   :  { %5878 = vmatmul.mubr.msk.f32.vlgmr.msra.gmra.mxu0 %vm134_vm2, %v7424_v47  ;;  %5922 = vmatmul.mubr.msk.f32.vlgmr.msra.gmra.mxu1 %vm134_vm2, %v7424_v47 }
  0xb5   :  { %5880 = vmatprep.mubr.msk.f32.mxu0 %vm135_vm1, %v7424_v47  ;;  %5924 = vmatprep.mubr.msk.f32.mxu1 %vm135_vm1, %v7424_v47 }
  0xb6   :  { %v123_v54 = vpop.permute.xlu0 %122  ;;  %v126_v55 = vpop.permute.xlu1 %125  ;;  %505 = vmatpush1.msra.mxu0 %v423_v50  ;;  %736 = vmatpush1.msra.mxu1 %v429_v51  ;;  %v810_v50 = vld [vmem:[#allocation2 + $0xb0] sm:$0xff] }
  0xb7   :  { %vm137_vm4 = vcmp.eq.s32.totalorder %v123_v54, %v100_v44  ;;  %506 = vmatprep.subr.mxu0 %v416_v52  ;;  %737 = vmatprep.subr.mxu1 %v422_v53  ;;  %vm138_vm5 = vcmp.eq.s32.totalorder %v126_v55, %v100_v44  ;;  %v809_v52 = vld [vmem:[#allocation2 + $0xa8] sm:$0xff]  ;;  %v803_v53 = vld [vmem:[#allocation2 + $0x78] sm:$0xff]  ;;  %v802_v54 = vld [vmem:[#allocation2 + $0x70] sm:$0xff] }
  0xb8   :  { %5881 = vmatmul.mubr.msk.f32.gmra.mxu0 %vm136_vm3, %v7424_v47  ;;  %5925 = vmatmul.mubr.msk.f32.gmra.mxu1 %vm136_vm3, %v7424_v47  ;;  %v808_v55 = vld [vmem:[#allocation2 + $0xa0] sm:$0xff] }
  0xb9   :  { %5883 = vmatprep.mubr.msk.f32.mxu0 %vm137_vm4, %v7424_v47  ;;  %5927 = vmatprep.mubr.msk.f32.mxu1 %vm137_vm4, %v7424_v47 }
  0xba   :  { %v129_v60 = vpop.permute.xlu0 %128  ;;  %v132_v61 = vpop.permute.xlu1 %131  ;;  %507 = vmatpush1.msra.mxu0 %v415_v56  ;;  %738 = vmatpush1.msra.mxu1 %v421_v57  ;;  %v795_v56 = vld [vmem:[#allocation2 + $0x38] sm:$0xff]  ;;  %v794_v57 = vld [vmem:[#allocation2 + $0x30] sm:$0xff] }
  0xbb   :  { %vm139_vm6 = vcmp.eq.s32.totalorder %v129_v60, %v100_v44  ;;  %508 = vmatprep.subr.mxu0 %v408_v58  ;;  %739 = vmatprep.subr.mxu1 %v414_v59  ;;  %vm140_vm7 = vcmp.eq.s32.totalorder %v132_v61, %v100_v44  ;;  %v817_v44 = vld [vmem:[#allocation2 + $0xe8] sm:$0xff]  ;;  %v1431_v58 = vld [vmem:[#allocation4 + $0x3d8] sm:$0xff]  ;;  %v1430_v60 = vld [vmem:[#allocation4 + $0x3d0] sm:$0xff] }
  0xbc   :  { %5884 = vmatmul.mubr.msk.f32.gmra.mxu0 %vm138_vm5, %v7424_v47  ;;  %5928 = vmatmul.mubr.msk.f32.gmra.mxu1 %vm138_vm5, %v7424_v47  ;;  %v801_v59 = vld [vmem:[#allocation2 + $0x68] sm:$0xff]  ;;  %v1423_v61 = vld [vmem:[#allocation4 + $0x398] sm:$0xff] }
  0xbd   :  { %5886 = vmatprep.mubr.msk.f32.mxu0 %vm139_vm6, %v7424_v47  ;;  %5930 = vmatprep.mubr.msk.f32.mxu1 %vm139_vm6, %v7424_v47 }
  0xbe   :  { %509 = vmatpush1.msra.mxu0 %v407_v62  ;;  %740 = vmatpush1.msra.mxu1 %v413_v0  ;;  %v800_v62 = vld [vmem:[#allocation2 + $0x60] sm:$0xff]  ;;  %v1415_v0 = vld [vmem:[#allocation4 + $0x358] sm:$0xff] }
  0xbf   :  { %510 = vmatprep.subr.mxu0 %v400_v63  ;;  %741 = vmatprep.subr.mxu1 %v406_v2  ;;  %v1422_v63 = vld [vmem:[#allocation4 + $0x390] sm:$0xff]  ;;  %v1407_v2 = vld [vmem:[#allocation4 + $0x318] sm:$0xff] }
  0xc0   :  { %5887 = vmatmul.mubr.msk.f32.gmra.mxu0 %vm140_vm7, %v7424_v47  ;;  %5931 = vmatmul.mubr.msk.f32.gmra.mxu1 %vm140_vm7, %v7424_v47  ;;  %v818_v47 = vld [vmem:[#allocation2 + $0xf0] sm:$0xff] }
  0xc1   :  { %511 = vmatpush1.msra.mxu0 %v399_v1  ;;  %544 = vmatprep.mubr.f32.mxu0 %v11627_v4  ;;  %v1414_v1 = vld [vmem:[#allocation4 + $0x350] sm:$0xff] }
  0xc2   :  { %742 = vmatpush1.msra.mxu1 %v405_v3  ;;  %775 = vmatprep.mubr.f32.mxu1 %v11627_v4  ;;  %v793_v3 = vld [vmem:[#allocation2 + $0x28] sm:$0xff] }
  0xc3   :  { %581 = vmatprep.subr.mxu0 %v426_v5  ;;  %1011 = vmatprep.subr.mxu1 %v815_v6  ;;  %v1406_v5 = vld [vmem:[#allocation4 + $0x310] sm:$0xff]  ;;  %v1399_v6 = vld [vmem:[#allocation4 + $0x2d8] sm:$0xff] }
 0x174   :  { %v7683_v7 = vpop.f32.mrf.mxu0 }
 0x176   :  { %v7688_v10 = vpop.f32.mrf.mxu0 }
 0x177   :  { %5562 = vmatmul.mubr.msk.f32.vlgmr.msra.gmra.mxu0 %vm473_vm8, %v7688_v10  ;;  %5568 = vmatmul.mubr.msk.f32.vlgmr.msra.gmra.mxu1 %vm473_vm8, %v7688_v10 }
 0x178   :  { %582 = vmatpush1.msra.mxu0 %v425_v8  ;;  %1012 = vmatpush1.msra.mxu1 %v814_v9  ;;  %v7722_v24 = vpop.f32.mrf.mxu0  ;;  %v1398_v8 = vld [vmem:[#allocation4 + $0x2d0] sm:$0xff]  ;;  %v792_v9 = vld [vmem:[#allocation2 + $0x20] sm:$0xff] }
 0x179   :  { %583 = vmatprep.subr.mxu0 %v418_v11  ;;  %1013 = vmatprep.subr.mxu1 %v807_v12  ;;  %v1390_v11 = vld [vmem:[#allocation4 + $0x290] sm:$0xff]  ;;  %v1383_v12 = vld [vmem:[#allocation4 + $0x258] sm:$0xff] }
 0x17a   :  { %550 = vmatprep.mubr.f32.mxu0 %v11627_v4  ;;  %584 = vmatpush1.msra.mxu0 %v417_v13  ;;  %v7741_v29 = vpop.f32.mrf.mxu0  ;;  %v1382_v13 = vld [vmem:[#allocation4 + $0x250] sm:$0xff] }
 0x17b   :  { %781 = vmatprep.mubr.f32.mxu1 %v11627_v4  ;;  %1014 = vmatpush1.msra.mxu1 %v806_v14  ;;  %v1375_v14 = vld [vmem:[#allocation4 + $0x218] sm:$0xff] }
 0x17c   :  { %5563 = vmatmul.mubr.msk.f32.gmra.mxu0 %vm473_vm8, %v7683_v7  ;;  %585 = vmatprep.subr.mxu0 %v410_v15  ;;  %v7760_v36 = vpop.f32.mrf.mxu0  ;;  %v1429_v15 = vld [vmem:[#allocation4 + $0x3c8] sm:$0xff] }
 0x17d   :  { %5569 = vmatmul.mubr.msk.f32.gmra.mxu1 %vm473_vm8, %v7683_v7  ;;  %1015 = vmatprep.subr.mxu1 %v799_v16  ;;  %v1374_v16 = vld [vmem:[#allocation4 + $0x210] sm:$0xff] }
 0x17e   :  { %586 = vmatpush1.msra.mxu0 %v409_v17  ;;  %1016 = vmatpush1.msra.mxu1 %v798_v18  ;;  %v7768_v41 = vpop.f32.mrf.mxu0  ;;  %v1367_v17 = vld [vmem:[#allocation4 + $0x1d8] sm:$0xff]  ;;  %v1428_v18 = vld [vmem:[#allocation4 + $0x3c0] sm:$0xff] }
 0x17f   :  { %587 = vmatprep.subr.mxu0 %v402_v19  ;;  %1017 = vmatprep.subr.mxu1 %v791_v20  ;;  %v1366_v19 = vld [vmem:[#allocation4 + $0x1d0] sm:$0xff]  ;;  %v1421_v20 = vld [vmem:[#allocation4 + $0x388] sm:$0xff] }
 0x180   :  { %588 = vmatpush1.msra.mxu0 %v401_v21  ;;  %621 = vmatprep.mubr.f32.mxu0 %v11627_v4  ;;  %v7776_v48 = vpop.f32.mrf.mxu0  ;;  %v1359_v21 = vld [vmem:[#allocation4 + $0x198] sm:$0xff] }
 0x181   :  { %1018 = vmatpush1.msra.mxu1 %v790_v22  ;;  %1051 = vmatprep.mubr.f32.mxu1 %v11627_v4  ;;  %v1420_v22 = vld [vmem:[#allocation4 + $0x380] sm:$0xff] }
 0x182   :  { %5564 = vmatmul.mubr.msk.f32.vlgmr.msra.gmra.mxu0 %vm473_vm8, %v7688_v10  ;;  %658 = vmatprep.subr.mxu0 %v428_v23  ;;  %v7784_v51 = vpop.f32.mrf.mxu0  ;;  %v1358_v23 = vld [vmem:[#allocation4 + $0x190] sm:$0xff] }
 0x183   :  { %5577 = vmatmul.mubr.msk.f32.vlgmr.msra.gmra.mxu1 %vm473_vm8, %v7683_v7  ;;  %659 = vmatpush1.msra.mxu0 %v427_v25  ;;  %v1413_v25 = vld [vmem:[#allocation4 + $0x348] sm:$0xff] }
 0x184   :  { %660 = vmatprep.subr.mxu0 %v420_v26  ;;  %627 = vmatprep.mubr.f32.mxu0 %v11627_v4  ;;  %v1351_v26 = vld [vmem:[#allocation4 + $0x158] sm:$0xff] }
 0x185   :  { %661 = vmatpush1.msra.mxu0 %v419_v27  ;;  %1057 = vmatprep.mubr.f32.mxu1 %v11627_v4  ;;  %v1350_v27 = vld [vmem:[#allocation4 + $0x150] sm:$0xff] }
 0x186   :  { %5565 = vmatmul.mubr.msk.f32.gmra.mxu0 %vm473_vm8, %v7683_v7  ;;  %662 = vmatprep.subr.mxu0 %v412_v28  ;;  %v1405_v28 = vld [vmem:[#allocation4 + $0x308] sm:$0xff] }
 0x187   :  { %5578 = vmatmul.mubr.msk.f32.gmra.mxu1 %vm473_vm8, %v7741_v29  ;;  %663 = vmatpush1.msra.mxu0 %v411_v30  ;;  %v1343_v30 = vld [vmem:[#allocation4 + $0x118] sm:$0xff] }
 0x188   :  { %664 = vmatprep.subr.mxu0 %v404_v31  ;;  %698 = vmatprep.mubr.f32.mxu0 %v11627_v4  ;;  %v1404_v31 = vld [vmem:[#allocation4 + $0x300] sm:$0xff] }
 0x189   :  { %665 = vmatpush1.msra.mxu0 %v403_v32  ;;  %1063 = vmatprep.mubr.f32.mxu1 %v11627_v4  ;;  %v1342_v32 = vld [vmem:[#allocation4 + $0x110] sm:$0xff] }
 0x18a   :  { %5566 = vmatmul.mubr.msk.f32.vlgmr.msra.gmra.mxu0 %vm473_vm8, %v7688_v10  ;;  %904 = vmatprep.subr.mxu0 %v813_v33  ;;  %v1391_v10 = vld [vmem:[#allocation4 + $0x298] sm:$0xff]  ;;  %v1397_v33 = vld [vmem:[#allocation4 + $0x2c8] sm:$0xff] }
 0x18b   :  { %5579 = vmatmul.mubr.msk.f32.gmra.mxu1 %vm473_vm8, %v7722_v24  ;;  %905 = vmatpush1.msra.mxu0 %v812_v34  ;;  %v1335_v34 = vld [vmem:[#allocation4 + $0xd8] sm:$0xff] }
 0x18c   :  { %906 = vmatprep.subr.mxu0 %v805_v35  ;;  %704 = vmatprep.mubr.f32.mxu0 %v11627_v4  ;;  %v1396_v35 = vld [vmem:[#allocation4 + $0x2c0] sm:$0xff] }
 0x18d   :  { %907 = vmatpush1.msra.mxu0 %v804_v37  ;;  %1069 = vmatprep.mubr.f32.mxu1 %v11627_v4  ;;  %v1334_v37 = vld [vmem:[#allocation4 + $0xd0] sm:$0xff] }
 0x18e   :  { %5567 = vmatmul.mubr.msk.f32.gmra.mxu0 %vm473_vm8, %v7683_v7  ;;  %908 = vmatprep.subr.mxu0 %v797_v38  ;;  %v1327_v38 = vld [vmem:[#allocation4 + $0x98] sm:$0xff] }
 0x18f   :  { %5580 = vmatmul.mubr.msk.f32.gmra.mxu1 %vm473_vm8, %v7768_v41  ;;  %909 = vmatpush1.msra.mxu0 %v796_v39  ;;  %v1388_v39 = vld [vmem:[#allocation4 + $0x280] sm:$0xff] }
 0x190   :  { %910 = vmatprep.subr.mxu0 %v789_v40  ;;  %944 = vmatprep.mubr.f32.mxu0 %v11627_v4  ;;  %v1326_v40 = vld [vmem:[#allocation4 + $0x90] sm:$0xff] }
 0x191   :  { %911 = vmatpush1.msra.mxu0 %v788_v42  ;;  %1075 = vmatprep.mubr.f32.mxu1 %v11627_v4  ;;  %v1381_v42 = vld [vmem:[#allocation4 + $0x248] sm:$0xff] }
 0x192   :  { %5570 = vmatmul.mubr.msk.f32.vlgmr.msra.gmra.mxu0 %vm473_vm8, %v7683_v7  ;;  %1118 = vmatprep.subr.mxu0 %v817_v44  ;;  %v1319_v44 = vld [vmem:[#allocation4 + $0x58] sm:$0xff] }
 0x193   :  { %5581 = vmatmul.mubr.msk.f32.gmra.mxu1 %vm473_vm8, %v7760_v36  ;;  %1225 = vmatprep.subr.mxu1 %v819_v45  ;;  %v1380_v45 = vld [vmem:[#allocation4 + $0x240] sm:$0xff] }
 0x194   :  { %1119 = vmatpush1.msra.mxu0 %v816_v46  ;;  %1226 = vmatpush1.msra.mxu1 %v818_v47  ;;  %v1318_v46 = vld [vmem:[#allocation4 + $0x50] sm:$0xff]  ;;  %v1373_v47 = vld [vmem:[#allocation4 + $0x208] sm:$0xff] }
 0x195   :  { %950 = vmatprep.mubr.f32.mxu0 %v11627_v4  ;;  %1081 = vmatprep.mubr.f32.mxu1 %v11627_v4 }
 0x196   :  { %5571 = vmatmul.mubr.msk.f32.gmra.mxu0 %vm473_vm8, %v7741_v29  ;;  %1227 = vmatprep.subr.mxu1 %v811_v49  ;;  %v1372_v49 = vld [vmem:[#allocation4 + $0x200] sm:$0xff] }
 0x197   :  { %5582 = vmatmul.mubr.msk.f32.gmra.mxu1 %vm473_vm8, %v7784_v51  ;;  %956 = vmatprep.mubr.f32.mxu0 %v11627_v4 }
 0x198   :  { %1228 = vmatpush1.msra.mxu1 %v810_v50  ;;  %1087 = vmatprep.mubr.f32.mxu1 %v11627_v4  ;;  %v1310_v50 = vld [vmem:[#allocation4 + $0x10] sm:$0xff] }
 0x199   :  { %1120 = vmatprep.subr.mxu0 %v809_v52  ;;  %1229 = vmatprep.subr.mxu1 %v803_v53  ;;  %v1365_v52 = vld [vmem:[#allocation4 + $0x1c8] sm:$0xff]  ;;  %v1559_v53 = vld [vmem:[#allocation4 + $0x7d8] sm:$0xff] }
 0x19a   :  { %5572 = vmatmul.mubr.msk.f32.gmra.mxu0 %vm473_vm8, %v7722_v24  ;;  %1230 = vmatpush1.msra.mxu1 %v802_v54  ;;  %v1364_v54 = vld [vmem:[#allocation4 + $0x1c0] sm:$0xff] }
 0x19b   :  { %5583 = vmatmul.mubr.msk.f32.gmra.mxu1 %vm473_vm8, %v7776_v48  ;;  %1121 = vmatpush1.msra.mxu0 %v808_v55  ;;  %v1558_v55 = vld [vmem:[#allocation4 + $0x7d0] sm:$0xff] }
 0x19c   :  { %1231 = vmatprep.subr.mxu1 %v795_v56  ;;  %962 = vmatprep.mubr.f32.mxu0 %v11627_v4  ;;  %v1357_v56 = vld [vmem:[#allocation4 + $0x188] sm:$0xff] }
 0x19d   :  { %1232 = vmatpush1.msra.mxu1 %v794_v57  ;;  %1265 = vmatprep.mubr.f32.mxu1 %v11627_v4  ;;  %v1551_v57 = vld [vmem:[#allocation4 + $0x798] sm:$0xff] }
 0x19e   :  { %1635 = vmatprep.subr.mxu1 %v1431_v58  ;;  %5573 = vmatmul.mubr.msk.f32.gmra.mxu0 %vm473_vm8, %v7768_v41  ;;  %v1550_v58 = vld [vmem:[#allocation4 + $0x790] sm:$0xff] }
 0x19f   :  { %5591 = vmatmul.mubr.msk.f32.vlgmr.msra.gmra.mxu1 %vm473_vm8, %v7683_v7  ;;  %1122 = vmatprep.subr.mxu0 %v801_v59  ;;  %v1349_v59 = vld [vmem:[#allocation4 + $0x148] sm:$0xff] }
 0x1a0   :  { %1636 = vmatpush1.msra.mxu1 %v1430_v60  ;;  %968 = vmatprep.mubr.f32.mxu0 %v11627_v4  ;;  %v1543_v60 = vld [vmem:[#allocation4 + $0x758] sm:$0xff] }
 0x1a1   :  { %1637 = vmatprep.subr.mxu1 %v1423_v61  ;;  %1123 = vmatpush1.msra.mxu0 %v800_v62  ;;  %v1348_v61 = vld [vmem:[#allocation4 + $0x140] sm:$0xff]  ;;  %v1542_v62 = vld [vmem:[#allocation4 + $0x750] sm:$0xff] }
 0x1a2   :  { %1638 = vmatpush1.msra.mxu1 %v1422_v63  ;;  %1271 = vmatprep.mubr.f32.mxu1 %v11627_v4  ;;  %v1341_v63 = vld [vmem:[#allocation4 + $0x108] sm:$0xff] }
 0x1a3   :  { %1639 = vmatprep.subr.mxu1 %v1415_v0  ;;  %5574 = vmatmul.mubr.msk.f32.gmra.mxu0 %vm473_vm8, %v7760_v36  ;;  %v1535_v0 = vld [vmem:[#allocation4 + $0x718] sm:$0xff] }
 0x1a4   :  { %5592 = vmatmul.mubr.msk.f32.gmra.mxu1 %vm473_vm8, %v7741_v29  ;;  %974 = vmatprep.mubr.f32.mxu0 %v11627_v4 }
 0x1a5   :  { %1640 = vmatpush1.msra.mxu1 %v1414_v1  ;;  %1277 = vmatprep.mubr.f32.mxu1 %v11627_v4  ;;  %v1534_v1 = vld [vmem:[#allocation4 + $0x710] sm:$0xff] }
 0x1a6   :  { %1641 = vmatprep.subr.mxu1 %v1407_v2  ;;  %1124 = vmatprep.subr.mxu0 %v793_v3  ;;  %v1333_v2 = vld [vmem:[#allocation4 + $0xc8] sm:$0xff]  ;;  %v1527_v3 = vld [vmem:[#allocation4 + $0x6d8] sm:$0xff] }
 0x1a7   :  { %1642 = vmatpush1.msra.mxu1 %v1406_v5  ;;  %5575 = vmatmul.mubr.msk.f32.gmra.mxu0 %vm473_vm8, %v7784_v51  ;;  %v1332_v5 = vld [vmem:[#allocation4 + $0xc0] sm:$0xff] }
 0x1a8   :  { %1643 = vmatprep.subr.mxu1 %v1399_v6  ;;  %5593 = vmatmul.mubr.msk.f32.gmra.mxu1 %vm473_vm8, %v7722_v24  ;;  %v1526_v6 = vld [vmem:[#allocation4 + $0x6d0] sm:$0xff] }
 0x1a9   :  { %1644 = vmatpush1.msra.mxu1 %v1398_v8  ;;  %1125 = vmatpush1.msra.mxu0 %v792_v9  ;;  %v1325_v8 = vld [vmem:[#allocation4 + $0x88] sm:$0xff]  ;;  %v1519_v9 = vld [vmem:[#allocation4 + $0x698] sm:$0xff] }
 0x1aa   :  { %1645 = vmatprep.subr.mxu1 %v1391_v10  ;;  %980 = vmatprep.mubr.f32.mxu0 %v11627_v4  ;;  %v1518_v10 = vld [vmem:[#allocation4 + $0x690] sm:$0xff] }
 0x1ab   :  { %1646 = vmatpush1.msra.mxu1 %v1390_v11  ;;  %1283 = vmatprep.mubr.f32.mxu1 %v11627_v4  ;;  %v1317_v11 = vld [vmem:[#allocation4 + $0x48] sm:$0xff] }
 0x1ac   :  { %1647 = vmatprep.subr.mxu1 %v1383_v12  ;;  %5576 = vmatmul.mubr.msk.f32.gmra.mxu0 %vm473_vm8, %v7776_v48  ;;  %v1511_v12 = vld [vmem:[#allocation4 + $0x658] sm:$0xff] }
 0x1ad   :  { %5594 = vmatmul.mubr.msk.f32.gmra.mxu1 %vm473_vm8, %v7768_v41  ;;  %1158 = vmatprep.mubr.f32.mxu0 %v11627_v4 }
 0x1ae   :  { %1648 = vmatpush1.msra.mxu1 %v1382_v13  ;;  %1289 = vmatprep.mubr.f32.mxu1 %v11627_v4  ;;  %v1316_v13 = vld [vmem:[#allocation4 + $0x40] sm:$0xff] }
 0x1af   :  { %1649 = vmatprep.subr.mxu1 %v1375_v14  ;;  %1564 = vmatprep.subr.mxu0 %v1429_v15  ;;  %v1510_v14 = vld [vmem:[#allocation4 + $0x650] sm:$0xff]  ;;  %v1309_v15 = vld [vmem:[#allocation4 + $0x8] sm:$0xff] }
 0x1b0   :  { %1650 = vmatpush1.msra.mxu1 %v1374_v16  ;;  %5584 = vmatmul.mubr.msk.f32.vlgmr.msra.gmra.mxu0 %vm473_vm8, %v7683_v7  ;;  %v1412_v7 = vld [vmem:[#allocation4 + $0x340] sm:$0xff]  ;;  %v1503_v16 = vld [vmem:[#allocation4 + $0x618] sm:$0xff] }
 0x1b1   :  { %1651 = vmatprep.subr.mxu1 %v1367_v17  ;;  %5595 = vmatmul.mubr.msk.f32.gmra.mxu1 %vm473_vm8, %v7760_v36  ;;  %v1308_v17 = vld [vmem:[#allocation4] sm:$0xff] }
 0x1b2   :  { %1565 = vmatpush1.msra.mxu0 %v1428_v18  ;;  %1652 = vmatpush1.msra.mxu1 %v1366_v19  ;;  %v1502_v18 = vld [vmem:[#allocation4 + $0x610] sm:$0xff]  ;;  %v1495_v19 = vld [vmem:[#allocation4 + $0x5d8] sm:$0xff] }
 0x1b3   :  { %1566 = vmatprep.subr.mxu0 %v1421_v20  ;;  %1653 = vmatprep.subr.mxu1 %v1359_v21  ;;  %v1556_v20 = vld [vmem:[#allocation4 + $0x7c0] sm:$0xff]  ;;  %v1494_v21 = vld [vmem:[#allocation4 + $0x5d0] sm:$0xff] }
 0x1b4   :  { %1567 = vmatpush1.msra.mxu0 %v1420_v22  ;;  %1654 = vmatpush1.msra.mxu1 %v1358_v23  ;;  %v1549_v22 = vld [vmem:[#allocation4 + $0x788] sm:$0xff]  ;;  %v1487_v23 = vld [vmem:[#allocation4 + $0x598] sm:$0xff] }
 0x1b5   :  { %1164 = vmatprep.mubr.f32.mxu0 %v11627_v4  ;;  %1295 = vmatprep.mubr.f32.mxu1 %v11627_v4 }
 0x1b6   :  { %1568 = vmatprep.subr.mxu0 %v1413_v25  ;;  %1655 = vmatprep.subr.mxu1 %v1351_v26  ;;  %v1548_v25 = vld [vmem:[#allocation4 + $0x780] sm:$0xff]  ;;  %v1486_v26 = vld [vmem:[#allocation4 + $0x590] sm:$0xff] }
 0x1b7   :  { %5585 = vmatmul.mubr.msk.f32.gmra.mxu0 %vm473_vm8, %v7741_v29  ;;  %5596 = vmatmul.mubr.msk.f32.gmra.mxu1 %vm473_vm8, %v7784_v51  ;;  %v1389_v29 = vld [vmem:[#allocation4 + $0x288] sm:$0xff] }
 0x1b8   :  { %1569 = vmatpush1.msra.mxu0 %v1412_v7  ;;  %1656 = vmatpush1.msra.mxu1 %v1350_v27  ;;  %v1541_v7 = vld [vmem:[#allocation4 + $0x748] sm:$0xff]  ;;  %v1479_v27 = vld [vmem:[#allocation4 + $0x558] sm:$0xff] }
 0x1b9   :  { %1570 = vmatprep.subr.mxu0 %v1405_v28  ;;  %1657 = vmatprep.subr.mxu1 %v1343_v30  ;;  %v1540_v28 = vld [vmem:[#allocation4 + $0x740] sm:$0xff]  ;;  %v1478_v30 = vld [vmem:[#allocation4 + $0x550] sm:$0xff] }
 0x1ba   :  { %1571 = vmatpush1.msra.mxu0 %v1404_v31  ;;  %1658 = vmatpush1.msra.mxu1 %v1342_v32  ;;  %v1533_v31 = vld [vmem:[#allocation4 + $0x708] sm:$0xff]  ;;  %v1471_v32 = vld [vmem:[#allocation4 + $0x518] sm:$0xff] }
 0x1bb   :  { %1170 = vmatprep.mubr.f32.mxu0 %v11627_v4  ;;  %1301 = vmatprep.mubr.f32.mxu1 %v11627_v4 }
 0x1bc   :  { %1572 = vmatprep.subr.mxu0 %v1397_v33  ;;  %1659 = vmatprep.subr.mxu1 %v1335_v34  ;;  %v1532_v33 = vld [vmem:[#allocation4 + $0x700] sm:$0xff]  ;;  %v1470_v34 = vld [vmem:[#allocation4 + $0x510] sm:$0xff] }
 0x1bd   :  { %5586 = vmatmul.mubr.msk.f32.gmra.mxu0 %vm473_vm8, %v7722_v24  ;;  %5597 = vmatmul.mubr.msk.f32.gmra.mxu1 %vm473_vm8, %v7776_v48  ;;  %v1311_v24 = vld [vmem:[#allocation4 + $0x18] sm:$0xff] }
 0x1be   :  { %1573 = vmatpush1.msra.mxu0 %v1396_v35  ;;  %1660 = vmatpush1.msra.mxu1 %v1334_v37  ;;  %v1525_v35 = vld [vmem:[#allocation4 + $0x6c8] sm:$0xff]  ;;  %v1463_v37 = vld [vmem:[#allocation4 + $0x4d8] sm:$0xff] }
 0x1bf   :  { %1574 = vmatprep.subr.mxu0 %v1389_v29  ;;  %1661 = vmatprep.subr.mxu1 %v1327_v38  ;;  %v1524_v29 = vld [vmem:[#allocation4 + $0x6c0] sm:$0xff]  ;;  %v1462_v38 = vld [vmem:[#allocation4 + $0x4d0] sm:$0xff] }
 0x1c0   :  { %1575 = vmatpush1.msra.mxu0 %v1388_v39  ;;  %1662 = vmatpush1.msra.mxu1 %v1326_v40  ;;  %v1517_v39 = vld [vmem:[#allocation4 + $0x688] sm:$0xff]  ;;  %v1455_v40 = vld [vmem:[#allocation4 + $0x498] sm:$0xff] }
 0x1c1   :  { %1176 = vmatprep.mubr.f32.mxu0 %v11627_v4  ;;  %1576 = vmatprep.subr.mxu0 %v1381_v42  ;;  %v1516_v42 = vld [vmem:[#allocation4 + $0x680] sm:$0xff] }
 0x1c2   :  { %1663 = vmatprep.subr.mxu1 %v1319_v44  ;;  %5587 = vmatmul.mubr.msk.f32.gmra.mxu0 %vm473_vm8, %v7768_v41  ;;  %v1356_v41 = vld [vmem:[#allocation4 + $0x180] sm:$0xff]  ;;  %v1454_v44 = vld [vmem:[#allocation4 + $0x490] sm:$0xff] }
 0x1c3   :  { %1577 = vmatpush1.msra.mxu0 %v1380_v45  ;;  %1664 = vmatpush1.msra.mxu1 %v1318_v46  ;;  %v1509_v45 = vld [vmem:[#allocation4 + $0x648] sm:$0xff]  ;;  %v1447_v46 = vld [vmem:[#allocation4 + $0x458] sm:$0xff] }
 0x1c4   :  { %1578 = vmatprep.subr.mxu0 %v1373_v47  ;;  %1665 = vmatprep.subr.mxu1 %v1311_v24  ;;  %v1508_v47 = vld [vmem:[#allocation4 + $0x640] sm:$0xff]  ;;  %v1446_v24 = vld [vmem:[#allocation4 + $0x450] sm:$0xff] }
 0x1c5   :  { %1579 = vmatpush1.msra.mxu0 %v1372_v49  ;;  %1666 = vmatpush1.msra.mxu1 %v1310_v50  ;;  %v1501_v49 = vld [vmem:[#allocation4 + $0x608] sm:$0xff]  ;;  %v1439_v50 = vld [vmem:[#allocation4 + $0x418] sm:$0xff] }
 0x1c6   :  { %1182 = vmatprep.mubr.f32.mxu0 %v11627_v4  ;;  %1580 = vmatprep.subr.mxu0 %v1365_v52  ;;  %v1500_v52 = vld [vmem:[#allocation4 + $0x600] sm:$0xff] }
 0x1c7   :  { %1667 = vmatprep.subr.mxu1 %v1559_v53  ;;  %5588 = vmatmul.mubr.msk.f32.gmra.mxu0 %vm473_vm8, %v7760_v36  ;;  %v1340_v36 = vld [vmem:[#allocation4 + $0x100] sm:$0xff]  ;;  %v1438_v53 = vld [vmem:[#allocation4 + $0x410] sm:$0xff] }
 0x1c8   :  { %1581 = vmatpush1.msra.mxu0 %v1364_v54  ;;  %1668 = vmatpush2.msra.mxu1 %v1558_v55  ;;  %v1493_v54 = vld [vmem:[#allocation4 + $0x5c8] sm:$0xff]  ;;  %v1435_v55 = vld [vmem:[#allocation4 + $0x3f8] sm:$0xff] }
 0x1c9   :  { %1582 = vmatprep.subr.mxu0 %v1357_v56  ;;  %1669 = vmatprep.subr.mxu1 %v1551_v57  ;;  %v1492_v56 = vld [vmem:[#allocation4 + $0x5c0] sm:$0xff]  ;;  %v1434_v57 = vld [vmem:[#allocation4 + $0x3f0] sm:$0xff] }
 0x1ca   :  { %1583 = vmatpush1.msra.mxu0 %v1356_v41  ;;  %1670 = vmatpush2.msra.mxu1 %v1550_v58  ;;  %v1485_v41 = vld [vmem:[#allocation4 + $0x588] sm:$0xff]  ;;  %v1427_v58 = vld [vmem:[#allocation4 + $0x3b8] sm:$0xff] }
 0x1cb   :  { %1188 = vmatprep.mubr.f32.mxu0 %v11627_v4  ;;  %1584 = vmatprep.subr.mxu0 %v1349_v59  ;;  %v1484_v59 = vld [vmem:[#allocation4 + $0x580] sm:$0xff] }
 0x1cc   :  { %1671 = vmatprep.subr.mxu1 %v1543_v60  ;;  %5589 = vmatmul.mubr.msk.f32.gmra.mxu0 %vm473_vm8, %v7784_v51  ;;  %v1324_v51 = vld [vmem:[#allocation4 + $0x80] sm:$0xff]  ;;  %v1426_v60 = vld [vmem:[#allocation4 + $0x3b0] sm:$0xff] }
 0x1cd   :  { %1585 = vmatpush1.msra.mxu0 %v1348_v61  ;;  %1672 = vmatpush2.msra.mxu1 %v1542_v62  ;;  %v1477_v61 = vld [vmem:[#allocation4 + $0x548] sm:$0xff]  ;;  %v1419_v62 = vld [vmem:[#allocation4 + $0x378] sm:$0xff] }
 0x1ce   :  { %1586 = vmatprep.subr.mxu0 %v1341_v63  ;;  %1673 = vmatprep.subr.mxu1 %v1535_v0  ;;  %v1476_v63 = vld [vmem:[#allocation4 + $0x540] sm:$0xff]  ;;  %v1418_v0 = vld [vmem:[#allocation4 + $0x370] sm:$0xff] }
 0x1cf   :  { %1587 = vmatpush1.msra.mxu0 %v1340_v36  ;;  %1674 = vmatpush2.msra.mxu1 %v1534_v1  ;;  %v1469_v36 = vld [vmem:[#allocation4 + $0x508] sm:$0xff]  ;;  %v1411_v1 = vld [vmem:[#allocation4 + $0x338] sm:$0xff] }
 0x1d0   :  { %1194 = vmatprep.mubr.f32.mxu0 %v11627_v4  ;;  %1588 = vmatprep.subr.mxu0 %v1333_v2  ;;  %v1468_v2 = vld [vmem:[#allocation4 + $0x500] sm:$0xff] }
 0x1d1   :  { %1675 = vmatprep.subr.mxu1 %v1527_v3  ;;  %5590 = vmatmul.mubr.msk.f32.gmra.mxu0 %vm473_vm8, %v7776_v48  ;;  %v1557_v48 = vld [vmem:[#allocation4 + $0x7c8] sm:$0xff]  ;;  %v1410_v3 = vld [vmem:[#allocation4 + $0x330] sm:$0xff] }
 0x1d2   :  { %1589 = vmatpush1.msra.mxu0 %v1332_v5  ;;  %1676 = vmatpush2.msra.mxu1 %v1526_v6  ;;  %v1461_v5 = vld [vmem:[#allocation4 + $0x4c8] sm:$0xff]  ;;  %v1403_v6 = vld [vmem:[#allocation4 + $0x2f8] sm:$0xff] }
 0x1d3   :  { %1590 = vmatprep.subr.mxu0 %v1325_v8  ;;  %1677 = vmatprep.subr.mxu1 %v1519_v9  ;;  %v1460_v8 = vld [vmem:[#allocation4 + $0x4c0] sm:$0xff]  ;;  %v1402_v9 = vld [vmem:[#allocation4 + $0x2f0] sm:$0xff] }
 0x1d4   :  { %1591 = vmatpush1.msra.mxu0 %v1324_v51  ;;  %1678 = vmatpush2.msra.mxu1 %v1518_v10  ;;  %v1453_v51 = vld [vmem:[#allocation4 + $0x488] sm:$0xff]  ;;  %v1395_v10 = vld [vmem:[#allocation4 + $0x2b8] sm:$0xff] }
 0x1d5   :  { %1592 = vmatprep.subr.mxu0 %v1317_v11  ;;  %1679 = vmatprep.subr.mxu1 %v1511_v12  ;;  %v1452_v11 = vld [vmem:[#allocation4 + $0x480] sm:$0xff]  ;;  %v1394_v12 = vld [vmem:[#allocation4 + $0x2b0] sm:$0xff] }
 0x1d6   :  { %1593 = vmatpush1.msra.mxu0 %v1316_v13  ;;  %1680 = vmatpush2.msra.mxu1 %v1510_v14  ;;  %v1445_v13 = vld [vmem:[#allocation4 + $0x448] sm:$0xff]  ;;  %v1387_v14 = vld [vmem:[#allocation4 + $0x278] sm:$0xff] }
 0x1d7   :  { %1594 = vmatprep.subr.mxu0 %v1309_v15  ;;  %1681 = vmatprep.subr.mxu1 %v1503_v16  ;;  %v1444_v15 = vld [vmem:[#allocation4 + $0x440] sm:$0xff]  ;;  %v1386_v16 = vld [vmem:[#allocation4 + $0x270] sm:$0xff] }
 0x1d8   :  { %1595 = vmatpush1.msra.mxu0 %v1308_v17  ;;  %1682 = vmatpush2.msra.mxu1 %v1502_v18  ;;  %v1437_v17 = vld [vmem:[#allocation4 + $0x408] sm:$0xff]  ;;  %v1379_v18 = vld [vmem:[#allocation4 + $0x238] sm:$0xff] }
 0x1d9   :  { %1596 = vmatprep.subr.mxu0 %v1557_v48  ;;  %1683 = vmatprep.subr.mxu1 %v1495_v19  ;;  %v1436_v48 = vld [vmem:[#allocation4 + $0x400] sm:$0xff]  ;;  %v1378_v19 = vld [vmem:[#allocation4 + $0x230] sm:$0xff] }
 0x1da   :  { %1597 = vmatpush2.msra.mxu0 %v1556_v20  ;;  %1684 = vmatpush2.msra.mxu1 %v1494_v21  ;;  %v7852_v20 = vld [vmem:[#allocation4 + $0x3e8] sm:$0xff]  ;;  %v1371_v21 = vld [vmem:[#allocation4 + $0x1f8] sm:$0xff] }
 0x1db   :  { %1598 = vmatprep.subr.mxu0 %v1549_v22  ;;  %1685 = vmatprep.subr.mxu1 %v1487_v23  ;;  %v1432_v22 = vld [vmem:[#allocation4 + $0x3e0] sm:$0xff]  ;;  %v1370_v23 = vld [vmem:[#allocation4 + $0x1f0] sm:$0xff] }
 0x1dc   :  { %1599 = vmatpush2.msra.mxu0 %v1548_v25  ;;  %1686 = vmatpush2.msra.mxu1 %v1486_v26  ;;  %v1425_v25 = vld [vmem:[#allocation4 + $0x3a8] sm:$0xff]  ;;  %v1363_v26 = vld [vmem:[#allocation4 + $0x1b8] sm:$0xff] }
 0x1dd   :  { %1600 = vmatprep.subr.mxu0 %v1541_v7  ;;  %1687 = vmatprep.subr.mxu1 %v1479_v27  ;;  %v1424_v7 = vld [vmem:[#allocation4 + $0x3a0] sm:$0xff]  ;;  %v1362_v27 = vld [vmem:[#allocation4 + $0x1b0] sm:$0xff] }
 0x1de   :  { %1601 = vmatpush2.msra.mxu0 %v1540_v28  ;;  %1688 = vmatpush2.msra.mxu1 %v1478_v30  ;;  %v1417_v28 = vld [vmem:[#allocation4 + $0x368] sm:$0xff]  ;;  %v1355_v30 = vld [vmem:[#allocation4 + $0x178] sm:$0xff] }
 0x1df   :  { %1602 = vmatprep.subr.mxu0 %v1533_v31  ;;  %1689 = vmatprep.subr.mxu1 %v1471_v32  ;;  %v1416_v31 = vld [vmem:[#allocation4 + $0x360] sm:$0xff]  ;;  %v1354_v32 = vld [vmem:[#allocation4 + $0x170] sm:$0xff] }
 0x1e0   :  { %1603 = vmatpush2.msra.mxu0 %v1532_v33  ;;  %1690 = vmatpush2.msra.mxu1 %v1470_v34  ;;  %v1409_v33 = vld [vmem:[#allocation4 + $0x328] sm:$0xff]  ;;  %v1347_v34 = vld [vmem:[#allocation4 + $0x138] sm:$0xff] }
 0x1e1   :  { %1604 = vmatprep.subr.mxu0 %v1525_v35  ;;  %1691 = vmatprep.subr.mxu1 %v1463_v37  ;;  %v1408_v35 = vld [vmem:[#allocation4 + $0x320] sm:$0xff]  ;;  %v1346_v37 = vld [vmem:[#allocation4 + $0x130] sm:$0xff] }
 0x1e2   :  { %1605 = vmatpush2.msra.mxu0 %v1524_v29  ;;  %1692 = vmatpush2.msra.mxu1 %v1462_v38  ;;  %v1401_v29 = vld [vmem:[#allocation4 + $0x2e8] sm:$0xff]  ;;  %v1339_v38 = vld [vmem:[#allocation4 + $0xf8] sm:$0xff] }
 0x1e3   :  { %1606 = vmatprep.subr.mxu0 %v1517_v39  ;;  %1693 = vmatprep.subr.mxu1 %v1455_v40  ;;  %v1400_v39 = vld [vmem:[#allocation4 + $0x2e0] sm:$0xff]  ;;  %v1338_v40 = vld [vmem:[#allocation4 + $0xf0] sm:$0xff] }
 0x1e4   :  { %1607 = vmatpush2.msra.mxu0 %v1516_v42  ;;  %1694 = vmatpush2.msra.mxu1 %v1454_v44  ;;  %v1393_v42 = vld [vmem:[#allocation4 + $0x2a8] sm:$0xff]  ;;  %v1331_v44 = vld [vmem:[#allocation4 + $0xb8] sm:$0xff] }
 0x1e5   :  { %1608 = vmatprep.subr.mxu0 %v1509_v45  ;;  %1695 = vmatprep.subr.mxu1 %v1447_v46  ;;  %v1392_v45 = vld [vmem:[#allocation4 + $0x2a0] sm:$0xff]  ;;  %v1330_v46 = vld [vmem:[#allocation4 + $0xb0] sm:$0xff] }
 0x1e6   :  { %1609 = vmatpush2.msra.mxu0 %v1508_v47  ;;  %1696 = vmatpush2.msra.mxu1 %v1446_v24  ;;  %v1385_v47 = vld [vmem:[#allocation4 + $0x268] sm:$0xff]  ;;  %v1323_v24 = vld [vmem:[#allocation4 + $0x78] sm:$0xff] }
 0x1e7   :  { %1610 = vmatprep.subr.mxu0 %v1501_v49  ;;  %1697 = vmatprep.subr.mxu1 %v1439_v50  ;;  %v1384_v49 = vld [vmem:[#allocation4 + $0x260] sm:$0xff]  ;;  %v1322_v50 = vld [vmem:[#allocation4 + $0x70] sm:$0xff] }
 0x1e8   :  { %1611 = vmatpush2.msra.mxu0 %v1500_v52  ;;  %1698 = vmatpush2.msra.mxu1 %v1438_v53  ;;  %v1377_v52 = vld [vmem:[#allocation4 + $0x228] sm:$0xff]  ;;  %v1315_v53 = vld [vmem:[#allocation4 + $0x38] sm:$0xff] }
 0x1e9   :  { %1699 = vmatprep.mubr.f32.mxu1 %v11627_v4  ;;  %1612 = vmatprep.subr.mxu0 %v1493_v54  ;;  %v1376_v54 = vld [vmem:[#allocation4 + $0x220] sm:$0xff] }
 0x1ea   :  { %1700 = vmatmul.mubr.f32.vlgmr.msra.gmra.mxu1 %v11627_v4  ;;  %1777 = vmatprep.subr.mxu1 %v1435_v55  ;;  %v1314_v55 = vld [vmem:[#allocation4 + $0x30] sm:$0xff] }
 0x1eb   :  { %1613 = vmatpush2.msra.mxu0 %v1492_v56  ;;  %1778 = vmatpush1.msra.mxu1 %v1434_v57  ;;  %v1369_v56 = vld [vmem:[#allocation4 + $0x1e8] sm:$0xff]  ;;  %v1563_v57 = vld [vmem:[#allocation4 + $0x7f8] sm:$0xff] }
 0x1ec   :  { %1614 = vmatprep.subr.mxu0 %v1485_v41  ;;  %1779 = vmatprep.subr.mxu1 %v1427_v58  ;;  %v1368_v41 = vld [vmem:[#allocation4 + $0x1e0] sm:$0xff]  ;;  %v1562_v58 = vld [vmem:[#allocation4 + $0x7f0] sm:$0xff] }
 0x1ed   :  { %1615 = vmatpush2.msra.mxu0 %v1484_v59  ;;  %1780 = vmatpush1.msra.mxu1 %v1426_v60  ;;  %v1361_v59 = vld [vmem:[#allocation4 + $0x1a8] sm:$0xff]  ;;  %v1555_v60 = vld [vmem:[#allocation4 + $0x7b8] sm:$0xff] }
 0x1ee   :  { %1616 = vmatprep.subr.mxu0 %v1477_v61  ;;  %1781 = vmatprep.subr.mxu1 %v1419_v62  ;;  %v1360_v61 = vld [vmem:[#allocation4 + $0x1a0] sm:$0xff]  ;;  %v1554_v62 = vld [vmem:[#allocation4 + $0x7b0] sm:$0xff] }
 0x1ef   :  { %1617 = vmatpush2.msra.mxu0 %v1476_v63  ;;  %1782 = vmatpush1.msra.mxu1 %v1418_v0  ;;  %v1353_v63 = vld [vmem:[#allocation4 + $0x168] sm:$0xff]  ;;  %v1547_v0 = vld [vmem:[#allocation4 + $0x778] sm:$0xff] }
 0x1f0   :  { %1618 = vmatprep.subr.mxu0 %v1469_v36  ;;  %1783 = vmatprep.subr.mxu1 %v1411_v1  ;;  %v1352_v36 = vld [vmem:[#allocation4 + $0x160] sm:$0xff]  ;;  %v1546_v1 = vld [vmem:[#allocation4 + $0x770] sm:$0xff] }
 0x1f1   :  { %1619 = vmatpush2.msra.mxu0 %v1468_v2  ;;  %1784 = vmatpush1.msra.mxu1 %v1410_v3  ;;  %v1345_v2 = vld [vmem:[#allocation4 + $0x128] sm:$0xff]  ;;  %v1539_v3 = vld [vmem:[#allocation4 + $0x738] sm:$0xff] }
 0x1f2   :  { %1620 = vmatprep.subr.mxu0 %v1461_v5  ;;  %1785 = vmatprep.subr.mxu1 %v1403_v6  ;;  %v1344_v5 = vld [vmem:[#allocation4 + $0x120] sm:$0xff]  ;;  %v1538_v6 = vld [vmem:[#allocation4 + $0x730] sm:$0xff] }
 0x1f3   :  { %1621 = vmatpush2.msra.mxu0 %v1460_v8  ;;  %1786 = vmatpush1.msra.mxu1 %v1402_v9  ;;  %v1337_v8 = vld [vmem:[#allocation4 + $0xe8] sm:$0xff]  ;;  %v1531_v9 = vld [vmem:[#allocation4 + $0x6f8] sm:$0xff] }
 0x1f4   :  { %1622 = vmatprep.subr.mxu0 %v1453_v51  ;;  %1787 = vmatprep.subr.mxu1 %v1395_v10  ;;  %v1336_v51 = vld [vmem:[#allocation4 + $0xe0] sm:$0xff]  ;;  %v1530_v10 = vld [vmem:[#allocation4 + $0x6f0] sm:$0xff] }
 0x1f5   :  { %1623 = vmatpush2.msra.mxu0 %v1452_v11  ;;  %1788 = vmatpush1.msra.mxu1 %v1394_v12  ;;  %v1329_v11 = vld [vmem:[#allocation4 + $0xa8] sm:$0xff]  ;;  %v1523_v12 = vld [vmem:[#allocation4 + $0x6b8] sm:$0xff] }
 0x1f6   :  { %1624 = vmatprep.subr.mxu0 %v1445_v13  ;;  %1789 = vmatprep.subr.mxu1 %v1387_v14  ;;  %v1328_v13 = vld [vmem:[#allocation4 + $0xa0] sm:$0xff]  ;;  %v1522_v14 = vld [vmem:[#allocation4 + $0x6b0] sm:$0xff] }
 0x1f7   :  { %1625 = vmatpush2.msra.mxu0 %v1444_v15  ;;  %1790 = vmatpush1.msra.mxu1 %v1386_v16  ;;  %v1321_v15 = vld [vmem:[#allocation4 + $0x68] sm:$0xff]  ;;  %v1515_v16 = vld [vmem:[#allocation4 + $0x678] sm:$0xff] }
 0x1f8   :  { %1626 = vmatprep.subr.mxu0 %v1437_v17  ;;  %1791 = vmatprep.subr.mxu1 %v1379_v18  ;;  %v1320_v17 = vld [vmem:[#allocation4 + $0x60] sm:$0xff]  ;;  %v1514_v18 = vld [vmem:[#allocation4 + $0x670] sm:$0xff] }
 0x1f9   :  { %1627 = vmatpush2.msra.mxu0 %v1436_v48  ;;  %1628 = vmatprep.mubr.f32.mxu0 %v11627_v4  ;;  %v1313_v48 = vld [vmem:[#allocation4 + $0x28] sm:$0xff] }
 0x1fa   :  { %1792 = vmatpush1.msra.mxu1 %v1378_v19  ;;  %1629 = vmatmul.mubr.f32.vlgmr.msra.gmra.mxu0 %v11627_v4  ;;  %v1507_v19 = vld [vmem:[#allocation4 + $0x638] sm:$0xff] }
 0x1fb   :  { %1706 = vmatprep.subr.mxu0 %v7852_v20  ;;  %1793 = vmatprep.subr.mxu1 %v1371_v21  ;;  %v1312_v21 = vld [vmem:[#allocation4 + $0x20] sm:$0xff] }
 0x1fc   :  { %1707 = vmatpush1.msra.mxu0 %v1432_v22  ;;  %1794 = vmatpush1.msra.mxu1 %v1370_v23  ;;  %v1506_v22 = vld [vmem:[#allocation4 + $0x630] sm:$0xff]  ;;  %v1561_v23 = vld [vmem:[#allocation4 + $0x7e8] sm:$0xff] }
 0x1fd   :  { %1708 = vmatprep.subr.mxu0 %v1425_v25  ;;  %1795 = vmatprep.subr.mxu1 %v1363_v26  ;;  %v1499_v25 = vld [vmem:[#allocation4 + $0x5f8] sm:$0xff]  ;;  %v1560_v26 = vld [vmem:[#allocation4 + $0x7e0] sm:$0xff] }
 0x1fe   :  { %1709 = vmatpush1.msra.mxu0 %v1424_v7  ;;  %1796 = vmatpush1.msra.mxu1 %v1362_v27  ;;  %v1498_v7 = vld [vmem:[#allocation4 + $0x5f0] sm:$0xff]  ;;  %v1553_v27 = vld [vmem:[#allocation4 + $0x7a8] sm:$0xff] }
 0x1ff   :  { %1710 = vmatprep.subr.mxu0 %v1417_v28  ;;  %1797 = vmatprep.subr.mxu1 %v1355_v30  ;;  %v1491_v28 = vld [vmem:[#allocation4 + $0x5b8] sm:$0xff]  ;;  %v7857_v30 = vpop.f32.mrf.mxu1 }
 0x200   :  { %1711 = vmatpush1.msra.mxu0 %v1416_v31  ;;  %1798 = vmatpush1.msra.mxu1 %v1354_v32  ;;  %12164 = vst [vmem:[#allocation12_spill] sm:$0xff] %v7857_v30  ;;  %v1552_v31 = vld [vmem:[#allocation4 + $0x7a0] sm:$0xff]  ;;  %v1490_v32 = vld [vmem:[#allocation4 + $0x5b0] sm:$0xff]  ;;  %v6385_v30 = vld [vmem:[#allocation4 + $0x88] sm:$0xff] }
 0x201   :  { %1712 = vmatprep.subr.mxu0 %v1409_v33  ;;  %1799 = vmatprep.subr.mxu1 %v1347_v34  ;;  %v1545_v33 = vld [vmem:[#allocation4 + $0x768] sm:$0xff]  ;;  %v1483_v34 = vld [vmem:[#allocation4 + $0x578] sm:$0xff] }
 0x202   :  { %1713 = vmatpush1.msra.mxu0 %v1408_v35  ;;  %1800 = vmatpush1.msra.mxu1 %v1346_v37  ;;  %v1544_v35 = vld [vmem:[#allocation4 + $0x760] sm:$0xff]  ;;  %v1482_v37 = vld [vmem:[#allocation4 + $0x570] sm:$0xff] }
 0x203   :  { %1714 = vmatprep.subr.mxu0 %v1401_v29  ;;  %1801 = vmatprep.subr.mxu1 %v1339_v38  ;;  %v1537_v29 = vld [vmem:[#allocation4 + $0x728] sm:$0xff]  ;;  %v1475_v38 = vld [vmem:[#allocation4 + $0x538] sm:$0xff] }
 0x204   :  { %1715 = vmatpush1.msra.mxu0 %v1400_v39  ;;  %1802 = vmatpush1.msra.mxu1 %v1338_v40  ;;  %v7859_v39 = vpop.f32.mrf.mxu1  ;;  %v1536_v40 = vld [vmem:[#allocation4 + $0x720] sm:$0xff] }
 0x205   :  { %1716 = vmatprep.subr.mxu0 %v1393_v42  ;;  %1803 = vmatprep.subr.mxu1 %v1331_v44  ;;  %12165 = vst [vmem:[#allocation13_spill] sm:$0xff] %v7859_v39  ;;  %v1474_v42 = vld [vmem:[#allocation4 + $0x530] sm:$0xff]  ;;  %v1529_v44 = vld [vmem:[#allocation4 + $0x6e8] sm:$0xff]  ;;  %v6383_v39 = vld [vmem:[#allocation4 + $0xc0] sm:$0xff] }
 0x206   :  { %1717 = vmatpush1.msra.mxu0 %v1392_v45  ;;  %1804 = vmatpush1.msra.mxu1 %v1330_v46  ;;  %v1467_v45 = vld [vmem:[#allocation4 + $0x4f8] sm:$0xff]  ;;  %v7861_v46 = vpop.f32.mrf.mxu1 }
 0x207   :  { %1718 = vmatprep.subr.mxu0 %v1385_v47  ;;  %1805 = vmatprep.subr.mxu1 %v1323_v24  ;;  %12166 = vst [vmem:[#allocation14_spill] sm:$0xff] %v7861_v46  ;;  %v1528_v47 = vld [vmem:[#allocation4 + $0x6e0] sm:$0xff]  ;;  %v1466_v24 = vld [vmem:[#allocation4 + $0x4f0] sm:$0xff] }
 0x208   :  { %1719 = vmatpush1.msra.mxu0 %v1384_v49  ;;  %1806 = vmatpush1.msra.mxu1 %v1322_v50  ;;  %v1521_v49 = vld [vmem:[#allocation4 + $0x6a8] sm:$0xff]  ;;  %v1459_v50 = vld [vmem:[#allocation4 + $0x4b8] sm:$0xff] }
 0x209   :  { %1720 = vmatprep.subr.mxu0 %v1377_v52  ;;  %1807 = vmatprep.subr.mxu1 %v1315_v53  ;;  %v1520_v52 = vld [vmem:[#allocation4 + $0x6a0] sm:$0xff]  ;;  %v1458_v53 = vld [vmem:[#allocation4 + $0x4b0] sm:$0xff] }
 0x20a   :  { %1721 = vmatpush1.msra.mxu0 %v1376_v54  ;;  %1808 = vmatpush1.msra.mxu1 %v1314_v55  ;;  %v1513_v54 = vld [vmem:[#allocation4 + $0x668] sm:$0xff]  ;;  %v1451_v55 = vld [vmem:[#allocation4 + $0x478] sm:$0xff] }
 0x20b   :  { %1722 = vmatprep.subr.mxu0 %v1369_v56  ;;  %1809 = vmatprep.subr.mxu1 %v1563_v57  ;;  %v7863_v56 = vpop.f32.mrf.mxu1  ;;  %v1512_v57 = vld [vmem:[#allocation4 + $0x660] sm:$0xff] }
 0x20c   :  { %1723 = vmatpush1.msra.mxu0 %v1368_v41  ;;  %1810 = vmatpush2.msra.mxu1 %v1562_v58  ;;  %12167 = vst [vmem:[#allocation15_spill] sm:$0xff] %v7863_v56  ;;  %v1450_v41 = vld [vmem:[#allocation4 + $0x470] sm:$0xff]  ;;  %v1505_v58 = vld [vmem:[#allocation4 + $0x628] sm:$0xff] }
 0x20d   :  { %1724 = vmatprep.subr.mxu0 %v1361_v59  ;;  %1811 = vmatprep.subr.mxu1 %v1555_v60  ;;  %v1443_v59 = vld [vmem:[#allocation4 + $0x438] sm:$0xff]  ;;  %v1504_v60 = vld [vmem:[#allocation4 + $0x620] sm:$0xff]  ;;  %v6381_v56 = vld [vmem:[#allocation4 + $0xc8] sm:$0xff] }
 0x20e   :  { %1725 = vmatpush1.msra.mxu0 %v1360_v61  ;;  %1812 = vmatpush2.msra.mxu1 %v1554_v62  ;;  %v1442_v61 = vld [vmem:[#allocation4 + $0x430] sm:$0xff]  ;;  %v1497_v62 = vld [vmem:[#allocation4 + $0x5e8] sm:$0xff] }
 0x20f   :  { %1726 = vmatprep.subr.mxu0 %v1353_v63  ;;  %1813 = vmatprep.subr.mxu1 %v1547_v0  ;;  %v7865_v63 = vpop.f32.mrf.mxu1  ;;  %v7867_v0 = vld [vmem:[#allocation4 + $0x5e0] sm:$0xff] }
 0x210   :  { %1727 = vmatpush1.msra.mxu0 %v1352_v36  ;;  %1814 = vmatpush2.msra.mxu1 %v1546_v1  ;;  %12168 = vst [vmem:[#allocation16_spill] sm:$0xff] %v7865_v63  ;;  %v7869_v36 = vld [vmem:[#allocation4 + $0x5a8] sm:$0xff]  ;;  %v7872_v1 = vld [vmem:[#allocation4 + $0x5a0] sm:$0xff] }
 0x211   :  { %1728 = vmatprep.subr.mxu0 %v1345_v2  ;;  %1815 = vmatprep.subr.mxu1 %v1539_v3  ;;  %v7876_v2 = vld [vmem:[#allocation4 + $0x568] sm:$0xff]  ;;  %v7878_v3 = vpop.f32.mrf.mxu1 }
 0x212   :  { %1729 = vmatpush1.msra.mxu0 %v1344_v5  ;;  %1816 = vmatpush2.msra.mxu1 %v1538_v6  ;;  %12169 = vst [vmem:[#allocation17_spill] sm:$0xff] %v7878_v3  ;;  %v7881_v5 = vld [vmem:[#allocation4 + $0x560] sm:$0xff]  ;;  %v7885_v6 = vld [vmem:[#allocation4 + $0x528] sm:$0xff] }
 0x213   :  { %1730 = vmatprep.subr.mxu0 %v1337_v8  ;;  %1817 = vmatprep.subr.mxu1 %v1531_v9  ;;  %v6321_v8 = vld [vmem:[#allocation4 + $0x3d8] sm:$0xff]  ;;  %v7888_v9 = vld [vmem:[#allocation4 + $0x520] sm:$0xff] }
 0x214   :  { %1731 = vmatpush1.msra.mxu0 %v1336_v51  ;;  %1818 = vmatpush2.msra.mxu1 %v1530_v10  ;;  %v6322_v51 = vld [vmem:[#allocation4 + $0x3d0] sm:$0xff]  ;;  %v7891_v10 = vld [vmem:[#allocation4 + $0x4e8] sm:$0xff] }
 0x215   :  { %1732 = vmatprep.subr.mxu0 %v1329_v11  ;;  %1819 = vmatprep.subr.mxu1 %v1523_v12  ;;  %v6323_v11 = vld [vmem:[#allocation4 + $0x398] sm:$0xff]  ;;  %v7893_v12 = vpop.f32.mrf.mxu1 }
 0x216   :  { %1733 = vmatpush1.msra.mxu0 %v1328_v13  ;;  %1820 = vmatpush2.msra.mxu1 %v1522_v14  ;;  %12170 = vst [vmem:[#allocation18_spill] sm:$0xff] %v7893_v12  ;;  %v7896_v13 = vld [vmem:[#allocation4 + $0x4e0] sm:$0xff]  ;;  %v6324_v14 = vld [vmem:[#allocation4 + $0x390] sm:$0xff]  ;;  %v6374_v12 = vld [vmem:[#allocation4 + $0x7d8] sm:$0xff] }
 0x217   :  { %1734 = vmatprep.subr.mxu0 %v1321_v15  ;;  %1821 = vmatprep.subr.mxu1 %v1515_v16  ;;  %v7899_v15 = vld [vmem:[#allocation4 + $0x4a8] sm:$0xff]  ;;  %v6325_v16 = vld [vmem:[#allocation4 + $0x358] sm:$0xff] }
 0x218   :  { %1735 = vmatpush1.msra.mxu0 %v1320_v17  ;;  %1822 = vmatpush2.msra.mxu1 %v1514_v18  ;;  %v7902_v17 = vld [vmem:[#allocation4 + $0x4a0] sm:$0xff]  ;;  %v7905_v18 = vshrl.u32 %v99_v43, 7  ;;  %v7916_v43 = vld [vmem:[#allocation4 + $0x428] sm:$0xff] }
 0x219   :  { %1736 = vmatprep.subr.mxu0 %v1313_v48  ;;  %1823 = vmatprep.subr.mxu1 %v1507_v19  ;;  %v6326_v48 = vld [vmem:[#allocation4 + $0x350] sm:$0xff]  ;;  %v7908_v19 = vld [vmem:[#allocation4 + $0x468] sm:$0xff] }
 0x21a   :  { %1737 = vmatpush1.msra.mxu0 %v1312_v21  ;;  %1824 = vmatpush2.msra.mxu1 %v1506_v22  ;;  %v6327_v21 = vld [vmem:[#allocation4 + $0x318] sm:$0xff]  ;;  %v7910_v22 = vpop.f32.mrf.mxu1  ;;  %v12184_v63 = vsub.s32 1, %v7905_v18 }
 0x21b   :  { %1738 = vmatprep.subr.mxu0 %v1561_v23  ;;  %1825 = vmatprep.subr.mxu1 %v1499_v25  ;;  %12171 = vst [vmem:[#allocation19_spill] sm:$0xff] %v7910_v22  ;;  %v7913_v23 = vld [vmem:[#allocation4 + $0x460] sm:$0xff]  ;;  %v6328_v25 = vld [vmem:[#allocation4 + $0x310] sm:$0xff] }
 0x21c   :  { %1739 = vmatpush2.msra.mxu0 %v1560_v26  ;;  %1826 = vmatpush2.msra.mxu1 %v1498_v7  ;;  %v6329_v26 = vld [vmem:[#allocation4 + $0x2d8] sm:$0xff]  ;;  %v7919_v7 = vld [vmem:[#allocation4 + $0x420] sm:$0xff] }
 0x21d   :  { %1740 = vmatprep.subr.mxu0 %v1553_v27  ;;  %1827 = vmatprep.subr.mxu1 %v1491_v28  ;;  %v11632_v27 = vsub.s32 0, %v7905_v18  ;;  %v6375_v22 = vld [vmem:[#allocation4 + $0x140] sm:$0xff] }
 0x21e   :  { %1741 = vmatpush2.msra.mxu0 %v1552_v31  ;;  %1828 = vmatpush2.msra.mxu1 %v1490_v32  ;;  %v6330_v32 = vld [vmem:[#allocation4 + $0x2d0] sm:$0xff] }
 0x21f   :  { %1742 = vmatprep.subr.mxu0 %v1545_v33  ;;  %1829 = vmatprep.subr.mxu1 %v1483_v34  ;;  %v7930_v33 = vld [vmem:[%s11620_s7] sm:$0xff]  ;;  %v11630_v34 = vsub.s32 6, %v7905_v18 }
 0x220   :  { %1743 = vmatpush2.msra.mxu0 %v1544_v35  ;;  %1830 = vmatpush2.msra.mxu1 %v1482_v37  ;;  %v6331_v35 = vld [vmem:[#allocation4 + $0x298] sm:$0xff]  ;;  %v11631_v37 = vsub.s32 1, %v7905_v18 }
 0x221   :  { %1744 = vmatprep.subr.mxu0 %v1537_v29  ;;  %1831 = vmatprep.subr.mxu1 %v1475_v38 }
 0x222   :  { %1745 = vmatpush2.msra.mxu0 %v1536_v40  ;;  %1832 = vmatpush2.msra.mxu1 %v1474_v42  ;;  %v6332_v40 = vld [vmem:[#allocation4 + $0x290] sm:$0xff]  ;;  %v11629_v42 = vsub.s32 7, %v7905_v18 }
 0x223   :  { %1746 = vmatprep.subr.mxu0 %v1529_v44  ;;  %1833 = vmatprep.subr.mxu1 %v1467_v45  ;;  %v6333_v44 = vld [vmem:[#allocation4 + $0x258] sm:$0xff]  ;;  %v7945_v45 = vrot.slane %v7930_v33, %v11632_v27  ;;  %v6371_v27 = vld [vmem:[#allocation4 + $0x180] sm:$0xff] }
 0x224   :  { %1747 = vmatpush2.msra.mxu0 %v1528_v47  ;;  %1834 = vmatpush2.msra.mxu1 %v1466_v24  ;;  %v6334_v47 = vld [vmem:[#allocation4 + $0x3c8] sm:$0xff]  ;;  %v7950_v24 = vrot.slane %v7930_v33, %v11630_v34  ;;  %v6366_v34 = vld [vmem:[#allocation4 + $0x58] sm:$0xff] }
 0x225   :  { %1748 = vmatprep.subr.mxu0 %v1521_v49  ;;  %1835 = vmatprep.subr.mxu1 %v1459_v50  ;;  %v443_v50 = vsub.s32 2, %v7905_v18 }
 0x226   :  { %1749 = vmatpush2.msra.mxu0 %v1520_v52  ;;  %1836 = vmatpush2.msra.mxu1 %v1458_v53  ;;  %v6335_v52 = vld [vmem:[#allocation4 + $0x3c0] sm:$0xff]  ;;  %v6336_v53 = vld [vmem:[#allocation4 + $0x250] sm:$0xff] }
 0x227   :  { %1750 = vmatprep.subr.mxu0 %v1513_v54  ;;  %1837 = vmatprep.subr.mxu1 %v1451_v55  ;;  %v7956_v54 = vld [vmem:[%s11621_s8] sm:$0xff]  ;;  %v7961_v55 = vrot.slane %v7930_v33, %v11631_v37  ;;  %v6368_v37 = vld [vmem:[#allocation4 + $0x50] sm:$0xff] }
 0x228   :  { %1751 = vmatpush2.msra.mxu0 %v1512_v57  ;;  %1838 = vmatpush2.msra.mxu1 %v1450_v41 }
 0x229   :  { %1752 = vmatprep.subr.mxu0 %v1505_v58  ;;  %1839 = vmatprep.subr.mxu1 %v1443_v59  ;;  %v6337_v58 = vld [vmem:[#allocation4 + $0x388] sm:$0xff]  ;;  %v6338_v59 = vld [vmem:[#allocation4 + $0x218] sm:$0xff] }
 0x22a   :  { %1753 = vmatpush2.msra.mxu0 %v1504_v60  ;;  %1840 = vmatpush2.msra.mxu1 %v1442_v61  ;;  %v7969_v60 = vrot.slane %v7930_v33, %v11629_v42  ;;  %v6365_v42 = vld [vmem:[#allocation4 + $0x1c8] sm:$0xff] }
 0x22b   :  { %1841 = vmatprep.mubr.f32.mxu1 %v11627_v4  ;;  %1754 = vmatprep.subr.mxu0 %v1497_v62 }
 0x22c   :  { %1842 = vmatmul.mubr.f32.vlgmr.msra.gmra.mxu1 %v11627_v4  ;;  %1755 = vmatpush2.msra.mxu0 %v7867_v0 }
 0x22d   :  { %1756 = vmatprep.subr.mxu0 %v7869_v36  ;;  %1770 = vmatprep.mubr.f32.mxu0 %v11627_v4 }
 0x22e   :  { %1757 = vmatpush2.msra.mxu0 %v7872_v1  ;;  %1975 = vmatprep.subr.mxu1 %v6321_v8  ;;  %v447_v8 = vsub.s32 3, %v7905_v18 }
 0x22f   :  { %1758 = vmatprep.subr.mxu0 %v7876_v2  ;;  %1976 = vmatpush1.msra.mxu1 %v6322_v51  ;;  %v6339_v51 = vld [vmem:[#allocation4 + $0x380] sm:$0xff] }
 0x230   :  { %1759 = vmatpush2.msra.mxu0 %v7881_v5  ;;  %1977 = vmatprep.subr.mxu1 %v6323_v11  ;;  %v6340_v11 = vld [vmem:[#allocation4 + $0x210] sm:$0xff] }
 0x231   :  { %1760 = vmatprep.subr.mxu0 %v7885_v6  ;;  %1978 = vmatpush1.msra.mxu1 %v6324_v14 }
 0x232   :  { %1761 = vmatpush2.msra.mxu0 %v7888_v9  ;;  %1979 = vmatprep.subr.mxu1 %v6325_v16 }
 0x233   :  { %1762 = vmatprep.subr.mxu0 %v7891_v10  ;;  %1980 = vmatpush1.msra.mxu1 %v6326_v48  ;;  %v6341_v48 = vld [vmem:[#allocation4 + $0x348] sm:$0xff] }
 0x234   :  { %1763 = vmatpush2.msra.mxu0 %v7896_v13  ;;  %1981 = vmatprep.subr.mxu1 %v6327_v21  ;;  %v6342_v21 = vld [vmem:[#allocation4 + $0x1d8] sm:$0xff] }
 0x235   :  { %1764 = vmatprep.subr.mxu0 %v7899_v15  ;;  %1982 = vmatpush1.msra.mxu1 %v6328_v25 }
 0x236   :  { %1765 = vmatpush2.msra.mxu0 %v7902_v17  ;;  %1983 = vmatprep.subr.mxu1 %v6329_v26  ;;  %v7982_v26 = vrot.slane %v7956_v54, %v443_v50 }
 0x237   :  { %1766 = vmatprep.subr.mxu0 %v7908_v19  ;;  %v7922_v28 = vpop.f32.mrf.mxu0  ;;  %v7924_v31 = vpop.f32.mrf.mxu1  ;;  %1984 = vmatpush1.msra.mxu1 %v6330_v32  ;;  %v6343_v32 = vld [vmem:[#allocation4 + $0x340] sm:$0xff] }
 0x238   :  { %1767 = vmatpush2.msra.mxu0 %v7913_v23  ;;  %1985 = vmatprep.subr.mxu1 %v6331_v35  ;;  %v6344_v35 = vld [vmem:[#allocation4 + $0x1d0] sm:$0xff] }
 0x239   :  { %1768 = vmatprep.subr.mxu0 %v7916_v43  ;;  %v7935_v29 = vpop.f32.mrf.mxu0  ;;  %v7937_v38 = vpop.f32.mrf.mxu1  ;;  %1986 = vmatpush1.msra.mxu1 %v6332_v40  ;;  %v6345_v40 = vld [vmem:[#allocation4 + $0x308] sm:$0xff] }
 0x23a   :  { %1769 = vmatpush2.msra.mxu0 %v7919_v7  ;;  %1987 = vmatprep.subr.mxu1 %v6333_v44  ;;  %v6346_v44 = vld [vmem:[#allocation4 + $0x198] sm:$0xff] }
 0x23b   :  { %1771 = vmatmul.mubr.f32.vlgmr.msra.gmra.mxu0 %v11627_v4  ;;  %1904 = vmatprep.subr.mxu0 %v6334_v47  ;;  %v6362_v4 = vld [vmem:[#allocation4 + $0x98] sm:$0xff] }
 0x23c   :  { %v552_v49 = vpop.f32.mrf.mxu0  ;;  %1905 = vmatpush1.msra.mxu0 %v6335_v52  ;;  %1988 = vmatpush1.msra.mxu1 %v6336_v53  ;;  %v6347_v52 = vld [vmem:[#allocation4 + $0x300] sm:$0xff]  ;;  %v6348_v53 = vld [vmem:[#allocation4 + $0x190] sm:$0xff] }
 0x23d   :  { %v7964_v57 = vadd.f32 %v552_v49, %v7945_v45  ;;  %v783_v41 = vpop.f32.mrf.mxu1  ;;  %1906 = vmatprep.subr.mxu0 %v6337_v58  ;;  %1989 = vmatprep.subr.mxu1 %v6338_v59  ;;  %v7987_v49 = vrot.slane %v7956_v54, %v447_v8  ;;  %v6349_v58 = vld [vmem:[#allocation4 + $0x2c8] sm:$0xff]  ;;  %v6350_v59 = vld [vmem:[#allocation4 + $0x158] sm:$0xff] }
 0x23e   :  { %v7972_v61 = vadd.f32 %v783_v41, %v7950_v24  ;;  %v554_v62 = vpop.f32.mrf.mxu0  ;;  %1907 = vmatpush1.msra.mxu0 %v6339_v51  ;;  %1990 = vmatpush1.msra.mxu1 %v6340_v11  ;;  %v6351_v11 = vld [vmem:[#allocation4 + $0x2c0] sm:$0xff] }
 0x23f   :  { %v7976_v14 = vadd.f32 %v554_v62, %v7961_v55  ;;  %v785_v16 = vpop.f32.mrf.mxu1  ;;  %1908 = vmatprep.subr.mxu0 %v6341_v48  ;;  %1991 = vmatprep.subr.mxu1 %v6342_v21  ;;  %v7995_v48 = vrot.slane %v7930_v33, %v443_v50 }
 0x240   :  { %12172 = vst [vmem:[#allocation20_spill] sm:$0xff] %v7972_v61  ;;  %v7979_v25 = vadd.f32 %v785_v16, %v7969_v60  ;;  %1909 = vmatpush1.msra.mxu0 %v6343_v32  ;;  %1992 = vmatpush1.msra.mxu1 %v6344_v35  ;;  %v6352_v16 = vld [vmem:[#allocation4 + $0x150] sm:$0xff]  ;;  %v6353_v32 = vld [vmem:[#allocation4 + $0x288] sm:$0xff]  ;;  %v6354_v35 = vld [vmem:[#allocation4 + $0x118] sm:$0xff] }
 0x241   :  { %1910 = vmatprep.subr.mxu0 %v6345_v40  ;;  %1993 = vmatprep.subr.mxu1 %v6346_v44  ;;  %v8437_v61 = vld [vmem:[#allocation6 + $0x6c8] sm:$0xff] }
 0x242   :  { %12173 = vst [vmem:[#allocation21_spill] sm:$0xff] %v7979_v25  ;;  %v7984_v47 = vpop.f32.mrf.mxu0  ;;  %1911 = vmatpush1.msra.mxu0 %v6347_v52  ;;  %1994 = vmatpush1.msra.mxu1 %v6348_v53  ;;  %v6355_v52 = vld [vmem:[#allocation4 + $0x280] sm:$0xff]  ;;  %v6356_v53 = vld [vmem:[#allocation4 + $0x110] sm:$0xff]  ;;  %12256 = vst [vmem:[#allocation97_spill] sm:$0xff] %v8437_v61 }
 0x243   :  { %v1053_v41 = vpop.f32.mrf.mxu1  ;;  %1912 = vmatprep.subr.mxu0 %v6349_v58  ;;  %1995 = vmatprep.subr.mxu1 %v6350_v59  ;;  %v6357_v59 = vld [vmem:[#allocation4 + $0x248] sm:$0xff]  ;;  %v8431_v25 = vld [vmem:[#allocation6 + $0x700] sm:$0xff] }
 0x244   :  { %v7990_v62 = vadd.f32 %v1053_v41, %v7982_v26  ;;  %v7992_v51 = vpop.f32.mrf.mxu0  ;;  %1913 = vmatpush1.msra.mxu0 %v6351_v11  ;;  %1996 = vmatpush1.msra.mxu1 %v6352_v16  ;;  %v8001_v41 = vrot.slane %v7930_v33, %v447_v8  ;;  %v6358_v11 = vld [vmem:[#allocation4 + $0xd8] sm:$0xff]  ;;  %12254 = vst [vmem:[#allocation95_spill] sm:$0xff] %v8431_v25 }
 0x245   :  { %v1055_v21 = vpop.f32.mrf.mxu1  ;;  %1914 = vmatprep.subr.mxu0 %v6353_v32  ;;  %1997 = vmatprep.subr.mxu1 %v6354_v35  ;;  %v6359_v32 = vld [vmem:[#allocation4 + $0x240] sm:$0xff]  ;;  %v6360_v35 = vld [vmem:[#allocation4 + $0xd0] sm:$0xff] }
 0x246   :  { %12174 = vst [vmem:[#allocation22_spill] sm:$0xff] %v7990_v62  ;;  %v7998_v40 = vadd.f32 %v1055_v21, %v7987_v49  ;;  %v629_v44 = vpop.f32.mrf.mxu0  ;;  %1915 = vmatpush1.msra.mxu0 %v6355_v52  ;;  %1998 = vmatpush1.msra.mxu1 %v6356_v53  ;;  %v6361_v53 = vld [vmem:[#allocation4 + $0x208] sm:$0xff] }
 0x247   :  { %v8004_v58 = vadd.f32 %v629_v44, %v7995_v48  ;;  %v1059_v50 = vpop.f32.mrf.mxu1  ;;  %1916 = vmatprep.subr.mxu0 %v6357_v59  ;;  %1999 = vmatprep.subr.mxu1 %v6358_v11  ;;  %v11633_v44 = vsub.s32 4, %v7905_v18  ;;  %v6363_v11 = vld [vmem:[#allocation4 + $0x200] sm:$0xff] }
 0x248   :  { %12175 = vst [vmem:[#allocation23_spill] sm:$0xff] %v7998_v40  ;;  %v8007_v16 = vadd.f32 %v1059_v50, %v7982_v26  ;;  %v631_v21 = vpop.f32.mrf.mxu0  ;;  %1917 = vmatpush1.msra.mxu0 %v6359_v32  ;;  %2000 = vmatpush1.msra.mxu1 %v6360_v35  ;;  %v6364_v32 = vld [vmem:[#allocation4 + $0x90] sm:$0xff] }
 0x249   :  { %v8010_v52 = vadd.f32 %v631_v21, %v8001_v41  ;;  %v1061_v8 = vpop.f32.mrf.mxu1  ;;  %1918 = vmatprep.subr.mxu0 %v6361_v53  ;;  %2001 = vmatprep.subr.mxu1 %v6362_v4  ;;  %v6369_v21 = vld [vmem:[#allocation4 + $0x188] sm:$0xff]  ;;  %v6372_v40 = vld [vmem:[#allocation4 + $0x10] sm:$0xff] }
 0x24a   :  { %12176 = vst [vmem:[#allocation24_spill] sm:$0xff] %v8007_v16  ;;  %v8014_v59 = vadd.f32 %v1061_v8, %v7987_v49  ;;  %v8016_v50 = vpop.f32.mrf.mxu0  ;;  %1919 = vmatpush1.msra.mxu0 %v6363_v11  ;;  %2002 = vmatpush1.msra.mxu1 %v6364_v32  ;;  %v6367_v8 = vld [vmem:[#allocation4 + $0x1c0] sm:$0xff]  ;;  %v8027_v11 = vrot.slane %v7930_v33, %v11633_v44  ;;  %v12181_v44 = vsub.s32 5, %v7905_v18  ;;  %v6393_v16 = vld [vmem:[#allocation4 + $0x8] sm:$0xff] }
 0x24b   :  { %v1065_v35 = vpop.f32.mrf.mxu1  ;;  %1920 = vmatprep.subr.mxu0 %v6365_v42  ;;  %2003 = vmatprep.subr.mxu1 %v6366_v34  ;;  %v6370_v42 = vld [vmem:[#allocation4 + $0x18] sm:$0xff] }
 0x24c   :  { %12177 = vst [vmem:[#allocation25_spill] sm:$0xff] %v8014_v59  ;;  %v8020_v53 = vadd.f32 %v1065_v35, %v7982_v26  ;;  %v8022_v4 = vpop.f32.mrf.mxu0  ;;  %1921 = vmatpush1.msra.mxu0 %v6367_v8  ;;  %2004 = vmatpush1.msra.mxu1 %v6368_v37  ;;  %v12180_v37 = vsub.s32 0, %v7905_v18  ;;  %v8040_v62 = vrot.slane %v7930_v33, %v12181_v44  ;;  %v6389_v59 = vld [vmem:[#allocation4 + $0x48] sm:$0xff] }
 0x24d   :  { %v1067_v32 = vpop.f32.mrf.mxu1  ;;  %1922 = vmatprep.subr.mxu0 %v6369_v21  ;;  %2005 = vmatprep.subr.mxu1 %v6370_v42  ;;  %v6373_v42 = vld [vmem:[#allocation4 + $0x148] sm:$0xff]  ;;  %v8051_v33 = vrot.slane %v7956_v54, %v12184_v63 }
 0x24e   :  { %12178 = vst [vmem:[#allocation26_spill] sm:$0xff] %v8020_v53  ;;  %v8030_v34 = vadd.f32 %v1067_v32, %v7987_v49  ;;  %v706_v35 = vpop.f32.mrf.mxu0  ;;  %1923 = vmatpush1.msra.mxu0 %v6371_v27  ;;  %2006 = vmatpush1.msra.mxu1 %v6372_v40  ;;  %v8035_v8 = vrot.slane %v7956_v54, %v12180_v37  ;;  %v6376_v37 = vld [vmem:[#allocation4 + $0x7d0] sm:$0xff] }
 0x24f   :  { %v8043_v21 = vadd.f32 %v706_v35, %v8027_v11  ;;  %v1071_v32 = vpop.f32.mrf.mxu1  ;;  %1924 = vmatprep.subr.mxu0 %v6373_v42  ;;  %2007 = vmatprep.subr.mxu1 %v6374_v12  ;;  %v6377_v42 = vld [vmem:[#allocation4 + $0x108] sm:$0xff]  ;;  %v6378_v12 = vld [vmem:[#allocation4 + $0x798] sm:$0xff] }
 0x250   :  { %12179 = vst [vmem:[#allocation27_spill] sm:$0xff] %v8030_v34  ;;  %v8046_v27 = vadd.f32 %v1071_v32, %v7982_v26  ;;  %v708_v40 = vpop.f32.mrf.mxu0  ;;  %1925 = vmatpush1.msra.mxu0 %v6375_v22  ;;  %2008 = vmatpush2.msra.mxu1 %v6376_v37  ;;  %v6379_v22 = vld [vmem:[#allocation4 + $0x100] sm:$0xff]  ;;  %v6380_v37 = vld [vmem:[#allocation4 + $0x790] sm:$0xff]  ;;  %v6397_v34 = vld [vmem:[#allocation4 + $0x7c8] sm:$0xff] }
 0x251   :  { %12182 = vst [vmem:[#allocation28_spill] sm:$0xff] %v8043_v21  ;;  %v8054_v44 = vadd.f32 %v708_v40, %v8040_v62  ;;  %v1073_v35 = vpop.f32.mrf.mxu1  ;;  %1926 = vmatprep.subr.mxu0 %v6377_v42  ;;  %2009 = vmatprep.subr.mxu1 %v6378_v12  ;;  %v6382_v40 = vld [vmem:[#allocation4 + $0x758] sm:$0xff] }
 0x252   :  { %12183 = vst [vmem:[#allocation29_spill] sm:$0xff] %v8046_v27  ;;  %v8057_v32 = vadd.f32 %v1073_v35, %v7987_v49  ;;  %v946_v3 = vpop.f32.mrf.mxu0  ;;  %1927 = vmatpush1.msra.mxu0 %v6379_v22  ;;  %2010 = vmatpush2.msra.mxu1 %v6380_v37  ;;  %v6384_v35 = vld [vmem:[#allocation4 + $0x750] sm:$0xff]  ;;  %v6407_v27 = vld [vmem:[#allocation4 + $0x740] sm:$0xff]  ;;  %v8439_v21 = vld [vmem:[#allocation6 + $0x6d8] sm:$0xff] }
 0x253   :  { %12185 = vst [vmem:[#allocation30_spill] sm:$0xff] %v8054_v44  ;;  %v8060_v46 = vadd.f32 %v946_v3, %v8035_v8  ;;  %v1077_v63 = vpop.f32.mrf.mxu1  ;;  %1928 = vmatprep.subr.mxu0 %v6381_v56  ;;  %2011 = vmatprep.subr.mxu1 %v6382_v40  ;;  %v6386_v3 = vld [vmem:[#allocation4 + $0x718] sm:$0xff]  ;;  %v8433_v44 = vld [vmem:[#allocation6 + $0x710] sm:$0xff]  ;;  %12257 = vst [vmem:[#allocation98_spill] sm:$0xff] %v8439_v21 }
 0x254   :  { %12186 = vst [vmem:[#allocation31_spill] sm:$0xff] %v8057_v32  ;;  %v8063_v42 = vadd.f32 %v1077_v63, %v7982_v26  ;;  %v948_v12 = vpop.f32.mrf.mxu0  ;;  %1929 = vmatpush1.msra.mxu0 %v6383_v39  ;;  %2012 = vmatpush2.msra.mxu1 %v6384_v35  ;;  %v6388_v63 = vld [vmem:[#allocation4 + $0x710] sm:$0xff]  ;;  %12255 = vst [vmem:[#allocation96_spill] sm:$0xff] %v8433_v44 }
 0x255   :  { %12187 = vst [vmem:[#allocation32_spill] sm:$0xff] %v8060_v46  ;;  %v8066_v22 = vadd.f32 %v948_v12, %v8051_v33  ;;  %v1079_v37 = vpop.f32.mrf.mxu1  ;;  %1930 = vmatprep.subr.mxu0 %v6385_v30  ;;  %2013 = vmatprep.subr.mxu1 %v6386_v3  ;;  %v6387_v46 = vld [vmem:[#allocation4 + $0x80] sm:$0xff]  ;;  %v6390_v12 = vld [vmem:[#allocation4 + $0x6d8] sm:$0xff] }
 0x256   :  { %12188 = vst [vmem:[#allocation33_spill] sm:$0xff] %v8063_v42  ;;  %v8069_v56 = vadd.f32 %v1079_v37, %v7987_v49  ;;  %v952_v40 = vpop.f32.mrf.mxu0  ;;  %1931 = vmatpush1.msra.mxu0 %v6387_v46  ;;  %2014 = vmatpush2.msra.mxu1 %v6388_v63  ;;  %v6392_v37 = vld [vmem:[#allocation4 + $0x6d0] sm:$0xff]  ;;  %v6431_v42 = vld [vmem:[#allocation4 + $0x5c0] sm:$0xff] }
 0x257   :  { %12189 = vst [vmem:[#allocation34_spill] sm:$0xff] %v8066_v22  ;;  %v8072_v39 = vadd.f32 %v952_v40, %v8035_v8  ;;  %v1083_v35 = vpop.f32.mrf.mxu1  ;;  %1932 = vmatprep.subr.mxu0 %v6389_v59  ;;  %2015 = vmatprep.subr.mxu1 %v6390_v12  ;;  %v6391_v22 = vld [vmem:[#allocation4 + $0x40] sm:$0xff]  ;;  %v6394_v40 = vld [vmem:[#allocation4 + $0x698] sm:$0xff] }
 0x258   :  { %12190 = vst [vmem:[#allocation35_spill] sm:$0xff] %v8069_v56  ;;  %v8075_v30 = vadd.f32 %v1083_v35, %v7982_v26  ;;  %v954_v3 = vpop.f32.mrf.mxu0  ;;  %1933 = vmatpush1.msra.mxu0 %v6391_v22  ;;  %2016 = vmatpush2.msra.mxu1 %v6392_v37  ;;  %v6396_v35 = vld [vmem:[#allocation4 + $0x690] sm:$0xff]  ;;  %v6421_v56 = vld [vmem:[#allocation4 + $0x648] sm:$0xff] }
 0x259   :  { %12191 = vst [vmem:[#allocation36_spill] sm:$0xff] %v8072_v39  ;;  %v8078_v46 = vadd.f32 %v954_v3, %v8051_v33  ;;  %v1085_v63 = vpop.f32.mrf.mxu1  ;;  %1934 = vmatprep.subr.mxu0 %v6393_v16  ;;  %2017 = vmatprep.subr.mxu1 %v6394_v40  ;;  %v6395_v39 = vld [vmem:[#allocation4] sm:$0xff]  ;;  %v6398_v3 = vld [vmem:[#allocation4 + $0x658] sm:$0xff]  ;;  %v12196_v16 = vsub.s32 6, %v7905_v18 }
 0x25a   :  { %12192 = vst [vmem:[#allocation37_spill] sm:$0xff] %v8075_v30  ;;  %v8081_v59 = vadd.f32 %v1085_v63, %v7987_v49  ;;  %v958_v12 = vpop.f32.mrf.mxu0  ;;  %1935 = vmatpush1.msra.mxu0 %v6395_v39  ;;  %2018 = vmatpush2.msra.mxu1 %v6396_v35  ;;  %v6399_v39 = vld [vmem:[#allocation4 + $0x7c0] sm:$0xff]  ;;  %v6400_v35 = vld [vmem:[#allocation4 + $0x650] sm:$0xff] }
 0x25b   :  { %12193 = vst [vmem:[#allocation38_spill] sm:$0xff] %v8078_v46  ;;  %v8084_v22 = vadd.f32 %v958_v12, %v8035_v8  ;;  %v1089_v37 = vpop.f32.mrf.mxu1  ;;  %1936 = vmatprep.subr.mxu0 %v6397_v34  ;;  %2019 = vmatprep.subr.mxu1 %v6398_v3  ;;  %v8089_v40 = vrot.slane %v7956_v54, %v12196_v16  ;;  %v6401_v34 = vld [vmem:[#allocation4 + $0x788] sm:$0xff]  ;;  %v6402_v3 = vld [vmem:[#allocation4 + $0x618] sm:$0xff]  ;;  %v8395_v30 = vld [vmem:[#allocation6 + $0x7c0] sm:$0xff] }
 0x25c   :  { %12194 = vst [vmem:[#allocation39_spill] sm:$0xff] %v8081_v59  ;;  %v8092_v63 = vadd.f32 %v1089_v37, %v7982_v26  ;;  %v960_v46 = vpop.f32.mrf.mxu0  ;;  %1937 = vmatpush2.msra.mxu0 %v6399_v39  ;;  %2020 = vmatpush2.msra.mxu1 %v6400_v35  ;;  %v6403_v39 = vld [vmem:[#allocation4 + $0x780] sm:$0xff]  ;;  %v6404_v35 = vld [vmem:[#allocation4 + $0x610] sm:$0xff]  ;;  %12242 = vst [vmem:[#allocation83_spill] sm:$0xff] %v8395_v30 }
 0x25d   :  { %12195 = vst [vmem:[#allocation40_spill] sm:$0xff] %v8084_v22  ;;  %v8095_v12 = vadd.f32 %v960_v46, %v8051_v33  ;;  %v1091_v53 = vpop.f32.mrf.mxu1  ;;  %1938 = vmatprep.subr.mxu0 %v6401_v34  ;;  %2021 = vmatprep.subr.mxu1 %v6402_v3  ;;  %v12199_v22 = vsub.s32 7, %v7905_v18  ;;  %v6405_v34 = vld [vmem:[#allocation4 + $0x748] sm:$0xff]  ;;  %v6406_v3 = vld [vmem:[#allocation4 + $0x5d8] sm:$0xff] }
 0x25e   :  { %12197 = vst [vmem:[#allocation41_spill] sm:$0xff] %v8092_v63  ;;  %v8103_v26 = vadd.f32 %v1091_v53, %v7987_v49  ;;  %v964_v37 = vpop.f32.mrf.mxu0  ;;  %1939 = vmatpush2.msra.mxu0 %v6403_v39  ;;  %2022 = vmatpush2.msra.mxu1 %v6404_v35  ;;  %v6408_v49 = vld [vmem:[#allocation4 + $0x5d0] sm:$0xff]  ;;  %v6409_v35 = vld [vmem:[#allocation4 + $0x708] sm:$0xff]  ;;  %v8419_v63 = vld [vmem:[#allocation6 + $0x740] sm:$0xff] }
 0x25f   :  { %12198 = vst [vmem:[#allocation42_spill] sm:$0xff] %v8095_v12  ;;  %v8100_v16 = vrot.slane %v7956_v54, %v12199_v22  ;;  %v8106_v46 = vadd.f32 %v964_v37, %v8035_v8  ;;  %v1267_v12 = vpop.f32.mrf.mxu1  ;;  %1940 = vmatprep.subr.mxu0 %v6405_v34  ;;  %2023 = vmatprep.subr.mxu1 %v6406_v3  ;;  %v6410_v37 = vld [vmem:[#allocation4 + $0x598] sm:$0xff]  ;;  %v6411_v3 = vld [vmem:[#allocation4 + $0x700] sm:$0xff]  ;;  %12250 = vst [vmem:[#allocation91_spill] sm:$0xff] %v8419_v63 }
 0x260   :  { %12200 = vst [vmem:[#allocation43_spill] sm:$0xff] %v8103_v26  ;;  %v8109_v32 = vadd.f32 %v1267_v12, %v8089_v40  ;;  %v966_v22 = vpop.f32.mrf.mxu0  ;;  %1941 = vmatpush2.msra.mxu0 %v6407_v27  ;;  %2024 = vmatpush2.msra.mxu1 %v6408_v49  ;;  %v6412_v12 = vld [vmem:[#allocation4 + $0x590] sm:$0xff]  ;;  %v6414_v27 = vld [vmem:[#allocation4 + $0x558] sm:$0xff]  ;;  %v8413_v26 = vld [vmem:[#allocation6 + $0x748] sm:$0xff] }
 0x261   :  { %12201 = vst [vmem:[#allocation44_spill] sm:$0xff] %v8106_v46  ;;  %v8112_v53 = vadd.f32 %v966_v22, %v8051_v33  ;;  %v1269_v39 = vpop.f32.mrf.mxu1  ;;  %1942 = vmatprep.subr.mxu0 %v6409_v35  ;;  %2025 = vmatprep.subr.mxu1 %v6410_v37  ;;  %v6413_v46 = vld [vmem:[#allocation4 + $0x6c8] sm:$0xff]  ;;  %v6416_v35 = vld [vmem:[#allocation4 + $0x550] sm:$0xff]  ;;  %12248 = vst [vmem:[#allocation89_spill] sm:$0xff] %v8413_v26 }
 0x262   :  { %12202 = vst [vmem:[#allocation45_spill] sm:$0xff] %v8109_v32  ;;  %v8115_v34 = vadd.f32 %v1269_v39, %v8100_v16  ;;  %1943 = vmatpush2.msra.mxu0 %v6411_v3  ;;  %2026 = vmatpush2.msra.mxu1 %v6412_v12  ;;  %v6417_v3 = vld [vmem:[#allocation4 + $0x688] sm:$0xff]  ;;  %v6418_v12 = vld [vmem:[#allocation4 + $0x518] sm:$0xff] }
 0x263   :  { %12203 = vst [vmem:[#allocation46_spill] sm:$0xff] %v8112_v53  ;;  %v970_v32 = vpop.f32.mrf.mxu0  ;;  %1944 = vmatprep.subr.mxu0 %v6413_v46  ;;  %2027 = vmatprep.subr.mxu1 %v6414_v27  ;;  %v6415_v53 = vld [vmem:[#allocation4 + $0x6c0] sm:$0xff] }
 0x264   :  { %12204 = vst [vmem:[#allocation47_spill] sm:$0xff] %v8115_v34  ;;  %v8118_v22 = vadd.f32 %v970_v32, %v8035_v8  ;;  %v1273_v49 = vpop.f32.mrf.mxu1  ;;  %1945 = vmatpush2.msra.mxu0 %v6415_v53  ;;  %2028 = vmatpush2.msra.mxu1 %v6416_v35  ;;  %v6419_v34 = vld [vmem:[#allocation4 + $0x680] sm:$0xff]  ;;  %v6420_v32 = vld [vmem:[#allocation4 + $0x510] sm:$0xff] }
 0x265   :  { %v8121_v39 = vadd.f32 %v1273_v49, %v8089_v40  ;;  %v972_v37 = vpop.f32.mrf.mxu0  ;;  %1946 = vmatprep.subr.mxu0 %v6417_v3  ;;  %2029 = vmatprep.subr.mxu1 %v6418_v12  ;;  %v6422_v49 = vld [vmem:[#allocation4 + $0x4d8] sm:$0xff] }
 0x266   :  { %12205 = vst [vmem:[#allocation48_spill] sm:$0xff] %v8118_v22  ;;  %v8124_v46 = vadd.f32 %v972_v37, %v8051_v33  ;;  %v1275_v27 = vpop.f32.mrf.mxu1  ;;  %1947 = vmatpush2.msra.mxu0 %v6419_v34  ;;  %2030 = vmatpush2.msra.mxu1 %v6420_v32  ;;  %v6424_v37 = vld [vmem:[#allocation4 + $0x4d0] sm:$0xff]  ;;  %v12216_v22 = vsub.s32 5, %v7905_v18 }
 0x267   :  { %12206 = vst [vmem:[#allocation49_spill] sm:$0xff] %v8121_v39  ;;  %v8127_v53 = vadd.f32 %v1275_v27, %v8100_v16  ;;  %v976_v35 = vpop.f32.mrf.mxu0  ;;  %1948 = vmatprep.subr.mxu0 %v6421_v56  ;;  %2031 = vmatprep.subr.mxu1 %v6422_v49  ;;  %v6423_v39 = vld [vmem:[#allocation4 + $0x640] sm:$0xff]  ;;  %v6426_v27 = vld [vmem:[#allocation4 + $0x498] sm:$0xff] }
 0x268   :  { %12207 = vst [vmem:[#allocation50_spill] sm:$0xff] %v8124_v46  ;;  %v8130_v3 = vadd.f32 %v976_v35, %v8035_v8  ;;  %v1279_v12 = vpop.f32.mrf.mxu1  ;;  %1949 = vmatpush2.msra.mxu0 %v6423_v39  ;;  %2032 = vmatpush2.msra.mxu1 %v6424_v37  ;;  %v6425_v46 = vld [vmem:[#allocation4 + $0x608] sm:$0xff]  ;;  %v6428_v35 = vld [vmem:[#allocation4 + $0x490] sm:$0xff] }
 0x269   :  { %12208 = vst [vmem:[#allocation51_spill] sm:$0xff] %v8127_v53  ;;  %v8133_v34 = vadd.f32 %v1279_v12, %v8089_v40  ;;  %v978_v32 = vpop.f32.mrf.mxu0  ;;  %1950 = vmatprep.subr.mxu0 %v6425_v46  ;;  %2033 = vmatprep.subr.mxu1 %v6426_v27  ;;  %v6427_v53 = vld [vmem:[#allocation4 + $0x600] sm:$0xff]  ;;  %v6429_v37 = vld [vmem:[#allocation4 + $0x5c8] sm:$0xff]  ;;  %v6430_v12 = vld [vmem:[#allocation4 + $0x458] sm:$0xff] }
 0x26a   :  { %12209 = vst [vmem:[#allocation52_spill] sm:$0xff] %v8130_v3  ;;  %v8136_v56 = vadd.f32 %v978_v32, %v8051_v33  ;;  %v1281_v49 = vpop.f32.mrf.mxu1  ;;  %1951 = vmatpush2.msra.mxu0 %v6427_v53  ;;  %2034 = vmatpush2.msra.mxu1 %v6428_v35  ;;  %v6432_v46 = vld [vmem:[#allocation4 + $0x450] sm:$0xff]  ;;  %v12213_v32 = vsub.s32 4, %v7905_v18 }
 0x26b   :  { %12210 = vst [vmem:[#allocation53_spill] sm:$0xff] %v8133_v34  ;;  %v8139_v39 = vadd.f32 %v1281_v49, %v8100_v16  ;;  %1952 = vmatprep.subr.mxu0 %v6429_v37  ;;  %2035 = vmatprep.subr.mxu1 %v6430_v12  ;;  %v6433_v49 = vld [vmem:[#allocation4 + $0x588] sm:$0xff]  ;;  %v8397_v3 = vld [vmem:[#allocation6 + $0x7d0] sm:$0xff] }
 0x26c   :  { %12211 = vst [vmem:[#allocation54_spill] sm:$0xff] %v8136_v56  ;;  %v982_v34 = vpop.f32.mrf.mxu0  ;;  %1953 = vmatpush2.msra.mxu0 %v6431_v42  ;;  %2036 = vmatpush2.msra.mxu1 %v6432_v46  ;;  %v8144_v27 = vrot.slane %v7956_v54, %v12213_v32  ;;  %v6435_v42 = vld [vmem:[#allocation4 + $0x580] sm:$0xff]  ;;  %v6436_v46 = vld [vmem:[#allocation4 + $0x410] sm:$0xff]  ;;  %v8155_v32 = vrot.slane %v7956_v54, %v12216_v22  ;;  %v6440_v54 = vld [vmem:[#allocation4 + $0x508] sm:$0xff] }
 0x26d   :  { %12212 = vst [vmem:[#allocation55_spill] sm:$0xff] %v8139_v39  ;;  %v8147_v53 = vadd.f32 %v982_v34, %v8035_v8  ;;  %v1285_v35 = vpop.f32.mrf.mxu1  ;;  %1954 = vmatprep.subr.mxu0 %v6433_v49  ;;  %v6434_v39 = vld [vmem:[#allocation4 + $0x418] sm:$0xff]  ;;  %v6437_v49 = vld [vmem:[#allocation4 + $0x548] sm:$0xff]  ;;  %12243 = vst [vmem:[#allocation84_spill] sm:$0xff] %v8397_v3 }
 0x26e   :  { %2037 = vmatprep.subr.mxu1 %v6434_v39  ;;  %v8150_v37 = vadd.f32 %v1285_v35, %v8089_v40  ;;  %v984_v12 = vpop.f32.mrf.mxu0  ;;  %1955 = vmatpush2.msra.mxu0 %v6435_v42  ;;  %v6438_v39 = vld [vmem:[#allocation4 + $0x3f8] sm:$0xff]  ;;  %v6439_v42 = vld [vmem:[#allocation4 + $0x540] sm:$0xff] }
 0x26f   :  { %12214 = vst [vmem:[#allocation56_spill] sm:$0xff] %v8147_v53  ;;  %2038 = vmatpush2.msra.mxu1 %v6436_v46  ;;  %v8158_v8 = vadd.f32 %v984_v12, %v8051_v33  ;;  %v1287_v34 = vpop.f32.mrf.mxu1  ;;  %1956 = vmatprep.subr.mxu0 %v6437_v49  ;;  %v6441_v12 = vld [vmem:[#allocation4 + $0x500] sm:$0xff]  ;;  %v8421_v53 = vld [vmem:[#allocation6 + $0x750] sm:$0xff] }
 0x270   :  { %12215 = vst [vmem:[#allocation57_spill] sm:$0xff] %v8150_v37  ;;  %2117 = vmatprep.subr.mxu1 %v6438_v39  ;;  %v8161_v35 = vadd.f32 %v1287_v34, %v8100_v16  ;;  %v1160_v37 = vpop.f32.mrf.mxu0  ;;  %1957 = vmatpush2.msra.mxu0 %v6439_v42  ;;  %v6442_v39 = vld [vmem:[#allocation4 + $0x4c8] sm:$0xff]  ;;  %12251 = vst [vmem:[#allocation92_spill] sm:$0xff] %v8421_v53 }
 0x271   :  { %12217 = vst [vmem:[#allocation58_spill] sm:$0xff] %v8158_v8  ;;  %v8164_v46 = vadd.f32 %v1160_v37, %v8144_v27  ;;  %v1291_v18 = vpop.f32.mrf.mxu1  ;;  %1958 = vmatprep.subr.mxu0 %v6440_v54  ;;  %v6443_v37 = vld [vmem:[#allocation4 + $0x4c0] sm:$0xff]  ;;  %v8415_v8 = vld [vmem:[#allocation6 + $0x758] sm:$0xff] }
 0x272   :  { %12218 = vst [vmem:[#allocation59_spill] sm:$0xff] %v8161_v35  ;;  %v8167_v33 = vadd.f32 %v1291_v18, %v8089_v40  ;;  %v1162_v22 = vpop.f32.mrf.mxu0  ;;  %1959 = vmatpush2.msra.mxu0 %v6441_v12  ;;  %v6445_v54 = vld [vmem:[#allocation4 + $0x480] sm:$0xff]  ;;  %12249 = vst [vmem:[#allocation90_spill] sm:$0xff] %v8415_v8 }
 0x273   :  { %12219 = vst [vmem:[#allocation60_spill] sm:$0xff] %v8164_v46  ;;  %v8170_v49 = vadd.f32 %v1162_v22, %v8155_v32  ;;  %v1293_v34 = vpop.f32.mrf.mxu1  ;;  %1960 = vmatprep.subr.mxu0 %v6442_v39  ;;  %v6444_v46 = vld [vmem:[#allocation4 + $0x488] sm:$0xff]  ;;  %v6447_v39 = vld [vmem:[#allocation4 + $0x440] sm:$0xff] }
 0x274   :  { %12220 = vst [vmem:[#allocation61_spill] sm:$0xff] %v8167_v33  ;;  %v8173_v42 = vadd.f32 %v1293_v34, %v8100_v16  ;;  %1961 = vmatpush2.msra.mxu0 %v6443_v37  ;;  %v6446_v33 = vld [vmem:[#allocation4 + $0x448] sm:$0xff] }
 0x275   :  { %12221 = vst [vmem:[#allocation62_spill] sm:$0xff] %v8170_v49  ;;  %1962 = vmatprep.subr.mxu0 %v6444_v46 }
 0x276   :  { %12222 = vst [vmem:[#allocation63_spill] sm:$0xff] %v8173_v42  ;;  %1963 = vmatpush2.msra.mxu0 %v6445_v54  ;;  %v6448_v42 = vld [vmem:[#allocation4 + $0x408] sm:$0xff]  ;;  %v6449_v54 = vld [vmem:[#allocation4 + $0x400] sm:$0xff] }
 0x277   :  { %v1166_v18 = vpop.f32.mrf.mxu0  ;;  %v1297_v35 = vpop.f32.mrf.mxu1  ;;  %1964 = vmatprep.subr.mxu0 %v6446_v33 }
 0x278   :  { %v8176_v12 = vadd.f32 %v1166_v18, %v8144_v27  ;;  %v8179_v22 = vadd.f32 %v1297_v35, %v8089_v40  ;;  %1965 = vmatpush2.msra.mxu0 %v6447_v39 }
 0x279   :  { %v1168_v34 = vpop.f32.mrf.mxu0  ;;  %v1299_v49 = vpop.f32.mrf.mxu1  ;;  %1966 = vmatprep.subr.mxu0 %v6448_v42 }
 0x27a   :  { %12223 = vst [vmem:[#allocation64_spill] sm:$0xff] %v8176_v12  ;;  %12224 = vst [vmem:[#allocation65_spill] sm:$0xff] %v8179_v22  ;;  %v8182_v46 = vadd.f32 %v1168_v34, %v8155_v32  ;;  %v8185_v37 = vadd.f32 %v1299_v49, %v8100_v16  ;;  %1967 = vmatpush2.msra.mxu0 %v6449_v54 }
 0x27b   :  { %2046 = vmatprep.subr.mxu0 %v7852_v20 }
 0x27c   :  { %12225 = vst [vmem:[#allocation66_spill] sm:$0xff] %v8182_v46  ;;  %12226 = vst [vmem:[#allocation67_spill] sm:$0xff] %v8185_v37 }
 0x27d   :  { %v1172_v33 = vpop.f32.mrf.mxu0  ;;  %v1303_v18 = vpop.f32.mrf.mxu1 }
 0x27e   :  { %v8189_v35 = vadd.f32 %v1172_v33, %v8144_v27  ;;  %v8192_v39 = vadd.f32 %v1303_v18, %v8089_v40 }
 0x27f   :  { %v1174_v12 = vpop.f32.mrf.mxu0  ;;  %v1305_v42 = vpop.f32.mrf.mxu1 }
 0x280   :  { %12227 = vst [vmem:[#allocation68_spill] sm:$0xff] %v8189_v35  ;;  %12228 = vst [vmem:[#allocation69_spill] sm:$0xff] %v8192_v39  ;;  %v8195_v34 = vadd.f32 %v1174_v12, %v8155_v32  ;;  %v8198_v49 = vadd.f32 %v1305_v42, %v8100_v16  ;;  %v8407_v39 = vld [vmem:[#allocation6 + $0x780] sm:$0xff] }
 0x281   :  { %12246 = vst [vmem:[#allocation87_spill] sm:$0xff] %v8407_v39 }
 0x282   :  { %12229 = vst [vmem:[#allocation70_spill] sm:$0xff] %v8195_v34  ;;  %12230 = vst [vmem:[#allocation71_spill] sm:$0xff] %v8198_v49  ;;  %v1178_v46 = vpop.f32.mrf.mxu0  ;;  %v8401_v49 = vld [vmem:[#allocation6 + $0x788] sm:$0xff] }
 0x283   :  { %v8201_v54 = vadd.f32 %v1178_v46, %v8144_v27  ;;  %12244 = vst [vmem:[#allocation85_spill] sm:$0xff] %v8401_v49 }
 0x284   :  { %v1180_v20 = vpop.f32.mrf.mxu0 }
 0x285   :  { %12231 = vst [vmem:[#allocation72_spill] sm:$0xff] %v8201_v54  ;;  %v8204_v37 = vadd.f32 %v1180_v20, %v8155_v32 }
 0x287   :  { %12232 = vst [vmem:[#allocation73_spill] sm:$0xff] %v8204_v37  ;;  %v1184_v33 = vpop.f32.mrf.mxu0 }
 0x288   :  { %v8207_v40 = vadd.f32 %v1184_v33, %v8144_v27 }
 0x289   :  { %v1186_v18 = vpop.f32.mrf.mxu0 }
 0x28a   :  { %12233 = vst [vmem:[#allocation74_spill] sm:$0xff] %v8207_v40  ;;  %v8210_v35 = vadd.f32 %v1186_v18, %v8155_v32  ;;  %v624_v18 = vadd.f32 %v7984_v47, %v7995_v48 }
 0x28c   :  { %12234 = vst [vmem:[#allocation75_spill] sm:$0xff] %v8210_v35  ;;  %v1190_v12 = vpop.f32.mrf.mxu0 }
 0x28d   :  { %v8213_v16 = vadd.f32 %v1190_v12, %v8144_v27  ;;  %v626_v12 = vadd.f32 %v7992_v51, %v8001_v41 }
 0x28e   :  { %v1192_v42 = vpop.f32.mrf.mxu0 }
 0x28f   :  { %12235 = vst [vmem:[#allocation76_spill] sm:$0xff] %v8213_v16  ;;  %v8216_v46 = vadd.f32 %v1192_v42, %v8155_v32  ;;  %v547_v42 = vadd.f32 %v7922_v28, %v7945_v45  ;;  %v780_v28 = vadd.f32 %v7937_v38, %v7969_v60 }
 0x291   :  { %12236 = vst [vmem:[#allocation77_spill] sm:$0xff] %v8216_v46  ;;  %v1196_v34 = vpop.f32.mrf.mxu0 }
 0x292   :  { %v8219_v20 = vadd.f32 %v1196_v34, %v8144_v27  ;;  %v549_v34 = vadd.f32 %v7935_v29, %v7961_v55  ;;  %v778_v29 = vadd.f32 %v7924_v31, %v7950_v24 }
 0x293   :  { %v1198_v37 = vpop.f32.mrf.mxu0 }
 0x294   :  { %12237 = vst [vmem:[#allocation78_spill] sm:$0xff] %v8219_v20  ;;  %v8222_v33 = vadd.f32 %v1198_v37, %v8155_v32  ;;  %v8409_v20 = vld [vmem:[#allocation6 + $0x790] sm:$0xff] }
 0x295   :  { %12247 = vst [vmem:[#allocation88_spill] sm:$0xff] %v8409_v20 }
 0x296   :  { %12238 = vst [vmem:[#allocation79_spill] sm:$0xff] %v8222_v33  ;;  %v8403_v33 = vld [vmem:[#allocation6 + $0x798] sm:$0xff] }
 0x297   :  { %12245 = vst [vmem:[#allocation86_spill] sm:$0xff] %v8403_v33 }
 0x2aa   :  { %v1701_v54 = vpop.f32.mrf.mxu1 }
 0x2ab   :  { %v1850_v46 = vadd.f32 %v1701_v54, %v624_v18  ;;  %v701_v18 = vadd.f32 %v8016_v50, %v8027_v11 }
 0x2ac   :  { %v1703_v35 = vpop.f32.mrf.mxu1 }
 0x2ad   :  { %v1851_v22 = vadd.f32 %v1703_v35, %v626_v12  ;;  %v5600_v37 = vmul.f32 -1.442695, %v1850_v46  ;;  %v703_v12 = vadd.f32 %v8022_v4, %v8040_v62 }
 0x2af   :  { %v5601_v59 = vmul.f32 -1.442695, %v1851_v22  ;;  %6033 = vpow2.f32 %v5600_v37 }
 0x2b1   :  { %6035 = vpow2.f32 %v5601_v59 }
 0x2ba   :  { %v1630_v40 = vpop.f32.mrf.mxu0 }
 0x2bb   :  { %v1848_v32 = vadd.f32 %v1630_v40, %v547_v42 }
 0x2bc   :  { %v1632_v27 = vpop.f32.mrf.mxu0  ;;  %v6034_v41 = vpop.eup %6033 }
 0x2bd   :  { %v1849_v16 = vadd.f32 %v1632_v27, %v549_v34  ;;  %v5598_v56 = vmul.f32 -1.442695, %v1848_v32  ;;  %v1874_v55 = vadd.f32 1.0, %v6034_v41 }
 0x2be   :  { %v6036_v45 = vpop.eup %6035 }
 0x2bf   :  { %v5599_v47 = vmul.f32 -1.442695, %v1849_v16  ;;  %6037 = vpow2.f32 %v5598_v56  ;;  %v1875_v40 = vadd.f32 1.0, %v6036_v45 }
 0x2c1   :  { %6039 = vpow2.f32 %v5599_v47 }
 0x2c2   :  { %6041 = vrcp.f32 %v1874_v55 }
 0x2c3   :  { %6043 = vrcp.f32 %v1875_v40 }
 0x2cc   :  { %v6038_v35 = vpop.eup %6037 }
 0x2cd   :  { %v1862_v46 = vadd.f32 1.0, %v6038_v35 }
 0x2ce   :  { %v6040_v22 = vpop.eup %6039 }
 0x2cf   :  { %v1863_v56 = vadd.f32 1.0, %v6040_v22  ;;  %6045 = vrcp.f32 %v1862_v46  ;;  %v6042_v27 = vpop.eup %6041 }
 0x2d0   :  { %v6044_v34 = vpop.eup %6043 }
 0x2d1   :  { %v1895_v62 = vmul.f32 0.0, %v6044_v34  ;;  %v6460_v34 = vld [vmem:[#allocation4 + $0x328] sm:$0xff] }
 0x2dc   :  { %v6046_v32 = vpop.eup %6045 }
 0x2ec   :  { %v1843_v51 = vpop.f32.mrf.mxu1 }
 0x2ed   :  { %v1854_v16 = vadd.f32 %v1843_v51, %v778_v29  ;;  %v1894_v51 = vmul.f32 0.0, %v6042_v27  ;;  %v6459_v27 = vld [vmem:[#allocation4 + $0x370] sm:$0xff] }
 0x2ee   :  { %v1845_v48 = vpop.f32.mrf.mxu1 }
 0x2ef   :  { %v1855_v54 = vadd.f32 %v1845_v48, %v780_v28  ;;  %v5602_v38 = vmul.f32 -1.442695, %v1854_v16 }
 0x2f1   :  { %v5603_v59 = vmul.f32 -1.442695, %v1855_v54 }
 0x2f3   :  { %6047 = vpow2.f32 %v5603_v59  ;;  %v6450_v59 = vld [vmem:[#allocation4 + $0x3e0] sm:$0xff] }
 0x2f4   :  { %6049 = vrcp.f32 %v1863_v56  ;;  %v6451_v56 = vld [vmem:[#allocation4 + $0x3f0] sm:$0xff] }
 0x2fb   :  { %v1772_v60 = vpop.f32.mrf.mxu0 }
 0x2fc   :  { %v1852_v31 = vadd.f32 %v1772_v60, %v701_v18  ;;  %v6452_v18 = vld [vmem:[#allocation4 + $0x3a8] sm:$0xff]  ;;  %v6454_v60 = vld [vmem:[#allocation4 + $0x3a0] sm:$0xff] }
 0x2fd   :  { %v1774_v24 = vpop.f32.mrf.mxu0 }
 0x2fe   :  { %6051 = vtanh.f32 %v1852_v31  ;;  %v1853_v42 = vadd.f32 %v1774_v24, %v703_v12  ;;  %v6455_v12 = vld [vmem:[#allocation4 + $0x3b0] sm:$0xff]  ;;  %v6456_v31 = vld [vmem:[#allocation4 + $0x368] sm:$0xff]  ;;  %v6457_v24 = vld [vmem:[#allocation4 + $0x378] sm:$0xff] }
 0x2ff   :  { %6053 = vpow2.f32 %v5602_v38  ;;  %v6453_v38 = vld [vmem:[#allocation4 + $0x3b8] sm:$0xff] }
 0x300   :  { %6055 = vtanh.f32 %v1853_v42  ;;  %v6048_v37 = vpop.eup %6047  ;;  %v6458_v42 = vld [vmem:[#allocation4 + $0x360] sm:$0xff] }
 0x301   :  { %v6050_v50 = vpop.eup %6049  ;;  %v1889_v48 = vadd.f32 1.0, %v6048_v37  ;;  %v6462_v37 = vld [vmem:[#allocation4 + $0x320] sm:$0xff] }
 0x303   :  { %6057 = vrcp.f32 %v1889_v48  ;;  %v6467_v48 = vld [vmem:[#allocation4 + $0x2f0] sm:$0xff] }
 0x30b   :  { %v6052_v11 = vpop.eup %6051 }
 0x30c   :  { %v6054_v47 = vpop.eup %6053  ;;  %v1896_v41 = vmul.f32 %v6052_v11, %v6046_v32  ;;  %v6461_v32 = vld [vmem:[#allocation4 + $0x338] sm:$0xff]  ;;  %v6464_v11 = vld [vmem:[#allocation4 + $0x2e8] sm:$0xff] }
 0x30d   :  { %v6056_v28 = vpop.eup %6055  ;;  %v1888_v35 = vadd.f32 1.0, %v6054_v47  ;;  %v6465_v47 = vld [vmem:[#allocation4 + $0x2f8] sm:$0xff] }
 0x30e   :  { %v8240_v4 = vadd.f32 %v1896_v41, %v1894_v51  ;;  %v1897_v45 = vmul.f32 %v6056_v28, %v6050_v50  ;;  %v6463_v50 = vld [vmem:[#allocation4 + $0x330] sm:$0xff]  ;;  %v6466_v51 = vld [vmem:[#allocation4 + $0x2e0] sm:$0xff]  ;;  %v6468_v41 = vld [vmem:[#allocation4 + $0x2a8] sm:$0xff] }
 0x30f   :  { %v6469_v28 = vld [vmem:[#allocation4 + $0x2b8] sm:$0xff] }
 0x310   :  { %12239 = vst [vmem:[#allocation80_spill] sm:$0xff] %v8240_v4  ;;  %v8242_v54 = vadd.f32 %v1897_v45, %v1895_v62  ;;  %6059 = vtanh.f32 %v8240_v4  ;;  %v6058_v29 = vpop.eup %6057  ;;  %v6470_v62 = vld [vmem:[#allocation4 + $0x2a0] sm:$0xff]  ;;  %v6471_v45 = vld [vmem:[#allocation4 + $0x2b0] sm:$0xff]  ;;  %v8427_v4 = vld [vmem:[#allocation6 + $0x718] sm:$0xff] }
 0x311   :  { %12253 = vst [vmem:[#allocation94_spill] sm:$0xff] %v8427_v4 }
 0x312   :  { %12240 = vst [vmem:[#allocation81_spill] sm:$0xff] %v8242_v54  ;;  %6061 = vtanh.f32 %v8242_v54  ;;  %v8425_v54 = vld [vmem:[#allocation6 + $0x708] sm:$0xff] }
 0x313   :  { %6063 = vrcp.f32 %v1888_v35  ;;  %v6472_v35 = vld [vmem:[#allocation4 + $0x268] sm:$0xff]  ;;  %12252 = vst [vmem:[#allocation93_spill] sm:$0xff] %v8425_v54 }
 0x31d   :  { %v6060_v55 = vpop.eup %6059 }
 0x31f   :  { %v6062_v22 = vpop.eup %6061 }
 0x320   :  { %v6064_v40 = vpop.eup %6063  ;;  %v1903_v46 = vmul.f32 %v6062_v22, %v6058_v29  ;;  %v6473_v29 = vld [vmem:[#allocation4 + $0x278] sm:$0xff]  ;;  %v6475_v22 = vld [vmem:[#allocation4 + $0x270] sm:$0xff] }
 0x321   :  { %v8246_v16 = vmul.f32 %v6064_v40, %v6060_v55  ;;  %v6474_v55 = vld [vmem:[#allocation4 + $0x260] sm:$0xff]  ;;  %v6476_v40 = vld [vmem:[#allocation4 + $0x228] sm:$0xff] }
 0x322   :  { %1968 = vmatprep.mubr.f32.mxu0 %v1903_v46  ;;  %2039 = vmatprep.mubr.f32.mxu1 %v1903_v46 }
 0x323   :  { %1969 = vmatmul.mubr.f32.vlgmr.msra.gmra.mxu0 %v8246_v16  ;;  %2040 = vmatmul.mubr.f32.vlgmr.msra.gmra.mxu1 %v8246_v16 }
 0x324   :  { %2047 = vmatpush1.msra.mxu0 %v6450_v59  ;;  %2118 = vmatpush1.msra.mxu1 %v6451_v56  ;;  %v6478_v59 = vld [vmem:[#allocation4 + $0x220] sm:$0xff]  ;;  %v6479_v56 = vld [vmem:[#allocation4 + $0x230] sm:$0xff] }
 0x325   :  { %2048 = vmatprep.subr.mxu0 %v6452_v18  ;;  %2110 = vmatprep.mubr.f32.mxu0 %v1903_v46  ;;  %v6480_v18 = vld [vmem:[#allocation4 + $0x1e8] sm:$0xff] }
 0x326   :  { %2119 = vmatprep.subr.mxu1 %v6453_v38  ;;  %2181 = vmatprep.mubr.f32.mxu1 %v1903_v46  ;;  %v6477_v46 = vld [vmem:[#allocation4 + $0x238] sm:$0xff] }
 0x327   :  { %2049 = vmatpush1.msra.mxu0 %v6454_v60  ;;  %2120 = vmatpush1.msra.mxu1 %v6455_v12  ;;  %v6481_v38 = vld [vmem:[#allocation4 + $0x1f8] sm:$0xff]  ;;  %v6482_v60 = vld [vmem:[#allocation4 + $0x1e0] sm:$0xff]  ;;  %v6483_v12 = vld [vmem:[#allocation4 + $0x1f0] sm:$0xff] }
 0x328   :  { %2050 = vmatprep.subr.mxu0 %v6456_v31  ;;  %2121 = vmatprep.subr.mxu1 %v6457_v24  ;;  %v6484_v31 = vld [vmem:[#allocation4 + $0x1a8] sm:$0xff]  ;;  %v6485_v24 = vld [vmem:[#allocation4 + $0x1b8] sm:$0xff] }
 0x329   :  { %2051 = vmatpush1.msra.mxu0 %v6458_v42  ;;  %2122 = vmatpush1.msra.mxu1 %v6459_v27  ;;  %v6486_v42 = vld [vmem:[#allocation4 + $0x1a0] sm:$0xff]  ;;  %v6487_v27 = vld [vmem:[#allocation4 + $0x1b0] sm:$0xff] }
 0x32a   :  { %2052 = vmatprep.subr.mxu0 %v6460_v34  ;;  %2123 = vmatprep.subr.mxu1 %v6461_v32  ;;  %v6488_v34 = vld [vmem:[#allocation4 + $0x168] sm:$0xff]  ;;  %v6489_v32 = vld [vmem:[#allocation4 + $0x178] sm:$0xff] }
 0x32b   :  { %2053 = vmatpush1.msra.mxu0 %v6462_v37  ;;  %2124 = vmatpush1.msra.mxu1 %v6463_v50  ;;  %v6490_v37 = vld [vmem:[#allocation4 + $0x160] sm:$0xff]  ;;  %v6491_v50 = vld [vmem:[#allocation4 + $0x170] sm:$0xff] }
 0x32c   :  { %2054 = vmatprep.subr.mxu0 %v6464_v11  ;;  %2125 = vmatprep.subr.mxu1 %v6465_v47  ;;  %v6492_v11 = vld [vmem:[#allocation4 + $0x128] sm:$0xff]  ;;  %v6493_v47 = vld [vmem:[#allocation4 + $0x138] sm:$0xff] }
 0x32d   :  { %2055 = vmatpush1.msra.mxu0 %v6466_v51  ;;  %2126 = vmatpush1.msra.mxu1 %v6467_v48  ;;  %v6494_v51 = vld [vmem:[#allocation4 + $0x120] sm:$0xff]  ;;  %v6495_v48 = vld [vmem:[#allocation4 + $0x130] sm:$0xff] }
 0x32e   :  { %2056 = vmatprep.subr.mxu0 %v6468_v41  ;;  %2127 = vmatprep.subr.mxu1 %v6469_v28  ;;  %v6496_v41 = vld [vmem:[#allocation4 + $0xe8] sm:$0xff]  ;;  %v6497_v28 = vld [vmem:[#allocation4 + $0xf8] sm:$0xff] }
 0x32f   :  { %2057 = vmatpush1.msra.mxu0 %v6470_v62  ;;  %2128 = vmatpush1.msra.mxu1 %v6471_v45  ;;  %v6498_v62 = vld [vmem:[#allocation4 + $0xe0] sm:$0xff]  ;;  %v6499_v45 = vld [vmem:[#allocation4 + $0xf0] sm:$0xff] }
 0x330   :  { %2058 = vmatprep.subr.mxu0 %v6472_v35  ;;  %2129 = vmatprep.subr.mxu1 %v6473_v29  ;;  %v6500_v35 = vld [vmem:[#allocation4 + $0xa8] sm:$0xff]  ;;  %v6501_v29 = vld [vmem:[#allocation4 + $0xb8] sm:$0xff] }
 0x331   :  { %2059 = vmatpush1.msra.mxu0 %v6474_v55  ;;  %2130 = vmatpush1.msra.mxu1 %v6475_v22  ;;  %v6502_v55 = vld [vmem:[#allocation4 + $0xa0] sm:$0xff]  ;;  %v6503_v22 = vld [vmem:[#allocation4 + $0xb0] sm:$0xff] }
 0x332   :  { %2060 = vmatprep.subr.mxu0 %v6476_v40  ;;  %2131 = vmatprep.subr.mxu1 %v6477_v46  ;;  %v6504_v40 = vld [vmem:[#allocation4 + $0x68] sm:$0xff]  ;;  %v6505_v46 = vld [vmem:[#allocation4 + $0x78] sm:$0xff] }
 0x333   :  { %2061 = vmatpush1.msra.mxu0 %v6478_v59  ;;  %2132 = vmatpush1.msra.mxu1 %v6479_v56  ;;  %v6506_v59 = vld [vmem:[#allocation4 + $0x60] sm:$0xff]  ;;  %v6507_v56 = vld [vmem:[#allocation4 + $0x70] sm:$0xff] }
 0x334   :  { %2062 = vmatprep.subr.mxu0 %v6480_v18  ;;  %2133 = vmatprep.subr.mxu1 %v6481_v38  ;;  %v6508_v18 = vld [vmem:[#allocation4 + $0x28] sm:$0xff]  ;;  %v6509_v38 = vld [vmem:[#allocation4 + $0x38] sm:$0xff] }
 0x335   :  { %2063 = vmatpush1.msra.mxu0 %v6482_v60  ;;  %2134 = vmatpush1.msra.mxu1 %v6483_v12  ;;  %v6510_v60 = vld [vmem:[#allocation4 + $0x20] sm:$0xff]  ;;  %v6511_v12 = vld [vmem:[#allocation4 + $0x30] sm:$0xff] }
 0x336   :  { %2064 = vmatprep.subr.mxu0 %v6484_v31  ;;  %2135 = vmatprep.subr.mxu1 %v6485_v24  ;;  %v6512_v31 = vld [vmem:[#allocation4 + $0x7e8] sm:$0xff]  ;;  %v6513_v24 = vld [vmem:[#allocation4 + $0x7f8] sm:$0xff] }
 0x337   :  { %2065 = vmatpush1.msra.mxu0 %v6486_v42  ;;  %2136 = vmatpush1.msra.mxu1 %v6487_v27  ;;  %v6514_v42 = vld [vmem:[#allocation4 + $0x7e0] sm:$0xff]  ;;  %v6515_v27 = vld [vmem:[#allocation4 + $0x7f0] sm:$0xff] }
 0x338   :  { %2066 = vmatprep.subr.mxu0 %v6488_v34  ;;  %2137 = vmatprep.subr.mxu1 %v6489_v32  ;;  %v6516_v34 = vld [vmem:[#allocation4 + $0x7a8] sm:$0xff]  ;;  %v6517_v32 = vld [vmem:[#allocation4 + $0x7b8] sm:$0xff] }
 0x339   :  { %2067 = vmatpush1.msra.mxu0 %v6490_v37  ;;  %2138 = vmatpush1.msra.mxu1 %v6491_v50  ;;  %v6518_v37 = vld [vmem:[#allocation4 + $0x7a0] sm:$0xff]  ;;  %v6519_v50 = vld [vmem:[#allocation4 + $0x7b0] sm:$0xff] }
 0x33a   :  { %2068 = vmatprep.subr.mxu0 %v6492_v11  ;;  %2139 = vmatprep.subr.mxu1 %v6493_v47  ;;  %v6520_v11 = vld [vmem:[#allocation4 + $0x768] sm:$0xff]  ;;  %v6521_v47 = vld [vmem:[#allocation4 + $0x778] sm:$0xff] }
 0x33b   :  { %2069 = vmatpush1.msra.mxu0 %v6494_v51  ;;  %2140 = vmatpush1.msra.mxu1 %v6495_v48  ;;  %v6522_v51 = vld [vmem:[#allocation4 + $0x760] sm:$0xff]  ;;  %v6523_v48 = vld [vmem:[#allocation4 + $0x770] sm:$0xff] }
 0x33c   :  { %2070 = vmatprep.subr.mxu0 %v6496_v41  ;;  %2141 = vmatprep.subr.mxu1 %v6497_v28  ;;  %v6524_v41 = vld [vmem:[#allocation4 + $0x728] sm:$0xff]  ;;  %v6525_v28 = vld [vmem:[#allocation4 + $0x738] sm:$0xff] }
 0x33d   :  { %2071 = vmatpush1.msra.mxu0 %v6498_v62  ;;  %2142 = vmatpush1.msra.mxu1 %v6499_v45  ;;  %v6526_v62 = vld [vmem:[#allocation4 + $0x720] sm:$0xff]  ;;  %v6527_v45 = vld [vmem:[#allocation4 + $0x730] sm:$0xff] }
 0x33e   :  { %2072 = vmatprep.subr.mxu0 %v6500_v35  ;;  %2143 = vmatprep.subr.mxu1 %v6501_v29  ;;  %v6528_v35 = vld [vmem:[#allocation4 + $0x6e8] sm:$0xff]  ;;  %v6529_v29 = vld [vmem:[#allocation4 + $0x6f8] sm:$0xff] }
 0x33f   :  { %2073 = vmatpush1.msra.mxu0 %v6502_v55  ;;  %2144 = vmatpush1.msra.mxu1 %v6503_v22  ;;  %v6530_v55 = vld [vmem:[#allocation4 + $0x6e0] sm:$0xff]  ;;  %v6531_v22 = vld [vmem:[#allocation4 + $0x6f0] sm:$0xff] }
 0x340   :  { %2074 = vmatprep.subr.mxu0 %v6504_v40  ;;  %2145 = vmatprep.subr.mxu1 %v6505_v46  ;;  %v6532_v40 = vld [vmem:[#allocation4 + $0x6a8] sm:$0xff]  ;;  %v6533_v46 = vld [vmem:[#allocation4 + $0x6b8] sm:$0xff] }
 0x341   :  { %2075 = vmatpush1.msra.mxu0 %v6506_v59  ;;  %2146 = vmatpush1.msra.mxu1 %v6507_v56  ;;  %v6534_v59 = vld [vmem:[#allocation4 + $0x6a0] sm:$0xff]  ;;  %v6535_v56 = vld [vmem:[#allocation4 + $0x6b0] sm:$0xff] }
 0x342   :  { %2076 = vmatprep.subr.mxu0 %v6508_v18  ;;  %2147 = vmatprep.subr.mxu1 %v6509_v38  ;;  %v6536_v18 = vld [vmem:[#allocation4 + $0x668] sm:$0xff]  ;;  %v6537_v38 = vld [vmem:[#allocation4 + $0x678] sm:$0xff] }
 0x343   :  { %2077 = vmatpush1.msra.mxu0 %v6510_v60  ;;  %2148 = vmatpush1.msra.mxu1 %v6511_v12  ;;  %v6538_v60 = vld [vmem:[#allocation4 + $0x660] sm:$0xff]  ;;  %v6539_v12 = vld [vmem:[#allocation4 + $0x670] sm:$0xff] }
 0x344   :  { %2078 = vmatprep.subr.mxu0 %v6512_v31  ;;  %2149 = vmatprep.subr.mxu1 %v6513_v24  ;;  %v6540_v31 = vld [vmem:[#allocation4 + $0x628] sm:$0xff]  ;;  %v6541_v24 = vld [vmem:[#allocation4 + $0x638] sm:$0xff] }
 0x345   :  { %2079 = vmatpush2.msra.mxu0 %v6514_v42  ;;  %2150 = vmatpush2.msra.mxu1 %v6515_v27  ;;  %v6542_v42 = vld [vmem:[#allocation4 + $0x620] sm:$0xff]  ;;  %v6543_v27 = vld [vmem:[#allocation4 + $0x630] sm:$0xff] }
 0x346   :  { %2080 = vmatprep.subr.mxu0 %v6516_v34  ;;  %2151 = vmatprep.subr.mxu1 %v6517_v32  ;;  %v6544_v34 = vld [vmem:[#allocation4 + $0x5e8] sm:$0xff]  ;;  %v6545_v32 = vld [vmem:[#allocation4 + $0x5f8] sm:$0xff] }
 0x347   :  { %2081 = vmatpush2.msra.mxu0 %v6518_v37  ;;  %2152 = vmatpush2.msra.mxu1 %v6519_v50  ;;  %v6546_v37 = vld [vmem:[#allocation4 + $0x5f0] sm:$0xff]  ;;  %v6547_v50 = vld [vmem:[#allocation4 + $0x5b8] sm:$0xff] }
 0x348   :  { %2082 = vmatprep.subr.mxu0 %v6520_v11  ;;  %2153 = vmatprep.subr.mxu1 %v6521_v47  ;;  %v6548_v11 = vld [vmem:[#allocation4 + $0x5b0] sm:$0xff]  ;;  %v6549_v47 = vld [vmem:[#allocation4 + $0x578] sm:$0xff] }
 0x349   :  { %2083 = vmatpush2.msra.mxu0 %v6522_v51  ;;  %2154 = vmatpush2.msra.mxu1 %v6523_v48  ;;  %v6550_v51 = vld [vmem:[#allocation4 + $0x570] sm:$0xff]  ;;  %v2365_v48 = vld [vmem:[#allocation6 + $0x3c8] sm:$0xff] }
 0x34a   :  { %2084 = vmatprep.subr.mxu0 %v6524_v41  ;;  %2155 = vmatprep.subr.mxu1 %v6525_v28  ;;  %v6560_v41 = vld [vmem:[#allocation4 + $0x430] sm:$0xff] }
 0x34b   :  { %2085 = vmatpush2.msra.mxu0 %v6526_v62  ;;  %2156 = vmatpush2.msra.mxu1 %v6527_v45  ;;  %v2366_v28 = vld [vmem:[#allocation6 + $0x3d0] sm:$0xff]  ;;  %v2356_v62 = vld [vmem:[#allocation6 + $0x380] sm:$0xff]  ;;  %v2349_v45 = vld [vmem:[#allocation6 + $0x348] sm:$0xff] }
 0x34c   :  { %2086 = vmatprep.subr.mxu0 %v6528_v35  ;;  %2157 = vmatprep.subr.mxu1 %v6529_v29  ;;  %v2351_v35 = vld [vmem:[#allocation6 + $0x358] sm:$0xff]  ;;  %v2350_v29 = vld [vmem:[#allocation6 + $0x350] sm:$0xff] }
 0x34d   :  { %2087 = vmatpush2.msra.mxu0 %v6530_v55  ;;  %2158 = vmatpush2.msra.mxu1 %v6531_v22  ;;  %v2341_v55 = vld [vmem:[#allocation6 + $0x308] sm:$0xff]  ;;  %v2343_v22 = vld [vmem:[#allocation6 + $0x318] sm:$0xff] }
 0x34e   :  { %2088 = vmatprep.subr.mxu0 %v6532_v40  ;;  %2159 = vmatprep.subr.mxu1 %v6533_v46  ;;  %v2342_v40 = vld [vmem:[#allocation6 + $0x310] sm:$0xff]  ;;  %v2333_v46 = vld [vmem:[#allocation6 + $0x2c8] sm:$0xff] }
 0x34f   :  { %2089 = vmatpush2.msra.mxu0 %v6534_v59  ;;  %2160 = vmatpush2.msra.mxu1 %v6535_v56  ;;  %v2335_v59 = vld [vmem:[#allocation6 + $0x2d8] sm:$0xff]  ;;  %v2332_v56 = vld [vmem:[#allocation6 + $0x2c0] sm:$0xff] }
 0x350   :  { %2090 = vmatprep.subr.mxu0 %v6536_v18  ;;  %2161 = vmatprep.subr.mxu1 %v6537_v38  ;;  %v2334_v18 = vld [vmem:[#allocation6 + $0x2d0] sm:$0xff]  ;;  %v2325_v38 = vld [vmem:[#allocation6 + $0x288] sm:$0xff] }
 0x351   :  { %2091 = vmatpush2.msra.mxu0 %v6538_v60  ;;  %2162 = vmatpush2.msra.mxu1 %v6539_v12  ;;  %v2327_v60 = vld [vmem:[#allocation6 + $0x298] sm:$0xff]  ;;  %v8267_v12 = vld [vmem:[#allocation6 + $0x280] sm:$0xff] }
 0x352   :  { %2092 = vmatprep.subr.mxu0 %v6540_v31  ;;  %2163 = vmatprep.subr.mxu1 %v6541_v24  ;;  %v8269_v31 = vld [vmem:[#allocation6 + $0x290] sm:$0xff]  ;;  %v8271_v24 = vld [vmem:[#allocation6 + $0x248] sm:$0xff] }
 0x353   :  { %2093 = vmatpush2.msra.mxu0 %v6542_v42  ;;  %2164 = vmatpush2.msra.mxu1 %v6543_v27  ;;  %v8273_v42 = vld [vmem:[#allocation6 + $0x258] sm:$0xff]  ;;  %v8275_v27 = vld [vmem:[#allocation6 + $0x240] sm:$0xff] }
 0x354   :  { %2094 = vmatprep.subr.mxu0 %v6544_v34  ;;  %2165 = vmatprep.subr.mxu1 %v6545_v32  ;;  %v8277_v34 = vld [vmem:[#allocation6 + $0x250] sm:$0xff]  ;;  %v8281_v32 = vld [vmem:[#allocation6 + $0x208] sm:$0xff] }
 0x355   :  { %2095 = vmatpush2.msra.mxu0 %v7867_v0  ;;  %2166 = vmatpush2.msra.mxu1 %v6546_v37  ;;  %v6551_v0 = vld [vmem:[#allocation4 + $0x538] sm:$0xff] }
 0x356   :  { %2096 = vmatprep.subr.mxu0 %v7869_v36  ;;  %2167 = vmatprep.subr.mxu1 %v6547_v50  ;;  %v6552_v36 = vld [vmem:[#allocation4 + $0x530] sm:$0xff]  ;;  %v8283_v37 = vld [vmem:[#allocation6 + $0x218] sm:$0xff]  ;;  %v8287_v50 = vld [vmem:[#allocation6 + $0x200] sm:$0xff] }
 0x357   :  { %2097 = vmatpush2.msra.mxu0 %v7872_v1  ;;  %2168 = vmatpush2.msra.mxu1 %v6548_v11  ;;  %v6553_v1 = vld [vmem:[#allocation4 + $0x4f8] sm:$0xff]  ;;  %v8289_v11 = vld [vmem:[#allocation6 + $0x210] sm:$0xff] }
 0x358   :  { %2098 = vmatprep.subr.mxu0 %v7876_v2  ;;  %2169 = vmatprep.subr.mxu1 %v6549_v47  ;;  %v6554_v2 = vld [vmem:[#allocation4 + $0x4f0] sm:$0xff]  ;;  %v8293_v47 = vld [vmem:[#allocation6 + $0x1c8] sm:$0xff] }
 0x359   :  { %2099 = vmatpush2.msra.mxu0 %v7881_v5  ;;  %2170 = vmatpush2.msra.mxu1 %v6550_v51  ;;  %v6555_v5 = vld [vmem:[#allocation4 + $0x4b8] sm:$0xff] }
 0x35a   :  { %2100 = vmatprep.subr.mxu0 %v7885_v6  ;;  %2171 = vmatprep.subr.mxu1 %v6551_v0  ;;  %v6556_v6 = vld [vmem:[#allocation4 + $0x4b0] sm:$0xff]  ;;  %v8295_v51 = vld [vmem:[#allocation6 + $0x1d8] sm:$0xff]  ;;  %v8299_v0 = vld [vmem:[#allocation6 + $0x1c0] sm:$0xff] }
 0x35b   :  { %2101 = vmatpush2.msra.mxu0 %v7888_v9  ;;  %2172 = vmatpush2.msra.mxu1 %v6552_v36  ;;  %v6557_v9 = vld [vmem:[#allocation4 + $0x478] sm:$0xff]  ;;  %v8301_v36 = vld [vmem:[#allocation6 + $0x1d0] sm:$0xff] }
 0x35c   :  { %2102 = vmatprep.subr.mxu0 %v7891_v10  ;;  %2173 = vmatprep.subr.mxu1 %v6553_v1  ;;  %v6558_v10 = vld [vmem:[#allocation4 + $0x470] sm:$0xff]  ;;  %v8305_v1 = vld [vmem:[#allocation6 + $0x188] sm:$0xff] }
 0x35d   :  { %2103 = vmatpush2.msra.mxu0 %v7896_v13  ;;  %2174 = vmatpush2.msra.mxu1 %v6554_v2  ;;  %v6559_v13 = vld [vmem:[#allocation4 + $0x438] sm:$0xff] }
 0x35e   :  { %2104 = vmatprep.subr.mxu0 %v7899_v15  ;;  %2175 = vmatprep.subr.mxu1 %v6555_v5  ;;  %v2367_v15 = vld [vmem:[#allocation6 + $0x3d8] sm:$0xff]  ;;  %v8311_v5 = vld [vmem:[#allocation6 + $0x180] sm:$0xff] }
 0x35f   :  { %2105 = vmatpush2.msra.mxu0 %v7902_v17  ;;  %2176 = vmatpush2.msra.mxu1 %v6556_v6  ;;  %v2364_v17 = vld [vmem:[#allocation6 + $0x3c0] sm:$0xff]  ;;  %v8307_v2 = vld [vmem:[#allocation6 + $0x198] sm:$0xff]  ;;  %v8313_v6 = vld [vmem:[#allocation6 + $0x190] sm:$0xff] }
 0x360   :  { %2106 = vmatprep.subr.mxu0 %v7908_v19  ;;  %2177 = vmatprep.subr.mxu1 %v6557_v9  ;;  %v2357_v19 = vld [vmem:[#allocation6 + $0x388] sm:$0xff] }
 0x361   :  { %2107 = vmatpush2.msra.mxu0 %v7913_v23  ;;  %2178 = vmatpush2.msra.mxu1 %v6558_v10  ;;  %v2359_v23 = vld [vmem:[#allocation6 + $0x398] sm:$0xff]  ;;  %v8317_v9 = vld [vmem:[#allocation6 + $0x148] sm:$0xff] }
 0x362   :  { %2108 = vmatprep.subr.mxu0 %v7916_v43  ;;  %2179 = vmatprep.subr.mxu1 %v6559_v13  ;;  %v2358_v43 = vld [vmem:[#allocation6 + $0x390] sm:$0xff]  ;;  %v8319_v10 = vld [vmem:[#allocation6 + $0x158] sm:$0xff]  ;;  %v8323_v13 = vld [vmem:[#allocation6 + $0x140] sm:$0xff] }
 0x363   :  { %2109 = vmatpush2.msra.mxu0 %v7919_v7  ;;  %2180 = vmatpush2.msra.mxu1 %v6560_v41  ;;  %v2348_v7 = vld [vmem:[#allocation6 + $0x340] sm:$0xff]  ;;  %v8331_v41 = vld [vmem:[#allocation6 + $0x118] sm:$0xff] }
 0x364   :  { %2111 = vmatmul.mubr.f32.vlgmr.msra.gmra.mxu0 %v8246_v16  ;;  %2182 = vmatmul.mubr.f32.vlgmr.msra.gmra.mxu1 %v8246_v16  ;;  %v2340_v16 = vld [vmem:[#allocation6 + $0x300] sm:$0xff] }
 0x365   :  { %2500 = vmatprep.subr.mxu0 %v2365_v48  ;;  %2571 = vmatprep.subr.mxu1 %v2367_v15  ;;  %v8325_v48 = vld [vmem:[#allocation6 + $0x150] sm:$0xff]  ;;  %v8329_v15 = vld [vmem:[#allocation6 + $0x108] sm:$0xff] }
 0x366   :  { %2501 = vmatpush1.msra.mxu0 %v2364_v17  ;;  %2572 = vmatpush1.msra.mxu1 %v2366_v28  ;;  %v8335_v17 = vld [vmem:[#allocation6 + $0x100] sm:$0xff]  ;;  %v8337_v28 = vld [vmem:[#allocation6 + $0x110] sm:$0xff] }
 0x367   :  { %2502 = vmatprep.subr.mxu0 %v2357_v19  ;;  %2573 = vmatprep.subr.mxu1 %v2359_v23  ;;  %v8341_v19 = vld [vmem:[#allocation6 + $0xc8] sm:$0xff]  ;;  %v8343_v23 = vld [vmem:[#allocation6 + $0xd8] sm:$0xff] }
 0x368   :  { %2503 = vmatpush1.msra.mxu0 %v2356_v62  ;;  %2574 = vmatpush1.msra.mxu1 %v2358_v43  ;;  %v8347_v62 = vld [vmem:[#allocation6 + $0xc0] sm:$0xff]  ;;  %v8349_v43 = vld [vmem:[#allocation6 + $0xd0] sm:$0xff] }
 0x369   :  { %2504 = vmatprep.subr.mxu0 %v2349_v45  ;;  %2575 = vmatprep.subr.mxu1 %v2351_v35  ;;  %v8353_v45 = vld [vmem:[#allocation6 + $0x88] sm:$0xff]  ;;  %v8355_v35 = vld [vmem:[#allocation6 + $0x98] sm:$0xff] }
 0x36a   :  { %2505 = vmatpush1.msra.mxu0 %v2348_v7  ;;  %2576 = vmatpush1.msra.mxu1 %v2350_v29  ;;  %v8359_v7 = vld [vmem:[#allocation6 + $0x80] sm:$0xff]  ;;  %v8361_v29 = vld [vmem:[#allocation6 + $0x90] sm:$0xff] }
 0x36b   :  { %2506 = vmatprep.subr.mxu0 %v2341_v55  ;;  %2577 = vmatprep.subr.mxu1 %v2343_v22  ;;  %v8365_v55 = vld [vmem:[#allocation6 + $0x48] sm:$0xff]  ;;  %v8367_v22 = vld [vmem:[#allocation6 + $0x58] sm:$0xff] }
 0x36c   :  { %2507 = vmatpush1.msra.mxu0 %v2340_v16  ;;  %2578 = vmatpush1.msra.mxu1 %v2342_v40  ;;  %v8371_v16 = vld [vmem:[#allocation6 + $0x40] sm:$0xff]  ;;  %v8373_v40 = vld [vmem:[#allocation6 + $0x50] sm:$0xff] }
 0x36d   :  { %2508 = vmatprep.subr.mxu0 %v2333_v46  ;;  %2579 = vmatprep.subr.mxu1 %v2335_v59  ;;  %v8377_v46 = vld [vmem:[#allocation6 + $0x8] sm:$0xff]  ;;  %v8379_v59 = vld [vmem:[#allocation6 + $0x18] sm:$0xff] }
 0x36e   :  { %2509 = vmatpush1.msra.mxu0 %v2332_v56  ;;  %2580 = vmatpush1.msra.mxu1 %v2334_v18  ;;  %v8383_v56 = vld [vmem:[#allocation6] sm:$0xff]  ;;  %v8385_v18 = vld [vmem:[#allocation6 + $0x10] sm:$0xff] }
 0x36f   :  { %2510 = vmatprep.subr.mxu0 %v2325_v38  ;;  %2581 = vmatprep.subr.mxu1 %v2327_v60  ;;  %v8389_v38 = vld [vmem:[#allocation6 + $0x7c8] sm:$0xff]  ;;  %v8391_v60 = vld [vmem:[#allocation6 + $0x7d8] sm:$0xff] }
 0x370   :  { %2511 = vmatpush1.msra.mxu0 %v8267_v12  ;;  %2582 = vmatpush1.msra.mxu1 %v8269_v31  ;;  %12241 = vst [vmem:[#allocation82_spill] sm:$0xff] %v8391_v60 }
 0x371   :  { %2512 = vmatprep.subr.mxu0 %v8271_v24  ;;  %2583 = vmatprep.subr.mxu1 %v8273_v42 }
 0x372   :  { %2513 = vmatpush1.msra.mxu0 %v8275_v27  ;;  %2584 = vmatpush1.msra.mxu1 %v8277_v34 }
 0x373   :  { %2514 = vmatprep.subr.mxu0 %v8281_v32  ;;  %2585 = vmatprep.subr.mxu1 %v8283_v37 }
 0x374   :  { %2515 = vmatpush1.msra.mxu0 %v8287_v50  ;;  %2586 = vmatpush1.msra.mxu1 %v8289_v11 }
 0x375   :  { %2516 = vmatprep.subr.mxu0 %v8293_v47  ;;  %2587 = vmatprep.subr.mxu1 %v8295_v51 }
 0x376   :  { %2517 = vmatpush1.msra.mxu0 %v8299_v0  ;;  %2588 = vmatpush1.msra.mxu1 %v8301_v36 }
 0x377   :  { %2518 = vmatprep.subr.mxu0 %v8305_v1  ;;  %2589 = vmatprep.subr.mxu1 %v8307_v2 }
 0x378   :  { %2519 = vmatpush1.msra.mxu0 %v8311_v5  ;;  %2590 = vmatpush1.msra.mxu1 %v8313_v6 }
 0x379   :  { %2520 = vmatprep.subr.mxu0 %v8317_v9  ;;  %2591 = vmatprep.subr.mxu1 %v8319_v10 }
 0x37a   :  { %2521 = vmatpush1.msra.mxu0 %v8323_v13  ;;  %2592 = vmatpush1.msra.mxu1 %v8325_v48 }
 0x37b   :  { %2522 = vmatprep.subr.mxu0 %v8329_v15  ;;  %2593 = vmatprep.subr.mxu1 %v8331_v41 }
 0x37c   :  { %2523 = vmatpush1.msra.mxu0 %v8335_v17  ;;  %2594 = vmatpush1.msra.mxu1 %v8337_v28 }
 0x37d   :  { %2524 = vmatprep.subr.mxu0 %v8341_v19  ;;  %2595 = vmatprep.subr.mxu1 %v8343_v23 }
 0x37e   :  { %2525 = vmatpush1.msra.mxu0 %v8347_v62  ;;  %2596 = vmatpush1.msra.mxu1 %v8349_v43 }
 0x37f   :  { %2526 = vmatprep.subr.mxu0 %v8353_v45  ;;  %2597 = vmatprep.subr.mxu1 %v8355_v35 }
 0x380   :  { %2527 = vmatpush1.msra.mxu0 %v8359_v7  ;;  %2598 = vmatpush1.msra.mxu1 %v8361_v29 }
 0x381   :  { %2528 = vmatprep.subr.mxu0 %v8365_v55  ;;  %2599 = vmatprep.subr.mxu1 %v8367_v22 }
 0x382   :  { %2529 = vmatpush1.msra.mxu0 %v8371_v16  ;;  %2600 = vmatpush1.msra.mxu1 %v8373_v40 }
 0x383   :  { %2530 = vmatprep.subr.mxu0 %v8377_v46  ;;  %2601 = vmatprep.subr.mxu1 %v8379_v59 }
 0x384   :  { %2531 = vmatpush1.msra.mxu0 %v8383_v56  ;;  %2602 = vmatpush1.msra.mxu1 %v8385_v18 }
 0x385   :  { %2532 = vmatprep.subr.mxu0 %v8389_v38  ;;  %2603 = vmatprep.subr.mxu1 %v8391_v60  ;;  %v2339_v60 = vld [vmem:[#allocation6 + $0x2f8] sm:$0xff] }
 0x386   :  { %2533 = vmatpush2.msra.mxu0 %v8395_v30  ;;  %2604 = vmatpush2.msra.mxu1 %v8397_v3  ;;  %v2347_v3 = vld [vmem:[#allocation6 + $0x338] sm:$0xff]  ;;  %v2344_v30 = vld [vmem:[#allocation6 + $0x320] sm:$0xff] }
 0x387   :  { %2534 = vmatprep.subr.mxu0 %v8401_v49  ;;  %2605 = vmatprep.subr.mxu1 %v8403_v33  ;;  %v2354_v33 = vld [vmem:[#allocation6 + $0x370] sm:$0xff]  ;;  %v2345_v49 = vld [vmem:[#allocation6 + $0x328] sm:$0xff] }
 0x388   :  { %2535 = vmatpush2.msra.mxu0 %v8407_v39  ;;  %2606 = vmatpush2.msra.mxu1 %v8409_v20  ;;  %v8443_v20 = vld [vmem:[#allocation6 + $0x6c0] sm:$0xff] }
 0x389   :  { %2536 = vmatprep.subr.mxu0 %v8413_v26  ;;  %2607 = vmatprep.subr.mxu1 %v8415_v8  ;;  %12258 = vst [vmem:[#allocation99_spill] sm:$0xff] %v8443_v20  ;;  %v8445_v26 = vld [vmem:[#allocation6 + $0x6d0] sm:$0xff]  ;;  %v8449_v8 = vld [vmem:[#allocation6 + $0x688] sm:$0xff]  ;;  %v2352_v39 = vld [vmem:[#allocation6 + $0x360] sm:$0xff] }
 0x38a   :  { %2537 = vmatpush2.msra.mxu0 %v8419_v63  ;;  %2608 = vmatpush2.msra.mxu1 %v8421_v53  ;;  %12259 = vst [vmem:[#allocation100_spill] sm:$0xff] %v8445_v26  ;;  %12260 = vst [vmem:[#allocation101_spill] sm:$0xff] %v8449_v8  ;;  %v8451_v63 = vld [vmem:[#allocation6 + $0x698] sm:$0xff]  ;;  %v8455_v53 = vld [vmem:[#allocation6 + $0x680] sm:$0xff] }
 0x38b   :  { %2538 = vmatprep.subr.mxu0 %v8425_v54  ;;  %2609 = vmatprep.subr.mxu1 %v8427_v4  ;;  %12261 = vst [vmem:[#allocation102_spill] sm:$0xff] %v8451_v63  ;;  %12262 = vst [vmem:[#allocation103_spill] sm:$0xff] %v8455_v53  ;;  %v8457_v54 = vld [vmem:[#allocation6 + $0x690] sm:$0xff]  ;;  %v8461_v4 = vld [vmem:[#allocation6 + $0x648] sm:$0xff] }
 0x38c   :  { %2539 = vmatpush2.msra.mxu0 %v8431_v25  ;;  %2610 = vmatpush2.msra.mxu1 %v8433_v44  ;;  %12263 = vst [vmem:[#allocation104_spill] sm:$0xff] %v8457_v54  ;;  %12264 = vst [vmem:[#allocation105_spill] sm:$0xff] %v8461_v4  ;;  %v8463_v25 = vld [vmem:[#allocation6 + $0x658] sm:$0xff]  ;;  %v8467_v44 = vld [vmem:[#allocation6 + $0x640] sm:$0xff] }
 0x38d   :  { %2540 = vmatprep.subr.mxu0 %v8437_v61  ;;  %2611 = vmatprep.subr.mxu1 %v8439_v21  ;;  %12265 = vst [vmem:[#allocation106_spill] sm:$0xff] %v8463_v25  ;;  %12266 = vst [vmem:[#allocation107_spill] sm:$0xff] %v8467_v44  ;;  %v8469_v61 = vld [vmem:[#allocation6 + $0x650] sm:$0xff]  ;;  %v8473_v21 = vld [vmem:[#allocation6 + $0x608] sm:$0xff] }
 0x38e   :  { %2541 = vmatpush2.msra.mxu0 %v8443_v20  ;;  %2612 = vmatpush2.msra.mxu1 %v8445_v26  ;;  %12267 = vst [vmem:[#allocation108_spill] sm:$0xff] %v8469_v61  ;;  %12268 = vst [vmem:[#allocation109_spill] sm:$0xff] %v8473_v21  ;;  %v8475_v20 = vld [vmem:[#allocation6 + $0x618] sm:$0xff]  ;;  %v8479_v26 = vld [vmem:[#allocation6 + $0x600] sm:$0xff] }
 0x38f   :  { %2542 = vmatprep.subr.mxu0 %v8449_v8  ;;  %2613 = vmatprep.subr.mxu1 %v8451_v63  ;;  %12269 = vst [vmem:[#allocation110_spill] sm:$0xff] %v8475_v20  ;;  %12270 = vst [vmem:[#allocation111_spill] sm:$0xff] %v8479_v26  ;;  %v8481_v8 = vld [vmem:[#allocation6 + $0x610] sm:$0xff]  ;;  %v8485_v63 = vld [vmem:[#allocation6 + $0x5c8] sm:$0xff] }
 0x390   :  { %2543 = vmatpush2.msra.mxu0 %v8455_v53  ;;  %2614 = vmatpush2.msra.mxu1 %v8457_v54  ;;  %12271 = vst [vmem:[#allocation112_spill] sm:$0xff] %v8481_v8  ;;  %12272 = vst [vmem:[#allocation113_spill] sm:$0xff] %v8485_v63  ;;  %v8487_v53 = vld [vmem:[#allocation6 + $0x5d8] sm:$0xff]  ;;  %v8491_v54 = vld [vmem:[#allocation6 + $0x5c0] sm:$0xff] }
 0x391   :  { %2544 = vmatprep.subr.mxu0 %v8461_v4  ;;  %2615 = vmatprep.subr.mxu1 %v8463_v25  ;;  %12273 = vst [vmem:[#allocation114_spill] sm:$0xff] %v8487_v53  ;;  %12274 = vst [vmem:[#allocation115_spill] sm:$0xff] %v8491_v54  ;;  %v8493_v4 = vld [vmem:[#allocation6 + $0x5d0] sm:$0xff]  ;;  %v8497_v25 = vld [vmem:[#allocation6 + $0x588] sm:$0xff] }
 0x392   :  { %2545 = vmatpush2.msra.mxu0 %v8467_v44  ;;  %2616 = vmatpush2.msra.mxu1 %v8469_v61  ;;  %12275 = vst [vmem:[#allocation116_spill] sm:$0xff] %v8493_v4  ;;  %12276 = vst [vmem:[#allocation117_spill] sm:$0xff] %v8497_v25  ;;  %v8499_v44 = vld [vmem:[#allocation6 + $0x598] sm:$0xff]  ;;  %v8503_v61 = vld [vmem:[#allocation6 + $0x580] sm:$0xff] }
 0x393   :  { %2546 = vmatprep.subr.mxu0 %v8473_v21  ;;  %2617 = vmatprep.subr.mxu1 %v8475_v20  ;;  %12277 = vst [vmem:[#allocation118_spill] sm:$0xff] %v8499_v44  ;;  %12278 = vst [vmem:[#allocation119_spill] sm:$0xff] %v8503_v61  ;;  %v8505_v21 = vld [vmem:[#allocation6 + $0x590] sm:$0xff]  ;;  %v8509_v20 = vld [vmem:[#allocation6 + $0x548] sm:$0xff] }
 0x394   :  { %2547 = vmatpush2.msra.mxu0 %v8479_v26  ;;  %2618 = vmatpush2.msra.mxu1 %v8481_v8  ;;  %12279 = vst [vmem:[#allocation120_spill] sm:$0xff] %v8505_v21  ;;  %12280 = vst [vmem:[#allocation121_spill] sm:$0xff] %v8509_v20  ;;  %v8511_v26 = vld [vmem:[#allocation6 + $0x558] sm:$0xff]  ;;  %v8515_v8 = vld [vmem:[#allocation6 + $0x540] sm:$0xff] }
 0x395   :  { %2548 = vmatprep.subr.mxu0 %v8485_v63  ;;  %2619 = vmatprep.subr.mxu1 %v8487_v53  ;;  %12281 = vst [vmem:[#allocation122_spill] sm:$0xff] %v8511_v26  ;;  %12282 = vst [vmem:[#allocation123_spill] sm:$0xff] %v8515_v8  ;;  %v8517_v63 = vld [vmem:[#allocation6 + $0x550] sm:$0xff]  ;;  %v8521_v53 = vld [vmem:[#allocation6 + $0x508] sm:$0xff] }
 0x396   :  { %2549 = vmatpush2.msra.mxu0 %v8491_v54  ;;  %2620 = vmatpush2.msra.mxu1 %v8493_v4  ;;  %12283 = vst [vmem:[#allocation124_spill] sm:$0xff] %v8517_v63  ;;  %12284 = vst [vmem:[#allocation125_spill] sm:$0xff] %v8521_v53  ;;  %v8523_v54 = vld [vmem:[#allocation6 + $0x518] sm:$0xff]  ;;  %v8527_v4 = vld [vmem:[#allocation6 + $0x500] sm:$0xff] }
 0x397   :  { %2550 = vmatprep.subr.mxu0 %v8497_v25  ;;  %2621 = vmatprep.subr.mxu1 %v8499_v44  ;;  %12285 = vst [vmem:[#allocation126_spill] sm:$0xff] %v8523_v54  ;;  %12286 = vst [vmem:[#allocation127_spill] sm:$0xff] %v8527_v4  ;;  %v8529_v25 = vld [vmem:[#allocation6 + $0x510] sm:$0xff]  ;;  %v8533_v44 = vld [vmem:[#allocation6 + $0x4c8] sm:$0xff] }
 0x398   :  { %2551 = vmatpush2.msra.mxu0 %v8503_v61  ;;  %2622 = vmatpush2.msra.mxu1 %v8505_v21  ;;  %12287 = vst [vmem:[#allocation128_spill] sm:$0xff] %v8529_v25  ;;  %12288 = vst [vmem:[#allocation129_spill] sm:$0xff] %v8533_v44  ;;  %v8535_v61 = vld [vmem:[#allocation6 + $0x4d8] sm:$0xff]  ;;  %v8539_v21 = vld [vmem:[#allocation6 + $0x4c0] sm:$0xff] }
 0x399   :  { %2552 = vmatprep.subr.mxu0 %v8509_v20  ;;  %2623 = vmatprep.subr.mxu1 %v8511_v26  ;;  %12289 = vst [vmem:[#allocation130_spill] sm:$0xff] %v8535_v61  ;;  %12290 = vst [vmem:[#allocation131_spill] sm:$0xff] %v8539_v21  ;;  %v8541_v20 = vld [vmem:[#allocation6 + $0x4d0] sm:$0xff]  ;;  %v8545_v26 = vld [vmem:[#allocation6 + $0x488] sm:$0xff] }
 0x39a   :  { %2553 = vmatpush2.msra.mxu0 %v8515_v8  ;;  %2624 = vmatpush2.msra.mxu1 %v8517_v63  ;;  %12291 = vst [vmem:[#allocation132_spill] sm:$0xff] %v8541_v20  ;;  %12292 = vst [vmem:[#allocation133_spill] sm:$0xff] %v8545_v26  ;;  %v8547_v8 = vld [vmem:[#allocation6 + $0x498] sm:$0xff]  ;;  %v8551_v63 = vld [vmem:[#allocation6 + $0x480] sm:$0xff] }
 0x39b   :  { %2554 = vmatprep.subr.mxu0 %v8521_v53  ;;  %2625 = vmatprep.subr.mxu1 %v8523_v54  ;;  %12293 = vst [vmem:[#allocation134_spill] sm:$0xff] %v8547_v8  ;;  %12294 = vst [vmem:[#allocation135_spill] sm:$0xff] %v8551_v63  ;;  %v8553_v53 = vld [vmem:[#allocation6 + $0x490] sm:$0xff]  ;;  %v8557_v54 = vld [vmem:[#allocation6 + $0x448] sm:$0xff] }
 0x39c   :  { %2555 = vmatpush2.msra.mxu0 %v8527_v4  ;;  %2626 = vmatpush2.msra.mxu1 %v8529_v25  ;;  %12295 = vst [vmem:[#allocation136_spill] sm:$0xff] %v8553_v53  ;;  %12296 = vst [vmem:[#allocation137_spill] sm:$0xff] %v8557_v54  ;;  %v8559_v4 = vld [vmem:[#allocation6 + $0x458] sm:$0xff]  ;;  %v8563_v25 = vld [vmem:[#allocation6 + $0x440] sm:$0xff] }
 0x39d   :  { %2556 = vmatprep.subr.mxu0 %v8533_v44  ;;  %2627 = vmatprep.subr.mxu1 %v8535_v61  ;;  %12297 = vst [vmem:[#allocation138_spill] sm:$0xff] %v8559_v4  ;;  %12298 = vst [vmem:[#allocation139_spill] sm:$0xff] %v8563_v25  ;;  %v8565_v44 = vld [vmem:[#allocation6 + $0x450] sm:$0xff]  ;;  %v8569_v61 = vld [vmem:[#allocation6 + $0x408] sm:$0xff] }
 0x39e   :  { %2557 = vmatpush2.msra.mxu0 %v8539_v21  ;;  %2628 = vmatpush2.msra.mxu1 %v8541_v20  ;;  %12299 = vst [vmem:[#allocation140_spill] sm:$0xff] %v8565_v44  ;;  %12300 = vst [vmem:[#allocation141_spill] sm:$0xff] %v8569_v61  ;;  %v8571_v21 = vld [vmem:[#allocation6 + $0x418] sm:$0xff]  ;;  %v8575_v20 = vld [vmem:[#allocation6 + $0x400] sm:$0xff] }
 0x39f   :  { %2558 = vmatprep.subr.mxu0 %v8545_v26  ;;  %2629 = vmatprep.subr.mxu1 %v8547_v8  ;;  %12301 = vst [vmem:[#allocation142_spill] sm:$0xff] %v8571_v21  ;;  %12302 = vst [vmem:[#allocation143_spill] sm:$0xff] %v8575_v20  ;;  %v8579_v8 = vld [vmem:[#allocation6 + $0x410] sm:$0xff]  ;;  %v2353_v26 = vld [vmem:[#allocation6 + $0x368] sm:$0xff] }
 0x3a0   :  { %2559 = vmatpush2.msra.mxu0 %v8551_v63  ;;  %2630 = vmatpush2.msra.mxu1 %v8553_v53  ;;  %12303 = vst [vmem:[#allocation144_spill] sm:$0xff] %v8579_v8  ;;  %v12304_v53 = vmov 0.0   ;;  %v8585_v63 = vld [vmem:[#allocation6 + $0x3e8] sm:$0xff] }
 0x3a1   :  { %2560 = vmatprep.subr.mxu0 %v8557_v54  ;;  %2631 = vmatprep.subr.mxu1 %v8559_v4  ;;  %12305 = vst [vmem:[#allocation145_spill] sm:$0xff] %v8585_v63  ;;  %v8587_v54 = vld [vmem:[#allocation6 + $0x3f8] sm:$0xff]  ;;  %v2362_v4 = vld [vmem:[#allocation6 + $0x3b0] sm:$0xff] }
 0x3a2   :  { %2561 = vmatpush2.msra.mxu0 %v8563_v25  ;;  %2632 = vmatpush2.msra.mxu1 %v8565_v44  ;;  %12306 = vst [vmem:[#allocation146_spill] sm:$0xff] %v8587_v54  ;;  %v2368_v25 = vld [vmem:[#allocation6 + $0x3e0] sm:$0xff]  ;;  %v2370_v44 = vld [vmem:[#allocation6 + $0x3f0] sm:$0xff] }
 0x3a3   :  { %2562 = vmatprep.subr.mxu0 %v8569_v61  ;;  %2633 = vmatprep.subr.mxu1 %v8571_v21  ;;  %v2361_v61 = vld [vmem:[#allocation6 + $0x3a8] sm:$0xff]  ;;  %v2363_v21 = vld [vmem:[#allocation6 + $0x3b8] sm:$0xff] }
 0x3a4   :  { %2563 = vmatpush2.msra.mxu0 %v8575_v20  ;;  %2564 = vmatprep.mubr.f32.mxu0 %v12304_v53  ;;  %v2360_v20 = vld [vmem:[#allocation6 + $0x3a0] sm:$0xff] }
 0x3a5   :  { %2634 = vmatpush2.msra.mxu1 %v8579_v8  ;;  %2635 = vmatprep.mubr.f32.mxu1 %v12304_v53  ;;  %v2355_v8 = vld [vmem:[#allocation6 + $0x378] sm:$0xff] }
 0x3a6   :  { %2565 = vmatmul.mubr.f32.vlgmr.msra.gmra.mxu0 %v12304_v53  ;;  %2636 = vmatmul.mubr.f32.vlgmr.msra.gmra.mxu1 %v12304_v53 }
 0x3a7   :  { %2642 = vmatprep.subr.mxu0 %v8585_v63  ;;  %2713 = vmatprep.subr.mxu1 %v8587_v54  ;;  %v2346_v63 = vld [vmem:[#allocation6 + $0x330] sm:$0xff]  ;;  %v2337_v54 = vld [vmem:[#allocation6 + $0x2e8] sm:$0xff] }
 0x3a8   :  { %2643 = vmatpush1.msra.mxu0 %v2368_v25  ;;  %2714 = vmatpush1.msra.mxu1 %v2370_v44  ;;  %v2336_v25 = vld [vmem:[#allocation6 + $0x2e0] sm:$0xff]  ;;  %v2338_v44 = vld [vmem:[#allocation6 + $0x2f0] sm:$0xff] }
 0x3a9   :  { %2644 = vmatprep.subr.mxu0 %v2361_v61  ;;  %2715 = vmatprep.subr.mxu1 %v2363_v21  ;;  %v2329_v61 = vld [vmem:[#allocation6 + $0x2a8] sm:$0xff]  ;;  %v2331_v21 = vld [vmem:[#allocation6 + $0x2b8] sm:$0xff] }
 0x3aa   :  { %2645 = vmatpush1.msra.mxu0 %v2360_v20  ;;  %2716 = vmatpush1.msra.mxu1 %v2362_v4  ;;  %v2328_v20 = vld [vmem:[#allocation6 + $0x2a0] sm:$0xff]  ;;  %v2330_v4 = vld [vmem:[#allocation6 + $0x2b0] sm:$0xff] }
 0x3ab   :  { %2646 = vmatprep.subr.mxu0 %v2353_v26  ;;  %2717 = vmatprep.subr.mxu1 %v2355_v8  ;;  %v8595_v26 = vld [vmem:[#allocation6 + $0x268] sm:$0xff]  ;;  %v8597_v8 = vld [vmem:[#allocation6 + $0x278] sm:$0xff] }
 0x3ac   :  { %2647 = vmatpush1.msra.mxu0 %v2352_v39  ;;  %2718 = vmatpush1.msra.mxu1 %v2354_v33  ;;  %v8599_v39 = vld [vmem:[#allocation6 + $0x260] sm:$0xff]  ;;  %v8611_v33 = vld [vmem:[#allocation6 + $0x230] sm:$0xff] }
 0x3ad   :  { %2648 = vmatprep.subr.mxu0 %v2345_v49  ;;  %2719 = vmatprep.subr.mxu1 %v2347_v3  ;;  %v8601_v3 = vld [vmem:[#allocation6 + $0x270] sm:$0xff]  ;;  %v8609_v49 = vld [vmem:[#allocation6 + $0x220] sm:$0xff]  ;;  %12310 = vst [vmem:[#allocation150_spill] sm:$0xff] %v8611_v33 }
 0x3ae   :  { %2649 = vmatpush1.msra.mxu0 %v2344_v30  ;;  %2720 = vmatpush1.msra.mxu1 %v2346_v63  ;;  %v8603_v30 = vld [vmem:[#allocation6 + $0x228] sm:$0xff]  ;;  %v8605_v63 = vld [vmem:[#allocation6 + $0x238] sm:$0xff]  ;;  %12309 = vst [vmem:[#allocation149_spill] sm:$0xff] %v8609_v49 }
 0x3af   :  { %2650 = vmatprep.subr.mxu0 %v2337_v54  ;;  %2721 = vmatprep.subr.mxu1 %v2339_v60  ;;  %12307 = vst [vmem:[#allocation147_spill] sm:$0xff] %v8603_v30  ;;  %12308 = vst [vmem:[#allocation148_spill] sm:$0xff] %v8605_v63  ;;  %v8615_v54 = vld [vmem:[#allocation6 + $0x1e8] sm:$0xff]  ;;  %v8617_v60 = vld [vmem:[#allocation6 + $0x1f8] sm:$0xff] }
 0x3b0   :  { %2651 = vmatpush1.msra.mxu0 %v2336_v25  ;;  %2722 = vmatpush1.msra.mxu1 %v2338_v44  ;;  %12311 = vst [vmem:[#allocation151_spill] sm:$0xff] %v8615_v54  ;;  %12312 = vst [vmem:[#allocation152_spill] sm:$0xff] %v8617_v60  ;;  %v8621_v25 = vld [vmem:[#allocation6 + $0x1e0] sm:$0xff]  ;;  %v8623_v44 = vld [vmem:[#allocation6 + $0x1f0] sm:$0xff] }
 0x3b1   :  { %2652 = vmatprep.subr.mxu0 %v2329_v61  ;;  %2723 = vmatprep.subr.mxu1 %v2331_v21  ;;  %12313 = vst [vmem:[#allocation153_spill] sm:$0xff] %v8621_v25  ;;  %12314 = vst [vmem:[#allocation154_spill] sm:$0xff] %v8623_v44  ;;  %v8627_v61 = vld [vmem:[#allocation6 + $0x1a8] sm:$0xff]  ;;  %v8629_v21 = vld [vmem:[#allocation6 + $0x1b8] sm:$0xff] }
 0x3b2   :  { %2653 = vmatpush1.msra.mxu0 %v2328_v20  ;;  %2724 = vmatpush1.msra.mxu1 %v2330_v4  ;;  %12315 = vst [vmem:[#allocation155_spill] sm:$0xff] %v8627_v61  ;;  %12316 = vst [vmem:[#allocation156_spill] sm:$0xff] %v8629_v21  ;;  %v8633_v20 = vld [vmem:[#allocation6 + $0x1a0] sm:$0xff]  ;;  %v8635_v4 = vld [vmem:[#allocation6 + $0x1b0] sm:$0xff] }
 0x3b3   :  { %2654 = vmatprep.subr.mxu0 %v8595_v26  ;;  %2725 = vmatprep.subr.mxu1 %v8597_v8  ;;  %12317 = vst [vmem:[#allocation157_spill] sm:$0xff] %v8633_v20  ;;  %12318 = vst [vmem:[#allocation158_spill] sm:$0xff] %v8635_v4 }
 0x3b4   :  { %2655 = vmatpush1.msra.mxu0 %v8599_v39  ;;  %2726 = vmatpush1.msra.mxu1 %v8601_v3 }
 0x3b5   :  { %2656 = vmatprep.subr.mxu0 %v8603_v30  ;;  %2727 = vmatprep.subr.mxu1 %v8605_v63  ;;  %v8639_v63 = vld [vmem:[#allocation6 + $0x168] sm:$0xff]  ;;  %v8901_v30 = vld [vmem:[#allocation6 + $0x430] sm:$0xff] }
 0x3b6   :  { %2657 = vmatpush1.msra.mxu0 %v8609_v49  ;;  %2728 = vmatpush1.msra.mxu1 %v8611_v33  ;;  %12319 = vst [vmem:[#allocation159_spill] sm:$0xff] %v8639_v63  ;;  %v8641_v49 = vld [vmem:[#allocation6 + $0x178] sm:$0xff]  ;;  %v8645_v33 = vld [vmem:[#allocation6 + $0x160] sm:$0xff] }
 0x3b7   :  { %2658 = vmatprep.subr.mxu0 %v8615_v54  ;;  %2729 = vmatprep.subr.mxu1 %v8617_v60  ;;  %12320 = vst [vmem:[#allocation160_spill] sm:$0xff] %v8641_v49  ;;  %12321 = vst [vmem:[#allocation161_spill] sm:$0xff] %v8645_v33  ;;  %v8647_v54 = vld [vmem:[#allocation6 + $0x170] sm:$0xff]  ;;  %v8651_v60 = vld [vmem:[#allocation6 + $0x128] sm:$0xff] }
 0x3b8   :  { %2659 = vmatpush1.msra.mxu0 %v8621_v25  ;;  %2730 = vmatpush1.msra.mxu1 %v8623_v44  ;;  %12322 = vst [vmem:[#allocation162_spill] sm:$0xff] %v8647_v54  ;;  %12323 = vst [vmem:[#allocation163_spill] sm:$0xff] %v8651_v60  ;;  %v8653_v25 = vld [vmem:[#allocation6 + $0x138] sm:$0xff]  ;;  %v8657_v44 = vld [vmem:[#allocation6 + $0x120] sm:$0xff] }
 0x3b9   :  { %2660 = vmatprep.subr.mxu0 %v8627_v61  ;;  %2731 = vmatprep.subr.mxu1 %v8629_v21  ;;  %12324 = vst [vmem:[#allocation164_spill] sm:$0xff] %v8653_v25  ;;  %12325 = vst [vmem:[#allocation165_spill] sm:$0xff] %v8657_v44  ;;  %v8659_v61 = vld [vmem:[#allocation6 + $0x130] sm:$0xff]  ;;  %v8663_v21 = vld [vmem:[#allocation6 + $0xe8] sm:$0xff] }
 0x3ba   :  { %2661 = vmatpush1.msra.mxu0 %v8633_v20  ;;  %2732 = vmatpush1.msra.mxu1 %v8635_v4  ;;  %12326 = vst [vmem:[#allocation166_spill] sm:$0xff] %v8659_v61  ;;  %12327 = vst [vmem:[#allocation167_spill] sm:$0xff] %v8663_v21  ;;  %v8665_v20 = vld [vmem:[#allocation6 + $0xf8] sm:$0xff]  ;;  %v8669_v4 = vld [vmem:[#allocation6 + $0xe0] sm:$0xff] }
 0x3bb   :  { %2662 = vmatprep.subr.mxu0 %v8639_v63  ;;  %2733 = vmatprep.subr.mxu1 %v8641_v49  ;;  %12328 = vst [vmem:[#allocation168_spill] sm:$0xff] %v8665_v20  ;;  %12329 = vst [vmem:[#allocation169_spill] sm:$0xff] %v8669_v4  ;;  %v8671_v63 = vld [vmem:[#allocation6 + $0xf0] sm:$0xff]  ;;  %v8675_v49 = vld [vmem:[#allocation6 + $0xa8] sm:$0xff] }
 0x3bc   :  { %2663 = vmatpush1.msra.mxu0 %v8645_v33  ;;  %2734 = vmatpush1.msra.mxu1 %v8647_v54  ;;  %12330 = vst [vmem:[#allocation170_spill] sm:$0xff] %v8671_v63  ;;  %12331 = vst [vmem:[#allocation171_spill] sm:$0xff] %v8675_v49  ;;  %v8677_v33 = vld [vmem:[#allocation6 + $0xb8] sm:$0xff]  ;;  %v8681_v54 = vld [vmem:[#allocation6 + $0xa0] sm:$0xff] }
 0x3bd   :  { %2664 = vmatprep.subr.mxu0 %v8651_v60  ;;  %2735 = vmatprep.subr.mxu1 %v8653_v25  ;;  %12332 = vst [vmem:[#allocation172_spill] sm:$0xff] %v8677_v33  ;;  %12333 = vst [vmem:[#allocation173_spill] sm:$0xff] %v8681_v54  ;;  %v8683_v60 = vld [vmem:[#allocation6 + $0xb0] sm:$0xff]  ;;  %v8687_v25 = vld [vmem:[#allocation6 + $0x68] sm:$0xff] }
 0x3be   :  { %2665 = vmatpush1.msra.mxu0 %v8657_v44  ;;  %2736 = vmatpush1.msra.mxu1 %v8659_v61  ;;  %12334 = vst [vmem:[#allocation174_spill] sm:$0xff] %v8683_v60  ;;  %12335 = vst [vmem:[#allocation175_spill] sm:$0xff] %v8687_v25  ;;  %v8689_v44 = vld [vmem:[#allocation6 + $0x78] sm:$0xff]  ;;  %v8693_v61 = vld [vmem:[#allocation6 + $0x60] sm:$0xff] }
 0x3bf   :  { %2666 = vmatprep.subr.mxu0 %v8663_v21  ;;  %2737 = vmatprep.subr.mxu1 %v8665_v20  ;;  %12336 = vst [vmem:[#allocation176_spill] sm:$0xff] %v8689_v44  ;;  %12337 = vst [vmem:[#allocation177_spill] sm:$0xff] %v8693_v61  ;;  %v8695_v21 = vld [vmem:[#allocation6 + $0x70] sm:$0xff]  ;;  %v8699_v20 = vld [vmem:[#allocation6 + $0x28] sm:$0xff] }
 0x3c0   :  { %2667 = vmatpush1.msra.mxu0 %v8669_v4  ;;  %2738 = vmatpush1.msra.mxu1 %v8671_v63  ;;  %12338 = vst [vmem:[#allocation178_spill] sm:$0xff] %v8695_v21  ;;  %12339 = vst [vmem:[#allocation179_spill] sm:$0xff] %v8699_v20  ;;  %v8701_v4 = vld [vmem:[#allocation6 + $0x38] sm:$0xff]  ;;  %v8705_v63 = vld [vmem:[#allocation6 + $0x20] sm:$0xff] }
 0x3c1   :  { %2668 = vmatprep.subr.mxu0 %v8675_v49  ;;  %2739 = vmatprep.subr.mxu1 %v8677_v33  ;;  %12340 = vst [vmem:[#allocation180_spill] sm:$0xff] %v8701_v4  ;;  %12341 = vst [vmem:[#allocation181_spill] sm:$0xff] %v8705_v63  ;;  %v8707_v49 = vld [vmem:[#allocation6 + $0x30] sm:$0xff]  ;;  %v8711_v33 = vld [vmem:[#allocation6 + $0x7e8] sm:$0xff] }
 0x3c2   :  { %2669 = vmatpush1.msra.mxu0 %v8681_v54  ;;  %2740 = vmatpush1.msra.mxu1 %v8683_v60  ;;  %12342 = vst [vmem:[#allocation182_spill] sm:$0xff] %v8707_v49  ;;  %12343 = vst [vmem:[#allocation183_spill] sm:$0xff] %v8711_v33  ;;  %v8713_v54 = vld [vmem:[#allocation6 + $0x7f8] sm:$0xff]  ;;  %v8717_v60 = vld [vmem:[#allocation6 + $0x7e0] sm:$0xff] }
 0x3c3   :  { %2670 = vmatprep.subr.mxu0 %v8687_v25  ;;  %2741 = vmatprep.subr.mxu1 %v8689_v44  ;;  %12344 = vst [vmem:[#allocation184_spill] sm:$0xff] %v8713_v54  ;;  %12345 = vst [vmem:[#allocation185_spill] sm:$0xff] %v8717_v60  ;;  %v8719_v25 = vld [vmem:[#allocation6 + $0x7f0] sm:$0xff]  ;;  %v8723_v44 = vld [vmem:[#allocation6 + $0x7a8] sm:$0xff] }
 0x3c4   :  { %2671 = vmatpush1.msra.mxu0 %v8693_v61  ;;  %2742 = vmatpush1.msra.mxu1 %v8695_v21  ;;  %12346 = vst [vmem:[#allocation186_spill] sm:$0xff] %v8719_v25  ;;  %12347 = vst [vmem:[#allocation187_spill] sm:$0xff] %v8723_v44  ;;  %v8725_v61 = vld [vmem:[#allocation6 + $0x7b8] sm:$0xff]  ;;  %v8729_v21 = vld [vmem:[#allocation6 + $0x7a0] sm:$0xff] }
 0x3c5   :  { %2672 = vmatprep.subr.mxu0 %v8699_v20  ;;  %2743 = vmatprep.subr.mxu1 %v8701_v4  ;;  %12348 = vst [vmem:[#allocation188_spill] sm:$0xff] %v8725_v61  ;;  %12349 = vst [vmem:[#allocation189_spill] sm:$0xff] %v8729_v21  ;;  %v8731_v20 = vld [vmem:[#allocation6 + $0x7b0] sm:$0xff]  ;;  %v8735_v4 = vld [vmem:[#allocation6 + $0x768] sm:$0xff] }
 0x3c6   :  { %2673 = vmatpush1.msra.mxu0 %v8705_v63  ;;  %2744 = vmatpush1.msra.mxu1 %v8707_v49  ;;  %12350 = vst [vmem:[#allocation190_spill] sm:$0xff] %v8731_v20  ;;  %12351 = vst [vmem:[#allocation191_spill] sm:$0xff] %v8735_v4  ;;  %v8737_v63 = vld [vmem:[#allocation6 + $0x778] sm:$0xff]  ;;  %v8741_v49 = vld [vmem:[#allocation6 + $0x760] sm:$0xff] }
 0x3c7   :  { %2674 = vmatprep.subr.mxu0 %v8711_v33  ;;  %2745 = vmatprep.subr.mxu1 %v8713_v54  ;;  %12352 = vst [vmem:[#allocation192_spill] sm:$0xff] %v8737_v63  ;;  %12353 = vst [vmem:[#allocation193_spill] sm:$0xff] %v8741_v49  ;;  %v8743_v33 = vld [vmem:[#allocation6 + $0x770] sm:$0xff]  ;;  %v8747_v54 = vld [vmem:[#allocation6 + $0x728] sm:$0xff] }
 0x3c8   :  { %2675 = vmatpush2.msra.mxu0 %v8717_v60  ;;  %2746 = vmatpush2.msra.mxu1 %v8719_v25  ;;  %12354 = vst [vmem:[#allocation194_spill] sm:$0xff] %v8743_v33  ;;  %12355 = vst [vmem:[#allocation195_spill] sm:$0xff] %v8747_v54  ;;  %v8749_v60 = vld [vmem:[#allocation6 + $0x738] sm:$0xff]  ;;  %v8753_v25 = vld [vmem:[#allocation6 + $0x720] sm:$0xff] }
 0x3c9   :  { %2676 = vmatprep.subr.mxu0 %v8723_v44  ;;  %2747 = vmatprep.subr.mxu1 %v8725_v61  ;;  %12356 = vst [vmem:[#allocation196_spill] sm:$0xff] %v8749_v60  ;;  %12357 = vst [vmem:[#allocation197_spill] sm:$0xff] %v8753_v25  ;;  %v8755_v44 = vld [vmem:[#allocation6 + $0x730] sm:$0xff]  ;;  %v8759_v61 = vld [vmem:[#allocation6 + $0x6e8] sm:$0xff] }
 0x3ca   :  { %2677 = vmatpush2.msra.mxu0 %v8729_v21  ;;  %2748 = vmatpush2.msra.mxu1 %v8731_v20  ;;  %12358 = vst [vmem:[#allocation198_spill] sm:$0xff] %v8755_v44  ;;  %12359 = vst [vmem:[#allocation199_spill] sm:$0xff] %v8759_v61  ;;  %v8761_v21 = vld [vmem:[#allocation6 + $0x6f8] sm:$0xff]  ;;  %v8765_v20 = vld [vmem:[#allocation6 + $0x6e0] sm:$0xff] }
 0x3cb   :  { %2678 = vmatprep.subr.mxu0 %v8735_v4  ;;  %2749 = vmatprep.subr.mxu1 %v8737_v63  ;;  %12360 = vst [vmem:[#allocation200_spill] sm:$0xff] %v8761_v21  ;;  %12361 = vst [vmem:[#allocation201_spill] sm:$0xff] %v8765_v20  ;;  %v8767_v4 = vld [vmem:[#allocation6 + $0x6f0] sm:$0xff]  ;;  %v8771_v63 = vld [vmem:[#allocation6 + $0x6a8] sm:$0xff] }
 0x3cc   :  { %2679 = vmatpush2.msra.mxu0 %v8741_v49  ;;  %2750 = vmatpush2.msra.mxu1 %v8743_v33  ;;  %12362 = vst [vmem:[#allocation202_spill] sm:$0xff] %v8767_v4  ;;  %12363 = vst [vmem:[#allocation203_spill] sm:$0xff] %v8771_v63  ;;  %v8773_v49 = vld [vmem:[#allocation6 + $0x6b8] sm:$0xff]  ;;  %v8777_v33 = vld [vmem:[#allocation6 + $0x6a0] sm:$0xff] }
 0x3cd   :  { %2680 = vmatprep.subr.mxu0 %v8747_v54  ;;  %2751 = vmatprep.subr.mxu1 %v8749_v60  ;;  %12364 = vst [vmem:[#allocation204_spill] sm:$0xff] %v8773_v49  ;;  %12365 = vst [vmem:[#allocation205_spill] sm:$0xff] %v8777_v33  ;;  %v8779_v54 = vld [vmem:[#allocation6 + $0x6b0] sm:$0xff]  ;;  %v8783_v60 = vld [vmem:[#allocation6 + $0x668] sm:$0xff] }
 0x3ce   :  { %2681 = vmatpush2.msra.mxu0 %v8753_v25  ;;  %2752 = vmatpush2.msra.mxu1 %v8755_v44  ;;  %12366 = vst [vmem:[#allocation206_spill] sm:$0xff] %v8779_v54  ;;  %12367 = vst [vmem:[#allocation207_spill] sm:$0xff] %v8783_v60  ;;  %v8785_v25 = vld [vmem:[#allocation6 + $0x678] sm:$0xff]  ;;  %v8789_v44 = vld [vmem:[#allocation6 + $0x660] sm:$0xff] }
 0x3cf   :  { %2682 = vmatprep.subr.mxu0 %v8759_v61  ;;  %2753 = vmatprep.subr.mxu1 %v8761_v21  ;;  %12368 = vst [vmem:[#allocation208_spill] sm:$0xff] %v8785_v25  ;;  %12369 = vst [vmem:[#allocation209_spill] sm:$0xff] %v8789_v44  ;;  %v8791_v61 = vld [vmem:[#allocation6 + $0x670] sm:$0xff]  ;;  %v8795_v21 = vld [vmem:[#allocation6 + $0x628] sm:$0xff] }
 0x3d0   :  { %2683 = vmatpush2.msra.mxu0 %v8765_v20  ;;  %2754 = vmatpush2.msra.mxu1 %v8767_v4  ;;  %12370 = vst [vmem:[#allocation210_spill] sm:$0xff] %v8791_v61  ;;  %12371 = vst [vmem:[#allocation211_spill] sm:$0xff] %v8795_v21  ;;  %v8797_v20 = vld [vmem:[#allocation6 + $0x638] sm:$0xff]  ;;  %v8801_v4 = vld [vmem:[#allocation6 + $0x620] sm:$0xff] }
 0x3d1   :  { %2684 = vmatprep.subr.mxu0 %v8771_v63  ;;  %2755 = vmatprep.subr.mxu1 %v8773_v49  ;;  %12372 = vst [vmem:[#allocation212_spill] sm:$0xff] %v8797_v20  ;;  %12373 = vst [vmem:[#allocation213_spill] sm:$0xff] %v8801_v4  ;;  %v8803_v63 = vld [vmem:[#allocation6 + $0x630] sm:$0xff]  ;;  %v8807_v49 = vld [vmem:[#allocation6 + $0x5e8] sm:$0xff] }
 0x3d2   :  { %2685 = vmatpush2.msra.mxu0 %v8777_v33  ;;  %2756 = vmatpush2.msra.mxu1 %v8779_v54  ;;  %12374 = vst [vmem:[#allocation214_spill] sm:$0xff] %v8803_v63  ;;  %12375 = vst [vmem:[#allocation215_spill] sm:$0xff] %v8807_v49  ;;  %v8809_v33 = vld [vmem:[#allocation6 + $0x5f8] sm:$0xff]  ;;  %v8813_v54 = vld [vmem:[#allocation6 + $0x5e0] sm:$0xff] }
 0x3d3   :  { %2686 = vmatprep.subr.mxu0 %v8783_v60  ;;  %2757 = vmatprep.subr.mxu1 %v8785_v25  ;;  %12376 = vst [vmem:[#allocation216_spill] sm:$0xff] %v8809_v33  ;;  %12377 = vst [vmem:[#allocation217_spill] sm:$0xff] %v8813_v54  ;;  %v8815_v60 = vld [vmem:[#allocation6 + $0x5f0] sm:$0xff]  ;;  %v8819_v25 = vld [vmem:[#allocation6 + $0x5a8] sm:$0xff] }
 0x3d4   :  { %2687 = vmatpush2.msra.mxu0 %v8789_v44  ;;  %2758 = vmatpush2.msra.mxu1 %v8791_v61  ;;  %12378 = vst [vmem:[#allocation218_spill] sm:$0xff] %v8815_v60  ;;  %12379 = vst [vmem:[#allocation219_spill] sm:$0xff] %v8819_v25  ;;  %v8821_v44 = vld [vmem:[#allocation6 + $0x5b8] sm:$0xff]  ;;  %v8825_v61 = vld [vmem:[#allocation6 + $0x5a0] sm:$0xff] }
 0x3d5   :  { %2688 = vmatprep.subr.mxu0 %v8795_v21  ;;  %2759 = vmatprep.subr.mxu1 %v8797_v20  ;;  %12380 = vst [vmem:[#allocation220_spill] sm:$0xff] %v8821_v44  ;;  %12381 = vst [vmem:[#allocation221_spill] sm:$0xff] %v8825_v61  ;;  %v8827_v21 = vld [vmem:[#allocation6 + $0x5b0] sm:$0xff]  ;;  %v8831_v20 = vld [vmem:[#allocation6 + $0x568] sm:$0xff] }
 0x3d6   :  { %2689 = vmatpush2.msra.mxu0 %v8801_v4  ;;  %2760 = vmatpush2.msra.mxu1 %v8803_v63  ;;  %12382 = vst [vmem:[#allocation222_spill] sm:$0xff] %v8827_v21  ;;  %12383 = vst [vmem:[#allocation223_spill] sm:$0xff] %v8831_v20  ;;  %v8833_v4 = vld [vmem:[#allocation6 + $0x578] sm:$0xff]  ;;  %v8837_v63 = vld [vmem:[#allocation6 + $0x560] sm:$0xff] }
 0x3d7   :  { %2690 = vmatprep.subr.mxu0 %v8807_v49  ;;  %2761 = vmatprep.subr.mxu1 %v8809_v33  ;;  %12384 = vst [vmem:[#allocation224_spill] sm:$0xff] %v8833_v4  ;;  %12385 = vst [vmem:[#allocation225_spill] sm:$0xff] %v8837_v63  ;;  %v8839_v49 = vld [vmem:[#allocation6 + $0x570] sm:$0xff]  ;;  %v8843_v33 = vld [vmem:[#allocation6 + $0x528] sm:$0xff] }
 0x3d8   :  { %2691 = vmatpush2.msra.mxu0 %v8813_v54  ;;  %2762 = vmatpush2.msra.mxu1 %v8815_v60  ;;  %12386 = vst [vmem:[#allocation226_spill] sm:$0xff] %v8839_v49  ;;  %12387 = vst [vmem:[#allocation227_spill] sm:$0xff] %v8843_v33  ;;  %v8845_v54 = vld [vmem:[#allocation6 + $0x538] sm:$0xff]  ;;  %v8849_v60 = vld [vmem:[#allocation6 + $0x520] sm:$0xff] }
 0x3d9   :  { %2692 = vmatprep.subr.mxu0 %v8819_v25  ;;  %2763 = vmatprep.subr.mxu1 %v8821_v44  ;;  %12388 = vst [vmem:[#allocation228_spill] sm:$0xff] %v8845_v54  ;;  %12389 = vst [vmem:[#allocation229_spill] sm:$0xff] %v8849_v60  ;;  %v8851_v25 = vld [vmem:[#allocation6 + $0x530] sm:$0xff]  ;;  %v8855_v44 = vld [vmem:[#allocation6 + $0x4e8] sm:$0xff] }
 0x3da   :  { %2693 = vmatpush2.msra.mxu0 %v8825_v61  ;;  %2764 = vmatpush2.msra.mxu1 %v8827_v21  ;;  %12390 = vst [vmem:[#allocation230_spill] sm:$0xff] %v8851_v25  ;;  %12391 = vst [vmem:[#allocation231_spill] sm:$0xff] %v8855_v44  ;;  %v8857_v61 = vld [vmem:[#allocation6 + $0x4f8] sm:$0xff]  ;;  %v8861_v21 = vld [vmem:[#allocation6 + $0x4e0] sm:$0xff] }
 0x3db   :  { %2694 = vmatprep.subr.mxu0 %v8831_v20  ;;  %2765 = vmatprep.subr.mxu1 %v8833_v4  ;;  %12392 = vst [vmem:[#allocation232_spill] sm:$0xff] %v8857_v61  ;;  %12393 = vst [vmem:[#allocation233_spill] sm:$0xff] %v8861_v21  ;;  %v8863_v20 = vld [vmem:[#allocation6 + $0x4f0] sm:$0xff]  ;;  %v8867_v4 = vld [vmem:[#allocation6 + $0x4a8] sm:$0xff] }
 0x3dc   :  { %2695 = vmatpush2.msra.mxu0 %v8837_v63  ;;  %2766 = vmatpush2.msra.mxu1 %v8839_v49  ;;  %12394 = vst [vmem:[#allocation234_spill] sm:$0xff] %v8863_v20  ;;  %12395 = vst [vmem:[#allocation235_spill] sm:$0xff] %v8867_v4  ;;  %v8869_v63 = vld [vmem:[#allocation6 + $0x4b8] sm:$0xff]  ;;  %v8873_v49 = vld [vmem:[#allocation6 + $0x4a0] sm:$0xff] }
 0x3dd   :  { %2696 = vmatprep.subr.mxu0 %v8843_v33  ;;  %2767 = vmatprep.subr.mxu1 %v8845_v54  ;;  %12396 = vst [vmem:[#allocation236_spill] sm:$0xff] %v8869_v63  ;;  %12397 = vst [vmem:[#allocation237_spill] sm:$0xff] %v8873_v49  ;;  %v8875_v33 = vld [vmem:[#allocation6 + $0x4b0] sm:$0xff]  ;;  %v8879_v54 = vld [vmem:[#allocation6 + $0x468] sm:$0xff] }
 0x3de   :  { %2697 = vmatpush2.msra.mxu0 %v8849_v60  ;;  %2768 = vmatpush2.msra.mxu1 %v8851_v25  ;;  %12398 = vst [vmem:[#allocation238_spill] sm:$0xff] %v8875_v33  ;;  %12399 = vst [vmem:[#allocation239_spill] sm:$0xff] %v8879_v54  ;;  %v8881_v60 = vld [vmem:[#allocation6 + $0x478] sm:$0xff]  ;;  %v8885_v25 = vld [vmem:[#allocation6 + $0x460] sm:$0xff] }
 0x3df   :  { %2698 = vmatprep.subr.mxu0 %v8855_v44  ;;  %2769 = vmatprep.subr.mxu1 %v8857_v61  ;;  %12400 = vst [vmem:[#allocation240_spill] sm:$0xff] %v8881_v60  ;;  %12401 = vst [vmem:[#allocation241_spill] sm:$0xff] %v8885_v25  ;;  %v8887_v44 = vld [vmem:[#allocation6 + $0x470] sm:$0xff]  ;;  %v8891_v61 = vld [vmem:[#allocation6 + $0x428] sm:$0xff] }
 0x3e0   :  { %2699 = vmatpush2.msra.mxu0 %v8861_v21  ;;  %2770 = vmatpush2.msra.mxu1 %v8863_v20  ;;  %12402 = vst [vmem:[#allocation242_spill] sm:$0xff] %v8887_v44  ;;  %v8893_v21 = vld [vmem:[#allocation6 + $0x438] sm:$0xff]  ;;  %v8897_v20 = vld [vmem:[#allocation6 + $0x420] sm:$0xff] }
 0x3e1   :  { %2700 = vmatprep.subr.mxu0 %v8867_v4  ;;  %2771 = vmatprep.subr.mxu1 %v8869_v63 }
 0x3e2   :  { %2701 = vmatpush2.msra.mxu0 %v8873_v49  ;;  %2772 = vmatpush2.msra.mxu1 %v8875_v33 }
 0x3e3   :  { %2702 = vmatprep.subr.mxu0 %v8879_v54  ;;  %2773 = vmatprep.subr.mxu1 %v8881_v60  ;;  %v1970_v4 = vpop.f32.mrf.mxu0  ;;  %v2041_v63 = vpop.f32.mrf.mxu1 }
 0x3e4   :  { %2703 = vmatpush2.msra.mxu0 %v8885_v25  ;;  %2774 = vmatpush2.msra.mxu1 %v8887_v44  ;;  %v8904_v33 = vadd.f32 %v1970_v4, %v7964_v57  ;;  %v8907_v49 = vadd.f32 %v2041_v63, %v8004_v58  ;;  %v8923_v57 = vld [vmem:[#allocation6 + $0x3c8] sm:$0xff]  ;;  %v8926_v58 = vld [vmem:[#allocation6 + $0x3d8] sm:$0xff]  ;;  %v8944_v4 = vld [vmem:[#allocation6 + $0x390] sm:$0xff] }
 0x3e5   :  { %2704 = vmatprep.subr.mxu0 %v8891_v61  ;;  %2775 = vmatprep.subr.mxu1 %v8893_v21  ;;  %v1972_v60 = vpop.f32.mrf.mxu0  ;;  %v2043_v54 = vpop.f32.mrf.mxu1  ;;  %v8935_v63 = vld [vmem:[#allocation6 + $0x388] sm:$0xff]  ;;  %12407 = vst [vmem:[#allocation247_spill] sm:$0xff] %v8944_v4 }
 0x3e6   :  { %2705 = vmatpush2.msra.mxu0 %v8897_v20  ;;  %2706 = vmatprep.mubr.f32.mxu0 %v12304_v53  ;;  %v8914_v44 = vadd.f32 %v1972_v60, %v7976_v14  ;;  %v8917_v25 = vadd.f32 %v2043_v54, %v8010_v52  ;;  %v8929_v14 = vld [vmem:[#allocation6 + $0x3c0] sm:$0xff]  ;;  %v8932_v52 = vld [vmem:[#allocation6 + $0x3d0] sm:$0xff]  ;;  %12404 = vst [vmem:[#allocation244_spill] sm:$0xff] %v8935_v63  ;;  %v8938_v54 = vld [vmem:[#allocation6 + $0x398] sm:$0xff] }
 0x3e7   :  { %2776 = vmatpush2.msra.mxu1 %v8901_v30  ;;  %2777 = vmatprep.mubr.f32.mxu1 %v12304_v53  ;;  %12403 = vst [vmem:[#allocation243_spill] sm:$0xff] %v8932_v52  ;;  %12405 = vst [vmem:[#allocation245_spill] sm:$0xff] %v8938_v54  ;;  %v8941_v60 = vld [vmem:[#allocation6 + $0x380] sm:$0xff] }
 0x3e8   :  { %2707 = vmatmul.mubr.f32.vlgmr.msra.gmra.mxu0 %v12304_v53  ;;  %2778 = vmatmul.mubr.f32.vlgmr.msra.gmra.mxu1 %v12304_v53  ;;  %12406 = vst [vmem:[#allocation246_spill] sm:$0xff] %v8941_v60  ;;  %v8947_v53 = vld [vmem:[#allocation6 + $0x348] sm:$0xff] }
 0x3e9   :  { %2840 = vmatprep.subr.mxu0 %v8923_v57  ;;  %2911 = vmatprep.subr.mxu1 %v8926_v58  ;;  %12408 = vst [vmem:[#allocation248_spill] sm:$0xff] %v8947_v53 }
 0x3ea   :  { %2841 = vmatpush1.msra.mxu0 %v8929_v14  ;;  %2912 = vmatpush1.msra.mxu1 %v8932_v52  ;;  %v8950_v52 = vld [vmem:[#allocation6 + $0x358] sm:$0xff] }
 0x3eb   :  { %2842 = vmatprep.subr.mxu0 %v8935_v63  ;;  %2913 = vmatprep.subr.mxu1 %v8938_v54  ;;  %12409 = vst [vmem:[#allocation249_spill] sm:$0xff] %v8950_v52  ;;  %v8953_v63 = vld [vmem:[#allocation6 + $0x340] sm:$0xff]  ;;  %v8956_v54 = vld [vmem:[#allocation6 + $0x350] sm:$0xff] }
 0x3ec   :  { %2843 = vmatpush1.msra.mxu0 %v8941_v60  ;;  %2914 = vmatpush1.msra.mxu1 %v8944_v4  ;;  %12410 = vst [vmem:[#allocation250_spill] sm:$0xff] %v8953_v63  ;;  %12411 = vst [vmem:[#allocation251_spill] sm:$0xff] %v8956_v54  ;;  %v8959_v60 = vld [vmem:[#allocation6 + $0x308] sm:$0xff]  ;;  %v8962_v4 = vld [vmem:[#allocation6 + $0x318] sm:$0xff] }
 0x3ed   :  { %2844 = vmatprep.subr.mxu0 %v8947_v53  ;;  %2915 = vmatprep.subr.mxu1 %v8950_v52  ;;  %12412 = vst [vmem:[#allocation252_spill] sm:$0xff] %v8959_v60  ;;  %12413 = vst [vmem:[#allocation253_spill] sm:$0xff] %v8962_v4  ;;  %v8965_v53 = vld [vmem:[#allocation6 + $0x300] sm:$0xff]  ;;  %v8968_v52 = vld [vmem:[#allocation6 + $0x310] sm:$0xff] }
 0x3ee   :  { %2845 = vmatpush1.msra.mxu0 %v8953_v63  ;;  %2916 = vmatpush1.msra.mxu1 %v8956_v54  ;;  %12414 = vst [vmem:[#allocation254_spill] sm:$0xff] %v8965_v53  ;;  %12415 = vst [vmem:[#allocation255_spill] sm:$0xff] %v8968_v52  ;;  %v8971_v63 = vld [vmem:[#allocation6 + $0x2c8] sm:$0xff]  ;;  %v8974_v54 = vld [vmem:[#allocation6 + $0x2d8] sm:$0xff] }
 0x3ef   :  { %2846 = vmatprep.subr.mxu0 %v8959_v60  ;;  %2917 = vmatprep.subr.mxu1 %v8962_v4  ;;  %v8977_v60 = vld [vmem:[#allocation6 + $0x2c0] sm:$0xff]  ;;  %v8980_v4 = vld [vmem:[#allocation6 + $0x2d0] sm:$0xff] }
 0x3f0   :  { %2847 = vmatpush1.msra.mxu0 %v8965_v53  ;;  %2918 = vmatpush1.msra.mxu1 %v8968_v52  ;;  %v8983_v53 = vld [vmem:[#allocation6 + $0x288] sm:$0xff]  ;;  %v8986_v52 = vld [vmem:[#allocation6 + $0x298] sm:$0xff] }
 0x3f1   :  { %2848 = vmatprep.subr.mxu0 %v8971_v63  ;;  %2919 = vmatprep.subr.mxu1 %v8974_v54 }
 0x3f2   :  { %2849 = vmatpush1.msra.mxu0 %v8977_v60  ;;  %2920 = vmatpush1.msra.mxu1 %v8980_v4 }
 0x3f3   :  { %2850 = vmatprep.subr.mxu0 %v8983_v53  ;;  %2921 = vmatprep.subr.mxu1 %v8986_v52 }
 0x3f4   :  { %2851 = vmatpush1.msra.mxu0 %v8267_v12  ;;  %2922 = vmatpush1.msra.mxu1 %v8269_v31  ;;  %v12416_v12 = vld [vmem:[#allocation82_spill] sm:$0xff]  ;;  %v12417_v31 = vld [vmem:[#allocation83_spill] sm:$0xff] }
 0x3f5   :  { %2852 = vmatprep.subr.mxu0 %v8271_v24  ;;  %2923 = vmatprep.subr.mxu1 %v8273_v42  ;;  %v12418_v24 = vld [vmem:[#allocation84_spill] sm:$0xff]  ;;  %v12419_v42 = vld [vmem:[#allocation85_spill] sm:$0xff] }
 0x3f6   :  { %2853 = vmatpush1.msra.mxu0 %v8275_v27  ;;  %2924 = vmatpush1.msra.mxu1 %v8277_v34  ;;  %v12420_v27 = vld [vmem:[#allocation86_spill] sm:$0xff]  ;;  %v5604_v34 = vmul.f32 -1.442695, %v8904_v33  ;;  %v12455_v33 = vld [vmem:[#allocation121_spill] sm:$0xff] }
 0x3f7   :  { %2854 = vmatprep.subr.mxu0 %v8281_v32  ;;  %2925 = vmatprep.subr.mxu1 %v8283_v37  ;;  %v12421_v32 = vld [vmem:[#allocation87_spill] sm:$0xff]  ;;  %v12422_v37 = vld [vmem:[#allocation88_spill] sm:$0xff] }
 0x3f8   :  { %2855 = vmatpush1.msra.mxu0 %v8287_v50  ;;  %2926 = vmatpush1.msra.mxu1 %v8289_v11  ;;  %v5606_v50 = vmul.f32 -1.442695, %v8907_v49  ;;  %v12423_v11 = vld [vmem:[#allocation89_spill] sm:$0xff]  ;;  %6065 = vpow2.f32 %v5604_v34 }
 0x3f9   :  { %2856 = vmatprep.subr.mxu0 %v8293_v47  ;;  %2927 = vmatprep.subr.mxu1 %v8295_v51  ;;  %v12424_v47 = vld [vmem:[#allocation90_spill] sm:$0xff]  ;;  %v5605_v51 = vmul.f32 -1.442695, %v8914_v44 }
 0x3fa   :  { %2857 = vmatpush1.msra.mxu0 %v8299_v0  ;;  %2928 = vmatpush1.msra.mxu1 %v8301_v36  ;;  %v12425_v0 = vld [vmem:[#allocation91_spill] sm:$0xff]  ;;  %v12426_v36 = vld [vmem:[#allocation92_spill] sm:$0xff]  ;;  %6067 = vpow2.f32 %v5606_v50 }
 0x3fb   :  { %2858 = vmatprep.subr.mxu0 %v8305_v1  ;;  %2929 = vmatprep.subr.mxu1 %v8307_v2  ;;  %v12427_v1 = vld [vmem:[#allocation93_spill] sm:$0xff]  ;;  %v12428_v2 = vld [vmem:[#allocation94_spill] sm:$0xff]  ;;  %6069 = vpow2.f32 %v5605_v51 }
 0x3fc   :  { %2859 = vmatpush1.msra.mxu0 %v8311_v5  ;;  %2930 = vmatpush1.msra.mxu1 %v8313_v6  ;;  %v5607_v5 = vmul.f32 -1.442695, %v8917_v25  ;;  %v12429_v6 = vld [vmem:[#allocation95_spill] sm:$0xff]  ;;  %v12456_v25 = vld [vmem:[#allocation122_spill] sm:$0xff] }
 0x3fd   :  { %2860 = vmatprep.subr.mxu0 %v8317_v9  ;;  %2931 = vmatprep.subr.mxu1 %v8319_v10  ;;  %v12430_v9 = vld [vmem:[#allocation96_spill] sm:$0xff]  ;;  %v12431_v10 = vld [vmem:[#allocation97_spill] sm:$0xff]  ;;  %v12464_v51 = vld [vmem:[#allocation130_spill] sm:$0xff] }
 0x3fe   :  { %2861 = vmatpush1.msra.mxu0 %v8323_v13  ;;  %2932 = vmatpush1.msra.mxu1 %v8325_v48  ;;  %v12432_v13 = vld [vmem:[#allocation98_spill] sm:$0xff]  ;;  %v12433_v48 = vld [vmem:[#allocation99_spill] sm:$0xff]  ;;  %6071 = vpow2.f32 %v5607_v5 }
 0x3ff   :  { %2862 = vmatprep.subr.mxu0 %v8329_v15  ;;  %2933 = vmatprep.subr.mxu1 %v8331_v41  ;;  %v12434_v15 = vld [vmem:[#allocation100_spill] sm:$0xff]  ;;  %v12435_v41 = vld [vmem:[#allocation101_spill] sm:$0xff]  ;;  %v12468_v5 = vld [vmem:[#allocation134_spill] sm:$0xff] }
 0x400   :  { %2863 = vmatpush1.msra.mxu0 %v8335_v17  ;;  %2934 = vmatpush1.msra.mxu1 %v8337_v28  ;;  %v12436_v17 = vld [vmem:[#allocation102_spill] sm:$0xff]  ;;  %v12437_v28 = vld [vmem:[#allocation103_spill] sm:$0xff] }
 0x401   :  { %2864 = vmatprep.subr.mxu0 %v8341_v19  ;;  %2935 = vmatprep.subr.mxu1 %v8343_v23  ;;  %v12438_v19 = vld [vmem:[#allocation104_spill] sm:$0xff]  ;;  %v12439_v23 = vld [vmem:[#allocation105_spill] sm:$0xff] }
 0x402   :  { %2865 = vmatpush1.msra.mxu0 %v8347_v62  ;;  %2936 = vmatpush1.msra.mxu1 %v8349_v43  ;;  %v12440_v62 = vld [vmem:[#allocation106_spill] sm:$0xff]  ;;  %v12441_v43 = vld [vmem:[#allocation107_spill] sm:$0xff] }
 0x403   :  { %2866 = vmatprep.subr.mxu0 %v8353_v45  ;;  %2937 = vmatprep.subr.mxu1 %v8355_v35  ;;  %v12442_v45 = vld [vmem:[#allocation108_spill] sm:$0xff]  ;;  %v12443_v35 = vld [vmem:[#allocation109_spill] sm:$0xff] }
 0x404   :  { %2867 = vmatpush1.msra.mxu0 %v8359_v7  ;;  %2938 = vmatpush1.msra.mxu1 %v8361_v29  ;;  %v12444_v7 = vld [vmem:[#allocation110_spill] sm:$0xff]  ;;  %v12445_v29 = vld [vmem:[#allocation111_spill] sm:$0xff] }
 0x405   :  { %2868 = vmatprep.subr.mxu0 %v8365_v55  ;;  %2939 = vmatprep.subr.mxu1 %v8367_v22  ;;  %v12446_v55 = vld [vmem:[#allocation112_spill] sm:$0xff]  ;;  %v12447_v22 = vld [vmem:[#allocation113_spill] sm:$0xff]  ;;  %v6066_v49 = vpop.eup %6065 }
 0x406   :  { %2869 = vmatpush1.msra.mxu0 %v8371_v16  ;;  %2940 = vmatpush1.msra.mxu1 %v8373_v40  ;;  %v12448_v16 = vld [vmem:[#allocation114_spill] sm:$0xff]  ;;  %v12449_v40 = vld [vmem:[#allocation115_spill] sm:$0xff]  ;;  %v2202_v34 = vadd.f32 1.0, %v6066_v49 }
 0x407   :  { %2870 = vmatprep.subr.mxu0 %v8377_v46  ;;  %2941 = vmatprep.subr.mxu1 %v8379_v59  ;;  %v12450_v46 = vld [vmem:[#allocation116_spill] sm:$0xff]  ;;  %v12451_v59 = vld [vmem:[#allocation117_spill] sm:$0xff]  ;;  %v6068_v44 = vpop.eup %6067  ;;  %v12484_v49 = vld [vmem:[#allocation146_spill] sm:$0xff] }
 0x408   :  { %2871 = vmatpush1.msra.mxu0 %v8383_v56  ;;  %2942 = vmatpush1.msra.mxu1 %v8385_v18  ;;  %v12452_v56 = vld [vmem:[#allocation118_spill] sm:$0xff]  ;;  %v12453_v18 = vld [vmem:[#allocation119_spill] sm:$0xff]  ;;  %6073 = vrcp.f32 %v2202_v34 }
 0x409   :  { %2872 = vmatprep.subr.mxu0 %v8389_v38  ;;  %2943 = vmatprep.subr.mxu1 %v12416_v12  ;;  %v12454_v38 = vld [vmem:[#allocation120_spill] sm:$0xff]  ;;  %v12457_v12 = vld [vmem:[#allocation123_spill] sm:$0xff] }
 0x40a   :  { %2873 = vmatpush2.msra.mxu0 %v12417_v31  ;;  %2944 = vmatpush2.msra.mxu1 %v12418_v24  ;;  %v12458_v31 = vld [vmem:[#allocation124_spill] sm:$0xff]  ;;  %v6070_v24 = vpop.eup %6069 }
 0x40b   :  { %2874 = vmatprep.subr.mxu0 %v12419_v42  ;;  %2945 = vmatprep.subr.mxu1 %v12420_v27  ;;  %v12459_v42 = vld [vmem:[#allocation125_spill] sm:$0xff]  ;;  %v12460_v27 = vld [vmem:[#allocation126_spill] sm:$0xff]  ;;  %v6072_v50 = vpop.eup %6071 }
 0x40c   :  { %2875 = vmatpush2.msra.mxu0 %v12421_v32  ;;  %2946 = vmatpush2.msra.mxu1 %v12422_v37  ;;  %v12461_v32 = vld [vmem:[#allocation127_spill] sm:$0xff]  ;;  %v12462_v37 = vld [vmem:[#allocation128_spill] sm:$0xff] }
 0x40d   :  { %2876 = vmatprep.subr.mxu0 %v12423_v11  ;;  %2947 = vmatprep.subr.mxu1 %v12424_v47  ;;  %v2214_v11 = vadd.f32 1.0, %v6068_v44  ;;  %v12463_v47 = vld [vmem:[#allocation129_spill] sm:$0xff] }
 0x40e   :  { %2877 = vmatpush2.msra.mxu0 %v12425_v0  ;;  %2948 = vmatpush2.msra.mxu1 %v12426_v36  ;;  %v2203_v0 = vadd.f32 1.0, %v6070_v24  ;;  %v12465_v36 = vld [vmem:[#allocation131_spill] sm:$0xff]  ;;  %v12485_v24 = vld [vmem:[#allocation80_spill] sm:$0xff] }
 0x40f   :  { %2878 = vmatprep.subr.mxu0 %v12427_v1  ;;  %2949 = vmatprep.subr.mxu1 %v12428_v2  ;;  %v12466_v1 = vld [vmem:[#allocation132_spill] sm:$0xff]  ;;  %v12467_v2 = vld [vmem:[#allocation133_spill] sm:$0xff]  ;;  %6075 = vrcp.f32 %v2214_v11 }
 0x410   :  { %2879 = vmatpush2.msra.mxu0 %v12429_v6  ;;  %2950 = vmatpush2.msra.mxu1 %v12430_v9  ;;  %v2215_v6 = vadd.f32 1.0, %v6072_v50  ;;  %6077 = vrcp.f32 %v2203_v0 }
 0x411   :  { %2880 = vmatprep.subr.mxu0 %v12431_v10  ;;  %2951 = vmatprep.subr.mxu1 %v12432_v13  ;;  %v12469_v13 = vld [vmem:[#allocation135_spill] sm:$0xff] }
 0x412   :  { %2881 = vmatpush2.msra.mxu0 %v12433_v48  ;;  %2952 = vmatpush2.msra.mxu1 %v12434_v15  ;;  %v12470_v48 = vld [vmem:[#allocation136_spill] sm:$0xff] }
 0x413   :  { %2882 = vmatprep.subr.mxu0 %v12435_v41  ;;  %2953 = vmatprep.subr.mxu1 %v12436_v17  ;;  %v12471_v15 = vld [vmem:[#allocation28_spill] sm:$0xff] }
 0x414   :  { %2883 = vmatpush2.msra.mxu0 %v12437_v28  ;;  %2954 = vmatpush2.msra.mxu1 %v12438_v19  ;;  %v12472_v17 = vld [vmem:[#allocation20_spill] sm:$0xff]  ;;  %v12473_v19 = vld [vmem:[#allocation137_spill] sm:$0xff] }
 0x415   :  { %2884 = vmatprep.subr.mxu0 %v12439_v23  ;;  %2955 = vmatprep.subr.mxu1 %v12440_v62  ;;  %v12474_v23 = vld [vmem:[#allocation138_spill] sm:$0xff] }
 0x416   :  { %2885 = vmatpush2.msra.mxu0 %v12441_v43  ;;  %2956 = vmatpush2.msra.mxu1 %v12442_v45  ;;  %v12475_v45 = vld [vmem:[#allocation139_spill] sm:$0xff] }
 0x417   :  { %2886 = vmatprep.subr.mxu0 %v12443_v35  ;;  %2957 = vmatprep.subr.mxu1 %v12444_v7  ;;  %v12476_v35 = vld [vmem:[#allocation140_spill] sm:$0xff] }
 0x418   :  { %2887 = vmatpush2.msra.mxu0 %v12445_v29  ;;  %2958 = vmatpush2.msra.mxu1 %v12446_v55  ;;  %v12477_v29 = vld [vmem:[#allocation30_spill] sm:$0xff] }
 0x419   :  { %2888 = vmatprep.subr.mxu0 %v12447_v22  ;;  %2959 = vmatprep.subr.mxu1 %v12448_v16  ;;  %v12478_v22 = vld [vmem:[#allocation21_spill] sm:$0xff] }
 0x41a   :  { %2889 = vmatpush2.msra.mxu0 %v12449_v40  ;;  %2960 = vmatpush2.msra.mxu1 %v12450_v46  ;;  %v12479_v40 = vld [vmem:[#allocation141_spill] sm:$0xff]  ;;  %v12480_v46 = vld [vmem:[#allocation142_spill] sm:$0xff] }
 0x41b   :  { %2890 = vmatprep.subr.mxu0 %v12451_v59  ;;  %2961 = vmatprep.subr.mxu1 %v12452_v56  ;;  %v12481_v59 = vld [vmem:[#allocation143_spill] sm:$0xff]  ;;  %v12482_v56 = vld [vmem:[#allocation144_spill] sm:$0xff] }
 0x41c   :  { %2891 = vmatpush2.msra.mxu0 %v12453_v18  ;;  %2962 = vmatpush2.msra.mxu1 %v12454_v38  ;;  %v12483_v38 = vld [vmem:[#allocation145_spill] sm:$0xff] }
 0x41d   :  { %2892 = vmatprep.subr.mxu0 %v12455_v33  ;;  %2963 = vmatprep.subr.mxu1 %v12456_v25  ;;  %v6074_v33 = vpop.eup %6073 }
 0x41e   :  { %2893 = vmatpush2.msra.mxu0 %v12457_v12  ;;  %2964 = vmatpush2.msra.mxu1 %v12458_v31  ;;  %v6076_v25 = vpop.eup %6075 }
 0x41f   :  { %2894 = vmatprep.subr.mxu0 %v12459_v42  ;;  %2965 = vmatprep.subr.mxu1 %v12460_v27  ;;  %v6078_v44 = vpop.eup %6077  ;;  %v2234_v42 = vmul.f32 %v6076_v25, %v12485_v24  ;;  %v12494_v24 = vld [vmem:[#allocation69_spill] sm:$0xff] }
 0x420   :  { %2895 = vmatpush2.msra.mxu0 %v12461_v32  ;;  %2966 = vmatpush2.msra.mxu1 %v12462_v37 }
 0x421   :  { %2896 = vmatprep.subr.mxu0 %v12463_v47  ;;  %2967 = vmatprep.subr.mxu1 %v12464_v51  ;;  %v12486_v47 = vld [vmem:[#allocation81_spill] sm:$0xff] }
 0x422   :  { %2897 = vmatpush2.msra.mxu0 %v12465_v36  ;;  %2968 = vmatpush2.msra.mxu1 %v12466_v1 }
 0x423   :  { %2898 = vmatprep.subr.mxu0 %v12467_v2  ;;  %2969 = vmatprep.subr.mxu1 %v12468_v5 }
 0x424   :  { %v2112_v9 = vpop.f32.mrf.mxu0  ;;  %v2183_v10 = vpop.f32.mrf.mxu1  ;;  %2899 = vmatpush2.msra.mxu0 %v12469_v13  ;;  %2970 = vmatpush2.msra.mxu1 %v12470_v48 }
 0x425   :  { %v2192_v41 = vadd.f32 %v2112_v9, %v12471_v15  ;;  %v2194_v28 = vadd.f32 %v2183_v10, %v12472_v17  ;;  %2900 = vmatprep.subr.mxu0 %v12473_v19  ;;  %2971 = vmatprep.subr.mxu1 %v12474_v23  ;;  %v12489_v17 = vld [vmem:[#allocation56_spill] sm:$0xff]  ;;  %v12490_v19 = vld [vmem:[#allocation41_spill] sm:$0xff] }
 0x426   :  { %v2114_v62 = vpop.f32.mrf.mxu0  ;;  %v2185_v43 = vpop.f32.mrf.mxu1  ;;  %2901 = vmatpush2.msra.mxu0 %v12475_v45  ;;  %2972 = vmatpush2.msra.mxu1 %v12476_v35 }
 0x427   :  { %6079 = vtanh.f32 %v2192_v41  ;;  %v5608_v7 = vmul.f32 -1.442695, %v2194_v28  ;;  %v2193_v55 = vadd.f32 %v2114_v62, %v12477_v29  ;;  %v2195_v16 = vadd.f32 %v2185_v43, %v12478_v22  ;;  %2902 = vmatprep.subr.mxu0 %v12479_v40  ;;  %2973 = vmatprep.subr.mxu1 %v12480_v46  ;;  %v12491_v43 = vld [vmem:[#allocation58_spill] sm:$0xff] }
 0x428   :  { %6081 = vrcp.f32 %v2215_v6  ;;  %2903 = vmatpush2.msra.mxu0 %v12481_v59  ;;  %2974 = vmatpush2.msra.mxu1 %v12482_v56 }
 0x429   :  { %6083 = vpow2.f32 %v5608_v7  ;;  %v5609_v18 = vmul.f32 -1.442695, %v2195_v16  ;;  %2982 = vmatprep.subr.mxu0 %v12483_v38  ;;  %3053 = vmatprep.subr.mxu1 %v12484_v49  ;;  %v12492_v7 = vld [vmem:[#allocation43_spill] sm:$0xff] }
 0x42a   :  { %6085 = vtanh.f32 %v2193_v55 }
 0x42b   :  { %6087 = vpow2.f32 %v5609_v18 }
 0x434   :  { %v6080_v12 = vpop.eup %6079 }
 0x435   :  { %v6082_v31 = vpop.eup %6081  ;;  %v2236_v27 = vmul.f32 %v6080_v12, %v6074_v33  ;;  %v12493_v12 = vld [vmem:[#allocation78_spill] sm:$0xff] }
 0x436   :  { %v6084_v34 = vpop.eup %6083  ;;  %v2235_v51 = vmul.f32 %v6082_v31, %v12486_v47 }
 0x437   :  { %v6086_v32 = vpop.eup %6085  ;;  %v2238_v37 = vadd.f32 %v2236_v27, %v2234_v42  ;;  %v2228_v50 = vadd.f32 1.0, %v6084_v34 }
 0x438   :  { %v6088_v11 = vpop.eup %6087  ;;  %v2237_v0 = vmul.f32 %v6086_v32, %v6078_v44 }
 0x439   :  { %6089 = vtanh.f32 %v2238_v37  ;;  %v2229_v36 = vadd.f32 1.0, %v6088_v11  ;;  %v12495_v37 = vld [vmem:[#allocation79_spill] sm:$0xff] }
 0x43a   :  { %6091 = vrcp.f32 %v2228_v50  ;;  %v2239_v1 = vadd.f32 %v2237_v0, %v2235_v51  ;;  %v12496_v11 = vld [vmem:[#allocation71_spill] sm:$0xff] }
 0x43b   :  { %6093 = vrcp.f32 %v2229_v36 }
 0x43c   :  { %6095 = vtanh.f32 %v2239_v1 }
 0x446   :  { %v6090_v2 = vpop.eup %6089 }
 0x447   :  { %v6092_v5 = vpop.eup %6091 }
 0x448   :  { %v6094_v6 = vpop.eup %6093  ;;  %v9107_v9 = vmul.f32 %v6092_v5, %v6090_v2 }
 0x449   :  { %v6096_v10 = vpop.eup %6095 }
 0x44a   :  { %12487 = vst [vmem:[#allocation82_spill] sm:$0xff] %v9107_v9  ;;  %v9109_v13 = vmul.f32 %v6096_v10, %v6094_v6  ;;  %v9440_v9 = vld [vmem:[#allocation6 + $0x18] sm:$0xff] }
 0x44b   :  { %12625 = vst [vmem:[#allocation103_spill] sm:$0xff] %v9440_v9 }
 0x44c   :  { %12488 = vst [vmem:[#allocation83_spill] sm:$0xff] %v9109_v13  ;;  %v9437_v13 = vld [vmem:[#allocation6 + $0x8] sm:$0xff] }
 0x44d   :  { %12624 = vst [vmem:[#allocation102_spill] sm:$0xff] %v9437_v13 }
 0x466   :  { %v2566_v48 = vpop.f32.mrf.mxu0  ;;  %v2637_v15 = vpop.f32.mrf.mxu1 }
 0x467   :  { %v2784_v28 = vadd.f32 %v2566_v48, %v12489_v17  ;;  %v2786_v23 = vadd.f32 %v2637_v15, %v12490_v19 }
 0x468   :  { %v2568_v41 = vpop.f32.mrf.mxu0  ;;  %v2639_v62 = vpop.f32.mrf.mxu1 }
 0x469   :  { %v2785_v45 = vadd.f32 %v2568_v41, %v12491_v43  ;;  %v5610_v35 = vmul.f32 -1.442695, %v2784_v28  ;;  %v2787_v29 = vadd.f32 %v2639_v62, %v12492_v7  ;;  %v5612_v55 = vmul.f32 -1.442695, %v2786_v23 }
 0x46b   :  { %v5611_v22 = vmul.f32 -1.442695, %v2785_v45  ;;  %6097 = vpow2.f32 %v5610_v35  ;;  %v5613_v16 = vmul.f32 -1.442695, %v2787_v29 }
 0x46c   :  { %6099 = vpow2.f32 %v5612_v55 }
 0x46d   :  { %6101 = vpow2.f32 %v5611_v22 }
 0x46e   :  { %6103 = vpow2.f32 %v5613_v16  ;;  %v9129_v16 = vld [vmem:[#allocation6 + $0x3e0] sm:$0xff] }
 0x478   :  { %v6098_v40 = vpop.eup %6097 }
 0x479   :  { %v6100_v46 = vpop.eup %6099  ;;  %v2798_v56 = vadd.f32 1.0, %v6098_v40  ;;  %v9132_v40 = vld [vmem:[#allocation6 + $0x3f0] sm:$0xff] }
 0x47a   :  { %v6102_v59 = vpop.eup %6101  ;;  %v2810_v38 = vadd.f32 1.0, %v6100_v46  ;;  %v9135_v46 = vld [vmem:[#allocation6 + $0x3a8] sm:$0xff] }
 0x47b   :  { %v6104_v18 = vpop.eup %6103  ;;  %v2799_v49 = vadd.f32 1.0, %v6102_v59  ;;  %6105 = vrcp.f32 %v2798_v56  ;;  %v9138_v59 = vld [vmem:[#allocation6 + $0x3b8] sm:$0xff]  ;;  %v9141_v56 = vld [vmem:[#allocation6 + $0x3a0] sm:$0xff] }
 0x47c   :  { %v2811_v33 = vadd.f32 1.0, %v6104_v18  ;;  %6107 = vrcp.f32 %v2810_v38  ;;  %v9144_v18 = vld [vmem:[#allocation6 + $0x3b0] sm:$0xff]  ;;  %v9147_v38 = vld [vmem:[#allocation6 + $0x368] sm:$0xff] }
 0x47d   :  { %6109 = vrcp.f32 %v2799_v49  ;;  %v9150_v49 = vld [vmem:[#allocation6 + $0x378] sm:$0xff] }
 0x488   :  { %v6106_v0 = vpop.eup %6105 }
 0x489   :  { %v6108_v36 = vpop.eup %6107 }
 0x48a   :  { %v6110_v1 = vpop.eup %6109  ;;  %v2830_v6 = vmul.f32 0.0, %v6108_v36  ;;  %v12499_v36 = vld [vmem:[#allocation149_spill] sm:$0xff] }
 0x4a8   :  { %v2708_v25 = vpop.f32.mrf.mxu0  ;;  %v2779_v44 = vpop.f32.mrf.mxu1 }
 0x4a9   :  { %v2788_v31 = vadd.f32 %v2708_v25, %v12493_v12  ;;  %v2790_v42 = vadd.f32 %v2779_v44, %v12494_v24  ;;  %v9156_v25 = vld [vmem:[#allocation6 + $0x370] sm:$0xff]  ;;  %v9159_v44 = vld [vmem:[#allocation6 + $0x328] sm:$0xff]  ;;  %v9162_v12 = vld [vmem:[#allocation6 + $0x338] sm:$0xff] }
 0x4aa   :  { %v2710_v27 = vpop.f32.mrf.mxu0  ;;  %v2781_v34 = vpop.f32.mrf.mxu1  ;;  %v9168_v24 = vld [vmem:[#allocation6 + $0x330] sm:$0xff] }
 0x4ab   :  { %6111 = vtanh.f32 %v2788_v31  ;;  %v5614_v32 = vmul.f32 -1.442695, %v2790_v42  ;;  %v2789_v50 = vadd.f32 %v2710_v27, %v12495_v37  ;;  %v2791_v47 = vadd.f32 %v2781_v34, %v12496_v11  ;;  %v9165_v31 = vld [vmem:[#allocation6 + $0x320] sm:$0xff]  ;;  %v9171_v42 = vld [vmem:[#allocation6 + $0x2e8] sm:$0xff]  ;;  %v9174_v27 = vld [vmem:[#allocation6 + $0x2f8] sm:$0xff] }
 0x4ac   :  { %6113 = vrcp.f32 %v2811_v33  ;;  %v9153_v33 = vld [vmem:[#allocation6 + $0x360] sm:$0xff]  ;;  %v9183_v37 = vld [vmem:[#allocation6 + $0x2a8] sm:$0xff] }
 0x4ad   :  { %6115 = vpow2.f32 %v5614_v32  ;;  %v5615_v51 = vmul.f32 -1.442695, %v2791_v47  ;;  %v9177_v34 = vld [vmem:[#allocation6 + $0x2e0] sm:$0xff]  ;;  %v9180_v32 = vld [vmem:[#allocation6 + $0x2f0] sm:$0xff] }
 0x4ae   :  { %6117 = vtanh.f32 %v2789_v50  ;;  %v9186_v50 = vld [vmem:[#allocation6 + $0x2b8] sm:$0xff]  ;;  %v9189_v11 = vld [vmem:[#allocation6 + $0x2a0] sm:$0xff]  ;;  %v9192_v47 = vld [vmem:[#allocation6 + $0x2b0] sm:$0xff] }
 0x4af   :  { %6119 = vpow2.f32 %v5615_v51  ;;  %v12497_v51 = vld [vmem:[#allocation147_spill] sm:$0xff] }
 0x4b8   :  { %v6112_v2 = vpop.eup %6111 }
 0x4b9   :  { %v6114_v5 = vpop.eup %6113  ;;  %v2832_v10 = vmul.f32 %v6112_v2, %v6106_v0  ;;  %v12498_v0 = vld [vmem:[#allocation148_spill] sm:$0xff]  ;;  %v12501_v2 = vld [vmem:[#allocation151_spill] sm:$0xff] }
 0x4ba   :  { %v6116_v48 = vpop.eup %6115  ;;  %v2831_v19 = vmul.f32 0.0, %v6114_v5  ;;  %v12502_v5 = vld [vmem:[#allocation152_spill] sm:$0xff] }
 0x4bb   :  { %v6118_v15 = vpop.eup %6117  ;;  %v9119_v41 = vadd.f32 %v2832_v10, %v2830_v6  ;;  %v2824_v17 = vadd.f32 1.0, %v6116_v48  ;;  %v12503_v6 = vld [vmem:[#allocation153_spill] sm:$0xff]  ;;  %v12508_v10 = vld [vmem:[#allocation158_spill] sm:$0xff]  ;;  %v12509_v48 = vld [vmem:[#allocation159_spill] sm:$0xff] }
 0x4bc   :  { %v6120_v28 = vpop.eup %6119  ;;  %v2833_v23 = vmul.f32 %v6118_v15, %v6110_v1  ;;  %v12500_v1 = vld [vmem:[#allocation150_spill] sm:$0xff]  ;;  %v12510_v15 = vld [vmem:[#allocation160_spill] sm:$0xff] }
 0x4bd   :  { %6121 = vtanh.f32 %v9119_v41  ;;  %v2825_v62 = vadd.f32 1.0, %v6120_v28  ;;  %v12512_v28 = vld [vmem:[#allocation162_spill] sm:$0xff] }
 0x4be   :  { %6123 = vrcp.f32 %v2824_v17  ;;  %v9122_v43 = vadd.f32 %v2833_v23, %v2831_v19  ;;  %v12511_v17 = vld [vmem:[#allocation161_spill] sm:$0xff]  ;;  %v12513_v19 = vld [vmem:[#allocation163_spill] sm:$0xff]  ;;  %v12514_v23 = vld [vmem:[#allocation164_spill] sm:$0xff] }
 0x4bf   :  { %6125 = vrcp.f32 %v2825_v62  ;;  %v12515_v62 = vld [vmem:[#allocation165_spill] sm:$0xff] }
 0x4c0   :  { %6127 = vtanh.f32 %v9122_v43 }
 0x4ca   :  { %v6122_v45 = vpop.eup %6121 }
 0x4cb   :  { %v6124_v35 = vpop.eup %6123 }
 0x4cc   :  { %v6126_v7 = vpop.eup %6125  ;;  %v9125_v22 = vmul.f32 %v6124_v35, %v6122_v45  ;;  %v12516_v45 = vld [vmem:[#allocation166_spill] sm:$0xff]  ;;  %v12517_v35 = vld [vmem:[#allocation167_spill] sm:$0xff] }
 0x4cd   :  { %v6128_v29 = vpop.eup %6127 }
 0x4ce   :  { %v2839_v55 = vmul.f32 %v6128_v29, %v6126_v7  ;;  %v12518_v7 = vld [vmem:[#allocation168_spill] sm:$0xff]  ;;  %v12519_v29 = vld [vmem:[#allocation169_spill] sm:$0xff] }
 0x4d0   :  { %2904 = vmatprep.mubr.f32.mxu0 %v2839_v55  ;;  %2975 = vmatprep.mubr.f32.mxu1 %v2839_v55 }
 0x4d1   :  { %2905 = vmatmul.mubr.f32.vlgmr.msra.gmra.mxu0 %v9125_v22  ;;  %2976 = vmatmul.mubr.f32.vlgmr.msra.gmra.mxu1 %v9125_v22 }
 0x4d2   :  { %2983 = vmatpush1.msra.mxu0 %v9129_v16  ;;  %3054 = vmatpush1.msra.mxu1 %v9132_v40 }
 0x4d3   :  { %2984 = vmatprep.subr.mxu0 %v9135_v46  ;;  %3046 = vmatprep.mubr.f32.mxu0 %v2839_v55 }
 0x4d4   :  { %3055 = vmatprep.subr.mxu1 %v9138_v59  ;;  %3117 = vmatprep.mubr.f32.mxu1 %v2839_v55  ;;  %v12520_v55 = vld [vmem:[#allocation170_spill] sm:$0xff] }
 0x4d5   :  { %2985 = vmatpush1.msra.mxu0 %v9141_v56  ;;  %3056 = vmatpush1.msra.mxu1 %v9144_v18 }
 0x4d6   :  { %2986 = vmatprep.subr.mxu0 %v9147_v38  ;;  %3057 = vmatprep.subr.mxu1 %v9150_v49 }
 0x4d7   :  { %2987 = vmatpush1.msra.mxu0 %v9153_v33  ;;  %3058 = vmatpush1.msra.mxu1 %v9156_v25 }
 0x4d8   :  { %2988 = vmatprep.subr.mxu0 %v9159_v44  ;;  %3059 = vmatprep.subr.mxu1 %v9162_v12 }
 0x4d9   :  { %2989 = vmatpush1.msra.mxu0 %v9165_v31  ;;  %3060 = vmatpush1.msra.mxu1 %v9168_v24 }
 0x4da   :  { %2990 = vmatprep.subr.mxu0 %v9171_v42  ;;  %3061 = vmatprep.subr.mxu1 %v9174_v27 }
 0x4db   :  { %2991 = vmatpush1.msra.mxu0 %v9177_v34  ;;  %3062 = vmatpush1.msra.mxu1 %v9180_v32 }
 0x4dc   :  { %2992 = vmatprep.subr.mxu0 %v9183_v37  ;;  %3063 = vmatprep.subr.mxu1 %v9186_v50 }
 0x4dd   :  { %2993 = vmatpush1.msra.mxu0 %v9189_v11  ;;  %3064 = vmatpush1.msra.mxu1 %v9192_v47 }
 0x4de   :  { %2994 = vmatprep.subr.mxu0 %v8595_v26  ;;  %3065 = vmatprep.subr.mxu1 %v8597_v8  ;;  %v12504_v26 = vld [vmem:[#allocation154_spill] sm:$0xff]  ;;  %v12505_v8 = vld [vmem:[#allocation155_spill] sm:$0xff] }
 0x4df   :  { %2995 = vmatpush1.msra.mxu0 %v8599_v39  ;;  %3066 = vmatpush1.msra.mxu1 %v8601_v3  ;;  %v12506_v39 = vld [vmem:[#allocation156_spill] sm:$0xff]  ;;  %v12507_v3 = vld [vmem:[#allocation157_spill] sm:$0xff] }
 0x4e0   :  { %2996 = vmatprep.subr.mxu0 %v12497_v51  ;;  %3067 = vmatprep.subr.mxu1 %v12498_v0  ;;  %v12521_v51 = vld [vmem:[#allocation171_spill] sm:$0xff]  ;;  %v12522_v0 = vld [vmem:[#allocation172_spill] sm:$0xff] }
 0x4e1   :  { %2997 = vmatpush1.msra.mxu0 %v12499_v36  ;;  %3068 = vmatpush1.msra.mxu1 %v12500_v1  ;;  %v12523_v36 = vld [vmem:[#allocation173_spill] sm:$0xff]  ;;  %v12524_v1 = vld [vmem:[#allocation174_spill] sm:$0xff] }
 0x4e2   :  { %2998 = vmatprep.subr.mxu0 %v12501_v2  ;;  %3069 = vmatprep.subr.mxu1 %v12502_v5  ;;  %v12525_v2 = vld [vmem:[#allocation175_spill] sm:$0xff]  ;;  %v12526_v5 = vld [vmem:[#allocation176_spill] sm:$0xff] }
 0x4e3   :  { %2999 = vmatpush1.msra.mxu0 %v12503_v6  ;;  %3070 = vmatpush1.msra.mxu1 %v12504_v26  ;;  %v12527_v6 = vld [vmem:[#allocation177_spill] sm:$0xff]  ;;  %v12528_v26 = vld [vmem:[#allocation178_spill] sm:$0xff] }
 0x4e4   :  { %3000 = vmatprep.subr.mxu0 %v12505_v8  ;;  %3071 = vmatprep.subr.mxu1 %v12506_v39  ;;  %v12529_v8 = vld [vmem:[#allocation179_spill] sm:$0xff]  ;;  %v12530_v39 = vld [vmem:[#allocation180_spill] sm:$0xff] }
 0x4e5   :  { %3001 = vmatpush1.msra.mxu0 %v12507_v3  ;;  %3072 = vmatpush1.msra.mxu1 %v12508_v10  ;;  %v12531_v3 = vld [vmem:[#allocation181_spill] sm:$0xff]  ;;  %v12532_v10 = vld [vmem:[#allocation182_spill] sm:$0xff] }
 0x4e6   :  { %3002 = vmatprep.subr.mxu0 %v12509_v48  ;;  %3073 = vmatprep.subr.mxu1 %v12510_v15  ;;  %v12533_v48 = vld [vmem:[#allocation183_spill] sm:$0xff]  ;;  %v12534_v15 = vld [vmem:[#allocation184_spill] sm:$0xff] }
 0x4e7   :  { %3003 = vmatpush1.msra.mxu0 %v12511_v17  ;;  %3074 = vmatpush1.msra.mxu1 %v12512_v28  ;;  %v12535_v17 = vld [vmem:[#allocation185_spill] sm:$0xff]  ;;  %v12536_v28 = vld [vmem:[#allocation186_spill] sm:$0xff] }
 0x4e8   :  { %3004 = vmatprep.subr.mxu0 %v12513_v19  ;;  %3075 = vmatprep.subr.mxu1 %v12514_v23  ;;  %v12537_v19 = vld [vmem:[#allocation187_spill] sm:$0xff]  ;;  %v12538_v23 = vld [vmem:[#allocation188_spill] sm:$0xff] }
 0x4e9   :  { %3005 = vmatpush1.msra.mxu0 %v12515_v62  ;;  %3076 = vmatpush1.msra.mxu1 %v12516_v45  ;;  %v12539_v62 = vld [vmem:[#allocation189_spill] sm:$0xff]  ;;  %v12540_v45 = vld [vmem:[#allocation190_spill] sm:$0xff] }
 0x4ea   :  { %3006 = vmatprep.subr.mxu0 %v12517_v35  ;;  %3077 = vmatprep.subr.mxu1 %v12518_v7  ;;  %v12541_v35 = vld [vmem:[#allocation191_spill] sm:$0xff]  ;;  %v12542_v7 = vld [vmem:[#allocation192_spill] sm:$0xff] }
 0x4eb   :  { %3007 = vmatpush1.msra.mxu0 %v12519_v29  ;;  %3078 = vmatpush1.msra.mxu1 %v12520_v55  ;;  %v12543_v29 = vld [vmem:[#allocation193_spill] sm:$0xff]  ;;  %v12544_v55 = vld [vmem:[#allocation194_spill] sm:$0xff] }
 0x4ec   :  { %3008 = vmatprep.subr.mxu0 %v12521_v51  ;;  %3079 = vmatprep.subr.mxu1 %v12522_v0  ;;  %v12545_v51 = vld [vmem:[#allocation195_spill] sm:$0xff]  ;;  %v12546_v0 = vld [vmem:[#allocation196_spill] sm:$0xff] }
 0x4ed   :  { %3009 = vmatpush1.msra.mxu0 %v12523_v36  ;;  %3080 = vmatpush1.msra.mxu1 %v12524_v1  ;;  %v12547_v36 = vld [vmem:[#allocation197_spill] sm:$0xff]  ;;  %v12548_v1 = vld [vmem:[#allocation198_spill] sm:$0xff] }
 0x4ee   :  { %3010 = vmatprep.subr.mxu0 %v12525_v2  ;;  %3081 = vmatprep.subr.mxu1 %v12526_v5  ;;  %v12549_v2 = vld [vmem:[#allocation199_spill] sm:$0xff]  ;;  %v12550_v5 = vld [vmem:[#allocation200_spill] sm:$0xff] }
 0x4ef   :  { %3011 = vmatpush1.msra.mxu0 %v12527_v6  ;;  %3082 = vmatpush1.msra.mxu1 %v12528_v26  ;;  %v12551_v6 = vld [vmem:[#allocation201_spill] sm:$0xff]  ;;  %v12552_v26 = vld [vmem:[#allocation202_spill] sm:$0xff] }
 0x4f0   :  { %3012 = vmatprep.subr.mxu0 %v12529_v8  ;;  %3083 = vmatprep.subr.mxu1 %v12530_v39  ;;  %v12553_v8 = vld [vmem:[#allocation203_spill] sm:$0xff]  ;;  %v12554_v39 = vld [vmem:[#allocation204_spill] sm:$0xff] }
 0x4f1   :  { %3013 = vmatpush1.msra.mxu0 %v12531_v3  ;;  %3084 = vmatpush1.msra.mxu1 %v12532_v10  ;;  %v12555_v3 = vld [vmem:[#allocation205_spill] sm:$0xff]  ;;  %v12556_v10 = vld [vmem:[#allocation206_spill] sm:$0xff] }
 0x4f2   :  { %3014 = vmatprep.subr.mxu0 %v12533_v48  ;;  %3085 = vmatprep.subr.mxu1 %v12534_v15  ;;  %v12557_v48 = vld [vmem:[#allocation207_spill] sm:$0xff]  ;;  %v12558_v15 = vld [vmem:[#allocation208_spill] sm:$0xff] }
 0x4f3   :  { %3015 = vmatpush2.msra.mxu0 %v12535_v17  ;;  %3086 = vmatpush2.msra.mxu1 %v12536_v28  ;;  %v12559_v17 = vld [vmem:[#allocation209_spill] sm:$0xff]  ;;  %v12560_v28 = vld [vmem:[#allocation210_spill] sm:$0xff] }
 0x4f4   :  { %3016 = vmatprep.subr.mxu0 %v12537_v19  ;;  %3087 = vmatprep.subr.mxu1 %v12538_v23  ;;  %v12561_v19 = vld [vmem:[#allocation211_spill] sm:$0xff]  ;;  %v12562_v23 = vld [vmem:[#allocation212_spill] sm:$0xff] }
 0x4f5   :  { %3017 = vmatpush2.msra.mxu0 %v12539_v62  ;;  %3088 = vmatpush2.msra.mxu1 %v12540_v45  ;;  %v12563_v62 = vld [vmem:[#allocation213_spill] sm:$0xff]  ;;  %v12564_v45 = vld [vmem:[#allocation214_spill] sm:$0xff] }
 0x4f6   :  { %3018 = vmatprep.subr.mxu0 %v12541_v35  ;;  %3089 = vmatprep.subr.mxu1 %v12542_v7  ;;  %v12565_v35 = vld [vmem:[#allocation215_spill] sm:$0xff]  ;;  %v12566_v7 = vld [vmem:[#allocation216_spill] sm:$0xff] }
 0x4f7   :  { %3019 = vmatpush2.msra.mxu0 %v12543_v29  ;;  %3090 = vmatpush2.msra.mxu1 %v12544_v55  ;;  %v12567_v29 = vld [vmem:[#allocation217_spill] sm:$0xff]  ;;  %v12568_v55 = vld [vmem:[#allocation218_spill] sm:$0xff] }
 0x4f8   :  { %3020 = vmatprep.subr.mxu0 %v12545_v51  ;;  %3091 = vmatprep.subr.mxu1 %v12546_v0  ;;  %v12569_v51 = vld [vmem:[#allocation219_spill] sm:$0xff]  ;;  %v12570_v0 = vld [vmem:[#allocation220_spill] sm:$0xff] }
 0x4f9   :  { %3021 = vmatpush2.msra.mxu0 %v12547_v36  ;;  %3092 = vmatpush2.msra.mxu1 %v12548_v1  ;;  %v12571_v36 = vld [vmem:[#allocation221_spill] sm:$0xff]  ;;  %v12572_v1 = vld [vmem:[#allocation222_spill] sm:$0xff] }
 0x4fa   :  { %3022 = vmatprep.subr.mxu0 %v12549_v2  ;;  %3093 = vmatprep.subr.mxu1 %v12550_v5  ;;  %v12573_v2 = vld [vmem:[#allocation223_spill] sm:$0xff]  ;;  %v12574_v5 = vld [vmem:[#allocation224_spill] sm:$0xff] }
 0x4fb   :  { %3023 = vmatpush2.msra.mxu0 %v12551_v6  ;;  %3094 = vmatpush2.msra.mxu1 %v12552_v26  ;;  %v12575_v6 = vld [vmem:[#allocation225_spill] sm:$0xff]  ;;  %v12576_v26 = vld [vmem:[#allocation226_spill] sm:$0xff] }
 0x4fc   :  { %3024 = vmatprep.subr.mxu0 %v12553_v8  ;;  %3095 = vmatprep.subr.mxu1 %v12554_v39  ;;  %v12577_v8 = vld [vmem:[#allocation227_spill] sm:$0xff]  ;;  %v12578_v39 = vld [vmem:[#allocation228_spill] sm:$0xff] }
 0x4fd   :  { %3025 = vmatpush2.msra.mxu0 %v12555_v3  ;;  %3096 = vmatpush2.msra.mxu1 %v12556_v10  ;;  %v12579_v3 = vld [vmem:[#allocation229_spill] sm:$0xff]  ;;  %v12580_v10 = vld [vmem:[#allocation230_spill] sm:$0xff] }
 0x4fe   :  { %3026 = vmatprep.subr.mxu0 %v12557_v48  ;;  %3097 = vmatprep.subr.mxu1 %v12558_v15  ;;  %v12581_v48 = vld [vmem:[#allocation231_spill] sm:$0xff]  ;;  %v12582_v15 = vld [vmem:[#allocation232_spill] sm:$0xff] }
 0x4ff   :  { %3027 = vmatpush2.msra.mxu0 %v12559_v17  ;;  %3098 = vmatpush2.msra.mxu1 %v12560_v28  ;;  %v12583_v17 = vld [vmem:[#allocation233_spill] sm:$0xff]  ;;  %v12584_v28 = vld [vmem:[#allocation234_spill] sm:$0xff] }
 0x500   :  { %3028 = vmatprep.subr.mxu0 %v12561_v19  ;;  %3099 = vmatprep.subr.mxu1 %v12562_v23  ;;  %v12585_v19 = vld [vmem:[#allocation235_spill] sm:$0xff]  ;;  %v12586_v23 = vld [vmem:[#allocation236_spill] sm:$0xff] }
 0x501   :  { %3029 = vmatpush2.msra.mxu0 %v12563_v62  ;;  %3100 = vmatpush2.msra.mxu1 %v12564_v45  ;;  %v12587_v62 = vld [vmem:[#allocation237_spill] sm:$0xff]  ;;  %v12588_v45 = vld [vmem:[#allocation238_spill] sm:$0xff] }
 0x502   :  { %3030 = vmatprep.subr.mxu0 %v12565_v35  ;;  %3101 = vmatprep.subr.mxu1 %v12566_v7  ;;  %v12589_v35 = vld [vmem:[#allocation239_spill] sm:$0xff]  ;;  %v12590_v7 = vld [vmem:[#allocation240_spill] sm:$0xff] }
 0x503   :  { %3031 = vmatpush2.msra.mxu0 %v12567_v29  ;;  %3102 = vmatpush2.msra.mxu1 %v12568_v55  ;;  %v12591_v29 = vld [vmem:[#allocation241_spill] sm:$0xff]  ;;  %v12592_v55 = vld [vmem:[#allocation242_spill] sm:$0xff] }
 0x504   :  { %3032 = vmatprep.subr.mxu0 %v12569_v51  ;;  %3103 = vmatprep.subr.mxu1 %v12570_v0  ;;  %v12593_v51 = vld [vmem:[#allocation243_spill] sm:$0xff]  ;;  %v12594_v0 = vld [vmem:[#allocation244_spill] sm:$0xff] }
 0x505   :  { %3033 = vmatpush2.msra.mxu0 %v12571_v36  ;;  %3104 = vmatpush2.msra.mxu1 %v12572_v1  ;;  %v12599_v36 = vld [vmem:[#allocation249_spill] sm:$0xff]  ;;  %v12604_v1 = vld [vmem:[#allocation254_spill] sm:$0xff] }
 0x506   :  { %3034 = vmatprep.subr.mxu0 %v12573_v2  ;;  %3105 = vmatprep.subr.mxu1 %v12574_v5  ;;  %v12605_v2 = vld [vmem:[#allocation255_spill] sm:$0xff]  ;;  %v9323_v5 = vld [vmem:[#allocation6 + $0x280] sm:$0xff] }
 0x507   :  { %3035 = vmatpush2.msra.mxu0 %v12575_v6  ;;  %3106 = vmatpush2.msra.mxu1 %v12576_v26  ;;  %v9326_v6 = vld [vmem:[#allocation6 + $0x290] sm:$0xff]  ;;  %v9329_v26 = vld [vmem:[#allocation6 + $0x248] sm:$0xff] }
 0x508   :  { %3036 = vmatprep.subr.mxu0 %v12577_v8  ;;  %3107 = vmatprep.subr.mxu1 %v12578_v39  ;;  %v9350_v8 = vld [vmem:[#allocation6 + $0x210] sm:$0xff]  ;;  %v9353_v39 = vld [vmem:[#allocation6 + $0x1c8] sm:$0xff] }
 0x509   :  { %3037 = vmatpush2.msra.mxu0 %v12579_v3  ;;  %3108 = vmatpush2.msra.mxu1 %v12580_v10  ;;  %v9356_v3 = vld [vmem:[#allocation6 + $0x1d8] sm:$0xff]  ;;  %v9359_v10 = vld [vmem:[#allocation6 + $0x1c0] sm:$0xff] }
 0x50a   :  { %3038 = vmatprep.subr.mxu0 %v12581_v48  ;;  %3109 = vmatprep.subr.mxu1 %v12582_v15  ;;  %v9362_v48 = vld [vmem:[#allocation6 + $0x1d0] sm:$0xff]  ;;  %v9365_v15 = vld [vmem:[#allocation6 + $0x188] sm:$0xff] }
 0x50b   :  { %3039 = vmatpush2.msra.mxu0 %v12583_v17  ;;  %3110 = vmatpush2.msra.mxu1 %v12584_v28  ;;  %v9368_v17 = vld [vmem:[#allocation6 + $0x198] sm:$0xff]  ;;  %v9371_v28 = vld [vmem:[#allocation6 + $0x180] sm:$0xff] }
 0x50c   :  { %3040 = vmatprep.subr.mxu0 %v12585_v19  ;;  %3111 = vmatprep.subr.mxu1 %v12586_v23  ;;  %v9374_v19 = vld [vmem:[#allocation6 + $0x190] sm:$0xff]  ;;  %v9377_v23 = vld [vmem:[#allocation6 + $0x148] sm:$0xff] }
 0x50d   :  { %3041 = vmatpush2.msra.mxu0 %v12587_v62  ;;  %3112 = vmatpush2.msra.mxu1 %v12588_v45  ;;  %v9380_v62 = vld [vmem:[#allocation6 + $0x158] sm:$0xff]  ;;  %v9383_v45 = vld [vmem:[#allocation6 + $0x140] sm:$0xff] }
 0x50e   :  { %3042 = vmatprep.subr.mxu0 %v12589_v35  ;;  %3113 = vmatprep.subr.mxu1 %v12590_v7  ;;  %12606 = vst [vmem:[#allocation84_spill] sm:$0xff] %v9383_v45  ;;  %v9386_v35 = vld [vmem:[#allocation6 + $0x150] sm:$0xff]  ;;  %v9389_v7 = vld [vmem:[#allocation6 + $0x108] sm:$0xff] }
 0x50f   :  { %3043 = vmatpush2.msra.mxu0 %v12591_v29  ;;  %3114 = vmatpush2.msra.mxu1 %v12592_v55  ;;  %12607 = vst [vmem:[#allocation85_spill] sm:$0xff] %v9386_v35  ;;  %12608 = vst [vmem:[#allocation86_spill] sm:$0xff] %v9389_v7  ;;  %v9392_v29 = vld [vmem:[#allocation6 + $0x118] sm:$0xff]  ;;  %v9395_v55 = vld [vmem:[#allocation6 + $0x100] sm:$0xff] }
 0x510   :  { %3044 = vmatprep.subr.mxu0 %v8891_v61  ;;  %3115 = vmatprep.subr.mxu1 %v8893_v21  ;;  %v12595_v61 = vld [vmem:[#allocation245_spill] sm:$0xff]  ;;  %v12596_v21 = vld [vmem:[#allocation246_spill] sm:$0xff]  ;;  %12609 = vst [vmem:[#allocation87_spill] sm:$0xff] %v9392_v29  ;;  %12610 = vst [vmem:[#allocation88_spill] sm:$0xff] %v9395_v55 }
 0x511   :  { %3045 = vmatpush2.msra.mxu0 %v8897_v20  ;;  %3116 = vmatpush2.msra.mxu1 %v8901_v30  ;;  %v12597_v20 = vld [vmem:[#allocation247_spill] sm:$0xff]  ;;  %v12598_v30 = vld [vmem:[#allocation248_spill] sm:$0xff] }
 0x512   :  { %3047 = vmatmul.mubr.f32.vlgmr.msra.gmra.mxu0 %v9125_v22  ;;  %3118 = vmatmul.mubr.f32.vlgmr.msra.gmra.mxu1 %v9125_v22  ;;  %v12600_v22 = vld [vmem:[#allocation250_spill] sm:$0xff] }
 0x513   :  { %3180 = vmatprep.subr.mxu0 %v8923_v57  ;;  %3251 = vmatprep.subr.mxu1 %v8926_v58  ;;  %v12601_v57 = vld [vmem:[#allocation251_spill] sm:$0xff]  ;;  %v12602_v58 = vld [vmem:[#allocation252_spill] sm:$0xff] }
 0x514   :  { %3181 = vmatpush1.msra.mxu0 %v8929_v14  ;;  %3252 = vmatpush1.msra.mxu1 %v12593_v51  ;;  %v12603_v14 = vld [vmem:[#allocation253_spill] sm:$0xff]  ;;  %v9398_v51 = vld [vmem:[#allocation6 + $0x110] sm:$0xff] }
 0x515   :  { %3182 = vmatprep.subr.mxu0 %v12594_v0  ;;  %3253 = vmatprep.subr.mxu1 %v12595_v61  ;;  %12611 = vst [vmem:[#allocation89_spill] sm:$0xff] %v9398_v51  ;;  %v9401_v0 = vld [vmem:[#allocation6 + $0xc8] sm:$0xff]  ;;  %v9404_v61 = vld [vmem:[#allocation6 + $0xd8] sm:$0xff] }
 0x516   :  { %3183 = vmatpush1.msra.mxu0 %v12596_v21  ;;  %3254 = vmatpush1.msra.mxu1 %v12597_v20  ;;  %12612 = vst [vmem:[#allocation90_spill] sm:$0xff] %v9401_v0  ;;  %12613 = vst [vmem:[#allocation91_spill] sm:$0xff] %v9404_v61  ;;  %v9407_v21 = vld [vmem:[#allocation6 + $0xc0] sm:$0xff]  ;;  %v9410_v20 = vld [vmem:[#allocation6 + $0xd0] sm:$0xff] }
 0x517   :  { %3184 = vmatprep.subr.mxu0 %v12598_v30  ;;  %3255 = vmatprep.subr.mxu1 %v12599_v36  ;;  %12614 = vst [vmem:[#allocation92_spill] sm:$0xff] %v9407_v21  ;;  %12615 = vst [vmem:[#allocation93_spill] sm:$0xff] %v9410_v20  ;;  %v9413_v30 = vld [vmem:[#allocation6 + $0x88] sm:$0xff]  ;;  %v9416_v36 = vld [vmem:[#allocation6 + $0x98] sm:$0xff] }
 0x518   :  { %3185 = vmatpush1.msra.mxu0 %v12600_v22  ;;  %3256 = vmatpush1.msra.mxu1 %v12601_v57  ;;  %12616 = vst [vmem:[#allocation94_spill] sm:$0xff] %v9413_v30  ;;  %12617 = vst [vmem:[#allocation95_spill] sm:$0xff] %v9416_v36  ;;  %v9419_v22 = vld [vmem:[#allocation6 + $0x80] sm:$0xff]  ;;  %v9422_v57 = vld [vmem:[#allocation6 + $0x90] sm:$0xff] }
 0x519   :  { %3186 = vmatprep.subr.mxu0 %v12602_v58  ;;  %3257 = vmatprep.subr.mxu1 %v12603_v14  ;;  %12618 = vst [vmem:[#allocation96_spill] sm:$0xff] %v9419_v22  ;;  %12619 = vst [vmem:[#allocation97_spill] sm:$0xff] %v9422_v57  ;;  %v9425_v58 = vld [vmem:[#allocation6 + $0x48] sm:$0xff]  ;;  %v9428_v14 = vld [vmem:[#allocation6 + $0x58] sm:$0xff] }
 0x51a   :  { %3187 = vmatpush1.msra.mxu0 %v12604_v1  ;;  %3258 = vmatpush1.msra.mxu1 %v12605_v2  ;;  %12620 = vst [vmem:[#allocation98_spill] sm:$0xff] %v9425_v58  ;;  %12621 = vst [vmem:[#allocation99_spill] sm:$0xff] %v9428_v14  ;;  %v9431_v1 = vld [vmem:[#allocation6 + $0x40] sm:$0xff]  ;;  %v9434_v2 = vld [vmem:[#allocation6 + $0x50] sm:$0xff] }
 0x51b   :  { %3188 = vmatprep.subr.mxu0 %v8971_v63  ;;  %3259 = vmatprep.subr.mxu1 %v8974_v54  ;;  %v9332_v63 = vld [vmem:[#allocation6 + $0x258] sm:$0xff]  ;;  %v9335_v54 = vld [vmem:[#allocation6 + $0x240] sm:$0xff]  ;;  %12622 = vst [vmem:[#allocation100_spill] sm:$0xff] %v9431_v1  ;;  %12623 = vst [vmem:[#allocation101_spill] sm:$0xff] %v9434_v2 }
 0x51c   :  { %3189 = vmatpush1.msra.mxu0 %v8977_v60  ;;  %3260 = vmatpush1.msra.mxu1 %v8980_v4  ;;  %v9344_v60 = vld [vmem:[#allocation6 + $0x218] sm:$0xff]  ;;  %v9347_v4 = vld [vmem:[#allocation6 + $0x200] sm:$0xff] }
 0x51d   :  { %3190 = vmatprep.subr.mxu0 %v8983_v53  ;;  %3261 = vmatprep.subr.mxu1 %v8986_v52  ;;  %v9338_v53 = vld [vmem:[#allocation6 + $0x250] sm:$0xff]  ;;  %v9341_v52 = vld [vmem:[#allocation6 + $0x208] sm:$0xff] }
 0x51e   :  { %3191 = vmatpush1.msra.mxu0 %v9323_v5  ;;  %3262 = vmatpush1.msra.mxu1 %v9326_v6 }
 0x51f   :  { %3192 = vmatprep.subr.mxu0 %v9329_v26  ;;  %3263 = vmatprep.subr.mxu1 %v9332_v63 }
 0x520   :  { %3193 = vmatpush1.msra.mxu0 %v9335_v54  ;;  %3264 = vmatpush1.msra.mxu1 %v9338_v53 }
 0x521   :  { %3194 = vmatprep.subr.mxu0 %v9341_v52  ;;  %3265 = vmatprep.subr.mxu1 %v9344_v60 }
 0x522   :  { %3195 = vmatpush1.msra.mxu0 %v9347_v4  ;;  %3266 = vmatpush1.msra.mxu1 %v9350_v8 }
 0x523   :  { %3196 = vmatprep.subr.mxu0 %v9353_v39  ;;  %3267 = vmatprep.subr.mxu1 %v9356_v3 }
 0x524   :  { %3197 = vmatpush1.msra.mxu0 %v9359_v10  ;;  %3268 = vmatpush1.msra.mxu1 %v9362_v48 }
 0x525   :  { %3198 = vmatprep.subr.mxu0 %v9365_v15  ;;  %3269 = vmatprep.subr.mxu1 %v9368_v17 }
 0x526   :  { %3199 = vmatpush1.msra.mxu0 %v9371_v28  ;;  %3270 = vmatpush1.msra.mxu1 %v9374_v19 }
 0x527   :  { %3200 = vmatprep.subr.mxu0 %v9377_v23  ;;  %3271 = vmatprep.subr.mxu1 %v9380_v62 }
 0x528   :  { %3201 = vmatpush1.msra.mxu0 %v9383_v45  ;;  %3272 = vmatpush1.msra.mxu1 %v9386_v35 }
 0x529   :  { %3202 = vmatprep.subr.mxu0 %v9389_v7  ;;  %3273 = vmatprep.subr.mxu1 %v9392_v29 }
 0x52a   :  { %3203 = vmatpush1.msra.mxu0 %v9395_v55  ;;  %3274 = vmatpush1.msra.mxu1 %v9398_v51 }
 0x52b   :  { %3204 = vmatprep.subr.mxu0 %v9401_v0  ;;  %3275 = vmatprep.subr.mxu1 %v9404_v61 }
 0x52c   :  { %3205 = vmatpush1.msra.mxu0 %v9407_v21  ;;  %3276 = vmatpush1.msra.mxu1 %v9410_v20  ;;  %v12696_v21 = vld [vmem:[#allocation54_spill] sm:$0xff] }
 0x52d   :  { %3206 = vmatprep.subr.mxu0 %v9413_v30  ;;  %3277 = vmatprep.subr.mxu1 %v9416_v36  ;;  %v12695_v30 = vld [vmem:[#allocation37_spill] sm:$0xff] }
 0x52e   :  { %3207 = vmatpush1.msra.mxu0 %v9419_v22  ;;  %3278 = vmatpush1.msra.mxu1 %v9422_v57 }
 0x52f   :  { %3208 = vmatprep.subr.mxu0 %v9425_v58  ;;  %3279 = vmatprep.subr.mxu1 %v9428_v14  ;;  %v9443_v58 = vld [vmem:[#allocation6] sm:$0xff]  ;;  %v9446_v14 = vld [vmem:[#allocation6 + $0x10] sm:$0xff] }
 0x530   :  { %3209 = vmatpush1.msra.mxu0 %v9431_v1  ;;  %3280 = vmatpush1.msra.mxu1 %v9434_v2  ;;  %12626 = vst [vmem:[#allocation104_spill] sm:$0xff] %v9443_v58  ;;  %12627 = vst [vmem:[#allocation105_spill] sm:$0xff] %v9446_v14  ;;  %v9449_v1 = vld [vmem:[#allocation6 + $0x7c8] sm:$0xff]  ;;  %v9452_v2 = vld [vmem:[#allocation6 + $0x7d8] sm:$0xff] }
 0x531   :  { %3210 = vmatprep.subr.mxu0 %v9437_v13  ;;  %3281 = vmatprep.subr.mxu1 %v9440_v9  ;;  %12628 = vst [vmem:[#allocation106_spill] sm:$0xff] %v9449_v1  ;;  %12629 = vst [vmem:[#allocation107_spill] sm:$0xff] %v9452_v2  ;;  %v9455_v13 = vld [vmem:[#allocation6 + $0x7c0] sm:$0xff]  ;;  %v9458_v9 = vld [vmem:[#allocation6 + $0x7d0] sm:$0xff] }
 0x532   :  { %3211 = vmatpush1.msra.mxu0 %v9443_v58  ;;  %3282 = vmatpush1.msra.mxu1 %v9446_v14  ;;  %12630 = vst [vmem:[#allocation108_spill] sm:$0xff] %v9455_v13  ;;  %12631 = vst [vmem:[#allocation109_spill] sm:$0xff] %v9458_v9  ;;  %v9461_v58 = vld [vmem:[#allocation6 + $0x788] sm:$0xff]  ;;  %v9464_v14 = vld [vmem:[#allocation6 + $0x798] sm:$0xff] }
 0x533   :  { %3212 = vmatprep.subr.mxu0 %v9449_v1  ;;  %3283 = vmatprep.subr.mxu1 %v9452_v2  ;;  %12632 = vst [vmem:[#allocation110_spill] sm:$0xff] %v9461_v58  ;;  %12633 = vst [vmem:[#allocation111_spill] sm:$0xff] %v9464_v14  ;;  %v9467_v1 = vld [vmem:[#allocation6 + $0x780] sm:$0xff]  ;;  %v9470_v2 = vld [vmem:[#allocation6 + $0x790] sm:$0xff] }
 0x534   :  { %3213 = vmatpush2.msra.mxu0 %v9455_v13  ;;  %3284 = vmatpush2.msra.mxu1 %v9458_v9  ;;  %12634 = vst [vmem:[#allocation112_spill] sm:$0xff] %v9467_v1  ;;  %12635 = vst [vmem:[#allocation113_spill] sm:$0xff] %v9470_v2  ;;  %v9473_v13 = vld [vmem:[#allocation6 + $0x748] sm:$0xff]  ;;  %v9476_v9 = vld [vmem:[#allocation6 + $0x758] sm:$0xff] }
 0x535   :  { %3214 = vmatprep.subr.mxu0 %v9461_v58  ;;  %3285 = vmatprep.subr.mxu1 %v9464_v14  ;;  %12636 = vst [vmem:[#allocation114_spill] sm:$0xff] %v9473_v13  ;;  %12637 = vst [vmem:[#allocation115_spill] sm:$0xff] %v9476_v9  ;;  %v9479_v58 = vld [vmem:[#allocation6 + $0x740] sm:$0xff]  ;;  %v9482_v14 = vld [vmem:[#allocation6 + $0x750] sm:$0xff] }
 0x536   :  { %3215 = vmatpush2.msra.mxu0 %v9467_v1  ;;  %3286 = vmatpush2.msra.mxu1 %v9470_v2  ;;  %12638 = vst [vmem:[#allocation116_spill] sm:$0xff] %v9479_v58  ;;  %12639 = vst [vmem:[#allocation117_spill] sm:$0xff] %v9482_v14  ;;  %v9485_v1 = vld [vmem:[#allocation6 + $0x708] sm:$0xff]  ;;  %v9488_v2 = vld [vmem:[#allocation6 + $0x718] sm:$0xff] }
 0x537   :  { %3216 = vmatprep.subr.mxu0 %v9473_v13  ;;  %3287 = vmatprep.subr.mxu1 %v9476_v9  ;;  %12640 = vst [vmem:[#allocation118_spill] sm:$0xff] %v9485_v1  ;;  %12641 = vst [vmem:[#allocation119_spill] sm:$0xff] %v9488_v2  ;;  %v9491_v13 = vld [vmem:[#allocation6 + $0x700] sm:$0xff]  ;;  %v9494_v9 = vld [vmem:[#allocation6 + $0x710] sm:$0xff] }
 0x538   :  { %3217 = vmatpush2.msra.mxu0 %v9479_v58  ;;  %3288 = vmatpush2.msra.mxu1 %v9482_v14  ;;  %12642 = vst [vmem:[#allocation120_spill] sm:$0xff] %v9491_v13  ;;  %12643 = vst [vmem:[#allocation121_spill] sm:$0xff] %v9494_v9  ;;  %v9497_v58 = vld [vmem:[#allocation6 + $0x6c8] sm:$0xff]  ;;  %v9500_v14 = vld [vmem:[#allocation6 + $0x6d8] sm:$0xff] }
 0x539   :  { %3218 = vmatprep.subr.mxu0 %v9485_v1  ;;  %3289 = vmatprep.subr.mxu1 %v9488_v2  ;;  %12644 = vst [vmem:[#allocation122_spill] sm:$0xff] %v9497_v58  ;;  %12645 = vst [vmem:[#allocation123_spill] sm:$0xff] %v9500_v14  ;;  %v9503_v1 = vld [vmem:[#allocation6 + $0x6c0] sm:$0xff]  ;;  %v9506_v2 = vld [vmem:[#allocation6 + $0x6d0] sm:$0xff] }
 0x53a   :  { %3219 = vmatpush2.msra.mxu0 %v9491_v13  ;;  %3290 = vmatpush2.msra.mxu1 %v9494_v9  ;;  %12646 = vst [vmem:[#allocation124_spill] sm:$0xff] %v9503_v1  ;;  %12647 = vst [vmem:[#allocation125_spill] sm:$0xff] %v9506_v2  ;;  %v9509_v13 = vld [vmem:[#allocation6 + $0x688] sm:$0xff]  ;;  %v9512_v9 = vld [vmem:[#allocation6 + $0x698] sm:$0xff] }
 0x53b   :  { %3220 = vmatprep.subr.mxu0 %v9497_v58  ;;  %3291 = vmatprep.subr.mxu1 %v9500_v14  ;;  %12648 = vst [vmem:[#allocation126_spill] sm:$0xff] %v9509_v13  ;;  %12649 = vst [vmem:[#allocation127_spill] sm:$0xff] %v9512_v9  ;;  %v9515_v58 = vld [vmem:[#allocation6 + $0x680] sm:$0xff]  ;;  %v9518_v14 = vld [vmem:[#allocation6 + $0x690] sm:$0xff] }
 0x53c   :  { %3221 = vmatpush2.msra.mxu0 %v9503_v1  ;;  %3292 = vmatpush2.msra.mxu1 %v9506_v2  ;;  %12650 = vst [vmem:[#allocation128_spill] sm:$0xff] %v9515_v58  ;;  %12651 = vst [vmem:[#allocation129_spill] sm:$0xff] %v9518_v14  ;;  %v9521_v1 = vld [vmem:[#allocation6 + $0x648] sm:$0xff]  ;;  %v9524_v2 = vld [vmem:[#allocation6 + $0x658] sm:$0xff] }
 0x53d   :  { %3222 = vmatprep.subr.mxu0 %v9509_v13  ;;  %3293 = vmatprep.subr.mxu1 %v9512_v9  ;;  %12652 = vst [vmem:[#allocation130_spill] sm:$0xff] %v9521_v1  ;;  %12653 = vst [vmem:[#allocation131_spill] sm:$0xff] %v9524_v2  ;;  %v9527_v13 = vld [vmem:[#allocation6 + $0x640] sm:$0xff]  ;;  %v9530_v9 = vld [vmem:[#allocation6 + $0x650] sm:$0xff] }
 0x53e   :  { %3223 = vmatpush2.msra.mxu0 %v9515_v58  ;;  %3294 = vmatpush2.msra.mxu1 %v9518_v14  ;;  %12654 = vst [vmem:[#allocation132_spill] sm:$0xff] %v9527_v13  ;;  %12655 = vst [vmem:[#allocation133_spill] sm:$0xff] %v9530_v9  ;;  %v9533_v58 = vld [vmem:[#allocation6 + $0x608] sm:$0xff]  ;;  %v9536_v14 = vld [vmem:[#allocation6 + $0x618] sm:$0xff] }
 0x53f   :  { %3224 = vmatprep.subr.mxu0 %v9521_v1  ;;  %3295 = vmatprep.subr.mxu1 %v9524_v2  ;;  %12656 = vst [vmem:[#allocation134_spill] sm:$0xff] %v9533_v58  ;;  %12657 = vst [vmem:[#allocation135_spill] sm:$0xff] %v9536_v14  ;;  %v9539_v1 = vld [vmem:[#allocation6 + $0x600] sm:$0xff]  ;;  %v9542_v2 = vld [vmem:[#allocation6 + $0x610] sm:$0xff] }
 0x540   :  { %3225 = vmatpush2.msra.mxu0 %v9527_v13  ;;  %3296 = vmatpush2.msra.mxu1 %v9530_v9  ;;  %12658 = vst [vmem:[#allocation136_spill] sm:$0xff] %v9539_v1  ;;  %12659 = vst [vmem:[#allocation28_spill] sm:$0xff] %v9542_v2  ;;  %v9545_v13 = vld [vmem:[#allocation6 + $0x5c8] sm:$0xff]  ;;  %v9548_v9 = vld [vmem:[#allocation6 + $0x5d8] sm:$0xff] }
 0x541   :  { %3226 = vmatprep.subr.mxu0 %v9533_v58  ;;  %3297 = vmatprep.subr.mxu1 %v9536_v14  ;;  %12660 = vst [vmem:[#allocation20_spill] sm:$0xff] %v9545_v13  ;;  %12661 = vst [vmem:[#allocation137_spill] sm:$0xff] %v9548_v9  ;;  %v9551_v58 = vld [vmem:[#allocation6 + $0x5c0] sm:$0xff]  ;;  %v9554_v14 = vld [vmem:[#allocation6 + $0x5d0] sm:$0xff] }
 0x542   :  { %3227 = vmatpush2.msra.mxu0 %v9539_v1  ;;  %3298 = vmatpush2.msra.mxu1 %v9542_v2  ;;  %12662 = vst [vmem:[#allocation138_spill] sm:$0xff] %v9551_v58  ;;  %12663 = vst [vmem:[#allocation139_spill] sm:$0xff] %v9554_v14  ;;  %v9557_v1 = vld [vmem:[#allocation6 + $0x588] sm:$0xff]  ;;  %v9560_v2 = vld [vmem:[#allocation6 + $0x598] sm:$0xff] }
 0x543   :  { %3228 = vmatprep.subr.mxu0 %v9545_v13  ;;  %3299 = vmatprep.subr.mxu1 %v9548_v9  ;;  %12664 = vst [vmem:[#allocation140_spill] sm:$0xff] %v9557_v1  ;;  %12665 = vst [vmem:[#allocation30_spill] sm:$0xff] %v9560_v2  ;;  %v9563_v13 = vld [vmem:[#allocation6 + $0x580] sm:$0xff]  ;;  %v9566_v9 = vld [vmem:[#allocation6 + $0x590] sm:$0xff] }
 0x544   :  { %3229 = vmatpush2.msra.mxu0 %v9551_v58  ;;  %3300 = vmatpush2.msra.mxu1 %v9554_v14  ;;  %12666 = vst [vmem:[#allocation21_spill] sm:$0xff] %v9563_v13  ;;  %12667 = vst [vmem:[#allocation141_spill] sm:$0xff] %v9566_v9  ;;  %v9569_v58 = vld [vmem:[#allocation6 + $0x548] sm:$0xff]  ;;  %v9572_v14 = vld [vmem:[#allocation6 + $0x558] sm:$0xff] }
 0x545   :  { %3230 = vmatprep.subr.mxu0 %v9557_v1  ;;  %3301 = vmatprep.subr.mxu1 %v9560_v2  ;;  %12668 = vst [vmem:[#allocation142_spill] sm:$0xff] %v9569_v58  ;;  %12669 = vst [vmem:[#allocation143_spill] sm:$0xff] %v9572_v14  ;;  %v9575_v1 = vld [vmem:[#allocation6 + $0x540] sm:$0xff]  ;;  %v9578_v2 = vld [vmem:[#allocation6 + $0x550] sm:$0xff] }
 0x546   :  { %3231 = vmatpush2.msra.mxu0 %v9563_v13  ;;  %3302 = vmatpush2.msra.mxu1 %v9566_v9  ;;  %12670 = vst [vmem:[#allocation144_spill] sm:$0xff] %v9575_v1  ;;  %12671 = vst [vmem:[#allocation145_spill] sm:$0xff] %v9578_v2  ;;  %v9581_v13 = vld [vmem:[#allocation6 + $0x508] sm:$0xff]  ;;  %v9584_v9 = vld [vmem:[#allocation6 + $0x518] sm:$0xff] }
 0x547   :  { %3232 = vmatprep.subr.mxu0 %v9569_v58  ;;  %3303 = vmatprep.subr.mxu1 %v9572_v14  ;;  %12672 = vst [vmem:[#allocation146_spill] sm:$0xff] %v9581_v13  ;;  %12673 = vst [vmem:[#allocation80_spill] sm:$0xff] %v9584_v9  ;;  %v9587_v58 = vld [vmem:[#allocation6 + $0x500] sm:$0xff]  ;;  %v9590_v14 = vld [vmem:[#allocation6 + $0x510] sm:$0xff] }
 0x548   :  { %3233 = vmatpush2.msra.mxu0 %v9575_v1  ;;  %3304 = vmatpush2.msra.mxu1 %v9578_v2  ;;  %12674 = vst [vmem:[#allocation81_spill] sm:$0xff] %v9587_v58  ;;  %12675 = vst [vmem:[#allocation56_spill] sm:$0xff] %v9590_v14  ;;  %v9593_v1 = vld [vmem:[#allocation6 + $0x4c8] sm:$0xff]  ;;  %v9596_v2 = vld [vmem:[#allocation6 + $0x4d8] sm:$0xff] }
 0x549   :  { %3234 = vmatprep.subr.mxu0 %v9581_v13  ;;  %3305 = vmatprep.subr.mxu1 %v9584_v9  ;;  %12676 = vst [vmem:[#allocation41_spill] sm:$0xff] %v9593_v1  ;;  %12677 = vst [vmem:[#allocation58_spill] sm:$0xff] %v9596_v2  ;;  %v9599_v13 = vld [vmem:[#allocation6 + $0x4c0] sm:$0xff]  ;;  %v9602_v9 = vld [vmem:[#allocation6 + $0x4d0] sm:$0xff] }
 0x54a   :  { %3235 = vmatpush2.msra.mxu0 %v9587_v58  ;;  %3306 = vmatpush2.msra.mxu1 %v9590_v14  ;;  %12678 = vst [vmem:[#allocation43_spill] sm:$0xff] %v9599_v13  ;;  %12679 = vst [vmem:[#allocation78_spill] sm:$0xff] %v9602_v9  ;;  %v9605_v58 = vld [vmem:[#allocation6 + $0x488] sm:$0xff]  ;;  %v9608_v14 = vld [vmem:[#allocation6 + $0x498] sm:$0xff] }
 0x54b   :  { %3236 = vmatprep.subr.mxu0 %v9593_v1  ;;  %3307 = vmatprep.subr.mxu1 %v9596_v2  ;;  %12680 = vst [vmem:[#allocation69_spill] sm:$0xff] %v9605_v58  ;;  %12681 = vst [vmem:[#allocation79_spill] sm:$0xff] %v9608_v14  ;;  %v9611_v1 = vld [vmem:[#allocation6 + $0x480] sm:$0xff]  ;;  %v9614_v2 = vld [vmem:[#allocation6 + $0x490] sm:$0xff] }
 0x54c   :  { %3237 = vmatpush2.msra.mxu0 %v9599_v13  ;;  %3308 = vmatpush2.msra.mxu1 %v9602_v9  ;;  %12682 = vst [vmem:[#allocation71_spill] sm:$0xff] %v9611_v1  ;;  %12683 = vst [vmem:[#allocation147_spill] sm:$0xff] %v9614_v2  ;;  %v9617_v13 = vld [vmem:[#allocation6 + $0x448] sm:$0xff]  ;;  %v9620_v9 = vld [vmem:[#allocation6 + $0x458] sm:$0xff] }
 0x54d   :  { %3238 = vmatprep.subr.mxu0 %v9605_v58  ;;  %3309 = vmatprep.subr.mxu1 %v9608_v14  ;;  %12684 = vst [vmem:[#allocation148_spill] sm:$0xff] %v9617_v13  ;;  %12685 = vst [vmem:[#allocation149_spill] sm:$0xff] %v9620_v9  ;;  %v9623_v58 = vld [vmem:[#allocation6 + $0x440] sm:$0xff]  ;;  %v9626_v14 = vld [vmem:[#allocation6 + $0x450] sm:$0xff] }
 0x54e   :  { %3239 = vmatpush2.msra.mxu0 %v9611_v1  ;;  %3310 = vmatpush2.msra.mxu1 %v9614_v2  ;;  %12686 = vst [vmem:[#allocation150_spill] sm:$0xff] %v9623_v58  ;;  %12687 = vst [vmem:[#allocation151_spill] sm:$0xff] %v9626_v14  ;;  %v9629_v1 = vld [vmem:[#allocation6 + $0x408] sm:$0xff]  ;;  %v9632_v2 = vld [vmem:[#allocation6 + $0x418] sm:$0xff] }
 0x54f   :  { %3240 = vmatprep.subr.mxu0 %v9617_v13  ;;  %3311 = vmatprep.subr.mxu1 %v9620_v9  ;;  %12688 = vst [vmem:[#allocation152_spill] sm:$0xff] %v9629_v1  ;;  %12689 = vst [vmem:[#allocation153_spill] sm:$0xff] %v9632_v2  ;;  %v9635_v13 = vld [vmem:[#allocation6 + $0x400] sm:$0xff]  ;;  %v9638_v9 = vld [vmem:[#allocation6 + $0x410] sm:$0xff] }
 0x550   :  { %3241 = vmatpush2.msra.mxu0 %v9623_v58  ;;  %3312 = vmatpush2.msra.mxu1 %v9626_v14  ;;  %12690 = vst [vmem:[#allocation154_spill] sm:$0xff] %v9635_v13  ;;  %12691 = vst [vmem:[#allocation155_spill] sm:$0xff] %v9638_v9  ;;  %v9641_v58 = vld [vmem:[#allocation6 + $0x3e8] sm:$0xff]  ;;  %v9644_v14 = vld [vmem:[#allocation6 + $0x3f8] sm:$0xff] }
 0x551   :  { %3242 = vmatprep.subr.mxu0 %v9629_v1  ;;  %3313 = vmatprep.subr.mxu1 %v9632_v2  ;;  %12692 = vst [vmem:[#allocation156_spill] sm:$0xff] %v9641_v58  ;;  %12693 = vst [vmem:[#allocation157_spill] sm:$0xff] %v9644_v14  ;;  %v12694_v2 = vld [vmem:[#allocation52_spill] sm:$0xff] }
 0x552   :  { %3243 = vmatpush2.msra.mxu0 %v9635_v13  ;;  %3314 = vmatpush2.msra.mxu1 %v9638_v9  ;;  %v12697_v9 = vld [vmem:[#allocation39_spill] sm:$0xff] }
 0x553   :  { %3322 = vmatprep.subr.mxu0 %v9641_v58  ;;  %3393 = vmatprep.subr.mxu1 %v9644_v14 }
 0x591   :  { %v2906_v1 = vpop.f32.mrf.mxu0  ;;  %v2977_v57 = vpop.f32.mrf.mxu1 }
 0x592   :  { %v3124_v36 = vadd.f32 %v2906_v1, %v12694_v2  ;;  %v3126_v20 = vadd.f32 %v2977_v57, %v12695_v30 }
 0x593   :  { %v2908_v22 = vpop.f32.mrf.mxu0  ;;  %v2979_v13 = vpop.f32.mrf.mxu1 }
 0x594   :  { %v3125_v61 = vadd.f32 %v2908_v22, %v12696_v21  ;;  %v5616_v0 = vmul.f32 -1.442695, %v3124_v36  ;;  %v3127_v51 = vadd.f32 %v2979_v13, %v12697_v9  ;;  %v5618_v55 = vmul.f32 -1.442695, %v3126_v20  ;;  %v12698_v9 = vld [vmem:[#allocation76_spill] sm:$0xff]  ;;  %v12700_v20 = vld [vmem:[#allocation77_spill] sm:$0xff] }
 0x596   :  { %v5617_v29 = vmul.f32 -1.442695, %v3125_v61  ;;  %6129 = vpow2.f32 %v5616_v0  ;;  %v5619_v58 = vmul.f32 -1.442695, %v3127_v51  ;;  %v12699_v61 = vld [vmem:[#allocation65_spill] sm:$0xff] }
 0x597   :  { %6131 = vpow2.f32 %v5618_v55 }
 0x598   :  { %6133 = vpow2.f32 %v5617_v29 }
 0x599   :  { %6135 = vpow2.f32 %v5619_v58  ;;  %v12701_v58 = vld [vmem:[#allocation67_spill] sm:$0xff] }
 0x5a3   :  { %v6130_v14 = vpop.eup %6129 }
 0x5a4   :  { %v6132_v7 = vpop.eup %6131  ;;  %v3138_v45 = vadd.f32 1.0, %v6130_v14 }
 0x5a5   :  { %v6134_v35 = vpop.eup %6133  ;;  %v3150_v2 = vadd.f32 1.0, %v6132_v7 }
 0x5a6   :  { %v6136_v1 = vpop.eup %6135  ;;  %v3139_v30 = vadd.f32 1.0, %v6134_v35  ;;  %6137 = vrcp.f32 %v3138_v45 }
 0x5a7   :  { %v3151_v57 = vadd.f32 1.0, %v6136_v1  ;;  %6139 = vrcp.f32 %v3150_v2 }
 0x5a8   :  { %6141 = vrcp.f32 %v3139_v30 }
 0x5b3   :  { %v6138_v35 = vpop.eup %6137 }
 0x5b4   :  { %v6140_v7 = vpop.eup %6139 }
 0x5b5   :  { %v6142_v1 = vpop.eup %6141  ;;  %v3170_v30 = vmul.f32 %v6140_v7, %v9119_v41  ;;  %v9758_v7 = vld [vmem:[#allocation6 + $0x130] sm:$0xff] }
 0x5d2   :  { %v3048_v21 = vpop.f32.mrf.mxu0  ;;  %v3119_v36 = vpop.f32.mrf.mxu1 }
 0x5d3   :  { %v3128_v13 = vadd.f32 %v3048_v21, %v12698_v9  ;;  %v3130_v0 = vadd.f32 %v3119_v36, %v12699_v61 }
 0x5d4   :  { %v3050_v55 = vpop.f32.mrf.mxu0  ;;  %v3121_v29 = vpop.f32.mrf.mxu1 }
 0x5d5   :  { %6143 = vtanh.f32 %v3128_v13  ;;  %v5620_v51 = vmul.f32 -1.442695, %v3130_v0  ;;  %v3129_v22 = vadd.f32 %v3050_v55, %v12700_v20  ;;  %v3131_v14 = vadd.f32 %v3121_v29, %v12701_v58 }
 0x5d6   :  { %6145 = vrcp.f32 %v3151_v57 }
 0x5d7   :  { %6147 = vpow2.f32 %v5620_v51  ;;  %v5621_v45 = vmul.f32 -1.442695, %v3131_v14 }
 0x5d8   :  { %6149 = vtanh.f32 %v3129_v22 }
 0x5d9   :  { %6151 = vpow2.f32 %v5621_v45 }
 0x5e2   :  { %v6144_v2 = vpop.eup %6143 }
 0x5e3   :  { %v6146_v21 = vpop.eup %6145  ;;  %v3172_v36 = vmul.f32 %v6144_v2, %v6138_v35  ;;  %v9764_v2 = vld [vmem:[#allocation6 + $0xf8] sm:$0xff] }
 0x5e4   :  { %v6148_v9 = vpop.eup %6147  ;;  %v3171_v57 = vmul.f32 %v6146_v21, %v9122_v43  ;;  %v9689_v43 = vld [vmem:[#allocation6 + $0x268] sm:$0xff]  ;;  %v9767_v21 = vld [vmem:[#allocation6 + $0xe0] sm:$0xff] }
 0x5e5   :  { %v6150_v13 = vpop.eup %6149  ;;  %v9656_v61 = vadd.f32 %v3172_v36, %v3170_v30  ;;  %v3164_v0 = vadd.f32 1.0, %v6148_v9  ;;  %v9770_v30 = vld [vmem:[#allocation6 + $0xf0] sm:$0xff]  ;;  %v9773_v36 = vld [vmem:[#allocation6 + $0xa8] sm:$0xff]  ;;  %v9776_v9 = vld [vmem:[#allocation6 + $0xb8] sm:$0xff] }
 0x5e6   :  { %v6152_v55 = vpop.eup %6151  ;;  %v3173_v29 = vmul.f32 %v6150_v13, %v6142_v1  ;;  %v9761_v1 = vld [vmem:[#allocation6 + $0xe8] sm:$0xff]  ;;  %v9779_v13 = vld [vmem:[#allocation6 + $0xa0] sm:$0xff] }
 0x5e7   :  { %6153 = vtanh.f32 %v9656_v61  ;;  %v3165_v51 = vadd.f32 1.0, %v6152_v55  ;;  %v9785_v55 = vld [vmem:[#allocation6 + $0x68] sm:$0xff] }
 0x5e8   :  { %6155 = vrcp.f32 %v3164_v0  ;;  %v9660_v20 = vadd.f32 %v3173_v29, %v3171_v57  ;;  %v9782_v0 = vld [vmem:[#allocation6 + $0xb0] sm:$0xff]  ;;  %v9788_v57 = vld [vmem:[#allocation6 + $0x78] sm:$0xff]  ;;  %v9791_v29 = vld [vmem:[#allocation6 + $0x60] sm:$0xff] }
 0x5e9   :  { %6157 = vrcp.f32 %v3165_v51  ;;  %v9794_v51 = vld [vmem:[#allocation6 + $0x70] sm:$0xff] }
 0x5ea   :  { %6159 = vtanh.f32 %v9660_v20  ;;  %12702 = vst [vmem:[#allocation158_spill] sm:$0xff] %v9794_v51 }
 0x5f4   :  { %v6154_v41 = vpop.eup %6153 }
 0x5f5   :  { %v6156_v22 = vpop.eup %6155 }
 0x5f6   :  { %v6158_v58 = vpop.eup %6157  ;;  %v9663_v35 = vmul.f32 %v6156_v22, %v6154_v41  ;;  %v9797_v41 = vld [vmem:[#allocation6 + $0x28] sm:$0xff]  ;;  %v9800_v22 = vld [vmem:[#allocation6 + $0x38] sm:$0xff] }
 0x5f7   :  { %v6160_v14 = vpop.eup %6159  ;;  %12703 = vst [vmem:[#allocation159_spill] sm:$0xff] %v9797_v41  ;;  %12704 = vst [vmem:[#allocation160_spill] sm:$0xff] %v9800_v22 }
 0x5f8   :  { %v3179_v45 = vmul.f32 %v6160_v14, %v6158_v58  ;;  %v9803_v58 = vld [vmem:[#allocation6 + $0x20] sm:$0xff]  ;;  %v9806_v14 = vld [vmem:[#allocation6 + $0x30] sm:$0xff] }
 0x5f9   :  { %12705 = vst [vmem:[#allocation161_spill] sm:$0xff] %v9803_v58  ;;  %12706 = vst [vmem:[#allocation162_spill] sm:$0xff] %v9806_v14 }
 0x5fa   :  { %3244 = vmatprep.mubr.f32.mxu0 %v3179_v45  ;;  %3315 = vmatprep.mubr.f32.mxu1 %v3179_v45 }
 0x5fb   :  { %3245 = vmatmul.mubr.f32.vlgmr.msra.gmra.mxu0 %v9663_v35  ;;  %3316 = vmatmul.mubr.f32.vlgmr.msra.gmra.mxu1 %v9663_v35 }
 0x5fc   :  { %3323 = vmatpush1.msra.mxu0 %v9129_v16  ;;  %3394 = vmatpush1.msra.mxu1 %v9132_v40  ;;  %v9692_v16 = vld [vmem:[#allocation6 + $0x278] sm:$0xff]  ;;  %v9695_v40 = vld [vmem:[#allocation6 + $0x260] sm:$0xff] }
 0x5fd   :  { %3324 = vmatprep.subr.mxu0 %v9135_v46  ;;  %3386 = vmatprep.mubr.f32.mxu0 %v3179_v45  ;;  %v9698_v46 = vld [vmem:[#allocation6 + $0x270] sm:$0xff] }
 0x5fe   :  { %3395 = vmatprep.subr.mxu1 %v9138_v59  ;;  %3457 = vmatprep.mubr.f32.mxu1 %v3179_v45  ;;  %v9701_v59 = vld [vmem:[#allocation6 + $0x228] sm:$0xff] }
 0x5ff   :  { %3325 = vmatpush1.msra.mxu0 %v9141_v56  ;;  %3396 = vmatpush1.msra.mxu1 %v9144_v18  ;;  %v9704_v56 = vld [vmem:[#allocation6 + $0x238] sm:$0xff]  ;;  %v9707_v18 = vld [vmem:[#allocation6 + $0x220] sm:$0xff]  ;;  %v9809_v45 = vld [vmem:[#allocation6 + $0x7e8] sm:$0xff] }
 0x600   :  { %3326 = vmatprep.subr.mxu0 %v9147_v38  ;;  %3397 = vmatprep.subr.mxu1 %v9150_v49  ;;  %v9710_v38 = vld [vmem:[#allocation6 + $0x230] sm:$0xff]  ;;  %v9713_v49 = vld [vmem:[#allocation6 + $0x1e8] sm:$0xff]  ;;  %12707 = vst [vmem:[#allocation163_spill] sm:$0xff] %v9809_v45 }
 0x601   :  { %3327 = vmatpush1.msra.mxu0 %v9153_v33  ;;  %3398 = vmatpush1.msra.mxu1 %v9156_v25  ;;  %v9716_v33 = vld [vmem:[#allocation6 + $0x1f8] sm:$0xff]  ;;  %v9719_v25 = vld [vmem:[#allocation6 + $0x1e0] sm:$0xff] }
 0x602   :  { %3328 = vmatprep.subr.mxu0 %v9159_v44  ;;  %3399 = vmatprep.subr.mxu1 %v9162_v12  ;;  %v9722_v44 = vld [vmem:[#allocation6 + $0x1f0] sm:$0xff]  ;;  %v9725_v12 = vld [vmem:[#allocation6 + $0x1a8] sm:$0xff] }
 0x603   :  { %3329 = vmatpush1.msra.mxu0 %v9165_v31  ;;  %3400 = vmatpush1.msra.mxu1 %v9168_v24  ;;  %v9728_v31 = vld [vmem:[#allocation6 + $0x1b8] sm:$0xff]  ;;  %v9731_v24 = vld [vmem:[#allocation6 + $0x1a0] sm:$0xff] }
 0x604   :  { %3330 = vmatprep.subr.mxu0 %v9171_v42  ;;  %3401 = vmatprep.subr.mxu1 %v9174_v27  ;;  %v9734_v42 = vld [vmem:[#allocation6 + $0x1b0] sm:$0xff]  ;;  %v9737_v27 = vld [vmem:[#allocation6 + $0x168] sm:$0xff] }
 0x605   :  { %3331 = vmatpush1.msra.mxu0 %v9177_v34  ;;  %3402 = vmatpush1.msra.mxu1 %v9180_v32  ;;  %v9740_v34 = vld [vmem:[#allocation6 + $0x178] sm:$0xff]  ;;  %v9743_v32 = vld [vmem:[#allocation6 + $0x160] sm:$0xff] }
 0x606   :  { %3332 = vmatprep.subr.mxu0 %v9183_v37  ;;  %3403 = vmatprep.subr.mxu1 %v9186_v50  ;;  %v9746_v37 = vld [vmem:[#allocation6 + $0x170] sm:$0xff]  ;;  %v9749_v50 = vld [vmem:[#allocation6 + $0x128] sm:$0xff] }
 0x607   :  { %3333 = vmatpush1.msra.mxu0 %v9189_v11  ;;  %3404 = vmatpush1.msra.mxu1 %v9192_v47  ;;  %v9752_v11 = vld [vmem:[#allocation6 + $0x138] sm:$0xff]  ;;  %v9755_v47 = vld [vmem:[#allocation6 + $0x120] sm:$0xff] }
 0x608   :  { %3334 = vmatprep.subr.mxu0 %v9689_v43  ;;  %3405 = vmatprep.subr.mxu1 %v9692_v16 }
 0x609   :  { %3335 = vmatpush1.msra.mxu0 %v9695_v40  ;;  %3406 = vmatpush1.msra.mxu1 %v9698_v46 }
 0x60a   :  { %3336 = vmatprep.subr.mxu0 %v9701_v59  ;;  %3407 = vmatprep.subr.mxu1 %v9704_v56 }
 0x60b   :  { %3337 = vmatpush1.msra.mxu0 %v9707_v18  ;;  %3408 = vmatpush1.msra.mxu1 %v9710_v38 }
 0x60c   :  { %3338 = vmatprep.subr.mxu0 %v9713_v49  ;;  %3409 = vmatprep.subr.mxu1 %v9716_v33 }
 0x60d   :  { %3339 = vmatpush1.msra.mxu0 %v9719_v25  ;;  %3410 = vmatpush1.msra.mxu1 %v9722_v44 }
 0x60e   :  { %3340 = vmatprep.subr.mxu0 %v9725_v12  ;;  %3411 = vmatprep.subr.mxu1 %v9728_v31 }
 0x60f   :  { %3341 = vmatpush1.msra.mxu0 %v9731_v24  ;;  %3412 = vmatpush1.msra.mxu1 %v9734_v42 }
 0x610   :  { %3342 = vmatprep.subr.mxu0 %v9737_v27  ;;  %3413 = vmatprep.subr.mxu1 %v9740_v34 }
 0x611   :  { %3343 = vmatpush1.msra.mxu0 %v9743_v32  ;;  %3414 = vmatpush1.msra.mxu1 %v9746_v37 }
 0x612   :  { %3344 = vmatprep.subr.mxu0 %v9749_v50  ;;  %3415 = vmatprep.subr.mxu1 %v9752_v11 }
 0x613   :  { %3345 = vmatpush1.msra.mxu0 %v9755_v47  ;;  %3416 = vmatpush1.msra.mxu1 %v9758_v7 }
 0x614   :  { %3346 = vmatprep.subr.mxu0 %v9761_v1  ;;  %3417 = vmatprep.subr.mxu1 %v9764_v2 }
 0x615   :  { %3347 = vmatpush1.msra.mxu0 %v9767_v21  ;;  %3418 = vmatpush1.msra.mxu1 %v9770_v30 }
 0x616   :  { %3348 = vmatprep.subr.mxu0 %v9773_v36  ;;  %3419 = vmatprep.subr.mxu1 %v9776_v9 }
 0x617   :  { %3349 = vmatpush1.msra.mxu0 %v9779_v13  ;;  %3420 = vmatpush1.msra.mxu1 %v9782_v0 }
 0x618   :  { %3350 = vmatprep.subr.mxu0 %v9785_v55  ;;  %3421 = vmatprep.subr.mxu1 %v9788_v57 }
 0x619   :  { %3351 = vmatpush1.msra.mxu0 %v9791_v29  ;;  %3422 = vmatpush1.msra.mxu1 %v9794_v51  ;;  %v9812_v51 = vld [vmem:[#allocation6 + $0x7f8] sm:$0xff] }
 0x61a   :  { %3352 = vmatprep.subr.mxu0 %v9797_v41  ;;  %3423 = vmatprep.subr.mxu1 %v9800_v22  ;;  %12708 = vst [vmem:[#allocation164_spill] sm:$0xff] %v9812_v51  ;;  %v9815_v41 = vld [vmem:[#allocation6 + $0x7e0] sm:$0xff]  ;;  %v9818_v22 = vld [vmem:[#allocation6 + $0x7f0] sm:$0xff] }
 0x61b   :  { %3353 = vmatpush1.msra.mxu0 %v9803_v58  ;;  %3424 = vmatpush1.msra.mxu1 %v9806_v14  ;;  %12709 = vst [vmem:[#allocation165_spill] sm:$0xff] %v9815_v41  ;;  %12710 = vst [vmem:[#allocation166_spill] sm:$0xff] %v9818_v22  ;;  %v9821_v58 = vld [vmem:[#allocation6 + $0x7a8] sm:$0xff]  ;;  %v9824_v14 = vld [vmem:[#allocation6 + $0x7b8] sm:$0xff] }
 0x61c   :  { %3354 = vmatprep.subr.mxu0 %v9809_v45  ;;  %3425 = vmatprep.subr.mxu1 %v9812_v51  ;;  %12711 = vst [vmem:[#allocation167_spill] sm:$0xff] %v9821_v58  ;;  %12712 = vst [vmem:[#allocation168_spill] sm:$0xff] %v9824_v14  ;;  %v9827_v45 = vld [vmem:[#allocation6 + $0x7a0] sm:$0xff]  ;;  %v9830_v51 = vld [vmem:[#allocation6 + $0x7b0] sm:$0xff] }
 0x61d   :  { %3355 = vmatpush2.msra.mxu0 %v9815_v41  ;;  %3426 = vmatpush2.msra.mxu1 %v9818_v22  ;;  %12713 = vst [vmem:[#allocation169_spill] sm:$0xff] %v9827_v45  ;;  %12714 = vst [vmem:[#allocation170_spill] sm:$0xff] %v9830_v51  ;;  %v9833_v41 = vld [vmem:[#allocation6 + $0x768] sm:$0xff]  ;;  %v9836_v22 = vld [vmem:[#allocation6 + $0x778] sm:$0xff] }
 0x61e   :  { %3356 = vmatprep.subr.mxu0 %v9821_v58  ;;  %3427 = vmatprep.subr.mxu1 %v9824_v14  ;;  %12715 = vst [vmem:[#allocation171_spill] sm:$0xff] %v9833_v41  ;;  %12716 = vst [vmem:[#allocation172_spill] sm:$0xff] %v9836_v22  ;;  %v9839_v58 = vld [vmem:[#allocation6 + $0x760] sm:$0xff]  ;;  %v9842_v14 = vld [vmem:[#allocation6 + $0x770] sm:$0xff] }
 0x61f   :  { %3357 = vmatpush2.msra.mxu0 %v9827_v45  ;;  %3428 = vmatpush2.msra.mxu1 %v9830_v51  ;;  %12717 = vst [vmem:[#allocation173_spill] sm:$0xff] %v9839_v58  ;;  %12718 = vst [vmem:[#allocation174_spill] sm:$0xff] %v9842_v14  ;;  %v9845_v45 = vld [vmem:[#allocation6 + $0x728] sm:$0xff]  ;;  %v9848_v51 = vld [vmem:[#allocation6 + $0x738] sm:$0xff] }
 0x620   :  { %3358 = vmatprep.subr.mxu0 %v9833_v41  ;;  %3429 = vmatprep.subr.mxu1 %v9836_v22  ;;  %12719 = vst [vmem:[#allocation175_spill] sm:$0xff] %v9845_v45  ;;  %12720 = vst [vmem:[#allocation176_spill] sm:$0xff] %v9848_v51  ;;  %v9851_v41 = vld [vmem:[#allocation6 + $0x720] sm:$0xff]  ;;  %v9854_v22 = vld [vmem:[#allocation6 + $0x730] sm:$0xff] }
 0x621   :  { %3359 = vmatpush2.msra.mxu0 %v9839_v58  ;;  %3430 = vmatpush2.msra.mxu1 %v9842_v14  ;;  %12721 = vst [vmem:[#allocation177_spill] sm:$0xff] %v9851_v41  ;;  %12722 = vst [vmem:[#allocation178_spill] sm:$0xff] %v9854_v22  ;;  %v9857_v58 = vld [vmem:[#allocation6 + $0x6e8] sm:$0xff]  ;;  %v9860_v14 = vld [vmem:[#allocation6 + $0x6f8] sm:$0xff] }
 0x622   :  { %3360 = vmatprep.subr.mxu0 %v9845_v45  ;;  %3431 = vmatprep.subr.mxu1 %v9848_v51  ;;  %12723 = vst [vmem:[#allocation179_spill] sm:$0xff] %v9857_v58  ;;  %12724 = vst [vmem:[#allocation180_spill] sm:$0xff] %v9860_v14  ;;  %v9863_v45 = vld [vmem:[#allocation6 + $0x6e0] sm:$0xff]  ;;  %v9866_v51 = vld [vmem:[#allocation6 + $0x6f0] sm:$0xff] }
 0x623   :  { %3361 = vmatpush2.msra.mxu0 %v9851_v41  ;;  %3432 = vmatpush2.msra.mxu1 %v9854_v22  ;;  %12725 = vst [vmem:[#allocation181_spill] sm:$0xff] %v9863_v45  ;;  %12726 = vst [vmem:[#allocation182_spill] sm:$0xff] %v9866_v51  ;;  %v9869_v41 = vld [vmem:[#allocation6 + $0x6a8] sm:$0xff]  ;;  %v9872_v22 = vld [vmem:[#allocation6 + $0x6b8] sm:$0xff] }
 0x624   :  { %3362 = vmatprep.subr.mxu0 %v9857_v58  ;;  %3433 = vmatprep.subr.mxu1 %v9860_v14  ;;  %12727 = vst [vmem:[#allocation183_spill] sm:$0xff] %v9869_v41  ;;  %12728 = vst [vmem:[#allocation184_spill] sm:$0xff] %v9872_v22  ;;  %v9875_v58 = vld [vmem:[#allocation6 + $0x6a0] sm:$0xff]  ;;  %v9878_v14 = vld [vmem:[#allocation6 + $0x6b0] sm:$0xff] }
 0x625   :  { %3363 = vmatpush2.msra.mxu0 %v9863_v45  ;;  %3434 = vmatpush2.msra.mxu1 %v9866_v51  ;;  %12729 = vst [vmem:[#allocation185_spill] sm:$0xff] %v9875_v58  ;;  %12730 = vst [vmem:[#allocation186_spill] sm:$0xff] %v9878_v14  ;;  %v9881_v45 = vld [vmem:[#allocation6 + $0x668] sm:$0xff]  ;;  %v9884_v51 = vld [vmem:[#allocation6 + $0x678] sm:$0xff] }
 0x626   :  { %3364 = vmatprep.subr.mxu0 %v9869_v41  ;;  %3435 = vmatprep.subr.mxu1 %v9872_v22  ;;  %12731 = vst [vmem:[#allocation187_spill] sm:$0xff] %v9881_v45  ;;  %12732 = vst [vmem:[#allocation188_spill] sm:$0xff] %v9884_v51  ;;  %v9887_v41 = vld [vmem:[#allocation6 + $0x660] sm:$0xff]  ;;  %v9890_v22 = vld [vmem:[#allocation6 + $0x670] sm:$0xff] }
 0x627   :  { %3365 = vmatpush2.msra.mxu0 %v9875_v58  ;;  %3436 = vmatpush2.msra.mxu1 %v9878_v14  ;;  %12733 = vst [vmem:[#allocation189_spill] sm:$0xff] %v9887_v41  ;;  %12734 = vst [vmem:[#allocation190_spill] sm:$0xff] %v9890_v22  ;;  %v9893_v58 = vld [vmem:[#allocation6 + $0x628] sm:$0xff]  ;;  %v9896_v14 = vld [vmem:[#allocation6 + $0x638] sm:$0xff] }
 0x628   :  { %3366 = vmatprep.subr.mxu0 %v9881_v45  ;;  %3437 = vmatprep.subr.mxu1 %v9884_v51  ;;  %12735 = vst [vmem:[#allocation191_spill] sm:$0xff] %v9893_v58  ;;  %12736 = vst [vmem:[#allocation192_spill] sm:$0xff] %v9896_v14  ;;  %v9899_v45 = vld [vmem:[#allocation6 + $0x620] sm:$0xff]  ;;  %v9902_v51 = vld [vmem:[#allocation6 + $0x630] sm:$0xff] }
 0x629   :  { %3367 = vmatpush2.msra.mxu0 %v9887_v41  ;;  %3438 = vmatpush2.msra.mxu1 %v9890_v22  ;;  %12737 = vst [vmem:[#allocation193_spill] sm:$0xff] %v9899_v45  ;;  %12738 = vst [vmem:[#allocation194_spill] sm:$0xff] %v9902_v51  ;;  %v9905_v41 = vld [vmem:[#allocation6 + $0x5e8] sm:$0xff]  ;;  %v9908_v22 = vld [vmem:[#allocation6 + $0x5f8] sm:$0xff] }
 0x62a   :  { %3368 = vmatprep.subr.mxu0 %v9893_v58  ;;  %3439 = vmatprep.subr.mxu1 %v9896_v14  ;;  %12739 = vst [vmem:[#allocation195_spill] sm:$0xff] %v9905_v41  ;;  %12740 = vst [vmem:[#allocation196_spill] sm:$0xff] %v9908_v22  ;;  %v9911_v58 = vld [vmem:[#allocation6 + $0x5e0] sm:$0xff]  ;;  %v9914_v14 = vld [vmem:[#allocation6 + $0x5f0] sm:$0xff] }
 0x62b   :  { %3369 = vmatpush2.msra.mxu0 %v9899_v45  ;;  %3440 = vmatpush2.msra.mxu1 %v9902_v51  ;;  %12741 = vst [vmem:[#allocation197_spill] sm:$0xff] %v9911_v58  ;;  %12742 = vst [vmem:[#allocation198_spill] sm:$0xff] %v9914_v14  ;;  %v9917_v45 = vld [vmem:[#allocation6 + $0x5a8] sm:$0xff]  ;;  %v9920_v51 = vld [vmem:[#allocation6 + $0x5b8] sm:$0xff] }
 0x62c   :  { %3370 = vmatprep.subr.mxu0 %v9905_v41  ;;  %3441 = vmatprep.subr.mxu1 %v9908_v22  ;;  %12743 = vst [vmem:[#allocation199_spill] sm:$0xff] %v9917_v45  ;;  %12744 = vst [vmem:[#allocation200_spill] sm:$0xff] %v9920_v51  ;;  %v9923_v41 = vld [vmem:[#allocation6 + $0x5a0] sm:$0xff]  ;;  %v9926_v22 = vld [vmem:[#allocation6 + $0x5b0] sm:$0xff] }
 0x62d   :  { %3371 = vmatpush2.msra.mxu0 %v9911_v58  ;;  %3442 = vmatpush2.msra.mxu1 %v9914_v14  ;;  %12745 = vst [vmem:[#allocation201_spill] sm:$0xff] %v9923_v41  ;;  %12746 = vst [vmem:[#allocation202_spill] sm:$0xff] %v9926_v22  ;;  %v9929_v58 = vld [vmem:[#allocation6 + $0x568] sm:$0xff]  ;;  %v9932_v14 = vld [vmem:[#allocation6 + $0x578] sm:$0xff] }
 0x62e   :  { %3372 = vmatprep.subr.mxu0 %v9917_v45  ;;  %3443 = vmatprep.subr.mxu1 %v9920_v51  ;;  %12747 = vst [vmem:[#allocation203_spill] sm:$0xff] %v9929_v58  ;;  %12748 = vst [vmem:[#allocation204_spill] sm:$0xff] %v9932_v14  ;;  %v9935_v45 = vld [vmem:[#allocation6 + $0x560] sm:$0xff]  ;;  %v9938_v51 = vld [vmem:[#allocation6 + $0x570] sm:$0xff] }
 0x62f   :  { %3373 = vmatpush2.msra.mxu0 %v9923_v41  ;;  %3444 = vmatpush2.msra.mxu1 %v9926_v22  ;;  %12749 = vst [vmem:[#allocation205_spill] sm:$0xff] %v9935_v45  ;;  %12750 = vst [vmem:[#allocation206_spill] sm:$0xff] %v9938_v51  ;;  %v9941_v41 = vld [vmem:[#allocation6 + $0x528] sm:$0xff]  ;;  %v9944_v22 = vld [vmem:[#allocation6 + $0x538] sm:$0xff] }
 0x630   :  { %3374 = vmatprep.subr.mxu0 %v9929_v58  ;;  %3445 = vmatprep.subr.mxu1 %v9932_v14  ;;  %12751 = vst [vmem:[#allocation207_spill] sm:$0xff] %v9941_v41  ;;  %12752 = vst [vmem:[#allocation208_spill] sm:$0xff] %v9944_v22  ;;  %v9947_v58 = vld [vmem:[#allocation6 + $0x520] sm:$0xff]  ;;  %v9950_v14 = vld [vmem:[#allocation6 + $0x530] sm:$0xff] }
 0x631   :  { %3375 = vmatpush2.msra.mxu0 %v9935_v45  ;;  %3446 = vmatpush2.msra.mxu1 %v9938_v51  ;;  %12753 = vst [vmem:[#allocation209_spill] sm:$0xff] %v9947_v58  ;;  %12754 = vst [vmem:[#allocation210_spill] sm:$0xff] %v9950_v14  ;;  %v9953_v45 = vld [vmem:[#allocation6 + $0x4e8] sm:$0xff]  ;;  %v9956_v51 = vld [vmem:[#allocation6 + $0x4f8] sm:$0xff] }
 0x632   :  { %3376 = vmatprep.subr.mxu0 %v9941_v41  ;;  %3447 = vmatprep.subr.mxu1 %v9944_v22  ;;  %12755 = vst [vmem:[#allocation211_spill] sm:$0xff] %v9953_v45  ;;  %12756 = vst [vmem:[#allocation212_spill] sm:$0xff] %v9956_v51  ;;  %v9959_v41 = vld [vmem:[#allocation6 + $0x4e0] sm:$0xff]  ;;  %v9962_v22 = vld [vmem:[#allocation6 + $0x4f0] sm:$0xff] }
 0x633   :  { %3377 = vmatpush2.msra.mxu0 %v9947_v58  ;;  %3448 = vmatpush2.msra.mxu1 %v9950_v14  ;;  %12757 = vst [vmem:[#allocation213_spill] sm:$0xff] %v9959_v41  ;;  %12758 = vst [vmem:[#allocation214_spill] sm:$0xff] %v9962_v22  ;;  %v9965_v58 = vld [vmem:[#allocation6 + $0x4a8] sm:$0xff]  ;;  %v9968_v14 = vld [vmem:[#allocation6 + $0x4b8] sm:$0xff] }
 0x634   :  { %3378 = vmatprep.subr.mxu0 %v9953_v45  ;;  %3449 = vmatprep.subr.mxu1 %v9956_v51  ;;  %12759 = vst [vmem:[#allocation215_spill] sm:$0xff] %v9965_v58  ;;  %12760 = vst [vmem:[#allocation216_spill] sm:$0xff] %v9968_v14  ;;  %v9971_v45 = vld [vmem:[#allocation6 + $0x4a0] sm:$0xff]  ;;  %v9974_v51 = vld [vmem:[#allocation6 + $0x4b0] sm:$0xff] }
 0x635   :  { %3379 = vmatpush2.msra.mxu0 %v9959_v41  ;;  %3450 = vmatpush2.msra.mxu1 %v9962_v22  ;;  %12761 = vst [vmem:[#allocation217_spill] sm:$0xff] %v9971_v45  ;;  %12762 = vst [vmem:[#allocation218_spill] sm:$0xff] %v9974_v51  ;;  %v9977_v41 = vld [vmem:[#allocation6 + $0x468] sm:$0xff]  ;;  %v9980_v22 = vld [vmem:[#allocation6 + $0x478] sm:$0xff] }
 0x636   :  { %3380 = vmatprep.subr.mxu0 %v9965_v58  ;;  %3451 = vmatprep.subr.mxu1 %v9968_v14  ;;  %12763 = vst [vmem:[#allocation219_spill] sm:$0xff] %v9977_v41  ;;  %12764 = vst [vmem:[#allocation220_spill] sm:$0xff] %v9980_v22  ;;  %v9983_v58 = vld [vmem:[#allocation6 + $0x460] sm:$0xff]  ;;  %v9986_v14 = vld [vmem:[#allocation6 + $0x470] sm:$0xff] }
 0x637   :  { %3381 = vmatpush2.msra.mxu0 %v9971_v45  ;;  %3452 = vmatpush2.msra.mxu1 %v9974_v51  ;;  %12765 = vst [vmem:[#allocation221_spill] sm:$0xff] %v9986_v14  ;;  %v9989_v45 = vld [vmem:[#allocation6 + $0x428] sm:$0xff]  ;;  %v9992_v51 = vld [vmem:[#allocation6 + $0x438] sm:$0xff] }
 0x638   :  { %3382 = vmatprep.subr.mxu0 %v9977_v41  ;;  %3453 = vmatprep.subr.mxu1 %v9980_v22  ;;  %12766 = vst [vmem:[#allocation222_spill] sm:$0xff] %v9989_v45  ;;  %12767 = vst [vmem:[#allocation223_spill] sm:$0xff] %v9992_v51  ;;  %v9995_v41 = vld [vmem:[#allocation6 + $0x420] sm:$0xff]  ;;  %v9998_v22 = vld [vmem:[#allocation6 + $0x430] sm:$0xff] }
 0x639   :  { %3383 = vmatpush2.msra.mxu0 %v9983_v58  ;;  %3454 = vmatpush2.msra.mxu1 %v9986_v14  ;;  %12768 = vst [vmem:[#allocation224_spill] sm:$0xff] %v9995_v41  ;;  %12769 = vst [vmem:[#allocation225_spill] sm:$0xff] %v9998_v22  ;;  %v10003_v14 = vld [vmem:[#allocation6 + $0x3c8] sm:$0xff] }
 0x63a   :  { %3384 = vmatprep.subr.mxu0 %v9989_v45  ;;  %3455 = vmatprep.subr.mxu1 %v9992_v51  ;;  %12770 = vst [vmem:[#allocation226_spill] sm:$0xff] %v10003_v14  ;;  %v10006_v45 = vld [vmem:[#allocation6 + $0x3d8] sm:$0xff]  ;;  %v10009_v51 = vld [vmem:[#allocation6 + $0x3c0] sm:$0xff] }
 0x63b   :  { %3385 = vmatpush2.msra.mxu0 %v9995_v41  ;;  %3456 = vmatpush2.msra.mxu1 %v9998_v22  ;;  %12771 = vst [vmem:[#allocation227_spill] sm:$0xff] %v10006_v45  ;;  %12772 = vst [vmem:[#allocation228_spill] sm:$0xff] %v10009_v51  ;;  %v10012_v41 = vld [vmem:[#allocation6 + $0x3d0] sm:$0xff]  ;;  %v10015_v22 = vld [vmem:[#allocation6 + $0x388] sm:$0xff] }
 0x63c   :  { %3387 = vmatmul.mubr.f32.vlgmr.msra.gmra.mxu0 %v9663_v35  ;;  %3458 = vmatmul.mubr.f32.vlgmr.msra.gmra.mxu1 %v9663_v35  ;;  %12773 = vst [vmem:[#allocation229_spill] sm:$0xff] %v10012_v41  ;;  %12774 = vst [vmem:[#allocation230_spill] sm:$0xff] %v10015_v22  ;;  %v10018_v35 = vld [vmem:[#allocation6 + $0x398] sm:$0xff] }
 0x63d   :  { %3520 = vmatprep.subr.mxu0 %v10003_v14  ;;  %3591 = vmatprep.subr.mxu1 %v10006_v45  ;;  %12775 = vst [vmem:[#allocation231_spill] sm:$0xff] %v10018_v35  ;;  %v10021_v14 = vld [vmem:[#allocation6 + $0x380] sm:$0xff]  ;;  %v10024_v45 = vld [vmem:[#allocation6 + $0x390] sm:$0xff] }
 0x63e   :  { %3521 = vmatpush1.msra.mxu0 %v10009_v51  ;;  %3592 = vmatpush1.msra.mxu1 %v10012_v41  ;;  %12776 = vst [vmem:[#allocation232_spill] sm:$0xff] %v10021_v14  ;;  %12777 = vst [vmem:[#allocation233_spill] sm:$0xff] %v10024_v45  ;;  %v10027_v51 = vld [vmem:[#allocation6 + $0x348] sm:$0xff]  ;;  %v10030_v41 = vld [vmem:[#allocation6 + $0x358] sm:$0xff] }
 0x63f   :  { %3522 = vmatprep.subr.mxu0 %v10015_v22  ;;  %3593 = vmatprep.subr.mxu1 %v10018_v35  ;;  %12778 = vst [vmem:[#allocation234_spill] sm:$0xff] %v10027_v51  ;;  %12779 = vst [vmem:[#allocation235_spill] sm:$0xff] %v10030_v41  ;;  %v10033_v22 = vld [vmem:[#allocation6 + $0x340] sm:$0xff]  ;;  %v10036_v35 = vld [vmem:[#allocation6 + $0x350] sm:$0xff] }
 0x640   :  { %3523 = vmatpush1.msra.mxu0 %v10021_v14  ;;  %3594 = vmatpush1.msra.mxu1 %v10024_v45  ;;  %12780 = vst [vmem:[#allocation236_spill] sm:$0xff] %v10033_v22  ;;  %12781 = vst [vmem:[#allocation237_spill] sm:$0xff] %v10036_v35  ;;  %v10039_v14 = vld [vmem:[#allocation6 + $0x308] sm:$0xff]  ;;  %v10042_v45 = vld [vmem:[#allocation6 + $0x318] sm:$0xff] }
 0x641   :  { %3524 = vmatprep.subr.mxu0 %v10027_v51  ;;  %3595 = vmatprep.subr.mxu1 %v10030_v41  ;;  %12782 = vst [vmem:[#allocation238_spill] sm:$0xff] %v10039_v14  ;;  %12783 = vst [vmem:[#allocation239_spill] sm:$0xff] %v10042_v45  ;;  %v10045_v51 = vld [vmem:[#allocation6 + $0x300] sm:$0xff]  ;;  %v10048_v41 = vld [vmem:[#allocation6 + $0x310] sm:$0xff] }
 0x642   :  { %3525 = vmatpush1.msra.mxu0 %v10033_v22  ;;  %3596 = vmatpush1.msra.mxu1 %v10036_v35  ;;  %12784 = vst [vmem:[#allocation240_spill] sm:$0xff] %v10045_v51  ;;  %12785 = vst [vmem:[#allocation241_spill] sm:$0xff] %v10048_v41  ;;  %v10051_v22 = vld [vmem:[#allocation6 + $0x2c8] sm:$0xff]  ;;  %v10054_v35 = vld [vmem:[#allocation6 + $0x2d8] sm:$0xff] }
 0x643   :  { %3526 = vmatprep.subr.mxu0 %v10039_v14  ;;  %3597 = vmatprep.subr.mxu1 %v10042_v45  ;;  %v10057_v14 = vld [vmem:[#allocation6 + $0x2c0] sm:$0xff]  ;;  %v10060_v45 = vld [vmem:[#allocation6 + $0x2d0] sm:$0xff] }
 0x644   :  { %3527 = vmatpush1.msra.mxu0 %v10045_v51  ;;  %3598 = vmatpush1.msra.mxu1 %v10048_v41  ;;  %v10063_v51 = vld [vmem:[#allocation6 + $0x288] sm:$0xff]  ;;  %v10066_v41 = vld [vmem:[#allocation6 + $0x298] sm:$0xff] }
 0x645   :  { %3528 = vmatprep.subr.mxu0 %v10051_v22  ;;  %3599 = vmatprep.subr.mxu1 %v10054_v35 }
 0x646   :  { %3529 = vmatpush1.msra.mxu0 %v10057_v14  ;;  %3600 = vmatpush1.msra.mxu1 %v10060_v45 }
 0x647   :  { %3530 = vmatprep.subr.mxu0 %v10063_v51  ;;  %3601 = vmatprep.subr.mxu1 %v10066_v41 }
 0x648   :  { %3531 = vmatpush1.msra.mxu0 %v9323_v5  ;;  %3602 = vmatpush1.msra.mxu1 %v9326_v6  ;;  %v12786_v5 = vld [vmem:[#allocation84_spill] sm:$0xff]  ;;  %v12787_v6 = vld [vmem:[#allocation85_spill] sm:$0xff] }
 0x649   :  { %3532 = vmatprep.subr.mxu0 %v9329_v26  ;;  %3603 = vmatprep.subr.mxu1 %v9332_v63  ;;  %v12788_v26 = vld [vmem:[#allocation86_spill] sm:$0xff]  ;;  %v12789_v63 = vld [vmem:[#allocation87_spill] sm:$0xff] }
 0x64a   :  { %3533 = vmatpush1.msra.mxu0 %v9335_v54  ;;  %3604 = vmatpush1.msra.mxu1 %v9338_v53  ;;  %v12790_v54 = vld [vmem:[#allocation88_spill] sm:$0xff]  ;;  %v12791_v53 = vld [vmem:[#allocation89_spill] sm:$0xff] }
 0x64b   :  { %3534 = vmatprep.subr.mxu0 %v9341_v52  ;;  %3605 = vmatprep.subr.mxu1 %v9344_v60  ;;  %v12792_v52 = vld [vmem:[#allocation90_spill] sm:$0xff]  ;;  %v12793_v60 = vld [vmem:[#allocation91_spill] sm:$0xff] }
 0x64c   :  { %3535 = vmatpush1.msra.mxu0 %v9347_v4  ;;  %3606 = vmatpush1.msra.mxu1 %v9350_v8  ;;  %v12794_v4 = vld [vmem:[#allocation92_spill] sm:$0xff]  ;;  %v12795_v8 = vld [vmem:[#allocation93_spill] sm:$0xff] }
 0x64d   :  { %3536 = vmatprep.subr.mxu0 %v9353_v39  ;;  %3607 = vmatprep.subr.mxu1 %v9356_v3  ;;  %v12796_v39 = vld [vmem:[#allocation94_spill] sm:$0xff]  ;;  %v12797_v3 = vld [vmem:[#allocation95_spill] sm:$0xff] }
 0x64e   :  { %3537 = vmatpush1.msra.mxu0 %v9359_v10  ;;  %3608 = vmatpush1.msra.mxu1 %v9362_v48  ;;  %v12798_v10 = vld [vmem:[#allocation96_spill] sm:$0xff]  ;;  %v12799_v48 = vld [vmem:[#allocation97_spill] sm:$0xff] }
 0x64f   :  { %3538 = vmatprep.subr.mxu0 %v9365_v15  ;;  %3609 = vmatprep.subr.mxu1 %v9368_v17  ;;  %v12800_v15 = vld [vmem:[#allocation98_spill] sm:$0xff]  ;;  %v12801_v17 = vld [vmem:[#allocation99_spill] sm:$0xff] }
 0x650   :  { %3539 = vmatpush1.msra.mxu0 %v9371_v28  ;;  %3610 = vmatpush1.msra.mxu1 %v9374_v19  ;;  %v12802_v28 = vld [vmem:[#allocation100_spill] sm:$0xff]  ;;  %v12803_v19 = vld [vmem:[#allocation101_spill] sm:$0xff] }
 0x651   :  { %3540 = vmatprep.subr.mxu0 %v9377_v23  ;;  %3611 = vmatprep.subr.mxu1 %v9380_v62  ;;  %v12804_v23 = vld [vmem:[#allocation102_spill] sm:$0xff]  ;;  %v12805_v62 = vld [vmem:[#allocation103_spill] sm:$0xff] }
 0x652   :  { %3541 = vmatpush1.msra.mxu0 %v12786_v5  ;;  %3612 = vmatpush1.msra.mxu1 %v12787_v6  ;;  %v12806_v5 = vld [vmem:[#allocation104_spill] sm:$0xff]  ;;  %v12807_v6 = vld [vmem:[#allocation105_spill] sm:$0xff] }
 0x653   :  { %3542 = vmatprep.subr.mxu0 %v12788_v26  ;;  %3613 = vmatprep.subr.mxu1 %v12789_v63  ;;  %v12808_v26 = vld [vmem:[#allocation106_spill] sm:$0xff]  ;;  %v12809_v63 = vld [vmem:[#allocation107_spill] sm:$0xff] }
 0x654   :  { %3543 = vmatpush1.msra.mxu0 %v12790_v54  ;;  %3614 = vmatpush1.msra.mxu1 %v12791_v53  ;;  %v12810_v54 = vld [vmem:[#allocation108_spill] sm:$0xff]  ;;  %v12811_v53 = vld [vmem:[#allocation109_spill] sm:$0xff] }
 0x655   :  { %3544 = vmatprep.subr.mxu0 %v12792_v52  ;;  %3615 = vmatprep.subr.mxu1 %v12793_v60  ;;  %v12812_v52 = vld [vmem:[#allocation110_spill] sm:$0xff]  ;;  %v12813_v60 = vld [vmem:[#allocation111_spill] sm:$0xff] }
 0x656   :  { %3545 = vmatpush1.msra.mxu0 %v12794_v4  ;;  %3616 = vmatpush1.msra.mxu1 %v12795_v8  ;;  %v12814_v4 = vld [vmem:[#allocation112_spill] sm:$0xff]  ;;  %v12815_v8 = vld [vmem:[#allocation113_spill] sm:$0xff] }
 0x657   :  { %3546 = vmatprep.subr.mxu0 %v12796_v39  ;;  %3617 = vmatprep.subr.mxu1 %v12797_v3  ;;  %v12816_v39 = vld [vmem:[#allocation114_spill] sm:$0xff]  ;;  %v12817_v3 = vld [vmem:[#allocation115_spill] sm:$0xff] }
 0x658   :  { %3547 = vmatpush1.msra.mxu0 %v12798_v10  ;;  %3618 = vmatpush1.msra.mxu1 %v12799_v48  ;;  %v12818_v10 = vld [vmem:[#allocation116_spill] sm:$0xff]  ;;  %v12819_v48 = vld [vmem:[#allocation117_spill] sm:$0xff] }
 0x659   :  { %3548 = vmatprep.subr.mxu0 %v12800_v15  ;;  %3619 = vmatprep.subr.mxu1 %v12801_v17  ;;  %v12820_v15 = vld [vmem:[#allocation118_spill] sm:$0xff]  ;;  %v12821_v17 = vld [vmem:[#allocation119_spill] sm:$0xff] }
 0x65a   :  { %3549 = vmatpush1.msra.mxu0 %v12802_v28  ;;  %3620 = vmatpush1.msra.mxu1 %v12803_v19  ;;  %v12822_v28 = vld [vmem:[#allocation120_spill] sm:$0xff]  ;;  %v12823_v19 = vld [vmem:[#allocation121_spill] sm:$0xff] }
 0x65b   :  { %3550 = vmatprep.subr.mxu0 %v12804_v23  ;;  %3621 = vmatprep.subr.mxu1 %v12805_v62  ;;  %v12824_v23 = vld [vmem:[#allocation122_spill] sm:$0xff]  ;;  %v12825_v62 = vld [vmem:[#allocation123_spill] sm:$0xff] }
 0x65c   :  { %3551 = vmatpush1.msra.mxu0 %v12806_v5  ;;  %3622 = vmatpush1.msra.mxu1 %v12807_v6  ;;  %v12826_v5 = vld [vmem:[#allocation124_spill] sm:$0xff]  ;;  %v12827_v6 = vld [vmem:[#allocation125_spill] sm:$0xff] }
 0x65d   :  { %3552 = vmatprep.subr.mxu0 %v12808_v26  ;;  %3623 = vmatprep.subr.mxu1 %v12809_v63  ;;  %v12828_v26 = vld [vmem:[#allocation126_spill] sm:$0xff]  ;;  %v12829_v63 = vld [vmem:[#allocation127_spill] sm:$0xff] }
 0x65e   :  { %3553 = vmatpush2.msra.mxu0 %v12810_v54  ;;  %3624 = vmatpush2.msra.mxu1 %v12811_v53  ;;  %v12830_v54 = vld [vmem:[#allocation128_spill] sm:$0xff]  ;;  %v12831_v53 = vld [vmem:[#allocation129_spill] sm:$0xff] }
 0x65f   :  { %3554 = vmatprep.subr.mxu0 %v12812_v52  ;;  %3625 = vmatprep.subr.mxu1 %v12813_v60  ;;  %v12832_v52 = vld [vmem:[#allocation130_spill] sm:$0xff]  ;;  %v12833_v60 = vld [vmem:[#allocation131_spill] sm:$0xff] }
 0x660   :  { %3555 = vmatpush2.msra.mxu0 %v12814_v4  ;;  %3626 = vmatpush2.msra.mxu1 %v12815_v8  ;;  %v12834_v4 = vld [vmem:[#allocation132_spill] sm:$0xff]  ;;  %v12835_v8 = vld [vmem:[#allocation133_spill] sm:$0xff] }
 0x661   :  { %3556 = vmatprep.subr.mxu0 %v12816_v39  ;;  %3627 = vmatprep.subr.mxu1 %v12817_v3  ;;  %v12836_v39 = vld [vmem:[#allocation134_spill] sm:$0xff]  ;;  %v12837_v3 = vld [vmem:[#allocation135_spill] sm:$0xff] }
 0x662   :  { %3557 = vmatpush2.msra.mxu0 %v12818_v10  ;;  %3628 = vmatpush2.msra.mxu1 %v12819_v48  ;;  %v12838_v10 = vld [vmem:[#allocation136_spill] sm:$0xff] }
 0x663   :  { %3558 = vmatprep.subr.mxu0 %v12820_v15  ;;  %3629 = vmatprep.subr.mxu1 %v12821_v17  ;;  %v12839_v48 = vld [vmem:[#allocation28_spill] sm:$0xff]  ;;  %v12841_v17 = vld [vmem:[#allocation137_spill] sm:$0xff] }
 0x664   :  { %3559 = vmatpush2.msra.mxu0 %v12822_v28  ;;  %3630 = vmatpush2.msra.mxu1 %v12823_v19  ;;  %v12840_v15 = vld [vmem:[#allocation20_spill] sm:$0xff]  ;;  %v12842_v28 = vld [vmem:[#allocation138_spill] sm:$0xff]  ;;  %v12843_v19 = vld [vmem:[#allocation139_spill] sm:$0xff] }
 0x665   :  { %3560 = vmatprep.subr.mxu0 %v12824_v23  ;;  %3631 = vmatprep.subr.mxu1 %v12825_v62  ;;  %v12844_v23 = vld [vmem:[#allocation140_spill] sm:$0xff]  ;;  %v12845_v62 = vld [vmem:[#allocation30_spill] sm:$0xff] }
 0x666   :  { %3561 = vmatpush2.msra.mxu0 %v12826_v5  ;;  %3632 = vmatpush2.msra.mxu1 %v12827_v6  ;;  %v12846_v5 = vld [vmem:[#allocation21_spill] sm:$0xff] }
 0x667   :  { %3562 = vmatprep.subr.mxu0 %v12828_v26  ;;  %3633 = vmatprep.subr.mxu1 %v12829_v63  ;;  %v12847_v6 = vld [vmem:[#allocation141_spill] sm:$0xff]  ;;  %v12848_v26 = vld [vmem:[#allocation142_spill] sm:$0xff]  ;;  %v12849_v63 = vld [vmem:[#allocation143_spill] sm:$0xff] }
 0x668   :  { %3563 = vmatpush2.msra.mxu0 %v12830_v54  ;;  %3634 = vmatpush2.msra.mxu1 %v12831_v53  ;;  %v12850_v54 = vld [vmem:[#allocation144_spill] sm:$0xff]  ;;  %v12851_v53 = vld [vmem:[#allocation145_spill] sm:$0xff] }
 0x669   :  { %3564 = vmatprep.subr.mxu0 %v12832_v52  ;;  %3635 = vmatprep.subr.mxu1 %v12833_v60  ;;  %v12852_v52 = vld [vmem:[#allocation146_spill] sm:$0xff]  ;;  %v12853_v60 = vld [vmem:[#allocation80_spill] sm:$0xff] }
 0x66a   :  { %3565 = vmatpush2.msra.mxu0 %v12834_v4  ;;  %3636 = vmatpush2.msra.mxu1 %v12835_v8  ;;  %v12854_v4 = vld [vmem:[#allocation81_spill] sm:$0xff]  ;;  %v12855_v8 = vld [vmem:[#allocation56_spill] sm:$0xff] }
 0x66b   :  { %3566 = vmatprep.subr.mxu0 %v12836_v39  ;;  %3637 = vmatprep.subr.mxu1 %v12837_v3  ;;  %v12856_v39 = vld [vmem:[#allocation41_spill] sm:$0xff]  ;;  %v12857_v3 = vld [vmem:[#allocation58_spill] sm:$0xff] }
 0x66c   :  { %3567 = vmatpush2.msra.mxu0 %v12838_v10  ;;  %3638 = vmatpush2.msra.mxu1 %v12839_v48  ;;  %v12858_v10 = vld [vmem:[#allocation43_spill] sm:$0xff]  ;;  %v12859_v48 = vld [vmem:[#allocation78_spill] sm:$0xff] }
 0x66d   :  { %3568 = vmatprep.subr.mxu0 %v12840_v15  ;;  %3639 = vmatprep.subr.mxu1 %v12841_v17  ;;  %v12860_v15 = vld [vmem:[#allocation69_spill] sm:$0xff]  ;;  %v12861_v17 = vld [vmem:[#allocation79_spill] sm:$0xff] }
 0x66e   :  { %3569 = vmatpush2.msra.mxu0 %v12842_v28  ;;  %3640 = vmatpush2.msra.mxu1 %v12843_v19  ;;  %v12862_v28 = vld [vmem:[#allocation71_spill] sm:$0xff] }
 0x66f   :  { %3570 = vmatprep.subr.mxu0 %v12844_v23  ;;  %3641 = vmatprep.subr.mxu1 %v12845_v62  ;;  %v12863_v19 = vld [vmem:[#allocation147_spill] sm:$0xff]  ;;  %v12864_v23 = vld [vmem:[#allocation148_spill] sm:$0xff]  ;;  %v12865_v62 = vld [vmem:[#allocation149_spill] sm:$0xff] }
 0x670   :  { %3571 = vmatpush2.msra.mxu0 %v12846_v5  ;;  %3642 = vmatpush2.msra.mxu1 %v12847_v6  ;;  %v12866_v5 = vld [vmem:[#allocation150_spill] sm:$0xff]  ;;  %v12867_v6 = vld [vmem:[#allocation151_spill] sm:$0xff] }
 0x671   :  { %3572 = vmatprep.subr.mxu0 %v12848_v26  ;;  %3643 = vmatprep.subr.mxu1 %v12849_v63  ;;  %v12868_v26 = vld [vmem:[#allocation152_spill] sm:$0xff]  ;;  %v12869_v63 = vld [vmem:[#allocation153_spill] sm:$0xff] }
 0x672   :  { %3573 = vmatpush2.msra.mxu0 %v12850_v54  ;;  %3644 = vmatpush2.msra.mxu1 %v12851_v53  ;;  %v12870_v54 = vld [vmem:[#allocation154_spill] sm:$0xff]  ;;  %v12871_v53 = vld [vmem:[#allocation155_spill] sm:$0xff] }
 0x673   :  { %3574 = vmatprep.subr.mxu0 %v12852_v52  ;;  %3645 = vmatprep.subr.mxu1 %v12853_v60  ;;  %v12872_v52 = vld [vmem:[#allocation156_spill] sm:$0xff]  ;;  %v12873_v60 = vld [vmem:[#allocation157_spill] sm:$0xff] }
 0x674   :  { %3575 = vmatpush2.msra.mxu0 %v12854_v4  ;;  %3646 = vmatpush2.msra.mxu1 %v12855_v8 }
 0x675   :  { %3576 = vmatprep.subr.mxu0 %v12856_v39  ;;  %3647 = vmatprep.subr.mxu1 %v12857_v3  ;;  %v12874_v3 = vld [vmem:[#allocation48_spill] sm:$0xff] }
 0x676   :  { %3577 = vmatpush2.msra.mxu0 %v12858_v10  ;;  %3648 = vmatpush2.msra.mxu1 %v12859_v48  ;;  %v12875_v48 = vld [vmem:[#allocation33_spill] sm:$0xff] }
 0x677   :  { %3578 = vmatprep.subr.mxu0 %v12860_v15  ;;  %3649 = vmatprep.subr.mxu1 %v12861_v17 }
 0x678   :  { %3579 = vmatpush2.msra.mxu0 %v12862_v28  ;;  %3650 = vmatpush2.msra.mxu1 %v12863_v19  ;;  %v12876_v28 = vld [vmem:[#allocation50_spill] sm:$0xff] }
 0x679   :  { %3580 = vmatprep.subr.mxu0 %v12864_v23  ;;  %3651 = vmatprep.subr.mxu1 %v12865_v62  ;;  %v12877_v62 = vld [vmem:[#allocation35_spill] sm:$0xff] }
 0x67a   :  { %3581 = vmatpush2.msra.mxu0 %v12866_v5  ;;  %3652 = vmatpush2.msra.mxu1 %v12867_v6 }
 0x67b   :  { %3582 = vmatprep.subr.mxu0 %v12868_v26  ;;  %3653 = vmatprep.subr.mxu1 %v12869_v63 }
 0x67c   :  { %3583 = vmatpush2.msra.mxu0 %v12870_v54  ;;  %3654 = vmatpush2.msra.mxu1 %v12871_v53 }
 0x67d   :  { %3662 = vmatprep.subr.mxu0 %v12872_v52  ;;  %3733 = vmatprep.subr.mxu1 %v12873_v60 }
 0x6bb   :  { %v3246_v4 = vpop.f32.mrf.mxu0  ;;  %v3317_v8 = vpop.f32.mrf.mxu1 }
 0x6bc   :  { %v3464_v10 = vadd.f32 %v3246_v4, %v12874_v3  ;;  %v3466_v15 = vadd.f32 %v3317_v8, %v12875_v48 }
 0x6bd   :  { %v3248_v39 = vpop.f32.mrf.mxu0  ;;  %v3319_v17 = vpop.f32.mrf.mxu1 }
 0x6be   :  { %v3465_v19 = vadd.f32 %v3248_v39, %v12876_v28  ;;  %v5622_v23 = vmul.f32 -1.442695, %v3464_v10  ;;  %v3467_v5 = vadd.f32 %v3319_v17, %v12877_v62  ;;  %v5624_v6 = vmul.f32 -1.442695, %v3466_v15  ;;  %v12878_v17 = vld [vmem:[#allocation74_spill] sm:$0xff]  ;;  %v12879_v28 = vld [vmem:[#allocation61_spill] sm:$0xff] }
 0x6c0   :  { %v5623_v26 = vmul.f32 -1.442695, %v3465_v19  ;;  %6161 = vpow2.f32 %v5622_v23  ;;  %v5625_v63 = vmul.f32 -1.442695, %v3467_v5 }
 0x6c1   :  { %6163 = vpow2.f32 %v5624_v6  ;;  %v12880_v6 = vld [vmem:[#allocation75_spill] sm:$0xff] }
 0x6c2   :  { %6165 = vpow2.f32 %v5623_v26 }
 0x6c3   :  { %6167 = vpow2.f32 %v5625_v63  ;;  %v12881_v63 = vld [vmem:[#allocation63_spill] sm:$0xff] }
 0x6cd   :  { %v6162_v54 = vpop.eup %6161 }
 0x6ce   :  { %v6164_v53 = vpop.eup %6163  ;;  %v3478_v60 = vadd.f32 1.0, %v6162_v54 }
 0x6cf   :  { %v6166_v52 = vpop.eup %6165  ;;  %v3490_v3 = vadd.f32 1.0, %v6164_v53 }
 0x6d0   :  { %v6168_v4 = vpop.eup %6167  ;;  %v3479_v8 = vadd.f32 1.0, %v6166_v52  ;;  %6169 = vrcp.f32 %v3478_v60 }
 0x6d1   :  { %v3491_v48 = vadd.f32 1.0, %v6168_v4  ;;  %6171 = vrcp.f32 %v3490_v3 }
 0x6d2   :  { %6173 = vrcp.f32 %v3479_v8 }
 0x6dd   :  { %v6170_v52 = vpop.eup %6169 }
 0x6de   :  { %v6172_v60 = vpop.eup %6171 }
 0x6df   :  { %v6174_v4 = vpop.eup %6173  ;;  %v3510_v8 = vmul.f32 %v6172_v60, %v9656_v61  ;;  %v10200_v60 = vld [vmem:[#allocation6 + $0x3f0] sm:$0xff] }
 0x6fc   :  { %v3388_v39 = vpop.f32.mrf.mxu0  ;;  %v3459_v10 = vpop.f32.mrf.mxu1 }
 0x6fd   :  { %v3468_v15 = vadd.f32 %v3388_v39, %v12878_v17  ;;  %v3470_v19 = vadd.f32 %v3459_v10, %v12879_v28 }
 0x6fe   :  { %v3390_v23 = vpop.f32.mrf.mxu0  ;;  %v3461_v62 = vpop.f32.mrf.mxu1 }
 0x6ff   :  { %6175 = vtanh.f32 %v3468_v15  ;;  %v5626_v5 = vmul.f32 -1.442695, %v3470_v19  ;;  %v3469_v26 = vadd.f32 %v3390_v23, %v12880_v6  ;;  %v3471_v54 = vadd.f32 %v3461_v62, %v12881_v63 }
 0x700   :  { %6177 = vrcp.f32 %v3491_v48 }
 0x701   :  { %6179 = vpow2.f32 %v5626_v5  ;;  %v5627_v53 = vmul.f32 -1.442695, %v3471_v54 }
 0x702   :  { %6181 = vtanh.f32 %v3469_v26 }
 0x703   :  { %6183 = vpow2.f32 %v5627_v53 }
 0x70c   :  { %v6176_v3 = vpop.eup %6175 }
 0x70d   :  { %v6178_v39 = vpop.eup %6177  ;;  %v3512_v10 = vmul.f32 %v6176_v3, %v6170_v52  ;;  %v10206_v3 = vld [vmem:[#allocation6 + $0x3b8] sm:$0xff] }
 0x70e   :  { %v6180_v17 = vpop.eup %6179  ;;  %v3511_v48 = vmul.f32 %v6178_v39, %v9660_v20  ;;  %v10197_v20 = vld [vmem:[#allocation6 + $0x3e0] sm:$0xff] }
 0x70f   :  { %v6182_v15 = vpop.eup %6181  ;;  %v10186_v28 = vadd.f32 %v3512_v10, %v3510_v8  ;;  %v3504_v19 = vadd.f32 1.0, %v6180_v17  ;;  %v10209_v39 = vld [vmem:[#allocation6 + $0x3a0] sm:$0xff]  ;;  %v10212_v8 = vld [vmem:[#allocation6 + $0x3b0] sm:$0xff]  ;;  %v10215_v10 = vld [vmem:[#allocation6 + $0x368] sm:$0xff] }
 0x710   :  { %v6184_v23 = vpop.eup %6183  ;;  %v3513_v62 = vmul.f32 %v6182_v15, %v6174_v4  ;;  %v10203_v4 = vld [vmem:[#allocation6 + $0x3a8] sm:$0xff]  ;;  %v10218_v17 = vld [vmem:[#allocation6 + $0x378] sm:$0xff]  ;;  %v10221_v15 = vld [vmem:[#allocation6 + $0x360] sm:$0xff] }
 0x711   :  { %6185 = vtanh.f32 %v10186_v28  ;;  %v3505_v5 = vadd.f32 1.0, %v6184_v23  ;;  %v10227_v23 = vld [vmem:[#allocation6 + $0x328] sm:$0xff] }
 0x712   :  { %6187 = vrcp.f32 %v3504_v19  ;;  %v10190_v6 = vadd.f32 %v3513_v62, %v3511_v48  ;;  %v10224_v19 = vld [vmem:[#allocation6 + $0x370] sm:$0xff]  ;;  %v10230_v48 = vld [vmem:[#allocation6 + $0x338] sm:$0xff]  ;;  %v10233_v62 = vld [vmem:[#allocation6 + $0x320] sm:$0xff] }
 0x713   :  { %6189 = vrcp.f32 %v3505_v5  ;;  %v10236_v5 = vld [vmem:[#allocation6 + $0x330] sm:$0xff] }
 0x714   :  { %6191 = vtanh.f32 %v10190_v6  ;;  %12882 = vst [vmem:[#allocation242_spill] sm:$0xff] %v10236_v5 }
 0x71e   :  { %v6186_v61 = vpop.eup %6185 }
 0x71f   :  { %v6188_v26 = vpop.eup %6187 }
 0x720   :  { %v6190_v63 = vpop.eup %6189  ;;  %v10193_v52 = vmul.f32 %v6188_v26, %v6186_v61  ;;  %v10239_v61 = vld [vmem:[#allocation6 + $0x2e8] sm:$0xff]  ;;  %v10242_v26 = vld [vmem:[#allocation6 + $0x2f8] sm:$0xff] }
 0x721   :  { %v6192_v54 = vpop.eup %6191  ;;  %12883 = vst [vmem:[#allocation243_spill] sm:$0xff] %v10239_v61  ;;  %12884 = vst [vmem:[#allocation244_spill] sm:$0xff] %v10242_v26 }
 0x722   :  { %v3519_v53 = vmul.f32 %v6192_v54, %v6190_v63  ;;  %v10245_v63 = vld [vmem:[#allocation6 + $0x2e0] sm:$0xff]  ;;  %v10248_v54 = vld [vmem:[#allocation6 + $0x2f0] sm:$0xff] }
 0x724   :  { %3584 = vmatprep.mubr.f32.mxu0 %v3519_v53  ;;  %3655 = vmatprep.mubr.f32.mxu1 %v3519_v53 }
 0x725   :  { %3585 = vmatmul.mubr.f32.vlgmr.msra.gmra.mxu0 %v10193_v52  ;;  %3656 = vmatmul.mubr.f32.vlgmr.msra.gmra.mxu1 %v10193_v52 }
 0x726   :  { %3663 = vmatpush1.msra.mxu0 %v10197_v20  ;;  %3734 = vmatpush1.msra.mxu1 %v10200_v60 }
 0x727   :  { %3664 = vmatprep.subr.mxu0 %v10203_v4  ;;  %3726 = vmatprep.mubr.f32.mxu0 %v3519_v53 }
 0x728   :  { %3735 = vmatprep.subr.mxu1 %v10206_v3  ;;  %3797 = vmatprep.mubr.f32.mxu1 %v3519_v53  ;;  %v10251_v53 = vld [vmem:[#allocation6 + $0x2a8] sm:$0xff] }
 0x729   :  { %3665 = vmatpush1.msra.mxu0 %v10209_v39  ;;  %3736 = vmatpush1.msra.mxu1 %v10212_v8 }
 0x72a   :  { %3666 = vmatprep.subr.mxu0 %v10215_v10  ;;  %3737 = vmatprep.subr.mxu1 %v10218_v17 }
 0x72b   :  { %3667 = vmatpush1.msra.mxu0 %v10221_v15  ;;  %3738 = vmatpush1.msra.mxu1 %v10224_v19 }
 0x72c   :  { %3668 = vmatprep.subr.mxu0 %v10227_v23  ;;  %3739 = vmatprep.subr.mxu1 %v10230_v48 }
 0x72d   :  { %3669 = vmatpush1.msra.mxu0 %v10233_v62  ;;  %3740 = vmatpush1.msra.mxu1 %v10236_v5  ;;  %v10254_v5 = vld [vmem:[#allocation6 + $0x2b8] sm:$0xff] }
 0x72e   :  { %3670 = vmatprep.subr.mxu0 %v10239_v61  ;;  %3741 = vmatprep.subr.mxu1 %v10242_v26  ;;  %v10257_v61 = vld [vmem:[#allocation6 + $0x2a0] sm:$0xff]  ;;  %v10260_v26 = vld [vmem:[#allocation6 + $0x2b0] sm:$0xff] }
 0x72f   :  { %3671 = vmatpush1.msra.mxu0 %v10245_v63  ;;  %3742 = vmatpush1.msra.mxu1 %v10248_v54 }
 0x730   :  { %3672 = vmatprep.subr.mxu0 %v10251_v53  ;;  %3743 = vmatprep.subr.mxu1 %v10254_v5 }
 0x731   :  { %3673 = vmatpush1.msra.mxu0 %v10257_v61  ;;  %3744 = vmatpush1.msra.mxu1 %v10260_v26 }
 0x732   :  { %3674 = vmatprep.subr.mxu0 %v9689_v43  ;;  %3745 = vmatprep.subr.mxu1 %v9692_v16  ;;  %v12885_v43 = vld [vmem:[#allocation158_spill] sm:$0xff]  ;;  %v12886_v16 = vld [vmem:[#allocation159_spill] sm:$0xff] }
 0x733   :  { %3675 = vmatpush1.msra.mxu0 %v9695_v40  ;;  %3746 = vmatpush1.msra.mxu1 %v9698_v46  ;;  %v12887_v40 = vld [vmem:[#allocation160_spill] sm:$0xff]  ;;  %v12888_v46 = vld [vmem:[#allocation161_spill] sm:$0xff] }
 0x734   :  { %3676 = vmatprep.subr.mxu0 %v9701_v59  ;;  %3747 = vmatprep.subr.mxu1 %v9704_v56  ;;  %v12889_v59 = vld [vmem:[#allocation162_spill] sm:$0xff]  ;;  %v12890_v56 = vld [vmem:[#allocation163_spill] sm:$0xff] }
 0x735   :  { %3677 = vmatpush1.msra.mxu0 %v9707_v18  ;;  %3748 = vmatpush1.msra.mxu1 %v9710_v38  ;;  %v12891_v18 = vld [vmem:[#allocation164_spill] sm:$0xff]  ;;  %v12892_v38 = vld [vmem:[#allocation165_spill] sm:$0xff] }
 0x736   :  { %3678 = vmatprep.subr.mxu0 %v9713_v49  ;;  %3749 = vmatprep.subr.mxu1 %v9716_v33  ;;  %v12893_v49 = vld [vmem:[#allocation166_spill] sm:$0xff]  ;;  %v12894_v33 = vld [vmem:[#allocation167_spill] sm:$0xff] }
 0x737   :  { %3679 = vmatpush1.msra.mxu0 %v9719_v25  ;;  %3750 = vmatpush1.msra.mxu1 %v9722_v44  ;;  %v12895_v25 = vld [vmem:[#allocation168_spill] sm:$0xff]  ;;  %v12896_v44 = vld [vmem:[#allocation169_spill] sm:$0xff] }
 0x738   :  { %3680 = vmatprep.subr.mxu0 %v9725_v12  ;;  %3751 = vmatprep.subr.mxu1 %v9728_v31  ;;  %v12897_v12 = vld [vmem:[#allocation170_spill] sm:$0xff]  ;;  %v12898_v31 = vld [vmem:[#allocation171_spill] sm:$0xff] }
 0x739   :  { %3681 = vmatpush1.msra.mxu0 %v9731_v24  ;;  %3752 = vmatpush1.msra.mxu1 %v9734_v42  ;;  %v12899_v24 = vld [vmem:[#allocation172_spill] sm:$0xff]  ;;  %v12900_v42 = vld [vmem:[#allocation173_spill] sm:$0xff] }
 0x73a   :  { %3682 = vmatprep.subr.mxu0 %v9737_v27  ;;  %3753 = vmatprep.subr.mxu1 %v9740_v34  ;;  %v12901_v27 = vld [vmem:[#allocation174_spill] sm:$0xff]  ;;  %v12902_v34 = vld [vmem:[#allocation175_spill] sm:$0xff] }
 0x73b   :  { %3683 = vmatpush1.msra.mxu0 %v9743_v32  ;;  %3754 = vmatpush1.msra.mxu1 %v9746_v37  ;;  %v12903_v32 = vld [vmem:[#allocation176_spill] sm:$0xff]  ;;  %v12904_v37 = vld [vmem:[#allocation177_spill] sm:$0xff] }
 0x73c   :  { %3684 = vmatprep.subr.mxu0 %v9749_v50  ;;  %3755 = vmatprep.subr.mxu1 %v9752_v11  ;;  %v12905_v50 = vld [vmem:[#allocation178_spill] sm:$0xff]  ;;  %v12906_v11 = vld [vmem:[#allocation179_spill] sm:$0xff] }
 0x73d   :  { %3685 = vmatpush1.msra.mxu0 %v9755_v47  ;;  %3756 = vmatpush1.msra.mxu1 %v9758_v7  ;;  %v12907_v47 = vld [vmem:[#allocation180_spill] sm:$0xff]  ;;  %v12908_v7 = vld [vmem:[#allocation181_spill] sm:$0xff] }
 0x73e   :  { %3686 = vmatprep.subr.mxu0 %v9761_v1  ;;  %3757 = vmatprep.subr.mxu1 %v9764_v2  ;;  %v12909_v1 = vld [vmem:[#allocation182_spill] sm:$0xff]  ;;  %v12910_v2 = vld [vmem:[#allocation183_spill] sm:$0xff] }
 0x73f   :  { %3687 = vmatpush1.msra.mxu0 %v9767_v21  ;;  %3758 = vmatpush1.msra.mxu1 %v9770_v30  ;;  %v12911_v21 = vld [vmem:[#allocation184_spill] sm:$0xff]  ;;  %v12912_v30 = vld [vmem:[#allocation185_spill] sm:$0xff] }
 0x740   :  { %3688 = vmatprep.subr.mxu0 %v9773_v36  ;;  %3759 = vmatprep.subr.mxu1 %v9776_v9  ;;  %v12913_v36 = vld [vmem:[#allocation186_spill] sm:$0xff]  ;;  %v12914_v9 = vld [vmem:[#allocation187_spill] sm:$0xff] }
 0x741   :  { %3689 = vmatpush1.msra.mxu0 %v9779_v13  ;;  %3760 = vmatpush1.msra.mxu1 %v9782_v0  ;;  %v12915_v13 = vld [vmem:[#allocation188_spill] sm:$0xff]  ;;  %v12916_v0 = vld [vmem:[#allocation189_spill] sm:$0xff] }
 0x742   :  { %3690 = vmatprep.subr.mxu0 %v9785_v55  ;;  %3761 = vmatprep.subr.mxu1 %v9788_v57  ;;  %v12917_v55 = vld [vmem:[#allocation190_spill] sm:$0xff]  ;;  %v12918_v57 = vld [vmem:[#allocation191_spill] sm:$0xff] }
 0x743   :  { %3691 = vmatpush1.msra.mxu0 %v9791_v29  ;;  %3762 = vmatpush1.msra.mxu1 %v12885_v43  ;;  %v12919_v29 = vld [vmem:[#allocation192_spill] sm:$0xff]  ;;  %v12920_v43 = vld [vmem:[#allocation193_spill] sm:$0xff] }
 0x744   :  { %3692 = vmatprep.subr.mxu0 %v12886_v16  ;;  %3763 = vmatprep.subr.mxu1 %v12887_v40  ;;  %v12921_v16 = vld [vmem:[#allocation194_spill] sm:$0xff]  ;;  %v12922_v40 = vld [vmem:[#allocation195_spill] sm:$0xff] }
 0x745   :  { %3693 = vmatpush1.msra.mxu0 %v12888_v46  ;;  %3764 = vmatpush1.msra.mxu1 %v12889_v59  ;;  %v12923_v46 = vld [vmem:[#allocation196_spill] sm:$0xff]  ;;  %v12924_v59 = vld [vmem:[#allocation197_spill] sm:$0xff] }
 0x746   :  { %3694 = vmatprep.subr.mxu0 %v12890_v56  ;;  %3765 = vmatprep.subr.mxu1 %v12891_v18  ;;  %v12925_v56 = vld [vmem:[#allocation198_spill] sm:$0xff]  ;;  %v12926_v18 = vld [vmem:[#allocation199_spill] sm:$0xff] }
 0x747   :  { %3695 = vmatpush2.msra.mxu0 %v12892_v38  ;;  %3766 = vmatpush2.msra.mxu1 %v12893_v49  ;;  %v12927_v38 = vld [vmem:[#allocation200_spill] sm:$0xff]  ;;  %v12928_v49 = vld [vmem:[#allocation201_spill] sm:$0xff] }
 0x748   :  { %3696 = vmatprep.subr.mxu0 %v12894_v33  ;;  %3767 = vmatprep.subr.mxu1 %v12895_v25  ;;  %v12929_v33 = vld [vmem:[#allocation202_spill] sm:$0xff]  ;;  %v12930_v25 = vld [vmem:[#allocation203_spill] sm:$0xff] }
 0x749   :  { %3697 = vmatpush2.msra.mxu0 %v12896_v44  ;;  %3768 = vmatpush2.msra.mxu1 %v12897_v12  ;;  %v12931_v44 = vld [vmem:[#allocation204_spill] sm:$0xff]  ;;  %v12932_v12 = vld [vmem:[#allocation205_spill] sm:$0xff] }
 0x74a   :  { %3698 = vmatprep.subr.mxu0 %v12898_v31  ;;  %3769 = vmatprep.subr.mxu1 %v12899_v24  ;;  %v12933_v31 = vld [vmem:[#allocation206_spill] sm:$0xff]  ;;  %v12934_v24 = vld [vmem:[#allocation207_spill] sm:$0xff] }
 0x74b   :  { %3699 = vmatpush2.msra.mxu0 %v12900_v42  ;;  %3770 = vmatpush2.msra.mxu1 %v12901_v27  ;;  %v12935_v42 = vld [vmem:[#allocation208_spill] sm:$0xff]  ;;  %v12936_v27 = vld [vmem:[#allocation209_spill] sm:$0xff] }
 0x74c   :  { %3700 = vmatprep.subr.mxu0 %v12902_v34  ;;  %3771 = vmatprep.subr.mxu1 %v12903_v32  ;;  %v12937_v34 = vld [vmem:[#allocation210_spill] sm:$0xff]  ;;  %v12938_v32 = vld [vmem:[#allocation211_spill] sm:$0xff] }
 0x74d   :  { %3701 = vmatpush2.msra.mxu0 %v12904_v37  ;;  %3772 = vmatpush2.msra.mxu1 %v12905_v50  ;;  %v12939_v37 = vld [vmem:[#allocation212_spill] sm:$0xff]  ;;  %v12940_v50 = vld [vmem:[#allocation213_spill] sm:$0xff] }
 0x74e   :  { %3702 = vmatprep.subr.mxu0 %v12906_v11  ;;  %3773 = vmatprep.subr.mxu1 %v12907_v47  ;;  %v12941_v11 = vld [vmem:[#allocation214_spill] sm:$0xff]  ;;  %v12942_v47 = vld [vmem:[#allocation215_spill] sm:$0xff] }
 0x74f   :  { %3703 = vmatpush2.msra.mxu0 %v12908_v7  ;;  %3774 = vmatpush2.msra.mxu1 %v12909_v1  ;;  %v12943_v7 = vld [vmem:[#allocation216_spill] sm:$0xff]  ;;  %v12944_v1 = vld [vmem:[#allocation217_spill] sm:$0xff] }
 0x750   :  { %3704 = vmatprep.subr.mxu0 %v12910_v2  ;;  %3775 = vmatprep.subr.mxu1 %v12911_v21  ;;  %v12945_v2 = vld [vmem:[#allocation218_spill] sm:$0xff]  ;;  %v12946_v21 = vld [vmem:[#allocation219_spill] sm:$0xff] }
 0x751   :  { %3705 = vmatpush2.msra.mxu0 %v12912_v30  ;;  %3776 = vmatpush2.msra.mxu1 %v12913_v36  ;;  %v12947_v30 = vld [vmem:[#allocation220_spill] sm:$0xff]  ;;  %v12948_v36 = vld [vmem:[#allocation221_spill] sm:$0xff] }
 0x752   :  { %3706 = vmatprep.subr.mxu0 %v12914_v9  ;;  %3777 = vmatprep.subr.mxu1 %v12915_v13  ;;  %v12949_v9 = vld [vmem:[#allocation222_spill] sm:$0xff]  ;;  %v12950_v13 = vld [vmem:[#allocation223_spill] sm:$0xff] }
 0x753   :  { %3707 = vmatpush2.msra.mxu0 %v12916_v0  ;;  %3778 = vmatpush2.msra.mxu1 %v12917_v55  ;;  %v12951_v0 = vld [vmem:[#allocation224_spill] sm:$0xff]  ;;  %v12952_v55 = vld [vmem:[#allocation225_spill] sm:$0xff] }
 0x754   :  { %3708 = vmatprep.subr.mxu0 %v12918_v57  ;;  %3779 = vmatprep.subr.mxu1 %v12919_v29  ;;  %v12953_v57 = vld [vmem:[#allocation226_spill] sm:$0xff]  ;;  %v12954_v29 = vld [vmem:[#allocation227_spill] sm:$0xff] }
 0x755   :  { %3709 = vmatpush2.msra.mxu0 %v12920_v43  ;;  %3780 = vmatpush2.msra.mxu1 %v12921_v16  ;;  %v12955_v43 = vld [vmem:[#allocation228_spill] sm:$0xff]  ;;  %v12957_v16 = vld [vmem:[#allocation230_spill] sm:$0xff] }
 0x756   :  { %3710 = vmatprep.subr.mxu0 %v12922_v40  ;;  %3781 = vmatprep.subr.mxu1 %v12923_v46  ;;  %v12958_v40 = vld [vmem:[#allocation231_spill] sm:$0xff]  ;;  %v12959_v46 = vld [vmem:[#allocation232_spill] sm:$0xff] }
 0x757   :  { %3711 = vmatpush2.msra.mxu0 %v12924_v59  ;;  %3782 = vmatpush2.msra.mxu1 %v12925_v56  ;;  %v12960_v59 = vld [vmem:[#allocation233_spill] sm:$0xff]  ;;  %v12961_v56 = vld [vmem:[#allocation234_spill] sm:$0xff] }
 0x758   :  { %3712 = vmatprep.subr.mxu0 %v12926_v18  ;;  %3783 = vmatprep.subr.mxu1 %v12927_v38  ;;  %v12962_v18 = vld [vmem:[#allocation235_spill] sm:$0xff]  ;;  %v12964_v38 = vld [vmem:[#allocation237_spill] sm:$0xff] }
 0x759   :  { %3713 = vmatpush2.msra.mxu0 %v12928_v49  ;;  %3784 = vmatpush2.msra.mxu1 %v12929_v33  ;;  %v12965_v49 = vld [vmem:[#allocation238_spill] sm:$0xff]  ;;  %v12966_v33 = vld [vmem:[#allocation239_spill] sm:$0xff] }
 0x75a   :  { %3714 = vmatprep.subr.mxu0 %v12930_v25  ;;  %3785 = vmatprep.subr.mxu1 %v12931_v44  ;;  %v12967_v25 = vld [vmem:[#allocation240_spill] sm:$0xff]  ;;  %v12968_v44 = vld [vmem:[#allocation241_spill] sm:$0xff] }
 0x75b   :  { %3715 = vmatpush2.msra.mxu0 %v12932_v12  ;;  %3786 = vmatpush2.msra.mxu1 %v12933_v31  ;;  %v10391_v12 = vld [vmem:[#allocation6 + $0x280] sm:$0xff]  ;;  %v10394_v31 = vld [vmem:[#allocation6 + $0x290] sm:$0xff] }
 0x75c   :  { %3716 = vmatprep.subr.mxu0 %v12934_v24  ;;  %3787 = vmatprep.subr.mxu1 %v12935_v42  ;;  %v10397_v24 = vld [vmem:[#allocation6 + $0x248] sm:$0xff]  ;;  %v10418_v42 = vld [vmem:[#allocation6 + $0x210] sm:$0xff] }
 0x75d   :  { %3717 = vmatpush2.msra.mxu0 %v12936_v27  ;;  %3788 = vmatpush2.msra.mxu1 %v12937_v34  ;;  %v10421_v27 = vld [vmem:[#allocation6 + $0x1c8] sm:$0xff]  ;;  %v10424_v34 = vld [vmem:[#allocation6 + $0x1d8] sm:$0xff] }
 0x75e   :  { %3718 = vmatprep.subr.mxu0 %v12938_v32  ;;  %3789 = vmatprep.subr.mxu1 %v12939_v37  ;;  %v10427_v32 = vld [vmem:[#allocation6 + $0x1c0] sm:$0xff]  ;;  %v10430_v37 = vld [vmem:[#allocation6 + $0x1d0] sm:$0xff] }
 0x75f   :  { %3719 = vmatpush2.msra.mxu0 %v12940_v50  ;;  %3790 = vmatpush2.msra.mxu1 %v12941_v11  ;;  %v10433_v50 = vld [vmem:[#allocation6 + $0x188] sm:$0xff]  ;;  %v10436_v11 = vld [vmem:[#allocation6 + $0x198] sm:$0xff] }
 0x760   :  { %3720 = vmatprep.subr.mxu0 %v12942_v47  ;;  %3791 = vmatprep.subr.mxu1 %v12943_v7  ;;  %v10439_v47 = vld [vmem:[#allocation6 + $0x180] sm:$0xff]  ;;  %v10442_v7 = vld [vmem:[#allocation6 + $0x190] sm:$0xff] }
 0x761   :  { %3721 = vmatpush2.msra.mxu0 %v12944_v1  ;;  %3792 = vmatpush2.msra.mxu1 %v12945_v2  ;;  %v10445_v1 = vld [vmem:[#allocation6 + $0x148] sm:$0xff]  ;;  %v10448_v2 = vld [vmem:[#allocation6 + $0x158] sm:$0xff] }
 0x762   :  { %3722 = vmatprep.subr.mxu0 %v12946_v21  ;;  %3793 = vmatprep.subr.mxu1 %v12947_v30  ;;  %v10451_v21 = vld [vmem:[#allocation6 + $0x140] sm:$0xff]  ;;  %v10454_v30 = vld [vmem:[#allocation6 + $0x150] sm:$0xff] }
 0x763   :  { %3723 = vmatpush2.msra.mxu0 %v9983_v58  ;;  %3794 = vmatpush2.msra.mxu1 %v12948_v36  ;;  %v12956_v58 = vld [vmem:[#allocation229_spill] sm:$0xff] }
 0x764   :  { %3724 = vmatprep.subr.mxu0 %v12949_v9  ;;  %3795 = vmatprep.subr.mxu1 %v12950_v13  ;;  %v10457_v36 = vld [vmem:[#allocation6 + $0x108] sm:$0xff]  ;;  %v10460_v9 = vld [vmem:[#allocation6 + $0x118] sm:$0xff]  ;;  %v10463_v13 = vld [vmem:[#allocation6 + $0x100] sm:$0xff] }
 0x765   :  { %3725 = vmatpush2.msra.mxu0 %v12951_v0  ;;  %3796 = vmatpush2.msra.mxu1 %v12952_v55  ;;  %12969 = vst [vmem:[#allocation245_spill] sm:$0xff] %v10460_v9  ;;  %12970 = vst [vmem:[#allocation246_spill] sm:$0xff] %v10463_v13  ;;  %v10466_v0 = vld [vmem:[#allocation6 + $0x110] sm:$0xff]  ;;  %v10469_v55 = vld [vmem:[#allocation6 + $0xc8] sm:$0xff] }
 0x766   :  { %3727 = vmatmul.mubr.f32.vlgmr.msra.gmra.mxu0 %v10193_v52  ;;  %3798 = vmatmul.mubr.f32.vlgmr.msra.gmra.mxu1 %v10193_v52  ;;  %v12963_v52 = vld [vmem:[#allocation236_spill] sm:$0xff]  ;;  %12971 = vst [vmem:[#allocation247_spill] sm:$0xff] %v10466_v0  ;;  %12972 = vst [vmem:[#allocation248_spill] sm:$0xff] %v10469_v55 }
 0x767   :  { %3860 = vmatprep.subr.mxu0 %v12953_v57  ;;  %3931 = vmatprep.subr.mxu1 %v12954_v29  ;;  %v10472_v57 = vld [vmem:[#allocation6 + $0xd8] sm:$0xff]  ;;  %v10475_v29 = vld [vmem:[#allocation6 + $0xc0] sm:$0xff] }
 0x768   :  { %3861 = vmatpush1.msra.mxu0 %v12955_v43  ;;  %3932 = vmatpush1.msra.mxu1 %v12956_v58  ;;  %12973 = vst [vmem:[#allocation249_spill] sm:$0xff] %v10472_v57  ;;  %12974 = vst [vmem:[#allocation250_spill] sm:$0xff] %v10475_v29  ;;  %v10478_v43 = vld [vmem:[#allocation6 + $0xd0] sm:$0xff]  ;;  %v10481_v58 = vld [vmem:[#allocation6 + $0x88] sm:$0xff] }
 0x769   :  { %3862 = vmatprep.subr.mxu0 %v12957_v16  ;;  %3933 = vmatprep.subr.mxu1 %v12958_v40  ;;  %12975 = vst [vmem:[#allocation251_spill] sm:$0xff] %v10478_v43  ;;  %12976 = vst [vmem:[#allocation252_spill] sm:$0xff] %v10481_v58  ;;  %v10484_v16 = vld [vmem:[#allocation6 + $0x98] sm:$0xff]  ;;  %v10487_v40 = vld [vmem:[#allocation6 + $0x80] sm:$0xff] }
 0x76a   :  { %3863 = vmatpush1.msra.mxu0 %v12959_v46  ;;  %3934 = vmatpush1.msra.mxu1 %v12960_v59  ;;  %12977 = vst [vmem:[#allocation253_spill] sm:$0xff] %v10484_v16  ;;  %12978 = vst [vmem:[#allocation254_spill] sm:$0xff] %v10487_v40  ;;  %v10490_v46 = vld [vmem:[#allocation6 + $0x90] sm:$0xff]  ;;  %v10493_v59 = vld [vmem:[#allocation6 + $0x48] sm:$0xff] }
 0x76b   :  { %3864 = vmatprep.subr.mxu0 %v12961_v56  ;;  %3935 = vmatprep.subr.mxu1 %v12962_v18  ;;  %12979 = vst [vmem:[#allocation255_spill] sm:$0xff] %v10490_v46  ;;  %12980 = vst [vmem:[#allocation52_spill] sm:$0xff] %v10493_v59  ;;  %v10496_v56 = vld [vmem:[#allocation6 + $0x58] sm:$0xff]  ;;  %v10499_v18 = vld [vmem:[#allocation6 + $0x40] sm:$0xff] }
 0x76c   :  { %3865 = vmatpush1.msra.mxu0 %v12963_v52  ;;  %3936 = vmatpush1.msra.mxu1 %v12964_v38  ;;  %12981 = vst [vmem:[#allocation37_spill] sm:$0xff] %v10496_v56  ;;  %12982 = vst [vmem:[#allocation54_spill] sm:$0xff] %v10499_v18  ;;  %v10502_v52 = vld [vmem:[#allocation6 + $0x50] sm:$0xff]  ;;  %v10505_v38 = vld [vmem:[#allocation6 + $0x8] sm:$0xff] }
 0x76d   :  { %3866 = vmatprep.subr.mxu0 %v12965_v49  ;;  %3937 = vmatprep.subr.mxu1 %v12966_v33  ;;  %12983 = vst [vmem:[#allocation39_spill] sm:$0xff] %v10502_v52  ;;  %12984 = vst [vmem:[#allocation76_spill] sm:$0xff] %v10505_v38  ;;  %v10508_v49 = vld [vmem:[#allocation6 + $0x18] sm:$0xff]  ;;  %v10511_v33 = vld [vmem:[#allocation6] sm:$0xff] }
 0x76e   :  { %3867 = vmatpush1.msra.mxu0 %v12967_v25  ;;  %3938 = vmatpush1.msra.mxu1 %v12968_v44  ;;  %12985 = vst [vmem:[#allocation65_spill] sm:$0xff] %v10508_v49  ;;  %12986 = vst [vmem:[#allocation77_spill] sm:$0xff] %v10511_v33  ;;  %v10514_v25 = vld [vmem:[#allocation6 + $0x10] sm:$0xff]  ;;  %v10517_v44 = vld [vmem:[#allocation6 + $0x7c8] sm:$0xff] }
 0x76f   :  { %3868 = vmatprep.subr.mxu0 %v10051_v22  ;;  %3939 = vmatprep.subr.mxu1 %v10054_v35  ;;  %v10400_v22 = vld [vmem:[#allocation6 + $0x258] sm:$0xff]  ;;  %v10415_v35 = vld [vmem:[#allocation6 + $0x200] sm:$0xff]  ;;  %12987 = vst [vmem:[#allocation67_spill] sm:$0xff] %v10514_v25  ;;  %12988 = vst [vmem:[#allocation84_spill] sm:$0xff] %v10517_v44 }
 0x770   :  { %3869 = vmatpush1.msra.mxu0 %v10057_v14  ;;  %3940 = vmatpush1.msra.mxu1 %v10060_v45  ;;  %v10403_v14 = vld [vmem:[#allocation6 + $0x240] sm:$0xff]  ;;  %v10412_v45 = vld [vmem:[#allocation6 + $0x218] sm:$0xff] }
 0x771   :  { %3870 = vmatprep.subr.mxu0 %v10063_v51  ;;  %3941 = vmatprep.subr.mxu1 %v10066_v41  ;;  %v10406_v51 = vld [vmem:[#allocation6 + $0x250] sm:$0xff]  ;;  %v10409_v41 = vld [vmem:[#allocation6 + $0x208] sm:$0xff] }
 0x772   :  { %3871 = vmatpush1.msra.mxu0 %v10391_v12  ;;  %3942 = vmatpush1.msra.mxu1 %v10394_v31 }
 0x773   :  { %3872 = vmatprep.subr.mxu0 %v10397_v24  ;;  %3943 = vmatprep.subr.mxu1 %v10400_v22 }
 0x774   :  { %3873 = vmatpush1.msra.mxu0 %v10403_v14  ;;  %3944 = vmatpush1.msra.mxu1 %v10406_v51 }
 0x775   :  { %3874 = vmatprep.subr.mxu0 %v10409_v41  ;;  %3945 = vmatprep.subr.mxu1 %v10412_v45 }
 0x776   :  { %3875 = vmatpush1.msra.mxu0 %v10415_v35  ;;  %3946 = vmatpush1.msra.mxu1 %v10418_v42 }
 0x777   :  { %3876 = vmatprep.subr.mxu0 %v10421_v27  ;;  %3947 = vmatprep.subr.mxu1 %v10424_v34 }
 0x778   :  { %3877 = vmatpush1.msra.mxu0 %v10427_v32  ;;  %3948 = vmatpush1.msra.mxu1 %v10430_v37 }
 0x779   :  { %3878 = vmatprep.subr.mxu0 %v10433_v50  ;;  %3949 = vmatprep.subr.mxu1 %v10436_v11 }
 0x77a   :  { %3879 = vmatpush1.msra.mxu0 %v10439_v47  ;;  %3950 = vmatpush1.msra.mxu1 %v10442_v7 }
 0x77b   :  { %3880 = vmatprep.subr.mxu0 %v10445_v1  ;;  %3951 = vmatprep.subr.mxu1 %v10448_v2 }
 0x77c   :  { %3881 = vmatpush1.msra.mxu0 %v10451_v21  ;;  %3952 = vmatpush1.msra.mxu1 %v10454_v30 }
 0x77d   :  { %3882 = vmatprep.subr.mxu0 %v10457_v36  ;;  %3953 = vmatprep.subr.mxu1 %v10460_v9 }
 0x77e   :  { %3883 = vmatpush1.msra.mxu0 %v10463_v13  ;;  %3954 = vmatpush1.msra.mxu1 %v10466_v0 }
 0x77f   :  { %3884 = vmatprep.subr.mxu0 %v10469_v55  ;;  %3955 = vmatprep.subr.mxu1 %v10472_v57 }
 0x780   :  { %3885 = vmatpush1.msra.mxu0 %v10475_v29  ;;  %3956 = vmatpush1.msra.mxu1 %v10478_v43 }
 0x781   :  { %3886 = vmatprep.subr.mxu0 %v10481_v58  ;;  %3957 = vmatprep.subr.mxu1 %v10484_v16  ;;  %v13056_v16 = vld [vmem:[#allocation46_spill] sm:$0xff] }
 0x782   :  { %3887 = vmatpush1.msra.mxu0 %v10487_v40  ;;  %3958 = vmatpush1.msra.mxu1 %v10490_v46  ;;  %v13055_v46 = vld [vmem:[#allocation29_spill] sm:$0xff] }
 0x783   :  { %3888 = vmatprep.subr.mxu0 %v10493_v59  ;;  %3959 = vmatprep.subr.mxu1 %v10496_v56 }
 0x784   :  { %3889 = vmatpush1.msra.mxu0 %v10499_v18  ;;  %3960 = vmatpush1.msra.mxu1 %v10502_v52  ;;  %v10520_v52 = vld [vmem:[#allocation6 + $0x7d8] sm:$0xff] }
 0x785   :  { %3890 = vmatprep.subr.mxu0 %v10505_v38  ;;  %3961 = vmatprep.subr.mxu1 %v10508_v49  ;;  %12989 = vst [vmem:[#allocation85_spill] sm:$0xff] %v10520_v52  ;;  %v10523_v38 = vld [vmem:[#allocation6 + $0x7c0] sm:$0xff]  ;;  %v10526_v49 = vld [vmem:[#allocation6 + $0x7d0] sm:$0xff] }
 0x786   :  { %3891 = vmatpush1.msra.mxu0 %v10511_v33  ;;  %3962 = vmatpush1.msra.mxu1 %v10514_v25  ;;  %12990 = vst [vmem:[#allocation86_spill] sm:$0xff] %v10523_v38  ;;  %12991 = vst [vmem:[#allocation87_spill] sm:$0xff] %v10526_v49  ;;  %v10529_v33 = vld [vmem:[#allocation6 + $0x788] sm:$0xff]  ;;  %v10532_v25 = vld [vmem:[#allocation6 + $0x798] sm:$0xff] }
 0x787   :  { %3892 = vmatprep.subr.mxu0 %v10517_v44  ;;  %3963 = vmatprep.subr.mxu1 %v10520_v52  ;;  %12992 = vst [vmem:[#allocation88_spill] sm:$0xff] %v10529_v33  ;;  %12993 = vst [vmem:[#allocation89_spill] sm:$0xff] %v10532_v25  ;;  %v10535_v44 = vld [vmem:[#allocation6 + $0x780] sm:$0xff]  ;;  %v10538_v52 = vld [vmem:[#allocation6 + $0x790] sm:$0xff] }
 0x788   :  { %3893 = vmatpush2.msra.mxu0 %v10523_v38  ;;  %3964 = vmatpush2.msra.mxu1 %v10526_v49  ;;  %12994 = vst [vmem:[#allocation90_spill] sm:$0xff] %v10535_v44  ;;  %12995 = vst [vmem:[#allocation91_spill] sm:$0xff] %v10538_v52  ;;  %v10541_v38 = vld [vmem:[#allocation6 + $0x748] sm:$0xff]  ;;  %v10544_v49 = vld [vmem:[#allocation6 + $0x758] sm:$0xff] }
 0x789   :  { %3894 = vmatprep.subr.mxu0 %v10529_v33  ;;  %3965 = vmatprep.subr.mxu1 %v10532_v25  ;;  %12996 = vst [vmem:[#allocation92_spill] sm:$0xff] %v10541_v38  ;;  %12997 = vst [vmem:[#allocation93_spill] sm:$0xff] %v10544_v49  ;;  %v10547_v33 = vld [vmem:[#allocation6 + $0x740] sm:$0xff]  ;;  %v10550_v25 = vld [vmem:[#allocation6 + $0x750] sm:$0xff] }
 0x78a   :  { %3895 = vmatpush2.msra.mxu0 %v10535_v44  ;;  %3966 = vmatpush2.msra.mxu1 %v10538_v52  ;;  %12998 = vst [vmem:[#allocation94_spill] sm:$0xff] %v10547_v33  ;;  %12999 = vst [vmem:[#allocation95_spill] sm:$0xff] %v10550_v25  ;;  %v10553_v44 = vld [vmem:[#allocation6 + $0x708] sm:$0xff]  ;;  %v10556_v52 = vld [vmem:[#allocation6 + $0x718] sm:$0xff] }
 0x78b   :  { %3896 = vmatprep.subr.mxu0 %v10541_v38  ;;  %3967 = vmatprep.subr.mxu1 %v10544_v49  ;;  %13000 = vst [vmem:[#allocation96_spill] sm:$0xff] %v10553_v44  ;;  %13001 = vst [vmem:[#allocation97_spill] sm:$0xff] %v10556_v52  ;;  %v10559_v38 = vld [vmem:[#allocation6 + $0x700] sm:$0xff]  ;;  %v10562_v49 = vld [vmem:[#allocation6 + $0x710] sm:$0xff] }
 0x78c   :  { %3897 = vmatpush2.msra.mxu0 %v10547_v33  ;;  %3968 = vmatpush2.msra.mxu1 %v10550_v25  ;;  %13002 = vst [vmem:[#allocation98_spill] sm:$0xff] %v10559_v38  ;;  %13003 = vst [vmem:[#allocation99_spill] sm:$0xff] %v10562_v49  ;;  %v10565_v33 = vld [vmem:[#allocation6 + $0x6c8] sm:$0xff]  ;;  %v10568_v25 = vld [vmem:[#allocation6 + $0x6d8] sm:$0xff] }
 0x78d   :  { %3898 = vmatprep.subr.mxu0 %v10553_v44  ;;  %3969 = vmatprep.subr.mxu1 %v10556_v52  ;;  %13004 = vst [vmem:[#allocation100_spill] sm:$0xff] %v10565_v33  ;;  %13005 = vst [vmem:[#allocation101_spill] sm:$0xff] %v10568_v25  ;;  %v10571_v44 = vld [vmem:[#allocation6 + $0x6c0] sm:$0xff]  ;;  %v10574_v52 = vld [vmem:[#allocation6 + $0x6d0] sm:$0xff] }
 0x78e   :  { %3899 = vmatpush2.msra.mxu0 %v10559_v38  ;;  %3970 = vmatpush2.msra.mxu1 %v10562_v49  ;;  %13006 = vst [vmem:[#allocation102_spill] sm:$0xff] %v10571_v44  ;;  %13007 = vst [vmem:[#allocation103_spill] sm:$0xff] %v10574_v52  ;;  %v10577_v38 = vld [vmem:[#allocation6 + $0x688] sm:$0xff]  ;;  %v10580_v49 = vld [vmem:[#allocation6 + $0x698] sm:$0xff] }
 0x78f   :  { %3900 = vmatprep.subr.mxu0 %v10565_v33  ;;  %3971 = vmatprep.subr.mxu1 %v10568_v25  ;;  %13008 = vst [vmem:[#allocation104_spill] sm:$0xff] %v10577_v38  ;;  %13009 = vst [vmem:[#allocation105_spill] sm:$0xff] %v10580_v49  ;;  %v10583_v33 = vld [vmem:[#allocation6 + $0x680] sm:$0xff]  ;;  %v10586_v25 = vld [vmem:[#allocation6 + $0x690] sm:$0xff] }
 0x790   :  { %3901 = vmatpush2.msra.mxu0 %v10571_v44  ;;  %3972 = vmatpush2.msra.mxu1 %v10574_v52  ;;  %13010 = vst [vmem:[#allocation106_spill] sm:$0xff] %v10583_v33  ;;  %13011 = vst [vmem:[#allocation107_spill] sm:$0xff] %v10586_v25  ;;  %v10589_v44 = vld [vmem:[#allocation6 + $0x648] sm:$0xff]  ;;  %v10592_v52 = vld [vmem:[#allocation6 + $0x658] sm:$0xff] }
 0x791   :  { %3902 = vmatprep.subr.mxu0 %v10577_v38  ;;  %3973 = vmatprep.subr.mxu1 %v10580_v49  ;;  %13012 = vst [vmem:[#allocation108_spill] sm:$0xff] %v10589_v44  ;;  %13013 = vst [vmem:[#allocation109_spill] sm:$0xff] %v10592_v52  ;;  %v10595_v38 = vld [vmem:[#allocation6 + $0x640] sm:$0xff]  ;;  %v10598_v49 = vld [vmem:[#allocation6 + $0x650] sm:$0xff] }
 0x792   :  { %3903 = vmatpush2.msra.mxu0 %v10583_v33  ;;  %3974 = vmatpush2.msra.mxu1 %v10586_v25  ;;  %13014 = vst [vmem:[#allocation110_spill] sm:$0xff] %v10595_v38  ;;  %13015 = vst [vmem:[#allocation111_spill] sm:$0xff] %v10598_v49  ;;  %v10601_v33 = vld [vmem:[#allocation6 + $0x608] sm:$0xff]  ;;  %v10604_v25 = vld [vmem:[#allocation6 + $0x618] sm:$0xff] }
 0x793   :  { %3904 = vmatprep.subr.mxu0 %v10589_v44  ;;  %3975 = vmatprep.subr.mxu1 %v10592_v52  ;;  %13016 = vst [vmem:[#allocation112_spill] sm:$0xff] %v10601_v33  ;;  %13017 = vst [vmem:[#allocation113_spill] sm:$0xff] %v10604_v25  ;;  %v10607_v44 = vld [vmem:[#allocation6 + $0x600] sm:$0xff]  ;;  %v10610_v52 = vld [vmem:[#allocation6 + $0x610] sm:$0xff] }
 0x794   :  { %3905 = vmatpush2.msra.mxu0 %v10595_v38  ;;  %3976 = vmatpush2.msra.mxu1 %v10598_v49  ;;  %13018 = vst [vmem:[#allocation114_spill] sm:$0xff] %v10607_v44  ;;  %13019 = vst [vmem:[#allocation115_spill] sm:$0xff] %v10610_v52  ;;  %v10613_v38 = vld [vmem:[#allocation6 + $0x5c8] sm:$0xff]  ;;  %v10616_v49 = vld [vmem:[#allocation6 + $0x5d8] sm:$0xff] }
 0x795   :  { %3906 = vmatprep.subr.mxu0 %v10601_v33  ;;  %3977 = vmatprep.subr.mxu1 %v10604_v25  ;;  %13020 = vst [vmem:[#allocation116_spill] sm:$0xff] %v10613_v38  ;;  %13021 = vst [vmem:[#allocation117_spill] sm:$0xff] %v10616_v49  ;;  %v10619_v33 = vld [vmem:[#allocation6 + $0x5c0] sm:$0xff]  ;;  %v10622_v25 = vld [vmem:[#allocation6 + $0x5d0] sm:$0xff] }
 0x796   :  { %3907 = vmatpush2.msra.mxu0 %v10607_v44  ;;  %3978 = vmatpush2.msra.mxu1 %v10610_v52  ;;  %13022 = vst [vmem:[#allocation118_spill] sm:$0xff] %v10619_v33  ;;  %13023 = vst [vmem:[#allocation119_spill] sm:$0xff] %v10622_v25  ;;  %v10625_v44 = vld [vmem:[#allocation6 + $0x588] sm:$0xff]  ;;  %v10628_v52 = vld [vmem:[#allocation6 + $0x598] sm:$0xff] }
 0x797   :  { %3908 = vmatprep.subr.mxu0 %v10613_v38  ;;  %3979 = vmatprep.subr.mxu1 %v10616_v49  ;;  %13024 = vst [vmem:[#allocation120_spill] sm:$0xff] %v10625_v44  ;;  %13025 = vst [vmem:[#allocation121_spill] sm:$0xff] %v10628_v52  ;;  %v10631_v38 = vld [vmem:[#allocation6 + $0x580] sm:$0xff]  ;;  %v10634_v49 = vld [vmem:[#allocation6 + $0x590] sm:$0xff] }
 0x798   :  { %3909 = vmatpush2.msra.mxu0 %v10619_v33  ;;  %3980 = vmatpush2.msra.mxu1 %v10622_v25  ;;  %13026 = vst [vmem:[#allocation122_spill] sm:$0xff] %v10631_v38  ;;  %13027 = vst [vmem:[#allocation123_spill] sm:$0xff] %v10634_v49  ;;  %v10637_v33 = vld [vmem:[#allocation6 + $0x548] sm:$0xff]  ;;  %v10640_v25 = vld [vmem:[#allocation6 + $0x558] sm:$0xff] }
 0x799   :  { %3910 = vmatprep.subr.mxu0 %v10625_v44  ;;  %3981 = vmatprep.subr.mxu1 %v10628_v52  ;;  %13028 = vst [vmem:[#allocation124_spill] sm:$0xff] %v10637_v33  ;;  %13029 = vst [vmem:[#allocation125_spill] sm:$0xff] %v10640_v25  ;;  %v10643_v44 = vld [vmem:[#allocation6 + $0x540] sm:$0xff]  ;;  %v10646_v52 = vld [vmem:[#allocation6 + $0x550] sm:$0xff] }
 0x79a   :  { %3911 = vmatpush2.msra.mxu0 %v10631_v38  ;;  %3982 = vmatpush2.msra.mxu1 %v10634_v49  ;;  %13030 = vst [vmem:[#allocation126_spill] sm:$0xff] %v10643_v44  ;;  %13031 = vst [vmem:[#allocation127_spill] sm:$0xff] %v10646_v52  ;;  %v10649_v38 = vld [vmem:[#allocation6 + $0x508] sm:$0xff]  ;;  %v10652_v49 = vld [vmem:[#allocation6 + $0x518] sm:$0xff] }
 0x79b   :  { %3912 = vmatprep.subr.mxu0 %v10637_v33  ;;  %3983 = vmatprep.subr.mxu1 %v10640_v25  ;;  %13032 = vst [vmem:[#allocation128_spill] sm:$0xff] %v10649_v38  ;;  %13033 = vst [vmem:[#allocation129_spill] sm:$0xff] %v10652_v49  ;;  %v10655_v33 = vld [vmem:[#allocation6 + $0x500] sm:$0xff]  ;;  %v10658_v25 = vld [vmem:[#allocation6 + $0x510] sm:$0xff] }
 0x79c   :  { %3913 = vmatpush2.msra.mxu0 %v10643_v44  ;;  %3984 = vmatpush2.msra.mxu1 %v10646_v52  ;;  %13034 = vst [vmem:[#allocation130_spill] sm:$0xff] %v10655_v33  ;;  %13035 = vst [vmem:[#allocation131_spill] sm:$0xff] %v10658_v25  ;;  %v10661_v44 = vld [vmem:[#allocation6 + $0x4c8] sm:$0xff]  ;;  %v10664_v52 = vld [vmem:[#allocation6 + $0x4d8] sm:$0xff] }
 0x79d   :  { %3914 = vmatprep.subr.mxu0 %v10649_v38  ;;  %3985 = vmatprep.subr.mxu1 %v10652_v49  ;;  %13036 = vst [vmem:[#allocation132_spill] sm:$0xff] %v10661_v44  ;;  %13037 = vst [vmem:[#allocation133_spill] sm:$0xff] %v10664_v52  ;;  %v10667_v38 = vld [vmem:[#allocation6 + $0x4c0] sm:$0xff]  ;;  %v10670_v49 = vld [vmem:[#allocation6 + $0x4d0] sm:$0xff] }
 0x79e   :  { %3915 = vmatpush2.msra.mxu0 %v10655_v33  ;;  %3986 = vmatpush2.msra.mxu1 %v10658_v25  ;;  %13038 = vst [vmem:[#allocation134_spill] sm:$0xff] %v10667_v38  ;;  %13039 = vst [vmem:[#allocation135_spill] sm:$0xff] %v10670_v49  ;;  %v10673_v33 = vld [vmem:[#allocation6 + $0x488] sm:$0xff]  ;;  %v10676_v25 = vld [vmem:[#allocation6 + $0x498] sm:$0xff] }
 0x79f   :  { %3916 = vmatprep.subr.mxu0 %v10661_v44  ;;  %3987 = vmatprep.subr.mxu1 %v10664_v52  ;;  %13040 = vst [vmem:[#allocation136_spill] sm:$0xff] %v10673_v33  ;;  %13041 = vst [vmem:[#allocation28_spill] sm:$0xff] %v10676_v25  ;;  %v10679_v44 = vld [vmem:[#allocation6 + $0x480] sm:$0xff]  ;;  %v10682_v52 = vld [vmem:[#allocation6 + $0x490] sm:$0xff] }
 0x7a0   :  { %3917 = vmatpush2.msra.mxu0 %v10667_v38  ;;  %3988 = vmatpush2.msra.mxu1 %v10670_v49  ;;  %13042 = vst [vmem:[#allocation20_spill] sm:$0xff] %v10679_v44  ;;  %13043 = vst [vmem:[#allocation137_spill] sm:$0xff] %v10682_v52  ;;  %v10685_v38 = vld [vmem:[#allocation6 + $0x448] sm:$0xff]  ;;  %v10688_v49 = vld [vmem:[#allocation6 + $0x458] sm:$0xff] }
 0x7a1   :  { %3918 = vmatprep.subr.mxu0 %v10673_v33  ;;  %3989 = vmatprep.subr.mxu1 %v10676_v25  ;;  %13044 = vst [vmem:[#allocation138_spill] sm:$0xff] %v10685_v38  ;;  %13045 = vst [vmem:[#allocation139_spill] sm:$0xff] %v10688_v49  ;;  %v10691_v33 = vld [vmem:[#allocation6 + $0x440] sm:$0xff]  ;;  %v10694_v25 = vld [vmem:[#allocation6 + $0x450] sm:$0xff] }
 0x7a2   :  { %3919 = vmatpush2.msra.mxu0 %v10679_v44  ;;  %3990 = vmatpush2.msra.mxu1 %v10682_v52  ;;  %13046 = vst [vmem:[#allocation140_spill] sm:$0xff] %v10691_v33  ;;  %13047 = vst [vmem:[#allocation30_spill] sm:$0xff] %v10694_v25  ;;  %v10697_v44 = vld [vmem:[#allocation6 + $0x408] sm:$0xff]  ;;  %v10700_v52 = vld [vmem:[#allocation6 + $0x418] sm:$0xff] }
 0x7a3   :  { %3920 = vmatprep.subr.mxu0 %v10685_v38  ;;  %3991 = vmatprep.subr.mxu1 %v10688_v49  ;;  %13048 = vst [vmem:[#allocation21_spill] sm:$0xff] %v10697_v44  ;;  %13049 = vst [vmem:[#allocation141_spill] sm:$0xff] %v10700_v52  ;;  %v10703_v38 = vld [vmem:[#allocation6 + $0x400] sm:$0xff]  ;;  %v10706_v49 = vld [vmem:[#allocation6 + $0x410] sm:$0xff] }
 0x7a4   :  { %3921 = vmatpush2.msra.mxu0 %v10691_v33  ;;  %3992 = vmatpush2.msra.mxu1 %v10694_v25  ;;  %13050 = vst [vmem:[#allocation142_spill] sm:$0xff] %v10703_v38  ;;  %13051 = vst [vmem:[#allocation143_spill] sm:$0xff] %v10706_v49  ;;  %v10709_v33 = vld [vmem:[#allocation6 + $0x3e8] sm:$0xff]  ;;  %v10712_v25 = vld [vmem:[#allocation6 + $0x3f8] sm:$0xff] }
 0x7a5   :  { %3922 = vmatprep.subr.mxu0 %v10697_v44  ;;  %3993 = vmatprep.subr.mxu1 %v10700_v52  ;;  %13052 = vst [vmem:[#allocation144_spill] sm:$0xff] %v10709_v33  ;;  %13053 = vst [vmem:[#allocation145_spill] sm:$0xff] %v10712_v25  ;;  %v13054_v52 = vld [vmem:[#allocation44_spill] sm:$0xff] }
 0x7a6   :  { %3923 = vmatpush2.msra.mxu0 %v10703_v38  ;;  %3994 = vmatpush2.msra.mxu1 %v10706_v49  ;;  %v13057_v49 = vld [vmem:[#allocation31_spill] sm:$0xff] }
 0x7a7   :  { %4002 = vmatprep.subr.mxu0 %v10709_v33  ;;  %4073 = vmatprep.subr.mxu1 %v10712_v25 }
 0x7e5   :  { %v3586_v44 = vpop.f32.mrf.mxu0  ;;  %v3657_v18 = vpop.f32.mrf.mxu1 }
 0x7e6   :  { %v3804_v59 = vadd.f32 %v3586_v44, %v13054_v52  ;;  %v3806_v40 = vadd.f32 %v3657_v18, %v13055_v46 }
 0x7e7   :  { %v3588_v56 = vpop.f32.mrf.mxu0  ;;  %v3659_v38 = vpop.f32.mrf.mxu1 }
 0x7e8   :  { %v3805_v58 = vadd.f32 %v3588_v56, %v13056_v16  ;;  %v5628_v43 = vmul.f32 -1.442695, %v3804_v59  ;;  %v3807_v29 = vadd.f32 %v3659_v38, %v13057_v49  ;;  %v5630_v57 = vmul.f32 -1.442695, %v3806_v40  ;;  %v13058_v56 = vld [vmem:[#allocation72_spill] sm:$0xff]  ;;  %v13060_v38 = vld [vmem:[#allocation73_spill] sm:$0xff] }
 0x7ea   :  { %v5629_v55 = vmul.f32 -1.442695, %v3805_v58  ;;  %6193 = vpow2.f32 %v5628_v43  ;;  %v5631_v33 = vmul.f32 -1.442695, %v3807_v29  ;;  %v13059_v58 = vld [vmem:[#allocation57_spill] sm:$0xff] }
 0x7eb   :  { %6195 = vpow2.f32 %v5630_v57 }
 0x7ec   :  { %6197 = vpow2.f32 %v5629_v55 }
 0x7ed   :  { %6199 = vpow2.f32 %v5631_v33  ;;  %v13061_v33 = vld [vmem:[#allocation59_spill] sm:$0xff] }
 0x7f7   :  { %v6194_v25 = vpop.eup %6193 }
 0x7f8   :  { %v6196_v0 = vpop.eup %6195  ;;  %v3818_v9 = vadd.f32 1.0, %v6194_v25 }
 0x7f9   :  { %v6198_v13 = vpop.eup %6197  ;;  %v3830_v44 = vadd.f32 1.0, %v6196_v0 }
 0x7fa   :  { %v6200_v52 = vpop.eup %6199  ;;  %v3819_v46 = vadd.f32 1.0, %v6198_v13  ;;  %6201 = vrcp.f32 %v3818_v9 }
 0x7fb   :  { %v3831_v18 = vadd.f32 1.0, %v6200_v52  ;;  %6203 = vrcp.f32 %v3830_v44 }
 0x7fc   :  { %6205 = vrcp.f32 %v3819_v46 }
 0x807   :  { %v6202_v13 = vpop.eup %6201 }
 0x808   :  { %v6204_v0 = vpop.eup %6203 }
 0x809   :  { %v6206_v52 = vpop.eup %6205  ;;  %v3850_v46 = vmul.f32 %v6204_v0, %v10186_v28  ;;  %v10808_v0 = vld [vmem:[#allocation6 + $0x178] sm:$0xff] }
 0x826   :  { %v3728_v16 = vpop.f32.mrf.mxu0  ;;  %v3799_v59 = vpop.f32.mrf.mxu1 }
 0x827   :  { %v3808_v40 = vadd.f32 %v3728_v16, %v13058_v56  ;;  %v3810_v43 = vadd.f32 %v3799_v59, %v13059_v58 }
 0x828   :  { %v3730_v57 = vpop.f32.mrf.mxu0  ;;  %v3801_v55 = vpop.f32.mrf.mxu1 }
 0x829   :  { %6207 = vtanh.f32 %v3808_v40  ;;  %v5632_v29 = vmul.f32 -1.442695, %v3810_v43  ;;  %v3809_v49 = vadd.f32 %v3730_v57, %v13060_v38  ;;  %v3811_v25 = vadd.f32 %v3801_v55, %v13061_v33 }
 0x82a   :  { %6209 = vrcp.f32 %v3831_v18 }
 0x82b   :  { %6211 = vpow2.f32 %v5632_v29  ;;  %v5633_v9 = vmul.f32 -1.442695, %v3811_v25 }
 0x82c   :  { %6213 = vtanh.f32 %v3809_v49 }
 0x82d   :  { %6215 = vpow2.f32 %v5633_v9 }
 0x836   :  { %v6208_v44 = vpop.eup %6207 }
 0x837   :  { %v6210_v16 = vpop.eup %6209  ;;  %v3852_v59 = vmul.f32 %v6208_v44, %v6202_v13  ;;  %v10814_v44 = vld [vmem:[#allocation6 + $0x170] sm:$0xff] }
 0x838   :  { %v6212_v56 = vpop.eup %6211  ;;  %v3851_v18 = vmul.f32 %v6210_v16, %v10190_v6  ;;  %v13062_v6 = vld [vmem:[#allocation242_spill] sm:$0xff]  ;;  %v10817_v16 = vld [vmem:[#allocation6 + $0x128] sm:$0xff] }
 0x839   :  { %v6214_v40 = vpop.eup %6213  ;;  %v10724_v58 = vadd.f32 %v3852_v59, %v3850_v46  ;;  %v3844_v43 = vadd.f32 1.0, %v6212_v56  ;;  %v10820_v46 = vld [vmem:[#allocation6 + $0x138] sm:$0xff]  ;;  %v10823_v59 = vld [vmem:[#allocation6 + $0x120] sm:$0xff]  ;;  %v10826_v56 = vld [vmem:[#allocation6 + $0x130] sm:$0xff] }
 0x83a   :  { %v6216_v57 = vpop.eup %6215  ;;  %v3853_v55 = vmul.f32 %v6214_v40, %v6206_v52  ;;  %v10811_v52 = vld [vmem:[#allocation6 + $0x160] sm:$0xff]  ;;  %v10829_v40 = vld [vmem:[#allocation6 + $0xe8] sm:$0xff] }
 0x83b   :  { %6217 = vtanh.f32 %v10724_v58  ;;  %v3845_v29 = vadd.f32 1.0, %v6216_v57  ;;  %v10835_v57 = vld [vmem:[#allocation6 + $0xe0] sm:$0xff] }
 0x83c   :  { %6219 = vrcp.f32 %v3844_v43  ;;  %v10728_v38 = vadd.f32 %v3853_v55, %v3851_v18  ;;  %v10832_v43 = vld [vmem:[#allocation6 + $0xf8] sm:$0xff]  ;;  %v10838_v18 = vld [vmem:[#allocation6 + $0xf0] sm:$0xff]  ;;  %v10841_v55 = vld [vmem:[#allocation6 + $0xa8] sm:$0xff] }
 0x83d   :  { %6221 = vrcp.f32 %v3845_v29  ;;  %v10844_v29 = vld [vmem:[#allocation6 + $0xb8] sm:$0xff] }
 0x83e   :  { %6223 = vtanh.f32 %v10728_v38 }
 0x848   :  { %v6218_v28 = vpop.eup %6217 }
 0x849   :  { %v6220_v49 = vpop.eup %6219 }
 0x84a   :  { %v6222_v33 = vpop.eup %6221  ;;  %v10731_v13 = vmul.f32 %v6220_v49, %v6218_v28  ;;  %v10847_v28 = vld [vmem:[#allocation6 + $0xa0] sm:$0xff]  ;;  %v10850_v49 = vld [vmem:[#allocation6 + $0xb0] sm:$0xff] }
 0x84b   :  { %v6224_v25 = vpop.eup %6223 }
 0x84c   :  { %v3859_v9 = vmul.f32 %v6224_v25, %v6222_v33  ;;  %v10853_v33 = vld [vmem:[#allocation6 + $0x68] sm:$0xff]  ;;  %v10856_v25 = vld [vmem:[#allocation6 + $0x78] sm:$0xff] }
 0x84d   :  { %13065 = vst [vmem:[#allocation146_spill] sm:$0xff] %v10853_v33  ;;  %13066 = vst [vmem:[#allocation80_spill] sm:$0xff] %v10856_v25 }
 0x84e   :  { %3924 = vmatprep.mubr.f32.mxu0 %v3859_v9  ;;  %3995 = vmatprep.mubr.f32.mxu1 %v3859_v9 }
 0x84f   :  { %3925 = vmatmul.mubr.f32.vlgmr.msra.gmra.mxu0 %v10731_v13  ;;  %3996 = vmatmul.mubr.f32.vlgmr.msra.gmra.mxu1 %v10731_v13 }
 0x850   :  { %4003 = vmatpush1.msra.mxu0 %v10197_v20  ;;  %4074 = vmatpush1.msra.mxu1 %v10200_v60  ;;  %v13063_v20 = vld [vmem:[#allocation243_spill] sm:$0xff]  ;;  %v13064_v60 = vld [vmem:[#allocation244_spill] sm:$0xff] }
 0x851   :  { %4004 = vmatprep.subr.mxu0 %v10203_v4  ;;  %4066 = vmatprep.mubr.f32.mxu0 %v3859_v9  ;;  %v10757_v4 = vld [vmem:[#allocation6 + $0x268] sm:$0xff] }
 0x852   :  { %4075 = vmatprep.subr.mxu1 %v10206_v3  ;;  %4137 = vmatprep.mubr.f32.mxu1 %v3859_v9  ;;  %v10760_v3 = vld [vmem:[#allocation6 + $0x278] sm:$0xff]  ;;  %v10859_v9 = vld [vmem:[#allocation6 + $0x60] sm:$0xff] }
 0x853   :  { %4005 = vmatpush1.msra.mxu0 %v10209_v39  ;;  %4076 = vmatpush1.msra.mxu1 %v10212_v8  ;;  %v10763_v39 = vld [vmem:[#allocation6 + $0x260] sm:$0xff]  ;;  %v10766_v8 = vld [vmem:[#allocation6 + $0x270] sm:$0xff]  ;;  %13067 = vst [vmem:[#allocation81_spill] sm:$0xff] %v10859_v9 }
 0x854   :  { %4006 = vmatprep.subr.mxu0 %v10215_v10  ;;  %4077 = vmatprep.subr.mxu1 %v10218_v17  ;;  %v10769_v10 = vld [vmem:[#allocation6 + $0x228] sm:$0xff]  ;;  %v10772_v17 = vld [vmem:[#allocation6 + $0x238] sm:$0xff] }
 0x855   :  { %4007 = vmatpush1.msra.mxu0 %v10221_v15  ;;  %4078 = vmatpush1.msra.mxu1 %v10224_v19  ;;  %v10775_v15 = vld [vmem:[#allocation6 + $0x220] sm:$0xff]  ;;  %v10778_v19 = vld [vmem:[#allocation6 + $0x230] sm:$0xff] }
 0x856   :  { %4008 = vmatprep.subr.mxu0 %v10227_v23  ;;  %4079 = vmatprep.subr.mxu1 %v10230_v48  ;;  %v10781_v23 = vld [vmem:[#allocation6 + $0x1e8] sm:$0xff]  ;;  %v10784_v48 = vld [vmem:[#allocation6 + $0x1f8] sm:$0xff] }
 0x857   :  { %4009 = vmatpush1.msra.mxu0 %v10233_v62  ;;  %4080 = vmatpush1.msra.mxu1 %v13062_v6  ;;  %v10787_v62 = vld [vmem:[#allocation6 + $0x1e0] sm:$0xff]  ;;  %v10862_v6 = vld [vmem:[#allocation6 + $0x70] sm:$0xff] }
 0x858   :  { %4010 = vmatprep.subr.mxu0 %v13063_v20  ;;  %4081 = vmatprep.subr.mxu1 %v13064_v60  ;;  %13068 = vst [vmem:[#allocation56_spill] sm:$0xff] %v10862_v6  ;;  %v10865_v20 = vld [vmem:[#allocation6 + $0x28] sm:$0xff]  ;;  %v10868_v60 = vld [vmem:[#allocation6 + $0x38] sm:$0xff] }
 0x859   :  { %4011 = vmatpush1.msra.mxu0 %v10245_v63  ;;  %4082 = vmatpush1.msra.mxu1 %v10248_v54  ;;  %v10799_v63 = vld [vmem:[#allocation6 + $0x1a0] sm:$0xff]  ;;  %v10802_v54 = vld [vmem:[#allocation6 + $0x1b0] sm:$0xff]  ;;  %13069 = vst [vmem:[#allocation41_spill] sm:$0xff] %v10865_v20  ;;  %13070 = vst [vmem:[#allocation58_spill] sm:$0xff] %v10868_v60 }
 0x85a   :  { %4012 = vmatprep.subr.mxu0 %v10251_v53  ;;  %4083 = vmatprep.subr.mxu1 %v10254_v5  ;;  %v10790_v5 = vld [vmem:[#allocation6 + $0x1f0] sm:$0xff]  ;;  %v10805_v53 = vld [vmem:[#allocation6 + $0x168] sm:$0xff] }
 0x85b   :  { %4013 = vmatpush1.msra.mxu0 %v10257_v61  ;;  %4084 = vmatpush1.msra.mxu1 %v10260_v26  ;;  %v10793_v61 = vld [vmem:[#allocation6 + $0x1a8] sm:$0xff]  ;;  %v10796_v26 = vld [vmem:[#allocation6 + $0x1b8] sm:$0xff] }
 0x85c   :  { %4014 = vmatprep.subr.mxu0 %v10757_v4  ;;  %4085 = vmatprep.subr.mxu1 %v10760_v3 }
 0x85d   :  { %4015 = vmatpush1.msra.mxu0 %v10763_v39  ;;  %4086 = vmatpush1.msra.mxu1 %v10766_v8 }
 0x85e   :  { %4016 = vmatprep.subr.mxu0 %v10769_v10  ;;  %4087 = vmatprep.subr.mxu1 %v10772_v17 }
 0x85f   :  { %4017 = vmatpush1.msra.mxu0 %v10775_v15  ;;  %4088 = vmatpush1.msra.mxu1 %v10778_v19 }
 0x860   :  { %4018 = vmatprep.subr.mxu0 %v10781_v23  ;;  %4089 = vmatprep.subr.mxu1 %v10784_v48 }
 0x861   :  { %4019 = vmatpush1.msra.mxu0 %v10787_v62  ;;  %4090 = vmatpush1.msra.mxu1 %v10790_v5 }
 0x862   :  { %4020 = vmatprep.subr.mxu0 %v10793_v61  ;;  %4091 = vmatprep.subr.mxu1 %v10796_v26 }
 0x863   :  { %4021 = vmatpush1.msra.mxu0 %v10799_v63  ;;  %4092 = vmatpush1.msra.mxu1 %v10802_v54 }
 0x864   :  { %4022 = vmatprep.subr.mxu0 %v10805_v53  ;;  %4093 = vmatprep.subr.mxu1 %v10808_v0 }
 0x865   :  { %4023 = vmatpush1.msra.mxu0 %v10811_v52  ;;  %4094 = vmatpush1.msra.mxu1 %v10814_v44 }
 0x866   :  { %4024 = vmatprep.subr.mxu0 %v10817_v16  ;;  %4095 = vmatprep.subr.mxu1 %v10820_v46 }
 0x867   :  { %4025 = vmatpush1.msra.mxu0 %v10823_v59  ;;  %4096 = vmatpush1.msra.mxu1 %v10826_v56 }
 0x868   :  { %4026 = vmatprep.subr.mxu0 %v10829_v40  ;;  %4097 = vmatprep.subr.mxu1 %v10832_v43 }
 0x869   :  { %4027 = vmatpush1.msra.mxu0 %v10835_v57  ;;  %4098 = vmatpush1.msra.mxu1 %v10838_v18 }
 0x86a   :  { %4028 = vmatprep.subr.mxu0 %v10841_v55  ;;  %4099 = vmatprep.subr.mxu1 %v10844_v29 }
 0x86b   :  { %4029 = vmatpush1.msra.mxu0 %v10847_v28  ;;  %4100 = vmatpush1.msra.mxu1 %v10850_v49 }
 0x86c   :  { %4030 = vmatprep.subr.mxu0 %v10853_v33  ;;  %4101 = vmatprep.subr.mxu1 %v10856_v25  ;;  %v10871_v33 = vld [vmem:[#allocation6 + $0x20] sm:$0xff]  ;;  %v10874_v25 = vld [vmem:[#allocation6 + $0x30] sm:$0xff] }
 0x86d   :  { %4031 = vmatpush1.msra.mxu0 %v10859_v9  ;;  %4102 = vmatpush1.msra.mxu1 %v10862_v6  ;;  %13071 = vst [vmem:[#allocation43_spill] sm:$0xff] %v10871_v33  ;;  %13072 = vst [vmem:[#allocation78_spill] sm:$0xff] %v10874_v25  ;;  %v10877_v9 = vld [vmem:[#allocation6 + $0x7e8] sm:$0xff]  ;;  %v10880_v6 = vld [vmem:[#allocation6 + $0x7f8] sm:$0xff] }
 0x86e   :  { %4032 = vmatprep.subr.mxu0 %v10865_v20  ;;  %4103 = vmatprep.subr.mxu1 %v10868_v60  ;;  %13073 = vst [vmem:[#allocation69_spill] sm:$0xff] %v10877_v9  ;;  %13074 = vst [vmem:[#allocation79_spill] sm:$0xff] %v10880_v6  ;;  %v10883_v20 = vld [vmem:[#allocation6 + $0x7e0] sm:$0xff]  ;;  %v10886_v60 = vld [vmem:[#allocation6 + $0x7f0] sm:$0xff] }
 0x86f   :  { %4033 = vmatpush1.msra.mxu0 %v10871_v33  ;;  %4104 = vmatpush1.msra.mxu1 %v10874_v25  ;;  %13075 = vst [vmem:[#allocation71_spill] sm:$0xff] %v10883_v20  ;;  %13076 = vst [vmem:[#allocation147_spill] sm:$0xff] %v10886_v60  ;;  %v10889_v33 = vld [vmem:[#allocation6 + $0x7a8] sm:$0xff]  ;;  %v10892_v25 = vld [vmem:[#allocation6 + $0x7b8] sm:$0xff] }
 0x870   :  { %4034 = vmatprep.subr.mxu0 %v10877_v9  ;;  %4105 = vmatprep.subr.mxu1 %v10880_v6  ;;  %13077 = vst [vmem:[#allocation148_spill] sm:$0xff] %v10889_v33  ;;  %13078 = vst [vmem:[#allocation149_spill] sm:$0xff] %v10892_v25  ;;  %v10895_v9 = vld [vmem:[#allocation6 + $0x7a0] sm:$0xff]  ;;  %v10898_v6 = vld [vmem:[#allocation6 + $0x7b0] sm:$0xff] }
 0x871   :  { %4035 = vmatpush2.msra.mxu0 %v10883_v20  ;;  %4106 = vmatpush2.msra.mxu1 %v10886_v60  ;;  %13079 = vst [vmem:[#allocation150_spill] sm:$0xff] %v10895_v9  ;;  %13080 = vst [vmem:[#allocation151_spill] sm:$0xff] %v10898_v6  ;;  %v10901_v20 = vld [vmem:[#allocation6 + $0x768] sm:$0xff]  ;;  %v10904_v60 = vld [vmem:[#allocation6 + $0x778] sm:$0xff] }
 0x872   :  { %4036 = vmatprep.subr.mxu0 %v10889_v33  ;;  %4107 = vmatprep.subr.mxu1 %v10892_v25  ;;  %13081 = vst [vmem:[#allocation152_spill] sm:$0xff] %v10901_v20  ;;  %13082 = vst [vmem:[#allocation153_spill] sm:$0xff] %v10904_v60  ;;  %v10907_v33 = vld [vmem:[#allocation6 + $0x760] sm:$0xff]  ;;  %v10910_v25 = vld [vmem:[#allocation6 + $0x770] sm:$0xff] }
 0x873   :  { %4037 = vmatpush2.msra.mxu0 %v10895_v9  ;;  %4108 = vmatpush2.msra.mxu1 %v10898_v6  ;;  %13083 = vst [vmem:[#allocation154_spill] sm:$0xff] %v10907_v33  ;;  %13084 = vst [vmem:[#allocation155_spill] sm:$0xff] %v10910_v25  ;;  %v10913_v9 = vld [vmem:[#allocation6 + $0x728] sm:$0xff]  ;;  %v10916_v6 = vld [vmem:[#allocation6 + $0x738] sm:$0xff] }
 0x874   :  { %4038 = vmatprep.subr.mxu0 %v10901_v20  ;;  %4109 = vmatprep.subr.mxu1 %v10904_v60  ;;  %13085 = vst [vmem:[#allocation156_spill] sm:$0xff] %v10913_v9  ;;  %13086 = vst [vmem:[#allocation157_spill] sm:$0xff] %v10916_v6  ;;  %v10919_v20 = vld [vmem:[#allocation6 + $0x720] sm:$0xff]  ;;  %v10922_v60 = vld [vmem:[#allocation6 + $0x730] sm:$0xff] }
 0x875   :  { %4039 = vmatpush2.msra.mxu0 %v10907_v33  ;;  %4110 = vmatpush2.msra.mxu1 %v10910_v25  ;;  %13087 = vst [vmem:[#allocation48_spill] sm:$0xff] %v10919_v20  ;;  %13088 = vst [vmem:[#allocation33_spill] sm:$0xff] %v10922_v60  ;;  %v10925_v33 = vld [vmem:[#allocation6 + $0x6e8] sm:$0xff]  ;;  %v10928_v25 = vld [vmem:[#allocation6 + $0x6f8] sm:$0xff] }
 0x876   :  { %4040 = vmatprep.subr.mxu0 %v10913_v9  ;;  %4111 = vmatprep.subr.mxu1 %v10916_v6  ;;  %13089 = vst [vmem:[#allocation50_spill] sm:$0xff] %v10925_v33  ;;  %13090 = vst [vmem:[#allocation35_spill] sm:$0xff] %v10928_v25  ;;  %v10931_v9 = vld [vmem:[#allocation6 + $0x6e0] sm:$0xff]  ;;  %v10934_v6 = vld [vmem:[#allocation6 + $0x6f0] sm:$0xff] }
 0x877   :  { %4041 = vmatpush2.msra.mxu0 %v10919_v20  ;;  %4112 = vmatpush2.msra.mxu1 %v10922_v60  ;;  %13091 = vst [vmem:[#allocation74_spill] sm:$0xff] %v10931_v9  ;;  %13092 = vst [vmem:[#allocation61_spill] sm:$0xff] %v10934_v6  ;;  %v10937_v20 = vld [vmem:[#allocation6 + $0x6a8] sm:$0xff]  ;;  %v10940_v60 = vld [vmem:[#allocation6 + $0x6b8] sm:$0xff] }
 0x878   :  { %4042 = vmatprep.subr.mxu0 %v10925_v33  ;;  %4113 = vmatprep.subr.mxu1 %v10928_v25  ;;  %13093 = vst [vmem:[#allocation75_spill] sm:$0xff] %v10937_v20  ;;  %13094 = vst [vmem:[#allocation63_spill] sm:$0xff] %v10940_v60  ;;  %v10943_v33 = vld [vmem:[#allocation6 + $0x6a0] sm:$0xff]  ;;  %v10946_v25 = vld [vmem:[#allocation6 + $0x6b0] sm:$0xff] }
 0x879   :  { %4043 = vmatpush2.msra.mxu0 %v10931_v9  ;;  %4114 = vmatpush2.msra.mxu1 %v10934_v6  ;;  %13095 = vst [vmem:[#allocation158_spill] sm:$0xff] %v10943_v33  ;;  %13096 = vst [vmem:[#allocation159_spill] sm:$0xff] %v10946_v25  ;;  %v10949_v9 = vld [vmem:[#allocation6 + $0x668] sm:$0xff]  ;;  %v10952_v6 = vld [vmem:[#allocation6 + $0x678] sm:$0xff] }
 0x87a   :  { %4044 = vmatprep.subr.mxu0 %v10937_v20  ;;  %4115 = vmatprep.subr.mxu1 %v10940_v60  ;;  %13097 = vst [vmem:[#allocation160_spill] sm:$0xff] %v10949_v9  ;;  %13098 = vst [vmem:[#allocation161_spill] sm:$0xff] %v10952_v6  ;;  %v10955_v20 = vld [vmem:[#allocation6 + $0x660] sm:$0xff]  ;;  %v10958_v60 = vld [vmem:[#allocation6 + $0x670] sm:$0xff] }
 0x87b   :  { %4045 = vmatpush2.msra.mxu0 %v10943_v33  ;;  %4116 = vmatpush2.msra.mxu1 %v10946_v25  ;;  %13099 = vst [vmem:[#allocation162_spill] sm:$0xff] %v10955_v20  ;;  %13100 = vst [vmem:[#allocation163_spill] sm:$0xff] %v10958_v60  ;;  %v10961_v33 = vld [vmem:[#allocation6 + $0x628] sm:$0xff]  ;;  %v10964_v25 = vld [vmem:[#allocation6 + $0x638] sm:$0xff] }
 0x87c   :  { %4046 = vmatprep.subr.mxu0 %v10949_v9  ;;  %4117 = vmatprep.subr.mxu1 %v10952_v6  ;;  %13101 = vst [vmem:[#allocation164_spill] sm:$0xff] %v10961_v33  ;;  %13102 = vst [vmem:[#allocation165_spill] sm:$0xff] %v10964_v25  ;;  %v10967_v9 = vld [vmem:[#allocation6 + $0x620] sm:$0xff]  ;;  %v10970_v6 = vld [vmem:[#allocation6 + $0x630] sm:$0xff] }
 0x87d   :  { %4047 = vmatpush2.msra.mxu0 %v10955_v20  ;;  %4118 = vmatpush2.msra.mxu1 %v10958_v60  ;;  %13103 = vst [vmem:[#allocation166_spill] sm:$0xff] %v10967_v9  ;;  %13104 = vst [vmem:[#allocation167_spill] sm:$0xff] %v10970_v6  ;;  %v10973_v20 = vld [vmem:[#allocation6 + $0x5e8] sm:$0xff]  ;;  %v10976_v60 = vld [vmem:[#allocation6 + $0x5f8] sm:$0xff] }
 0x87e   :  { %4048 = vmatprep.subr.mxu0 %v10961_v33  ;;  %4119 = vmatprep.subr.mxu1 %v10964_v25  ;;  %13105 = vst [vmem:[#allocation168_spill] sm:$0xff] %v10973_v20  ;;  %13106 = vst [vmem:[#allocation169_spill] sm:$0xff] %v10976_v60  ;;  %v10979_v33 = vld [vmem:[#allocation6 + $0x5e0] sm:$0xff]  ;;  %v10982_v25 = vld [vmem:[#allocation6 + $0x5f0] sm:$0xff] }
 0x87f   :  { %4049 = vmatpush2.msra.mxu0 %v10967_v9  ;;  %4120 = vmatpush2.msra.mxu1 %v10970_v6  ;;  %13107 = vst [vmem:[#allocation170_spill] sm:$0xff] %v10979_v33  ;;  %13108 = vst [vmem:[#allocation171_spill] sm:$0xff] %v10982_v25  ;;  %v10985_v9 = vld [vmem:[#allocation6 + $0x5a8] sm:$0xff]  ;;  %v10988_v6 = vld [vmem:[#allocation6 + $0x5b8] sm:$0xff] }
 0x880   :  { %4050 = vmatprep.subr.mxu0 %v10973_v20  ;;  %4121 = vmatprep.subr.mxu1 %v10976_v60  ;;  %13109 = vst [vmem:[#allocation172_spill] sm:$0xff] %v10985_v9  ;;  %13110 = vst [vmem:[#allocation173_spill] sm:$0xff] %v10988_v6  ;;  %v10991_v20 = vld [vmem:[#allocation6 + $0x5a0] sm:$0xff]  ;;  %v10994_v60 = vld [vmem:[#allocation6 + $0x5b0] sm:$0xff] }
 0x881   :  { %4051 = vmatpush2.msra.mxu0 %v10979_v33  ;;  %4122 = vmatpush2.msra.mxu1 %v10982_v25  ;;  %13111 = vst [vmem:[#allocation174_spill] sm:$0xff] %v10991_v20  ;;  %13112 = vst [vmem:[#allocation175_spill] sm:$0xff] %v10994_v60  ;;  %v10997_v33 = vld [vmem:[#allocation6 + $0x568] sm:$0xff]  ;;  %v11000_v25 = vld [vmem:[#allocation6 + $0x578] sm:$0xff] }
 0x882   :  { %4052 = vmatprep.subr.mxu0 %v10985_v9  ;;  %4123 = vmatprep.subr.mxu1 %v10988_v6  ;;  %13113 = vst [vmem:[#allocation176_spill] sm:$0xff] %v10997_v33  ;;  %13114 = vst [vmem:[#allocation177_spill] sm:$0xff] %v11000_v25  ;;  %v11003_v9 = vld [vmem:[#allocation6 + $0x560] sm:$0xff]  ;;  %v11006_v6 = vld [vmem:[#allocation6 + $0x570] sm:$0xff] }
 0x883   :  { %4053 = vmatpush2.msra.mxu0 %v10991_v20  ;;  %4124 = vmatpush2.msra.mxu1 %v10994_v60  ;;  %13115 = vst [vmem:[#allocation178_spill] sm:$0xff] %v11003_v9  ;;  %13116 = vst [vmem:[#allocation179_spill] sm:$0xff] %v11006_v6  ;;  %v11009_v20 = vld [vmem:[#allocation6 + $0x528] sm:$0xff]  ;;  %v11012_v60 = vld [vmem:[#allocation6 + $0x538] sm:$0xff] }
 0x884   :  { %4054 = vmatprep.subr.mxu0 %v10997_v33  ;;  %4125 = vmatprep.subr.mxu1 %v11000_v25  ;;  %13117 = vst [vmem:[#allocation180_spill] sm:$0xff] %v11009_v20  ;;  %13118 = vst [vmem:[#allocation181_spill] sm:$0xff] %v11012_v60  ;;  %v11015_v33 = vld [vmem:[#allocation6 + $0x520] sm:$0xff]  ;;  %v11018_v25 = vld [vmem:[#allocation6 + $0x530] sm:$0xff] }
 0x885   :  { %4055 = vmatpush2.msra.mxu0 %v11003_v9  ;;  %4126 = vmatpush2.msra.mxu1 %v11006_v6  ;;  %13119 = vst [vmem:[#allocation182_spill] sm:$0xff] %v11015_v33  ;;  %13120 = vst [vmem:[#allocation183_spill] sm:$0xff] %v11018_v25  ;;  %v11021_v9 = vld [vmem:[#allocation6 + $0x4e8] sm:$0xff]  ;;  %v11024_v6 = vld [vmem:[#allocation6 + $0x4f8] sm:$0xff] }
 0x886   :  { %4056 = vmatprep.subr.mxu0 %v11009_v20  ;;  %4127 = vmatprep.subr.mxu1 %v11012_v60  ;;  %13121 = vst [vmem:[#allocation184_spill] sm:$0xff] %v11021_v9  ;;  %13122 = vst [vmem:[#allocation185_spill] sm:$0xff] %v11024_v6  ;;  %v11027_v20 = vld [vmem:[#allocation6 + $0x4e0] sm:$0xff]  ;;  %v11030_v60 = vld [vmem:[#allocation6 + $0x4f0] sm:$0xff] }
 0x887   :  { %4057 = vmatpush2.msra.mxu0 %v11015_v33  ;;  %4128 = vmatpush2.msra.mxu1 %v11018_v25  ;;  %13123 = vst [vmem:[#allocation186_spill] sm:$0xff] %v11027_v20  ;;  %13124 = vst [vmem:[#allocation187_spill] sm:$0xff] %v11030_v60  ;;  %v11033_v33 = vld [vmem:[#allocation6 + $0x4a8] sm:$0xff]  ;;  %v11036_v25 = vld [vmem:[#allocation6 + $0x4b8] sm:$0xff] }
 0x888   :  { %4058 = vmatprep.subr.mxu0 %v11021_v9  ;;  %4129 = vmatprep.subr.mxu1 %v11024_v6  ;;  %13125 = vst [vmem:[#allocation188_spill] sm:$0xff] %v11033_v33  ;;  %13126 = vst [vmem:[#allocation189_spill] sm:$0xff] %v11036_v25  ;;  %v11039_v9 = vld [vmem:[#allocation6 + $0x4a0] sm:$0xff]  ;;  %v11042_v6 = vld [vmem:[#allocation6 + $0x4b0] sm:$0xff] }
 0x889   :  { %4059 = vmatpush2.msra.mxu0 %v11027_v20  ;;  %4130 = vmatpush2.msra.mxu1 %v11030_v60  ;;  %13127 = vst [vmem:[#allocation190_spill] sm:$0xff] %v11039_v9  ;;  %13128 = vst [vmem:[#allocation191_spill] sm:$0xff] %v11042_v6  ;;  %v11045_v20 = vld [vmem:[#allocation6 + $0x468] sm:$0xff]  ;;  %v11048_v60 = vld [vmem:[#allocation6 + $0x478] sm:$0xff] }
 0x88a   :  { %4060 = vmatprep.subr.mxu0 %v11033_v33  ;;  %4131 = vmatprep.subr.mxu1 %v11036_v25  ;;  %13129 = vst [vmem:[#allocation192_spill] sm:$0xff] %v11045_v20  ;;  %13130 = vst [vmem:[#allocation193_spill] sm:$0xff] %v11048_v60  ;;  %v11051_v33 = vld [vmem:[#allocation6 + $0x460] sm:$0xff]  ;;  %v11054_v25 = vld [vmem:[#allocation6 + $0x470] sm:$0xff] }
 0x88b   :  { %4061 = vmatpush2.msra.mxu0 %v11039_v9  ;;  %4132 = vmatpush2.msra.mxu1 %v11042_v6  ;;  %13131 = vst [vmem:[#allocation194_spill] sm:$0xff] %v11054_v25  ;;  %v11057_v9 = vld [vmem:[#allocation6 + $0x428] sm:$0xff]  ;;  %v11060_v6 = vld [vmem:[#allocation6 + $0x438] sm:$0xff] }
 0x88c   :  { %4062 = vmatprep.subr.mxu0 %v11045_v20  ;;  %4133 = vmatprep.subr.mxu1 %v11048_v60  ;;  %13132 = vst [vmem:[#allocation195_spill] sm:$0xff] %v11057_v9  ;;  %13133 = vst [vmem:[#allocation196_spill] sm:$0xff] %v11060_v6  ;;  %v11063_v20 = vld [vmem:[#allocation6 + $0x420] sm:$0xff]  ;;  %v11066_v60 = vld [vmem:[#allocation6 + $0x430] sm:$0xff] }
 0x88d   :  { %4063 = vmatpush2.msra.mxu0 %v11051_v33  ;;  %4134 = vmatpush2.msra.mxu1 %v11054_v25  ;;  %13134 = vst [vmem:[#allocation197_spill] sm:$0xff] %v11063_v20  ;;  %13135 = vst [vmem:[#allocation198_spill] sm:$0xff] %v11066_v60  ;;  %v11071_v25 = vld [vmem:[#allocation6 + $0x3c8] sm:$0xff] }
 0x88e   :  { %4064 = vmatprep.subr.mxu0 %v11057_v9  ;;  %4135 = vmatprep.subr.mxu1 %v11060_v6  ;;  %13136 = vst [vmem:[#allocation199_spill] sm:$0xff] %v11071_v25  ;;  %v11074_v9 = vld [vmem:[#allocation6 + $0x3d8] sm:$0xff]  ;;  %v11077_v6 = vld [vmem:[#allocation6 + $0x3c0] sm:$0xff] }
 0x88f   :  { %4065 = vmatpush2.msra.mxu0 %v11063_v20  ;;  %4136 = vmatpush2.msra.mxu1 %v11066_v60  ;;  %13137 = vst [vmem:[#allocation200_spill] sm:$0xff] %v11074_v9  ;;  %13138 = vst [vmem:[#allocation201_spill] sm:$0xff] %v11077_v6  ;;  %v11080_v20 = vld [vmem:[#allocation6 + $0x3d0] sm:$0xff]  ;;  %v11083_v60 = vld [vmem:[#allocation6 + $0x388] sm:$0xff] }
 0x890   :  { %4067 = vmatmul.mubr.f32.vlgmr.msra.gmra.mxu0 %v10731_v13  ;;  %4138 = vmatmul.mubr.f32.vlgmr.msra.gmra.mxu1 %v10731_v13  ;;  %13139 = vst [vmem:[#allocation202_spill] sm:$0xff] %v11080_v20  ;;  %13140 = vst [vmem:[#allocation203_spill] sm:$0xff] %v11083_v60  ;;  %v11086_v13 = vld [vmem:[#allocation6 + $0x398] sm:$0xff] }
 0x891   :  { %4200 = vmatprep.subr.mxu0 %v11071_v25  ;;  %4271 = vmatprep.subr.mxu1 %v11074_v9  ;;  %13141 = vst [vmem:[#allocation204_spill] sm:$0xff] %v11086_v13  ;;  %v11089_v25 = vld [vmem:[#allocation6 + $0x380] sm:$0xff]  ;;  %v11092_v9 = vld [vmem:[#allocation6 + $0x390] sm:$0xff] }
 0x892   :  { %4201 = vmatpush1.msra.mxu0 %v11077_v6  ;;  %4272 = vmatpush1.msra.mxu1 %v11080_v20  ;;  %13142 = vst [vmem:[#allocation205_spill] sm:$0xff] %v11089_v25  ;;  %13143 = vst [vmem:[#allocation206_spill] sm:$0xff] %v11092_v9  ;;  %v11095_v6 = vld [vmem:[#allocation6 + $0x348] sm:$0xff]  ;;  %v11098_v20 = vld [vmem:[#allocation6 + $0x358] sm:$0xff] }
 0x893   :  { %4202 = vmatprep.subr.mxu0 %v11083_v60  ;;  %4273 = vmatprep.subr.mxu1 %v11086_v13  ;;  %13144 = vst [vmem:[#allocation207_spill] sm:$0xff] %v11095_v6  ;;  %13145 = vst [vmem:[#allocation208_spill] sm:$0xff] %v11098_v20  ;;  %v11101_v60 = vld [vmem:[#allocation6 + $0x340] sm:$0xff]  ;;  %v11104_v13 = vld [vmem:[#allocation6 + $0x350] sm:$0xff] }
 0x894   :  { %4203 = vmatpush1.msra.mxu0 %v11089_v25  ;;  %4274 = vmatpush1.msra.mxu1 %v11092_v9  ;;  %13146 = vst [vmem:[#allocation209_spill] sm:$0xff] %v11101_v60  ;;  %13147 = vst [vmem:[#allocation210_spill] sm:$0xff] %v11104_v13  ;;  %v11107_v25 = vld [vmem:[#allocation6 + $0x308] sm:$0xff]  ;;  %v11110_v9 = vld [vmem:[#allocation6 + $0x318] sm:$0xff] }
 0x895   :  { %4204 = vmatprep.subr.mxu0 %v11095_v6  ;;  %4275 = vmatprep.subr.mxu1 %v11098_v20  ;;  %13148 = vst [vmem:[#allocation211_spill] sm:$0xff] %v11107_v25  ;;  %13149 = vst [vmem:[#allocation212_spill] sm:$0xff] %v11110_v9  ;;  %v11113_v6 = vld [vmem:[#allocation6 + $0x300] sm:$0xff]  ;;  %v11116_v20 = vld [vmem:[#allocation6 + $0x310] sm:$0xff] }
 0x896   :  { %4205 = vmatpush1.msra.mxu0 %v11101_v60  ;;  %4276 = vmatpush1.msra.mxu1 %v11104_v13  ;;  %13150 = vst [vmem:[#allocation213_spill] sm:$0xff] %v11113_v6  ;;  %13151 = vst [vmem:[#allocation214_spill] sm:$0xff] %v11116_v20  ;;  %v11119_v60 = vld [vmem:[#allocation6 + $0x2c8] sm:$0xff]  ;;  %v11122_v13 = vld [vmem:[#allocation6 + $0x2d8] sm:$0xff] }
 0x897   :  { %4206 = vmatprep.subr.mxu0 %v11107_v25  ;;  %4277 = vmatprep.subr.mxu1 %v11110_v9  ;;  %v11125_v25 = vld [vmem:[#allocation6 + $0x2c0] sm:$0xff]  ;;  %v11128_v9 = vld [vmem:[#allocation6 + $0x2d0] sm:$0xff] }
 0x898   :  { %4207 = vmatpush1.msra.mxu0 %v11113_v6  ;;  %4278 = vmatpush1.msra.mxu1 %v11116_v20  ;;  %v11131_v6 = vld [vmem:[#allocation6 + $0x288] sm:$0xff]  ;;  %v11134_v20 = vld [vmem:[#allocation6 + $0x298] sm:$0xff] }
 0x899   :  { %4208 = vmatprep.subr.mxu0 %v11119_v60  ;;  %4279 = vmatprep.subr.mxu1 %v11122_v13 }
 0x89a   :  { %4209 = vmatpush1.msra.mxu0 %v11125_v25  ;;  %4280 = vmatpush1.msra.mxu1 %v11128_v9 }
 0x89b   :  { %4210 = vmatprep.subr.mxu0 %v11131_v6  ;;  %4281 = vmatprep.subr.mxu1 %v11134_v20 }
 0x89c   :  { %4211 = vmatpush1.msra.mxu0 %v10391_v12  ;;  %4282 = vmatpush1.msra.mxu1 %v10394_v31  ;;  %v13152_v12 = vld [vmem:[#allocation245_spill] sm:$0xff]  ;;  %v13153_v31 = vld [vmem:[#allocation246_spill] sm:$0xff] }
 0x89d   :  { %4212 = vmatprep.subr.mxu0 %v10397_v24  ;;  %4283 = vmatprep.subr.mxu1 %v10400_v22  ;;  %v13154_v24 = vld [vmem:[#allocation247_spill] sm:$0xff]  ;;  %v13155_v22 = vld [vmem:[#allocation248_spill] sm:$0xff] }
 0x89e   :  { %4213 = vmatpush1.msra.mxu0 %v10403_v14  ;;  %4284 = vmatpush1.msra.mxu1 %v10406_v51  ;;  %v13156_v14 = vld [vmem:[#allocation249_spill] sm:$0xff]  ;;  %v13157_v51 = vld [vmem:[#allocation250_spill] sm:$0xff] }
 0x89f   :  { %4214 = vmatprep.subr.mxu0 %v10409_v41  ;;  %4285 = vmatprep.subr.mxu1 %v10412_v45  ;;  %v13158_v41 = vld [vmem:[#allocation251_spill] sm:$0xff]  ;;  %v13159_v45 = vld [vmem:[#allocation252_spill] sm:$0xff] }
 0x8a0   :  { %4215 = vmatpush1.msra.mxu0 %v10415_v35  ;;  %4286 = vmatpush1.msra.mxu1 %v10418_v42  ;;  %v13160_v35 = vld [vmem:[#allocation253_spill] sm:$0xff]  ;;  %v13161_v42 = vld [vmem:[#allocation254_spill] sm:$0xff] }
 0x8a1   :  { %4216 = vmatprep.subr.mxu0 %v10421_v27  ;;  %4287 = vmatprep.subr.mxu1 %v10424_v34  ;;  %v13162_v27 = vld [vmem:[#allocation255_spill] sm:$0xff]  ;;  %v13163_v34 = vld [vmem:[#allocation52_spill] sm:$0xff] }
 0x8a2   :  { %4217 = vmatpush1.msra.mxu0 %v10427_v32  ;;  %4288 = vmatpush1.msra.mxu1 %v10430_v37  ;;  %v13164_v32 = vld [vmem:[#allocation37_spill] sm:$0xff]  ;;  %v13165_v37 = vld [vmem:[#allocation54_spill] sm:$0xff] }
 0x8a3   :  { %4218 = vmatprep.subr.mxu0 %v10433_v50  ;;  %4289 = vmatprep.subr.mxu1 %v10436_v11  ;;  %v13166_v50 = vld [vmem:[#allocation39_spill] sm:$0xff]  ;;  %v13167_v11 = vld [vmem:[#allocation76_spill] sm:$0xff] }
 0x8a4   :  { %4219 = vmatpush1.msra.mxu0 %v10439_v47  ;;  %4290 = vmatpush1.msra.mxu1 %v10442_v7  ;;  %v13168_v47 = vld [vmem:[#allocation65_spill] sm:$0xff] }
 0x8a5   :  { %4220 = vmatprep.subr.mxu0 %v10445_v1  ;;  %4291 = vmatprep.subr.mxu1 %v10448_v2  ;;  %v13169_v7 = vld [vmem:[#allocation77_spill] sm:$0xff]  ;;  %v13170_v1 = vld [vmem:[#allocation67_spill] sm:$0xff]  ;;  %v13171_v2 = vld [vmem:[#allocation84_spill] sm:$0xff] }
 0x8a6   :  { %4221 = vmatpush1.msra.mxu0 %v10451_v21  ;;  %4292 = vmatpush1.msra.mxu1 %v10454_v30  ;;  %v13172_v21 = vld [vmem:[#allocation85_spill] sm:$0xff]  ;;  %v13173_v30 = vld [vmem:[#allocation86_spill] sm:$0xff] }
 0x8a7   :  { %4222 = vmatprep.subr.mxu0 %v10457_v36  ;;  %4293 = vmatprep.subr.mxu1 %v13152_v12  ;;  %v13174_v36 = vld [vmem:[#allocation87_spill] sm:$0xff]  ;;  %v13175_v12 = vld [vmem:[#allocation88_spill] sm:$0xff] }
 0x8a8   :  { %4223 = vmatpush1.msra.mxu0 %v13153_v31  ;;  %4294 = vmatpush1.msra.mxu1 %v13154_v24  ;;  %v13176_v31 = vld [vmem:[#allocation89_spill] sm:$0xff]  ;;  %v13177_v24 = vld [vmem:[#allocation90_spill] sm:$0xff] }
 0x8a9   :  { %4224 = vmatprep.subr.mxu0 %v13155_v22  ;;  %4295 = vmatprep.subr.mxu1 %v13156_v14  ;;  %v13178_v22 = vld [vmem:[#allocation91_spill] sm:$0xff]  ;;  %v13179_v14 = vld [vmem:[#allocation92_spill] sm:$0xff] }
 0x8aa   :  { %4225 = vmatpush1.msra.mxu0 %v13157_v51  ;;  %4296 = vmatpush1.msra.mxu1 %v13158_v41  ;;  %v13180_v51 = vld [vmem:[#allocation93_spill] sm:$0xff]  ;;  %v13181_v41 = vld [vmem:[#allocation94_spill] sm:$0xff] }
 0x8ab   :  { %4226 = vmatprep.subr.mxu0 %v13159_v45  ;;  %4297 = vmatprep.subr.mxu1 %v13160_v35  ;;  %v13182_v45 = vld [vmem:[#allocation95_spill] sm:$0xff]  ;;  %v13183_v35 = vld [vmem:[#allocation96_spill] sm:$0xff] }
 0x8ac   :  { %4227 = vmatpush1.msra.mxu0 %v13161_v42  ;;  %4298 = vmatpush1.msra.mxu1 %v13162_v27  ;;  %v13184_v42 = vld [vmem:[#allocation97_spill] sm:$0xff]  ;;  %v13185_v27 = vld [vmem:[#allocation98_spill] sm:$0xff] }
 0x8ad   :  { %4228 = vmatprep.subr.mxu0 %v13163_v34  ;;  %4299 = vmatprep.subr.mxu1 %v13164_v32  ;;  %v13186_v34 = vld [vmem:[#allocation99_spill] sm:$0xff]  ;;  %v13187_v32 = vld [vmem:[#allocation100_spill] sm:$0xff] }
 0x8ae   :  { %4229 = vmatpush1.msra.mxu0 %v13165_v37  ;;  %4300 = vmatpush1.msra.mxu1 %v13166_v50  ;;  %v13188_v37 = vld [vmem:[#allocation101_spill] sm:$0xff]  ;;  %v13189_v50 = vld [vmem:[#allocation102_spill] sm:$0xff] }
 0x8af   :  { %4230 = vmatprep.subr.mxu0 %v13167_v11  ;;  %4301 = vmatprep.subr.mxu1 %v13168_v47  ;;  %v13190_v11 = vld [vmem:[#allocation103_spill] sm:$0xff]  ;;  %v13191_v47 = vld [vmem:[#allocation104_spill] sm:$0xff] }
 0x8b0   :  { %4231 = vmatpush1.msra.mxu0 %v13169_v7  ;;  %4302 = vmatpush1.msra.mxu1 %v13170_v1  ;;  %v13192_v7 = vld [vmem:[#allocation105_spill] sm:$0xff]  ;;  %v13193_v1 = vld [vmem:[#allocation106_spill] sm:$0xff] }
 0x8b1   :  { %4232 = vmatprep.subr.mxu0 %v13171_v2  ;;  %4303 = vmatprep.subr.mxu1 %v13172_v21  ;;  %v13194_v2 = vld [vmem:[#allocation107_spill] sm:$0xff]  ;;  %v13195_v21 = vld [vmem:[#allocation108_spill] sm:$0xff] }
 0x8b2   :  { %4233 = vmatpush2.msra.mxu0 %v13173_v30  ;;  %4304 = vmatpush2.msra.mxu1 %v13174_v36  ;;  %v13196_v30 = vld [vmem:[#allocation109_spill] sm:$0xff]  ;;  %v13197_v36 = vld [vmem:[#allocation110_spill] sm:$0xff] }
 0x8b3   :  { %4234 = vmatprep.subr.mxu0 %v13175_v12  ;;  %4305 = vmatprep.subr.mxu1 %v13176_v31  ;;  %v13198_v12 = vld [vmem:[#allocation111_spill] sm:$0xff]  ;;  %v13199_v31 = vld [vmem:[#allocation112_spill] sm:$0xff] }
 0x8b4   :  { %4235 = vmatpush2.msra.mxu0 %v13177_v24  ;;  %4306 = vmatpush2.msra.mxu1 %v13178_v22  ;;  %v13200_v24 = vld [vmem:[#allocation113_spill] sm:$0xff]  ;;  %v13201_v22 = vld [vmem:[#allocation114_spill] sm:$0xff] }
 0x8b5   :  { %4236 = vmatprep.subr.mxu0 %v13179_v14  ;;  %4307 = vmatprep.subr.mxu1 %v13180_v51  ;;  %v13202_v14 = vld [vmem:[#allocation115_spill] sm:$0xff]  ;;  %v13203_v51 = vld [vmem:[#allocation116_spill] sm:$0xff] }
 0x8b6   :  { %4237 = vmatpush2.msra.mxu0 %v13181_v41  ;;  %4308 = vmatpush2.msra.mxu1 %v13182_v45  ;;  %v13204_v41 = vld [vmem:[#allocation117_spill] sm:$0xff]  ;;  %v13205_v45 = vld [vmem:[#allocation118_spill] sm:$0xff] }
 0x8b7   :  { %4238 = vmatprep.subr.mxu0 %v13183_v35  ;;  %4309 = vmatprep.subr.mxu1 %v13184_v42  ;;  %v13206_v35 = vld [vmem:[#allocation119_spill] sm:$0xff]  ;;  %v13207_v42 = vld [vmem:[#allocation120_spill] sm:$0xff] }
 0x8b8   :  { %4239 = vmatpush2.msra.mxu0 %v13185_v27  ;;  %4310 = vmatpush2.msra.mxu1 %v13186_v34  ;;  %v13208_v27 = vld [vmem:[#allocation121_spill] sm:$0xff]  ;;  %v13209_v34 = vld [vmem:[#allocation122_spill] sm:$0xff] }
 0x8b9   :  { %4240 = vmatprep.subr.mxu0 %v13187_v32  ;;  %4311 = vmatprep.subr.mxu1 %v13188_v37  ;;  %v13210_v32 = vld [vmem:[#allocation123_spill] sm:$0xff]  ;;  %v13211_v37 = vld [vmem:[#allocation124_spill] sm:$0xff] }
 0x8ba   :  { %4241 = vmatpush2.msra.mxu0 %v13189_v50  ;;  %4312 = vmatpush2.msra.mxu1 %v13190_v11  ;;  %v13212_v50 = vld [vmem:[#allocation125_spill] sm:$0xff]  ;;  %v13213_v11 = vld [vmem:[#allocation126_spill] sm:$0xff] }
 0x8bb   :  { %4242 = vmatprep.subr.mxu0 %v13191_v47  ;;  %4313 = vmatprep.subr.mxu1 %v13192_v7  ;;  %v13214_v47 = vld [vmem:[#allocation127_spill] sm:$0xff]  ;;  %v13215_v7 = vld [vmem:[#allocation128_spill] sm:$0xff] }
 0x8bc   :  { %4243 = vmatpush2.msra.mxu0 %v13193_v1  ;;  %4314 = vmatpush2.msra.mxu1 %v13194_v2  ;;  %v13216_v1 = vld [vmem:[#allocation129_spill] sm:$0xff]  ;;  %v13217_v2 = vld [vmem:[#allocation130_spill] sm:$0xff] }
 0x8bd   :  { %4244 = vmatprep.subr.mxu0 %v13195_v21  ;;  %4315 = vmatprep.subr.mxu1 %v13196_v30  ;;  %v13218_v21 = vld [vmem:[#allocation131_spill] sm:$0xff]  ;;  %v13219_v30 = vld [vmem:[#allocation132_spill] sm:$0xff] }
 0x8be   :  { %4245 = vmatpush2.msra.mxu0 %v13197_v36  ;;  %4316 = vmatpush2.msra.mxu1 %v13198_v12  ;;  %v13220_v36 = vld [vmem:[#allocation133_spill] sm:$0xff]  ;;  %v13221_v12 = vld [vmem:[#allocation134_spill] sm:$0xff] }
 0x8bf   :  { %4246 = vmatprep.subr.mxu0 %v13199_v31  ;;  %4317 = vmatprep.subr.mxu1 %v13200_v24  ;;  %v13222_v31 = vld [vmem:[#allocation135_spill] sm:$0xff]  ;;  %v13223_v24 = vld [vmem:[#allocation136_spill] sm:$0xff] }
 0x8c0   :  { %4247 = vmatpush2.msra.mxu0 %v13201_v22  ;;  %4318 = vmatpush2.msra.mxu1 %v13202_v14  ;;  %v13224_v22 = vld [vmem:[#allocation28_spill] sm:$0xff] }
 0x8c1   :  { %4248 = vmatprep.subr.mxu0 %v13203_v51  ;;  %4319 = vmatprep.subr.mxu1 %v13204_v41  ;;  %v13225_v14 = vld [vmem:[#allocation20_spill] sm:$0xff]  ;;  %v13226_v51 = vld [vmem:[#allocation137_spill] sm:$0xff]  ;;  %v13227_v41 = vld [vmem:[#allocation138_spill] sm:$0xff] }
 0x8c2   :  { %4249 = vmatpush2.msra.mxu0 %v13205_v45  ;;  %4320 = vmatpush2.msra.mxu1 %v13206_v35  ;;  %v13228_v45 = vld [vmem:[#allocation139_spill] sm:$0xff]  ;;  %v13229_v35 = vld [vmem:[#allocation140_spill] sm:$0xff] }
 0x8c3   :  { %4250 = vmatprep.subr.mxu0 %v13207_v42  ;;  %4321 = vmatprep.subr.mxu1 %v13208_v27  ;;  %v13230_v42 = vld [vmem:[#allocation30_spill] sm:$0xff]  ;;  %v13231_v27 = vld [vmem:[#allocation21_spill] sm:$0xff] }
 0x8c4   :  { %4251 = vmatpush2.msra.mxu0 %v13209_v34  ;;  %4322 = vmatpush2.msra.mxu1 %v13210_v32  ;;  %v13232_v34 = vld [vmem:[#allocation141_spill] sm:$0xff]  ;;  %v13233_v32 = vld [vmem:[#allocation142_spill] sm:$0xff] }
 0x8c5   :  { %4252 = vmatprep.subr.mxu0 %v13211_v37  ;;  %4323 = vmatprep.subr.mxu1 %v13212_v50  ;;  %v13234_v37 = vld [vmem:[#allocation143_spill] sm:$0xff]  ;;  %v13235_v50 = vld [vmem:[#allocation144_spill] sm:$0xff] }
 0x8c6   :  { %4253 = vmatpush2.msra.mxu0 %v13213_v11  ;;  %4324 = vmatpush2.msra.mxu1 %v13214_v47  ;;  %v13236_v11 = vld [vmem:[#allocation145_spill] sm:$0xff] }
 0x8c7   :  { %4254 = vmatprep.subr.mxu0 %v13215_v7  ;;  %4325 = vmatprep.subr.mxu1 %v13216_v1 }
 0x8c8   :  { %4255 = vmatpush2.msra.mxu0 %v13217_v2  ;;  %4326 = vmatpush2.msra.mxu1 %v13218_v21  ;;  %v13237_v2 = vld [vmem:[#allocation40_spill] sm:$0xff] }
 0x8c9   :  { %4256 = vmatprep.subr.mxu0 %v13219_v30  ;;  %4327 = vmatprep.subr.mxu1 %v13220_v36  ;;  %v13238_v30 = vld [vmem:[#allocation26_spill] sm:$0xff] }
 0x8ca   :  { %4257 = vmatpush2.msra.mxu0 %v13221_v12  ;;  %4328 = vmatpush2.msra.mxu1 %v13222_v31  ;;  %v13239_v31 = vld [vmem:[#allocation42_spill] sm:$0xff] }
 0x8cb   :  { %4258 = vmatprep.subr.mxu0 %v13223_v24  ;;  %4329 = vmatprep.subr.mxu1 %v13224_v22 }
 0x8cc   :  { %4259 = vmatpush2.msra.mxu0 %v13225_v14  ;;  %4330 = vmatpush2.msra.mxu1 %v13226_v51  ;;  %v13240_v14 = vld [vmem:[#allocation27_spill] sm:$0xff] }
 0x8cd   :  { %4260 = vmatprep.subr.mxu0 %v13227_v41  ;;  %4331 = vmatprep.subr.mxu1 %v13228_v45 }
 0x8ce   :  { %4261 = vmatpush2.msra.mxu0 %v13229_v35  ;;  %4332 = vmatpush2.msra.mxu1 %v13230_v42 }
 0x8cf   :  { %4262 = vmatprep.subr.mxu0 %v13231_v27  ;;  %4333 = vmatprep.subr.mxu1 %v13232_v34 }
 0x8d0   :  { %4263 = vmatpush2.msra.mxu0 %v13233_v32  ;;  %4334 = vmatpush2.msra.mxu1 %v13234_v37 }
 0x8d1   :  { %4342 = vmatprep.subr.mxu0 %v13235_v50  ;;  %4413 = vmatprep.subr.mxu1 %v13236_v11 }
 0x90f   :  { %v3926_v47 = vpop.f32.mrf.mxu0  ;;  %v3997_v7 = vpop.f32.mrf.mxu1 }
 0x910   :  { %v4144_v21 = vadd.f32 %v3926_v47, %v13237_v2  ;;  %v4146_v36 = vadd.f32 %v3997_v7, %v13238_v30  ;;  %v13241_v2 = vld [vmem:[#allocation68_spill] sm:$0xff]  ;;  %v13242_v30 = vld [vmem:[#allocation53_spill] sm:$0xff] }
 0x911   :  { %v3928_v1 = vpop.f32.mrf.mxu0  ;;  %v3999_v12 = vpop.f32.mrf.mxu1 }
 0x912   :  { %v4145_v24 = vadd.f32 %v3928_v1, %v13239_v31  ;;  %v5634_v22 = vmul.f32 -1.442695, %v4144_v21  ;;  %v4147_v51 = vadd.f32 %v3999_v12, %v13240_v14  ;;  %v5636_v41 = vmul.f32 -1.442695, %v4146_v36 }
 0x914   :  { %v5635_v45 = vmul.f32 -1.442695, %v4145_v24  ;;  %6225 = vpow2.f32 %v5634_v22  ;;  %v5637_v35 = vmul.f32 -1.442695, %v4147_v51  ;;  %v13243_v22 = vld [vmem:[#allocation70_spill] sm:$0xff]  ;;  %v13244_v51 = vld [vmem:[#allocation55_spill] sm:$0xff] }
 0x915   :  { %6227 = vpow2.f32 %v5636_v41 }
 0x916   :  { %6229 = vpow2.f32 %v5635_v45 }
 0x917   :  { %6231 = vpow2.f32 %v5637_v35 }
 0x921   :  { %v6226_v42 = vpop.eup %6225 }
 0x922   :  { %v6228_v27 = vpop.eup %6227  ;;  %v4158_v32 = vadd.f32 1.0, %v6226_v42 }
 0x923   :  { %v6230_v34 = vpop.eup %6229  ;;  %v4170_v50 = vadd.f32 1.0, %v6228_v27 }
 0x924   :  { %v6232_v37 = vpop.eup %6231  ;;  %v4159_v11 = vadd.f32 1.0, %v6230_v34  ;;  %6233 = vrcp.f32 %v4158_v32 }
 0x925   :  { %v4171_v47 = vadd.f32 1.0, %v6232_v37  ;;  %6235 = vrcp.f32 %v4170_v50 }
 0x926   :  { %6237 = vrcp.f32 %v4159_v11 }
 0x931   :  { %v6234_v35 = vpop.eup %6233 }
 0x932   :  { %v6236_v42 = vpop.eup %6235 }
 0x933   :  { %v6238_v27 = vpop.eup %6237  ;;  %v4190_v37 = vmul.f32 %v6236_v42, %v10724_v58  ;;  %v11277_v42 = vld [vmem:[#allocation6 + $0x3a0] sm:$0xff] }
 0x950   :  { %v4068_v7 = vpop.f32.mrf.mxu0  ;;  %v4139_v1 = vpop.f32.mrf.mxu1 }
 0x951   :  { %v4148_v21 = vadd.f32 %v4068_v7, %v13241_v2  ;;  %v4150_v36 = vadd.f32 %v4139_v1, %v13242_v30 }
 0x952   :  { %v4070_v12 = vpop.f32.mrf.mxu0  ;;  %v4141_v31 = vpop.f32.mrf.mxu1 }
 0x953   :  { %6239 = vtanh.f32 %v4148_v21  ;;  %v5638_v24 = vmul.f32 -1.442695, %v4150_v36  ;;  %v4149_v14 = vadd.f32 %v4070_v12, %v13243_v22  ;;  %v4151_v41 = vadd.f32 %v4141_v31, %v13244_v51 }
 0x954   :  { %6241 = vrcp.f32 %v4171_v47 }
 0x955   :  { %6243 = vpow2.f32 %v5638_v24  ;;  %v5639_v45 = vmul.f32 -1.442695, %v4151_v41  ;;  %v11268_v41 = vld [vmem:[#allocation6 + $0x3f0] sm:$0xff] }
 0x956   :  { %6245 = vtanh.f32 %v4149_v14 }
 0x957   :  { %6247 = vpow2.f32 %v5639_v45  ;;  %v11271_v45 = vld [vmem:[#allocation6 + $0x3a8] sm:$0xff] }
 0x960   :  { %v6240_v34 = vpop.eup %6239 }
 0x961   :  { %v6242_v32 = vpop.eup %6241  ;;  %v4192_v50 = vmul.f32 %v6240_v34, %v6234_v35  ;;  %v11274_v35 = vld [vmem:[#allocation6 + $0x3b8] sm:$0xff]  ;;  %v11283_v34 = vld [vmem:[#allocation6 + $0x368] sm:$0xff] }
 0x962   :  { %v6244_v11 = vpop.eup %6243  ;;  %v4191_v47 = vmul.f32 %v6242_v32, %v10728_v38  ;;  %v11265_v38 = vld [vmem:[#allocation6 + $0x3e0] sm:$0xff]  ;;  %v11286_v32 = vld [vmem:[#allocation6 + $0x378] sm:$0xff] }
 0x963   :  { %v6246_v7 = vpop.eup %6245  ;;  %v11254_v1 = vadd.f32 %v4192_v50, %v4190_v37  ;;  %v4184_v2 = vadd.f32 1.0, %v6244_v11  ;;  %v11289_v37 = vld [vmem:[#allocation6 + $0x360] sm:$0xff]  ;;  %v11292_v50 = vld [vmem:[#allocation6 + $0x370] sm:$0xff]  ;;  %v11295_v11 = vld [vmem:[#allocation6 + $0x328] sm:$0xff] }
 0x964   :  { %v6248_v21 = vpop.eup %6247  ;;  %v4193_v30 = vmul.f32 %v6246_v7, %v6238_v27  ;;  %v11280_v27 = vld [vmem:[#allocation6 + $0x3b0] sm:$0xff]  ;;  %v11298_v7 = vld [vmem:[#allocation6 + $0x338] sm:$0xff] }
 0x965   :  { %6249 = vtanh.f32 %v11254_v1  ;;  %v4185_v36 = vadd.f32 1.0, %v6248_v21  ;;  %v11304_v21 = vld [vmem:[#allocation6 + $0x330] sm:$0xff] }
 0x966   :  { %6251 = vrcp.f32 %v4184_v2  ;;  %v11258_v12 = vadd.f32 %v4193_v30, %v4191_v47  ;;  %v11301_v2 = vld [vmem:[#allocation6 + $0x320] sm:$0xff]  ;;  %v11307_v47 = vld [vmem:[#allocation6 + $0x2e8] sm:$0xff]  ;;  %v11310_v30 = vld [vmem:[#allocation6 + $0x2f8] sm:$0xff] }
 0x967   :  { %6253 = vrcp.f32 %v4185_v36  ;;  %v11313_v36 = vld [vmem:[#allocation6 + $0x2e0] sm:$0xff] }
 0x968   :  { %6255 = vtanh.f32 %v11258_v12 }
 0x972   :  { %v6250_v58 = vpop.eup %6249 }
 0x973   :  { %v6252_v31 = vpop.eup %6251 }
 0x974   :  { %v6254_v24 = vpop.eup %6253  ;;  %v11261_v51 = vmul.f32 %v6252_v31, %v6250_v58  ;;  %v11316_v58 = vld [vmem:[#allocation6 + $0x2f0] sm:$0xff]  ;;  %v11319_v31 = vld [vmem:[#allocation6 + $0x2a8] sm:$0xff] }
 0x975   :  { %v6256_v22 = vpop.eup %6255 }
 0x976   :  { %v4199_v14 = vmul.f32 %v6256_v22, %v6254_v24  ;;  %v11322_v24 = vld [vmem:[#allocation6 + $0x2b8] sm:$0xff]  ;;  %v11325_v22 = vld [vmem:[#allocation6 + $0x2a0] sm:$0xff] }
 0x978   :  { %4264 = vmatprep.mubr.f32.mxu0 %v4199_v14  ;;  %4335 = vmatprep.mubr.f32.mxu1 %v4199_v14 }
 0x979   :  { %4265 = vmatmul.mubr.f32.vlgmr.msra.gmra.mxu0 %v11261_v51  ;;  %4336 = vmatmul.mubr.f32.vlgmr.msra.gmra.mxu1 %v11261_v51 }
 0x97a   :  { %4343 = vmatpush1.msra.mxu0 %v11265_v38  ;;  %4414 = vmatpush1.msra.mxu1 %v11268_v41 }
 0x97b   :  { %4344 = vmatprep.subr.mxu0 %v11271_v45  ;;  %4406 = vmatprep.mubr.f32.mxu0 %v4199_v14 }
 0x97c   :  { %4415 = vmatprep.subr.mxu1 %v11274_v35  ;;  %4477 = vmatprep.mubr.f32.mxu1 %v4199_v14  ;;  %v11328_v14 = vld [vmem:[#allocation6 + $0x2b0] sm:$0xff] }
 0x97d   :  { %4345 = vmatpush1.msra.mxu0 %v11277_v42  ;;  %4416 = vmatpush1.msra.mxu1 %v11280_v27 }
 0x97e   :  { %4346 = vmatprep.subr.mxu0 %v11283_v34  ;;  %4417 = vmatprep.subr.mxu1 %v11286_v32 }
 0x97f   :  { %4347 = vmatpush1.msra.mxu0 %v11289_v37  ;;  %4418 = vmatpush1.msra.mxu1 %v11292_v50 }
 0x980   :  { %4348 = vmatprep.subr.mxu0 %v11295_v11  ;;  %4419 = vmatprep.subr.mxu1 %v11298_v7 }
 0x981   :  { %4349 = vmatpush1.msra.mxu0 %v11301_v2  ;;  %4420 = vmatpush1.msra.mxu1 %v11304_v21 }
 0x982   :  { %4350 = vmatprep.subr.mxu0 %v11307_v47  ;;  %4421 = vmatprep.subr.mxu1 %v11310_v30 }
 0x983   :  { %4351 = vmatpush1.msra.mxu0 %v11313_v36  ;;  %4422 = vmatpush1.msra.mxu1 %v11316_v58 }
 0x984   :  { %4352 = vmatprep.subr.mxu0 %v11319_v31  ;;  %4423 = vmatprep.subr.mxu1 %v11322_v24 }
 0x985   :  { %4353 = vmatpush1.msra.mxu0 %v11325_v22  ;;  %4424 = vmatpush1.msra.mxu1 %v11328_v14 }
 0x986   :  { %4354 = vmatprep.subr.mxu0 %v10757_v4  ;;  %4425 = vmatprep.subr.mxu1 %v10760_v3  ;;  %v13245_v4 = vld [vmem:[#allocation146_spill] sm:$0xff]  ;;  %v13246_v3 = vld [vmem:[#allocation80_spill] sm:$0xff] }
 0x987   :  { %4355 = vmatpush1.msra.mxu0 %v10763_v39  ;;  %4426 = vmatpush1.msra.mxu1 %v10766_v8  ;;  %v13247_v39 = vld [vmem:[#allocation81_spill] sm:$0xff]  ;;  %v13248_v8 = vld [vmem:[#allocation56_spill] sm:$0xff] }
 0x988   :  { %4356 = vmatprep.subr.mxu0 %v10769_v10  ;;  %4427 = vmatprep.subr.mxu1 %v10772_v17  ;;  %v13249_v10 = vld [vmem:[#allocation41_spill] sm:$0xff]  ;;  %v13250_v17 = vld [vmem:[#allocation58_spill] sm:$0xff] }
 0x989   :  { %4357 = vmatpush1.msra.mxu0 %v10775_v15  ;;  %4428 = vmatpush1.msra.mxu1 %v10778_v19  ;;  %v13251_v15 = vld [vmem:[#allocation43_spill] sm:$0xff]  ;;  %v13252_v19 = vld [vmem:[#allocation78_spill] sm:$0xff] }
 0x98a   :  { %4358 = vmatprep.subr.mxu0 %v10781_v23  ;;  %4429 = vmatprep.subr.mxu1 %v10784_v48  ;;  %v13253_v23 = vld [vmem:[#allocation69_spill] sm:$0xff]  ;;  %v13254_v48 = vld [vmem:[#allocation79_spill] sm:$0xff] }
 0x98b   :  { %4359 = vmatpush1.msra.mxu0 %v10787_v62  ;;  %4430 = vmatpush1.msra.mxu1 %v10790_v5  ;;  %v13255_v62 = vld [vmem:[#allocation71_spill] sm:$0xff] }
 0x98c   :  { %4360 = vmatprep.subr.mxu0 %v10793_v61  ;;  %4431 = vmatprep.subr.mxu1 %v10796_v26  ;;  %v13256_v5 = vld [vmem:[#allocation147_spill] sm:$0xff]  ;;  %v13257_v61 = vld [vmem:[#allocation148_spill] sm:$0xff]  ;;  %v13258_v26 = vld [vmem:[#allocation149_spill] sm:$0xff] }
 0x98d   :  { %4361 = vmatpush1.msra.mxu0 %v10799_v63  ;;  %4432 = vmatpush1.msra.mxu1 %v10802_v54  ;;  %v13259_v63 = vld [vmem:[#allocation150_spill] sm:$0xff]  ;;  %v13260_v54 = vld [vmem:[#allocation151_spill] sm:$0xff] }
 0x98e   :  { %4362 = vmatprep.subr.mxu0 %v10805_v53  ;;  %4433 = vmatprep.subr.mxu1 %v10808_v0  ;;  %v13261_v53 = vld [vmem:[#allocation152_spill] sm:$0xff]  ;;  %v13262_v0 = vld [vmem:[#allocation153_spill] sm:$0xff] }
 0x98f   :  { %4363 = vmatpush1.msra.mxu0 %v10811_v52  ;;  %4434 = vmatpush1.msra.mxu1 %v10814_v44  ;;  %v13263_v52 = vld [vmem:[#allocation154_spill] sm:$0xff]  ;;  %v13264_v44 = vld [vmem:[#allocation155_spill] sm:$0xff] }
 0x990   :  { %4364 = vmatprep.subr.mxu0 %v10817_v16  ;;  %4435 = vmatprep.subr.mxu1 %v10820_v46  ;;  %v13265_v16 = vld [vmem:[#allocation156_spill] sm:$0xff]  ;;  %v13266_v46 = vld [vmem:[#allocation157_spill] sm:$0xff] }
 0x991   :  { %4365 = vmatpush1.msra.mxu0 %v10823_v59  ;;  %4436 = vmatpush1.msra.mxu1 %v10826_v56  ;;  %v13267_v59 = vld [vmem:[#allocation48_spill] sm:$0xff]  ;;  %v13268_v56 = vld [vmem:[#allocation33_spill] sm:$0xff] }
 0x992   :  { %4366 = vmatprep.subr.mxu0 %v10829_v40  ;;  %4437 = vmatprep.subr.mxu1 %v10832_v43  ;;  %v13269_v40 = vld [vmem:[#allocation50_spill] sm:$0xff]  ;;  %v13270_v43 = vld [vmem:[#allocation35_spill] sm:$0xff] }
 0x993   :  { %4367 = vmatpush1.msra.mxu0 %v10835_v57  ;;  %4438 = vmatpush1.msra.mxu1 %v10838_v18  ;;  %v13271_v57 = vld [vmem:[#allocation74_spill] sm:$0xff]  ;;  %v13272_v18 = vld [vmem:[#allocation61_spill] sm:$0xff] }
 0x994   :  { %4368 = vmatprep.subr.mxu0 %v10841_v55  ;;  %4439 = vmatprep.subr.mxu1 %v10844_v29  ;;  %v13273_v55 = vld [vmem:[#allocation75_spill] sm:$0xff] }
 0x995   :  { %4369 = vmatpush1.msra.mxu0 %v10847_v28  ;;  %4440 = vmatpush1.msra.mxu1 %v10850_v49  ;;  %v13274_v29 = vld [vmem:[#allocation63_spill] sm:$0xff]  ;;  %v13275_v28 = vld [vmem:[#allocation158_spill] sm:$0xff] }
 0x996   :  { %4370 = vmatprep.subr.mxu0 %v13245_v4  ;;  %4441 = vmatprep.subr.mxu1 %v13246_v3  ;;  %v13276_v49 = vld [vmem:[#allocation159_spill] sm:$0xff]  ;;  %v13277_v4 = vld [vmem:[#allocation160_spill] sm:$0xff]  ;;  %v13278_v3 = vld [vmem:[#allocation161_spill] sm:$0xff] }
 0x997   :  { %4371 = vmatpush1.msra.mxu0 %v13247_v39  ;;  %4442 = vmatpush1.msra.mxu1 %v13248_v8  ;;  %v13279_v39 = vld [vmem:[#allocation162_spill] sm:$0xff]  ;;  %v13280_v8 = vld [vmem:[#allocation163_spill] sm:$0xff] }
 0x998   :  { %4372 = vmatprep.subr.mxu0 %v13249_v10  ;;  %4443 = vmatprep.subr.mxu1 %v13250_v17  ;;  %v13281_v10 = vld [vmem:[#allocation164_spill] sm:$0xff]  ;;  %v13282_v17 = vld [vmem:[#allocation165_spill] sm:$0xff] }
 0x999   :  { %4373 = vmatpush1.msra.mxu0 %v13251_v15  ;;  %4444 = vmatpush1.msra.mxu1 %v13252_v19  ;;  %v13283_v15 = vld [vmem:[#allocation166_spill] sm:$0xff]  ;;  %v13284_v19 = vld [vmem:[#allocation167_spill] sm:$0xff] }
 0x99a   :  { %4374 = vmatprep.subr.mxu0 %v13253_v23  ;;  %4445 = vmatprep.subr.mxu1 %v13254_v48  ;;  %v13285_v23 = vld [vmem:[#allocation168_spill] sm:$0xff]  ;;  %v13286_v48 = vld [vmem:[#allocation169_spill] sm:$0xff] }
 0x99b   :  { %4375 = vmatpush2.msra.mxu0 %v13255_v62  ;;  %4446 = vmatpush2.msra.mxu1 %v13256_v5  ;;  %v13287_v62 = vld [vmem:[#allocation170_spill] sm:$0xff]  ;;  %v13288_v5 = vld [vmem:[#allocation171_spill] sm:$0xff] }
 0x99c   :  { %4376 = vmatprep.subr.mxu0 %v13257_v61  ;;  %4447 = vmatprep.subr.mxu1 %v13258_v26  ;;  %v13289_v61 = vld [vmem:[#allocation172_spill] sm:$0xff]  ;;  %v13290_v26 = vld [vmem:[#allocation173_spill] sm:$0xff] }
 0x99d   :  { %4377 = vmatpush2.msra.mxu0 %v13259_v63  ;;  %4448 = vmatpush2.msra.mxu1 %v13260_v54  ;;  %v13291_v63 = vld [vmem:[#allocation174_spill] sm:$0xff]  ;;  %v13292_v54 = vld [vmem:[#allocation175_spill] sm:$0xff] }
 0x99e   :  { %4378 = vmatprep.subr.mxu0 %v13261_v53  ;;  %4449 = vmatprep.subr.mxu1 %v13262_v0  ;;  %v13293_v53 = vld [vmem:[#allocation176_spill] sm:$0xff]  ;;  %v13294_v0 = vld [vmem:[#allocation177_spill] sm:$0xff] }
 0x99f   :  { %4379 = vmatpush2.msra.mxu0 %v13263_v52  ;;  %4450 = vmatpush2.msra.mxu1 %v13264_v44  ;;  %v13295_v52 = vld [vmem:[#allocation178_spill] sm:$0xff]  ;;  %v13296_v44 = vld [vmem:[#allocation179_spill] sm:$0xff] }
 0x9a0   :  { %4380 = vmatprep.subr.mxu0 %v13265_v16  ;;  %4451 = vmatprep.subr.mxu1 %v13266_v46  ;;  %v13297_v16 = vld [vmem:[#allocation180_spill] sm:$0xff]  ;;  %v13298_v46 = vld [vmem:[#allocation181_spill] sm:$0xff] }
 0x9a1   :  { %4381 = vmatpush2.msra.mxu0 %v13267_v59  ;;  %4452 = vmatpush2.msra.mxu1 %v13268_v56  ;;  %v13299_v59 = vld [vmem:[#allocation182_spill] sm:$0xff]  ;;  %v13300_v56 = vld [vmem:[#allocation183_spill] sm:$0xff] }
 0x9a2   :  { %4382 = vmatprep.subr.mxu0 %v13269_v40  ;;  %4453 = vmatprep.subr.mxu1 %v13270_v43  ;;  %v13301_v40 = vld [vmem:[#allocation184_spill] sm:$0xff]  ;;  %v13302_v43 = vld [vmem:[#allocation185_spill] sm:$0xff] }
 0x9a3   :  { %4383 = vmatpush2.msra.mxu0 %v13271_v57  ;;  %4454 = vmatpush2.msra.mxu1 %v13272_v18  ;;  %v13303_v57 = vld [vmem:[#allocation186_spill] sm:$0xff]  ;;  %v13304_v18 = vld [vmem:[#allocation187_spill] sm:$0xff] }
 0x9a4   :  { %4384 = vmatprep.subr.mxu0 %v13273_v55  ;;  %4455 = vmatprep.subr.mxu1 %v13274_v29  ;;  %v13305_v55 = vld [vmem:[#allocation188_spill] sm:$0xff]  ;;  %v13306_v29 = vld [vmem:[#allocation189_spill] sm:$0xff] }
 0x9a5   :  { %4385 = vmatpush2.msra.mxu0 %v13275_v28  ;;  %4456 = vmatpush2.msra.mxu1 %v13276_v49  ;;  %v13307_v28 = vld [vmem:[#allocation190_spill] sm:$0xff]  ;;  %v13308_v49 = vld [vmem:[#allocation191_spill] sm:$0xff] }
 0x9a6   :  { %4386 = vmatprep.subr.mxu0 %v13277_v4  ;;  %4457 = vmatprep.subr.mxu1 %v13278_v3  ;;  %v13309_v4 = vld [vmem:[#allocation192_spill] sm:$0xff]  ;;  %v13310_v3 = vld [vmem:[#allocation193_spill] sm:$0xff] }
 0x9a7   :  { %4387 = vmatpush2.msra.mxu0 %v13279_v39  ;;  %4458 = vmatpush2.msra.mxu1 %v13280_v8  ;;  %v13311_v39 = vld [vmem:[#allocation194_spill] sm:$0xff]  ;;  %v13312_v8 = vld [vmem:[#allocation195_spill] sm:$0xff] }
 0x9a8   :  { %4388 = vmatprep.subr.mxu0 %v13281_v10  ;;  %4459 = vmatprep.subr.mxu1 %v13282_v17  ;;  %v13313_v10 = vld [vmem:[#allocation196_spill] sm:$0xff]  ;;  %v13314_v17 = vld [vmem:[#allocation197_spill] sm:$0xff] }
 0x9a9   :  { %4389 = vmatpush2.msra.mxu0 %v13283_v15  ;;  %4460 = vmatpush2.msra.mxu1 %v13284_v19  ;;  %v13315_v15 = vld [vmem:[#allocation198_spill] sm:$0xff]  ;;  %v13316_v19 = vld [vmem:[#allocation199_spill] sm:$0xff] }
 0x9aa   :  { %4390 = vmatprep.subr.mxu0 %v13285_v23  ;;  %4461 = vmatprep.subr.mxu1 %v13286_v48  ;;  %v13317_v23 = vld [vmem:[#allocation200_spill] sm:$0xff]  ;;  %v13318_v48 = vld [vmem:[#allocation201_spill] sm:$0xff] }
 0x9ab   :  { %4391 = vmatpush2.msra.mxu0 %v13287_v62  ;;  %4462 = vmatpush2.msra.mxu1 %v13288_v5  ;;  %v13320_v62 = vld [vmem:[#allocation203_spill] sm:$0xff]  ;;  %v13321_v5 = vld [vmem:[#allocation204_spill] sm:$0xff] }
 0x9ac   :  { %4392 = vmatprep.subr.mxu0 %v13289_v61  ;;  %4463 = vmatprep.subr.mxu1 %v13290_v26  ;;  %v13322_v61 = vld [vmem:[#allocation205_spill] sm:$0xff]  ;;  %v13323_v26 = vld [vmem:[#allocation206_spill] sm:$0xff] }
 0x9ad   :  { %4393 = vmatpush2.msra.mxu0 %v13291_v63  ;;  %4464 = vmatpush2.msra.mxu1 %v13292_v54  ;;  %v13324_v63 = vld [vmem:[#allocation207_spill] sm:$0xff]  ;;  %v13325_v54 = vld [vmem:[#allocation208_spill] sm:$0xff] }
 0x9ae   :  { %4394 = vmatprep.subr.mxu0 %v13293_v53  ;;  %4465 = vmatprep.subr.mxu1 %v13294_v0  ;;  %v13327_v53 = vld [vmem:[#allocation210_spill] sm:$0xff]  ;;  %v13328_v0 = vld [vmem:[#allocation211_spill] sm:$0xff] }
 0x9af   :  { %4395 = vmatpush2.msra.mxu0 %v13295_v52  ;;  %4466 = vmatpush2.msra.mxu1 %v13296_v44  ;;  %v13329_v52 = vld [vmem:[#allocation212_spill] sm:$0xff]  ;;  %v13330_v44 = vld [vmem:[#allocation213_spill] sm:$0xff] }
 0x9b0   :  { %4396 = vmatprep.subr.mxu0 %v13297_v16  ;;  %4467 = vmatprep.subr.mxu1 %v13298_v46  ;;  %v13331_v16 = vld [vmem:[#allocation214_spill] sm:$0xff]  ;;  %v7117_v46 = vld [vmem:[#allocation6 + $0x280] sm:$0xff] }
 0x9b1   :  { %4397 = vmatpush2.msra.mxu0 %v13299_v59  ;;  %4468 = vmatpush2.msra.mxu1 %v13300_v56  ;;  %v7118_v59 = vld [vmem:[#allocation6 + $0x290] sm:$0xff]  ;;  %v7119_v56 = vld [vmem:[#allocation6 + $0x248] sm:$0xff] }
 0x9b2   :  { %4398 = vmatprep.subr.mxu0 %v13301_v40  ;;  %4469 = vmatprep.subr.mxu1 %v13302_v43  ;;  %v7120_v40 = vld [vmem:[#allocation6 + $0x258] sm:$0xff]  ;;  %v7121_v43 = vld [vmem:[#allocation6 + $0x240] sm:$0xff] }
 0x9b3   :  { %4399 = vmatpush2.msra.mxu0 %v13303_v57  ;;  %4470 = vmatpush2.msra.mxu1 %v13304_v18  ;;  %v7128_v57 = vld [vmem:[#allocation6 + $0x1d8] sm:$0xff]  ;;  %v7129_v18 = vld [vmem:[#allocation6 + $0x1c0] sm:$0xff] }
 0x9b4   :  { %4400 = vmatprep.subr.mxu0 %v13305_v55  ;;  %4471 = vmatprep.subr.mxu1 %v13306_v29  ;;  %v7130_v55 = vld [vmem:[#allocation6 + $0x1d0] sm:$0xff]  ;;  %v7131_v29 = vld [vmem:[#allocation6 + $0x188] sm:$0xff] }
 0x9b5   :  { %4401 = vmatpush2.msra.mxu0 %v13307_v28  ;;  %4472 = vmatpush2.msra.mxu1 %v13308_v49  ;;  %v7132_v28 = vld [vmem:[#allocation6 + $0x198] sm:$0xff]  ;;  %v7133_v49 = vld [vmem:[#allocation6 + $0x180] sm:$0xff] }
 0x9b6   :  { %4402 = vmatprep.subr.mxu0 %v13309_v4  ;;  %4473 = vmatprep.subr.mxu1 %v13310_v3  ;;  %v7134_v4 = vld [vmem:[#allocation6 + $0x190] sm:$0xff]  ;;  %v7135_v3 = vld [vmem:[#allocation6 + $0x148] sm:$0xff] }
 0x9b7   :  { %4403 = vmatpush2.msra.mxu0 %v11051_v33  ;;  %4474 = vmatpush2.msra.mxu1 %v13311_v39  ;;  %v13319_v33 = vld [vmem:[#allocation202_spill] sm:$0xff]  ;;  %v7136_v39 = vld [vmem:[#allocation6 + $0x158] sm:$0xff] }
 0x9b8   :  { %4404 = vmatprep.subr.mxu0 %v13312_v8  ;;  %4475 = vmatprep.subr.mxu1 %v13313_v10  ;;  %v7137_v8 = vld [vmem:[#allocation6 + $0x140] sm:$0xff]  ;;  %v7138_v10 = vld [vmem:[#allocation6 + $0x150] sm:$0xff] }
 0x9b9   :  { %4405 = vmatpush2.msra.mxu0 %v13314_v17  ;;  %4476 = vmatpush2.msra.mxu1 %v13315_v15  ;;  %v7139_v17 = vld [vmem:[#allocation6 + $0x108] sm:$0xff]  ;;  %v7140_v15 = vld [vmem:[#allocation6 + $0x118] sm:$0xff] }
 0x9ba   :  { %4407 = vmatmul.mubr.f32.vlgmr.msra.gmra.mxu0 %v11261_v51  ;;  %4478 = vmatmul.mubr.f32.vlgmr.msra.gmra.mxu1 %v11261_v51  ;;  %v13326_v51 = vld [vmem:[#allocation209_spill] sm:$0xff] }
 0x9bb   :  { %4540 = vmatprep.subr.mxu0 %v13316_v19  ;;  %4611 = vmatprep.subr.mxu1 %v13317_v23  ;;  %v7141_v19 = vld [vmem:[#allocation6 + $0x100] sm:$0xff]  ;;  %v7142_v23 = vld [vmem:[#allocation6 + $0x110] sm:$0xff] }
 0x9bc   :  { %4541 = vmatpush1.msra.mxu0 %v13318_v48  ;;  %4612 = vmatpush1.msra.mxu1 %v13319_v33  ;;  %v7143_v48 = vld [vmem:[#allocation6 + $0xc8] sm:$0xff]  ;;  %v7144_v33 = vld [vmem:[#allocation6 + $0xd8] sm:$0xff] }
 0x9bd   :  { %4542 = vmatprep.subr.mxu0 %v13320_v62  ;;  %4613 = vmatprep.subr.mxu1 %v13321_v5  ;;  %v7145_v62 = vld [vmem:[#allocation6 + $0xc0] sm:$0xff]  ;;  %v7146_v5 = vld [vmem:[#allocation6 + $0xd0] sm:$0xff] }
 0x9be   :  { %4543 = vmatpush1.msra.mxu0 %v13322_v61  ;;  %4614 = vmatpush1.msra.mxu1 %v13323_v26  ;;  %v7147_v61 = vld [vmem:[#allocation6 + $0x88] sm:$0xff]  ;;  %v7148_v26 = vld [vmem:[#allocation6 + $0x98] sm:$0xff] }
 0x9bf   :  { %4544 = vmatprep.subr.mxu0 %v13324_v63  ;;  %4615 = vmatprep.subr.mxu1 %v13325_v54  ;;  %v7149_v63 = vld [vmem:[#allocation6 + $0x80] sm:$0xff]  ;;  %v7150_v54 = vld [vmem:[#allocation6 + $0x90] sm:$0xff] }
 0x9c0   :  { %4545 = vmatpush1.msra.mxu0 %v13326_v51  ;;  %4616 = vmatpush1.msra.mxu1 %v13327_v53  ;;  %v7151_v51 = vld [vmem:[#allocation6 + $0x48] sm:$0xff]  ;;  %v7152_v53 = vld [vmem:[#allocation6 + $0x58] sm:$0xff] }
 0x9c1   :  { %4546 = vmatprep.subr.mxu0 %v13328_v0  ;;  %4617 = vmatprep.subr.mxu1 %v13329_v52  ;;  %v7153_v0 = vld [vmem:[#allocation6 + $0x40] sm:$0xff]  ;;  %v7154_v52 = vld [vmem:[#allocation6 + $0x50] sm:$0xff] }
 0x9c2   :  { %4547 = vmatpush1.msra.mxu0 %v13330_v44  ;;  %4618 = vmatpush1.msra.mxu1 %v13331_v16  ;;  %v7155_v44 = vld [vmem:[#allocation6 + $0x8] sm:$0xff]  ;;  %v7156_v16 = vld [vmem:[#allocation6 + $0x18] sm:$0xff] }
 0x9c3   :  { %4548 = vmatprep.subr.mxu0 %v11119_v60  ;;  %4619 = vmatprep.subr.mxu1 %v11122_v13  ;;  %v7122_v60 = vld [vmem:[#allocation6 + $0x250] sm:$0xff]  ;;  %v7123_v13 = vld [vmem:[#allocation6 + $0x208] sm:$0xff] }
 0x9c4   :  { %4549 = vmatpush1.msra.mxu0 %v11125_v25  ;;  %4620 = vmatpush1.msra.mxu1 %v11128_v9  ;;  %v7124_v25 = vld [vmem:[#allocation6 + $0x218] sm:$0xff]  ;;  %v7125_v9 = vld [vmem:[#allocation6 + $0x200] sm:$0xff] }
 0x9c5   :  { %4550 = vmatprep.subr.mxu0 %v11131_v6  ;;  %4621 = vmatprep.subr.mxu1 %v11134_v20  ;;  %v7126_v6 = vld [vmem:[#allocation6 + $0x210] sm:$0xff]  ;;  %v7127_v20 = vld [vmem:[#allocation6 + $0x1c8] sm:$0xff] }
 0x9c6   :  { %4551 = vmatpush1.msra.mxu0 %v7117_v46  ;;  %4622 = vmatpush1.msra.mxu1 %v7118_v59  ;;  %v7157_v46 = vld [vmem:[#allocation6] sm:$0xff]  ;;  %v7158_v59 = vld [vmem:[#allocation6 + $0x10] sm:$0xff] }
 0x9c7   :  { %4552 = vmatprep.subr.mxu0 %v7119_v56  ;;  %4623 = vmatprep.subr.mxu1 %v7120_v40  ;;  %v7159_v56 = vld [vmem:[#allocation6 + $0x7c8] sm:$0xff]  ;;  %v7160_v40 = vld [vmem:[#allocation6 + $0x7d8] sm:$0xff] }
 0x9c8   :  { %4553 = vmatpush1.msra.mxu0 %v7121_v43  ;;  %4624 = vmatpush1.msra.mxu1 %v7122_v60  ;;  %v7161_v43 = vld [vmem:[#allocation6 + $0x7c0] sm:$0xff]  ;;  %v7162_v60 = vld [vmem:[#allocation6 + $0x7d0] sm:$0xff] }
 0x9c9   :  { %4554 = vmatprep.subr.mxu0 %v7123_v13  ;;  %4625 = vmatprep.subr.mxu1 %v7124_v25  ;;  %v7163_v13 = vld [vmem:[#allocation6 + $0x788] sm:$0xff]  ;;  %v7164_v25 = vld [vmem:[#allocation6 + $0x798] sm:$0xff] }
 0x9ca   :  { %4555 = vmatpush1.msra.mxu0 %v7125_v9  ;;  %4626 = vmatpush1.msra.mxu1 %v7126_v6  ;;  %v7165_v9 = vld [vmem:[#allocation6 + $0x780] sm:$0xff]  ;;  %v7166_v6 = vld [vmem:[#allocation6 + $0x790] sm:$0xff] }
 0x9cb   :  { %4556 = vmatprep.subr.mxu0 %v7127_v20  ;;  %4627 = vmatprep.subr.mxu1 %v7128_v57  ;;  %v7167_v20 = vld [vmem:[#allocation6 + $0x748] sm:$0xff]  ;;  %v7168_v57 = vld [vmem:[#allocation6 + $0x758] sm:$0xff] }
 0x9cc   :  { %4557 = vmatpush1.msra.mxu0 %v7129_v18  ;;  %4628 = vmatpush1.msra.mxu1 %v7130_v55  ;;  %v7169_v18 = vld [vmem:[#allocation6 + $0x740] sm:$0xff]  ;;  %v7170_v55 = vld [vmem:[#allocation6 + $0x750] sm:$0xff] }
 0x9cd   :  { %4558 = vmatprep.subr.mxu0 %v7131_v29  ;;  %4629 = vmatprep.subr.mxu1 %v7132_v28  ;;  %v7171_v29 = vld [vmem:[#allocation6 + $0x708] sm:$0xff]  ;;  %v7172_v28 = vld [vmem:[#allocation6 + $0x718] sm:$0xff] }
 0x9ce   :  { %4559 = vmatpush1.msra.mxu0 %v7133_v49  ;;  %4630 = vmatpush1.msra.mxu1 %v7134_v4  ;;  %v7173_v49 = vld [vmem:[#allocation6 + $0x700] sm:$0xff]  ;;  %v7174_v4 = vld [vmem:[#allocation6 + $0x710] sm:$0xff] }
 0x9cf   :  { %4560 = vmatprep.subr.mxu0 %v7135_v3  ;;  %4631 = vmatprep.subr.mxu1 %v7136_v39  ;;  %v7175_v3 = vld [vmem:[#allocation6 + $0x6c8] sm:$0xff]  ;;  %v7176_v39 = vld [vmem:[#allocation6 + $0x6d8] sm:$0xff] }
 0x9d0   :  { %4561 = vmatpush1.msra.mxu0 %v7137_v8  ;;  %4632 = vmatpush1.msra.mxu1 %v7138_v10  ;;  %v7177_v8 = vld [vmem:[#allocation6 + $0x6c0] sm:$0xff]  ;;  %v7178_v10 = vld [vmem:[#allocation6 + $0x6d0] sm:$0xff] }
 0x9d1   :  { %4562 = vmatprep.subr.mxu0 %v7139_v17  ;;  %4633 = vmatprep.subr.mxu1 %v7140_v15  ;;  %v7179_v17 = vld [vmem:[#allocation6 + $0x688] sm:$0xff]  ;;  %v7180_v15 = vld [vmem:[#allocation6 + $0x698] sm:$0xff] }
 0x9d2   :  { %4563 = vmatpush1.msra.mxu0 %v7141_v19  ;;  %4634 = vmatpush1.msra.mxu1 %v7142_v23  ;;  %v7181_v19 = vld [vmem:[#allocation6 + $0x680] sm:$0xff]  ;;  %v7182_v23 = vld [vmem:[#allocation6 + $0x690] sm:$0xff] }
 0x9d3   :  { %4564 = vmatprep.subr.mxu0 %v7143_v48  ;;  %4635 = vmatprep.subr.mxu1 %v7144_v33  ;;  %v7183_v48 = vld [vmem:[#allocation6 + $0x648] sm:$0xff]  ;;  %v7184_v33 = vld [vmem:[#allocation6 + $0x658] sm:$0xff] }
 0x9d4   :  { %4565 = vmatpush1.msra.mxu0 %v7145_v62  ;;  %4636 = vmatpush1.msra.mxu1 %v7146_v5  ;;  %v7185_v62 = vld [vmem:[#allocation6 + $0x640] sm:$0xff]  ;;  %v7186_v5 = vld [vmem:[#allocation6 + $0x650] sm:$0xff] }
 0x9d5   :  { %4566 = vmatprep.subr.mxu0 %v7147_v61  ;;  %4637 = vmatprep.subr.mxu1 %v7148_v26  ;;  %v7187_v61 = vld [vmem:[#allocation6 + $0x608] sm:$0xff]  ;;  %v7188_v26 = vld [vmem:[#allocation6 + $0x618] sm:$0xff] }
 0x9d6   :  { %4567 = vmatpush1.msra.mxu0 %v7149_v63  ;;  %4638 = vmatpush1.msra.mxu1 %v7150_v54  ;;  %v7189_v63 = vld [vmem:[#allocation6 + $0x600] sm:$0xff]  ;;  %v7190_v54 = vld [vmem:[#allocation6 + $0x610] sm:$0xff] }
 0x9d7   :  { %4568 = vmatprep.subr.mxu0 %v7151_v51  ;;  %4639 = vmatprep.subr.mxu1 %v7152_v53  ;;  %v7191_v51 = vld [vmem:[#allocation6 + $0x5c8] sm:$0xff]  ;;  %v7192_v53 = vld [vmem:[#allocation6 + $0x5d8] sm:$0xff] }
 0x9d8   :  { %4569 = vmatpush1.msra.mxu0 %v7153_v0  ;;  %4640 = vmatpush1.msra.mxu1 %v7154_v52  ;;  %v7193_v0 = vld [vmem:[#allocation6 + $0x5c0] sm:$0xff]  ;;  %v7194_v52 = vld [vmem:[#allocation6 + $0x5d0] sm:$0xff] }
 0x9d9   :  { %4570 = vmatprep.subr.mxu0 %v7155_v44  ;;  %4641 = vmatprep.subr.mxu1 %v7156_v16  ;;  %v7195_v44 = vld [vmem:[#allocation6 + $0x588] sm:$0xff]  ;;  %v7196_v16 = vld [vmem:[#allocation6 + $0x598] sm:$0xff] }
 0x9da   :  { %4571 = vmatpush1.msra.mxu0 %v7157_v46  ;;  %4642 = vmatpush1.msra.mxu1 %v7158_v59  ;;  %v7197_v46 = vld [vmem:[#allocation6 + $0x580] sm:$0xff]  ;;  %v7198_v59 = vld [vmem:[#allocation6 + $0x590] sm:$0xff] }
 0x9db   :  { %4572 = vmatprep.subr.mxu0 %v7159_v56  ;;  %4643 = vmatprep.subr.mxu1 %v7160_v40  ;;  %v7199_v56 = vld [vmem:[#allocation6 + $0x548] sm:$0xff]  ;;  %v7200_v40 = vld [vmem:[#allocation6 + $0x558] sm:$0xff] }
 0x9dc   :  { %4573 = vmatpush2.msra.mxu0 %v7161_v43  ;;  %4644 = vmatpush2.msra.mxu1 %v7162_v60  ;;  %v7201_v43 = vld [vmem:[#allocation6 + $0x540] sm:$0xff]  ;;  %v7202_v60 = vld [vmem:[#allocation6 + $0x550] sm:$0xff] }
 0x9dd   :  { %4574 = vmatprep.subr.mxu0 %v7163_v13  ;;  %4645 = vmatprep.subr.mxu1 %v7164_v25  ;;  %v7203_v13 = vld [vmem:[#allocation6 + $0x508] sm:$0xff]  ;;  %v7204_v25 = vld [vmem:[#allocation6 + $0x518] sm:$0xff] }
 0x9de   :  { %4575 = vmatpush2.msra.mxu0 %v7165_v9  ;;  %4646 = vmatpush2.msra.mxu1 %v7166_v6  ;;  %v7205_v9 = vld [vmem:[#allocation6 + $0x500] sm:$0xff]  ;;  %v7206_v6 = vld [vmem:[#allocation6 + $0x510] sm:$0xff] }
 0x9df   :  { %4576 = vmatprep.subr.mxu0 %v7167_v20  ;;  %4647 = vmatprep.subr.mxu1 %v7168_v57  ;;  %v7207_v20 = vld [vmem:[#allocation6 + $0x4c8] sm:$0xff]  ;;  %v7208_v57 = vld [vmem:[#allocation6 + $0x4d8] sm:$0xff] }
 0x9e0   :  { %4577 = vmatpush2.msra.mxu0 %v7169_v18  ;;  %4648 = vmatpush2.msra.mxu1 %v7170_v55  ;;  %v7209_v18 = vld [vmem:[#allocation6 + $0x4c0] sm:$0xff]  ;;  %v7210_v55 = vld [vmem:[#allocation6 + $0x4d0] sm:$0xff] }
 0x9e1   :  { %4578 = vmatprep.subr.mxu0 %v7171_v29  ;;  %4649 = vmatprep.subr.mxu1 %v7172_v28  ;;  %v7211_v29 = vld [vmem:[#allocation6 + $0x488] sm:$0xff]  ;;  %v7212_v28 = vld [vmem:[#allocation6 + $0x498] sm:$0xff] }
 0x9e2   :  { %4579 = vmatpush2.msra.mxu0 %v7173_v49  ;;  %4650 = vmatpush2.msra.mxu1 %v7174_v4  ;;  %v7213_v49 = vld [vmem:[#allocation6 + $0x480] sm:$0xff]  ;;  %v7214_v4 = vld [vmem:[#allocation6 + $0x490] sm:$0xff] }
 0x9e3   :  { %4580 = vmatprep.subr.mxu0 %v7175_v3  ;;  %4651 = vmatprep.subr.mxu1 %v7176_v39  ;;  %v7215_v3 = vld [vmem:[#allocation6 + $0x448] sm:$0xff]  ;;  %v7216_v39 = vld [vmem:[#allocation6 + $0x458] sm:$0xff] }
 0x9e4   :  { %4581 = vmatpush2.msra.mxu0 %v7177_v8  ;;  %4652 = vmatpush2.msra.mxu1 %v7178_v10  ;;  %v7217_v8 = vld [vmem:[#allocation6 + $0x440] sm:$0xff]  ;;  %v7218_v10 = vld [vmem:[#allocation6 + $0x450] sm:$0xff] }
 0x9e5   :  { %4582 = vmatprep.subr.mxu0 %v7179_v17  ;;  %4653 = vmatprep.subr.mxu1 %v7180_v15  ;;  %v7219_v17 = vld [vmem:[#allocation6 + $0x408] sm:$0xff]  ;;  %v7220_v15 = vld [vmem:[#allocation6 + $0x418] sm:$0xff] }
 0x9e6   :  { %4583 = vmatpush2.msra.mxu0 %v7181_v19  ;;  %4654 = vmatpush2.msra.mxu1 %v7182_v23  ;;  %v7221_v19 = vld [vmem:[#allocation6 + $0x400] sm:$0xff]  ;;  %v7222_v23 = vld [vmem:[#allocation6 + $0x410] sm:$0xff] }
 0x9e7   :  { %4584 = vmatprep.subr.mxu0 %v7183_v48  ;;  %4655 = vmatprep.subr.mxu1 %v7184_v33  ;;  %v7223_v48 = vld [vmem:[#allocation6 + $0x3e8] sm:$0xff]  ;;  %v7224_v33 = vld [vmem:[#allocation6 + $0x3f8] sm:$0xff] }
 0x9e8   :  { %4585 = vmatpush2.msra.mxu0 %v7185_v62  ;;  %4656 = vmatpush2.msra.mxu1 %v7186_v5 }
 0x9e9   :  { %4586 = vmatprep.subr.mxu0 %v7187_v61  ;;  %4657 = vmatprep.subr.mxu1 %v7188_v26  ;;  %v13332_v26 = vld [vmem:[#allocation36_spill] sm:$0xff] }
 0x9ea   :  { %4587 = vmatpush2.msra.mxu0 %v7189_v63  ;;  %4658 = vmatpush2.msra.mxu1 %v7190_v54  ;;  %v13333_v54 = vld [vmem:[#allocation24_spill] sm:$0xff] }
 0x9eb   :  { %4588 = vmatprep.subr.mxu0 %v7191_v51  ;;  %4659 = vmatprep.subr.mxu1 %v7192_v53 }
 0x9ec   :  { %4589 = vmatpush2.msra.mxu0 %v7193_v0  ;;  %4660 = vmatpush2.msra.mxu1 %v7194_v52  ;;  %v13334_v0 = vld [vmem:[#allocation38_spill] sm:$0xff] }
 0x9ed   :  { %4590 = vmatprep.subr.mxu0 %v7195_v44  ;;  %4661 = vmatprep.subr.mxu1 %v7196_v16  ;;  %v13335_v16 = vld [vmem:[#allocation25_spill] sm:$0xff] }
 0x9ee   :  { %4591 = vmatpush2.msra.mxu0 %v7197_v46  ;;  %4662 = vmatpush2.msra.mxu1 %v7198_v59 }
 0x9ef   :  { %4592 = vmatprep.subr.mxu0 %v7199_v56  ;;  %4663 = vmatprep.subr.mxu1 %v7200_v40 }
 0x9f0   :  { %4593 = vmatpush2.msra.mxu0 %v7201_v43  ;;  %4664 = vmatpush2.msra.mxu1 %v7202_v60 }
 0x9f1   :  { %4594 = vmatprep.subr.mxu0 %v7203_v13  ;;  %4665 = vmatprep.subr.mxu1 %v7204_v25 }
 0x9f2   :  { %4595 = vmatpush2.msra.mxu0 %v7205_v9  ;;  %4666 = vmatpush2.msra.mxu1 %v7206_v6 }
 0x9f3   :  { %4596 = vmatprep.subr.mxu0 %v7207_v20  ;;  %4667 = vmatprep.subr.mxu1 %v7208_v57 }
 0x9f4   :  { %4597 = vmatpush2.msra.mxu0 %v7209_v18  ;;  %4668 = vmatpush2.msra.mxu1 %v7210_v55 }
 0x9f5   :  { %4598 = vmatprep.subr.mxu0 %v7211_v29  ;;  %4669 = vmatprep.subr.mxu1 %v7212_v28  ;;  %v13336_v29 = vld [vmem:[#allocation64_spill] sm:$0xff] }
 0x9f6   :  { %4599 = vmatpush2.msra.mxu0 %v7213_v49  ;;  %4670 = vmatpush2.msra.mxu1 %v7214_v4  ;;  %v13337_v49 = vld [vmem:[#allocation49_spill] sm:$0xff] }
 0x9f7   :  { %4600 = vmatprep.subr.mxu0 %v7215_v3  ;;  %4671 = vmatprep.subr.mxu1 %v7216_v39 }
 0x9f8   :  { %4601 = vmatpush2.msra.mxu0 %v7217_v8  ;;  %4672 = vmatpush2.msra.mxu1 %v7218_v10  ;;  %v13338_v10 = vld [vmem:[#allocation66_spill] sm:$0xff] }
 0x9f9   :  { %4602 = vmatprep.subr.mxu0 %v7219_v17  ;;  %4673 = vmatprep.subr.mxu1 %v7220_v15  ;;  %v13339_v15 = vld [vmem:[#allocation51_spill] sm:$0xff] }
 0x9fa   :  { %4603 = vmatpush2.msra.mxu0 %v7221_v19  ;;  %4674 = vmatpush2.msra.mxu1 %v7222_v23 }
 0x9fb   :  { %4682 = vmatprep.subr.mxu0 %v7223_v48  ;;  %4753 = vmatprep.subr.mxu1 %v7224_v33 }
 0xa39   :  { %v4266_v62 = vpop.f32.mrf.mxu0  ;;  %v4337_v5 = vpop.f32.mrf.mxu1 }
 0xa3a   :  { %v4484_v63 = vadd.f32 %v4266_v62, %v13332_v26  ;;  %v4486_v51 = vadd.f32 %v4337_v5, %v13333_v54 }
 0xa3b   :  { %v4268_v61 = vpop.f32.mrf.mxu0  ;;  %v4339_v53 = vpop.f32.mrf.mxu1 }
 0xa3c   :  { %v4485_v52 = vadd.f32 %v4268_v61, %v13334_v0  ;;  %v5640_v44 = vmul.f32 -1.442695, %v4484_v63  ;;  %v4487_v46 = vadd.f32 %v4339_v53, %v13335_v16  ;;  %v5642_v59 = vmul.f32 -1.442695, %v4486_v51 }
 0xa3e   :  { %v5641_v56 = vmul.f32 -1.442695, %v4485_v52  ;;  %6257 = vpow2.f32 %v5640_v44  ;;  %v5643_v40 = vmul.f32 -1.442695, %v4487_v46 }
 0xa3f   :  { %6259 = vpow2.f32 %v5642_v59 }
 0xa40   :  { %6261 = vpow2.f32 %v5641_v56 }
 0xa41   :  { %6263 = vpow2.f32 %v5643_v40 }
 0xa4b   :  { %v6258_v43 = vpop.eup %6257 }
 0xa4c   :  { %v6260_v60 = vpop.eup %6259  ;;  %v4498_v25 = vadd.f32 1.0, %v6258_v43 }
 0xa4d   :  { %v6262_v13 = vpop.eup %6261  ;;  %v4510_v6 = vadd.f32 1.0, %v6260_v60 }
 0xa4e   :  { %v6264_v9 = vpop.eup %6263  ;;  %v4499_v20 = vadd.f32 1.0, %v6262_v13  ;;  %6265 = vrcp.f32 %v4498_v25  ;;  %v7248_v25 = vld [vmem:[#allocation6 + $0x130] sm:$0xff] }
 0xa4f   :  { %v4511_v57 = vadd.f32 1.0, %v6264_v9  ;;  %6267 = vrcp.f32 %v4510_v6  ;;  %v7249_v9 = vld [vmem:[#allocation6 + $0xe8] sm:$0xff]  ;;  %v7250_v6 = vld [vmem:[#allocation6 + $0xf8] sm:$0xff] }
 0xa50   :  { %6269 = vrcp.f32 %v4499_v20  ;;  %v7251_v20 = vld [vmem:[#allocation6 + $0xe0] sm:$0xff] }
 0xa5b   :  { %v6266_v48 = vpop.eup %6265 }
 0xa5c   :  { %v6268_v33 = vpop.eup %6267 }
 0xa5d   :  { %v6270_v62 = vpop.eup %6269  ;;  %v4530_v26 = vmul.f32 %v6268_v33, %v11254_v1  ;;  %v7268_v33 = vld [vmem:[#allocation6 + $0x7f0] sm:$0xff] }
 0xa7a   :  { %v4408_v18 = vpop.f32.mrf.mxu0  ;;  %v4479_v55 = vpop.f32.mrf.mxu1 }
 0xa7b   :  { %v4488_v28 = vadd.f32 %v4408_v18, %v13336_v29  ;;  %v4490_v4 = vadd.f32 %v4479_v55, %v13337_v49  ;;  %v7253_v18 = vld [vmem:[#allocation6 + $0xa8] sm:$0xff]  ;;  %v7254_v55 = vld [vmem:[#allocation6 + $0xb8] sm:$0xff]  ;;  %v7255_v29 = vld [vmem:[#allocation6 + $0xa0] sm:$0xff] }
 0xa7c   :  { %v4410_v3 = vpop.f32.mrf.mxu0  ;;  %v4481_v39 = vpop.f32.mrf.mxu1  ;;  %v7257_v49 = vld [vmem:[#allocation6 + $0x68] sm:$0xff] }
 0xa7d   :  { %6271 = vtanh.f32 %v4488_v28  ;;  %v5644_v8 = vmul.f32 -1.442695, %v4490_v4  ;;  %v4489_v17 = vadd.f32 %v4410_v3, %v13338_v10  ;;  %v4491_v19 = vadd.f32 %v4481_v39, %v13339_v15  ;;  %v7256_v28 = vld [vmem:[#allocation6 + $0xb0] sm:$0xff]  ;;  %v7258_v4 = vld [vmem:[#allocation6 + $0x78] sm:$0xff]  ;;  %v7259_v3 = vld [vmem:[#allocation6 + $0x60] sm:$0xff] }
 0xa7e   :  { %6273 = vrcp.f32 %v4511_v57  ;;  %v7252_v57 = vld [vmem:[#allocation6 + $0xf0] sm:$0xff]  ;;  %v7262_v10 = vld [vmem:[#allocation6 + $0x38] sm:$0xff] }
 0xa7f   :  { %6275 = vpow2.f32 %v5644_v8  ;;  %v5645_v23 = vmul.f32 -1.442695, %v4491_v19  ;;  %v7260_v39 = vld [vmem:[#allocation6 + $0x70] sm:$0xff]  ;;  %v7261_v8 = vld [vmem:[#allocation6 + $0x28] sm:$0xff] }
 0xa80   :  { %6277 = vtanh.f32 %v4489_v17  ;;  %v7263_v17 = vld [vmem:[#allocation6 + $0x20] sm:$0xff]  ;;  %v7264_v15 = vld [vmem:[#allocation6 + $0x30] sm:$0xff]  ;;  %v7265_v19 = vld [vmem:[#allocation6 + $0x7e8] sm:$0xff] }
 0xa81   :  { %6279 = vpow2.f32 %v5645_v23  ;;  %v7266_v23 = vld [vmem:[#allocation6 + $0x7f8] sm:$0xff] }
 0xa8a   :  { %v6272_v5 = vpop.eup %6271 }
 0xa8b   :  { %v6274_v61 = vpop.eup %6273  ;;  %v4532_v63 = vmul.f32 %v6272_v5, %v6266_v48  ;;  %v7267_v48 = vld [vmem:[#allocation6 + $0x7e0] sm:$0xff]  ;;  %v7270_v5 = vld [vmem:[#allocation6 + $0x7b8] sm:$0xff] }
 0xa8c   :  { %v6276_v54 = vpop.eup %6275  ;;  %v4531_v44 = vmul.f32 %v6274_v61, %v11258_v12  ;;  %v7225_v12 = vld [vmem:[#allocation6 + $0x268] sm:$0xff]  ;;  %v7271_v61 = vld [vmem:[#allocation6 + $0x7a0] sm:$0xff] }
 0xa8d   :  { %v6278_v51 = vpop.eup %6277  ;;  %v11468_v53 = vadd.f32 %v4532_v63, %v4530_v26  ;;  %v4524_v0 = vadd.f32 1.0, %v6276_v54  ;;  %v7272_v26 = vld [vmem:[#allocation6 + $0x7b0] sm:$0xff]  ;;  %v7273_v63 = vld [vmem:[#allocation6 + $0x768] sm:$0xff]  ;;  %v7274_v54 = vld [vmem:[#allocation6 + $0x778] sm:$0xff] }
 0xa8e   :  { %v6280_v52 = vpop.eup %6279  ;;  %v4533_v16 = vmul.f32 %v6278_v51, %v6270_v62  ;;  %v7269_v62 = vld [vmem:[#allocation6 + $0x7a8] sm:$0xff]  ;;  %v7275_v51 = vld [vmem:[#allocation6 + $0x760] sm:$0xff] }
 0xa8f   :  { %6281 = vtanh.f32 %v11468_v53  ;;  %v4525_v46 = vadd.f32 1.0, %v6280_v52  ;;  %v7277_v52 = vld [vmem:[#allocation6 + $0x728] sm:$0xff] }
 0xa90   :  { %6283 = vrcp.f32 %v4524_v0  ;;  %v11472_v59 = vadd.f32 %v4533_v16, %v4531_v44  ;;  %v7276_v0 = vld [vmem:[#allocation6 + $0x770] sm:$0xff]  ;;  %v7278_v44 = vld [vmem:[#allocation6 + $0x738] sm:$0xff]  ;;  %v7279_v16 = vld [vmem:[#allocation6 + $0x720] sm:$0xff] }
 0xa91   :  { %6285 = vrcp.f32 %v4525_v46  ;;  %v7280_v46 = vld [vmem:[#allocation6 + $0x730] sm:$0xff] }
 0xa92   :  { %6287 = vtanh.f32 %v11472_v59 }
 0xa9c   :  { %v6282_v1 = vpop.eup %6281 }
 0xa9d   :  { %v6284_v56 = vpop.eup %6283 }
 0xa9e   :  { %v6286_v40 = vpop.eup %6285  ;;  %v11475_v13 = vmul.f32 %v6284_v56, %v6282_v1  ;;  %v7281_v1 = vld [vmem:[#allocation6 + $0x6e8] sm:$0xff]  ;;  %v7282_v56 = vld [vmem:[#allocation6 + $0x6f8] sm:$0xff] }
 0xa9f   :  { %v6288_v43 = vpop.eup %6287 }
 0xaa0   :  { %v4539_v60 = vmul.f32 %v6288_v43, %v6286_v40  ;;  %v7283_v40 = vld [vmem:[#allocation6 + $0x6e0] sm:$0xff]  ;;  %v7284_v43 = vld [vmem:[#allocation6 + $0x6f0] sm:$0xff] }
 0xaa2   :  { %4604 = vmatprep.mubr.f32.mxu0 %v4539_v60  ;;  %4675 = vmatprep.mubr.f32.mxu1 %v4539_v60 }
 0xaa3   :  { %4605 = vmatmul.mubr.f32.vlgmr.msra.gmra.mxu0 %v11475_v13  ;;  %4676 = vmatmul.mubr.f32.vlgmr.msra.gmra.mxu1 %v11475_v13 }
 0xaa4   :  { %4683 = vmatpush1.msra.mxu0 %v11265_v38  ;;  %4754 = vmatpush1.msra.mxu1 %v11268_v41  ;;  %v7226_v38 = vld [vmem:[#allocation6 + $0x278] sm:$0xff]  ;;  %v7227_v41 = vld [vmem:[#allocation6 + $0x260] sm:$0xff] }
 0xaa5   :  { %4684 = vmatprep.subr.mxu0 %v11271_v45  ;;  %4746 = vmatprep.mubr.f32.mxu0 %v4539_v60  ;;  %v7228_v45 = vld [vmem:[#allocation6 + $0x270] sm:$0xff] }
 0xaa6   :  { %4755 = vmatprep.subr.mxu1 %v11274_v35  ;;  %4817 = vmatprep.mubr.f32.mxu1 %v4539_v60  ;;  %v7229_v35 = vld [vmem:[#allocation6 + $0x228] sm:$0xff] }
 0xaa7   :  { %4685 = vmatpush1.msra.mxu0 %v11277_v42  ;;  %4756 = vmatpush1.msra.mxu1 %v11280_v27  ;;  %v7230_v42 = vld [vmem:[#allocation6 + $0x238] sm:$0xff]  ;;  %v7231_v27 = vld [vmem:[#allocation6 + $0x220] sm:$0xff]  ;;  %v7285_v60 = vld [vmem:[#allocation6 + $0x6a8] sm:$0xff] }
 0xaa8   :  { %4686 = vmatprep.subr.mxu0 %v11283_v34  ;;  %4757 = vmatprep.subr.mxu1 %v11286_v32  ;;  %v7232_v34 = vld [vmem:[#allocation6 + $0x230] sm:$0xff]  ;;  %v7233_v32 = vld [vmem:[#allocation6 + $0x1e8] sm:$0xff] }
 0xaa9   :  { %4687 = vmatpush1.msra.mxu0 %v11289_v37  ;;  %4758 = vmatpush1.msra.mxu1 %v11292_v50  ;;  %v7234_v37 = vld [vmem:[#allocation6 + $0x1f8] sm:$0xff]  ;;  %v7235_v50 = vld [vmem:[#allocation6 + $0x1e0] sm:$0xff] }
 0xaaa   :  { %4688 = vmatprep.subr.mxu0 %v11295_v11  ;;  %4759 = vmatprep.subr.mxu1 %v11298_v7  ;;  %v7236_v11 = vld [vmem:[#allocation6 + $0x1f0] sm:$0xff]  ;;  %v7237_v7 = vld [vmem:[#allocation6 + $0x1a8] sm:$0xff] }
 0xaab   :  { %4689 = vmatpush1.msra.mxu0 %v11301_v2  ;;  %4760 = vmatpush1.msra.mxu1 %v11304_v21  ;;  %v7238_v2 = vld [vmem:[#allocation6 + $0x1b8] sm:$0xff]  ;;  %v7239_v21 = vld [vmem:[#allocation6 + $0x1a0] sm:$0xff] }
 0xaac   :  { %4690 = vmatprep.subr.mxu0 %v11307_v47  ;;  %4761 = vmatprep.subr.mxu1 %v11310_v30  ;;  %v7240_v47 = vld [vmem:[#allocation6 + $0x1b0] sm:$0xff]  ;;  %v7241_v30 = vld [vmem:[#allocation6 + $0x168] sm:$0xff] }
 0xaad   :  { %4691 = vmatpush1.msra.mxu0 %v11313_v36  ;;  %4762 = vmatpush1.msra.mxu1 %v11316_v58  ;;  %v7242_v36 = vld [vmem:[#allocation6 + $0x178] sm:$0xff]  ;;  %v7243_v58 = vld [vmem:[#allocation6 + $0x160] sm:$0xff] }
 0xaae   :  { %4692 = vmatprep.subr.mxu0 %v11319_v31  ;;  %4763 = vmatprep.subr.mxu1 %v11322_v24  ;;  %v7244_v31 = vld [vmem:[#allocation6 + $0x170] sm:$0xff]  ;;  %v7245_v24 = vld [vmem:[#allocation6 + $0x128] sm:$0xff] }
 0xaaf   :  { %4693 = vmatpush1.msra.mxu0 %v11325_v22  ;;  %4764 = vmatpush1.msra.mxu1 %v11328_v14  ;;  %v7246_v22 = vld [vmem:[#allocation6 + $0x138] sm:$0xff]  ;;  %v7247_v14 = vld [vmem:[#allocation6 + $0x120] sm:$0xff] }
 0xab0   :  { %4694 = vmatprep.subr.mxu0 %v7225_v12  ;;  %4765 = vmatprep.subr.mxu1 %v7226_v38  ;;  %v7286_v12 = vld [vmem:[#allocation6 + $0x6b8] sm:$0xff]  ;;  %v7287_v38 = vld [vmem:[#allocation6 + $0x6a0] sm:$0xff] }
 0xab1   :  { %4695 = vmatpush1.msra.mxu0 %v7227_v41  ;;  %4766 = vmatpush1.msra.mxu1 %v7228_v45  ;;  %v7288_v41 = vld [vmem:[#allocation6 + $0x6b0] sm:$0xff]  ;;  %v7289_v45 = vld [vmem:[#allocation6 + $0x668] sm:$0xff] }
 0xab2   :  { %4696 = vmatprep.subr.mxu0 %v7229_v35  ;;  %4767 = vmatprep.subr.mxu1 %v7230_v42  ;;  %v7290_v35 = vld [vmem:[#allocation6 + $0x678] sm:$0xff]  ;;  %v7291_v42 = vld [vmem:[#allocation6 + $0x660] sm:$0xff] }
 0xab3   :  { %4697 = vmatpush1.msra.mxu0 %v7231_v27  ;;  %4768 = vmatpush1.msra.mxu1 %v7232_v34  ;;  %v7292_v27 = vld [vmem:[#allocation6 + $0x670] sm:$0xff]  ;;  %v7293_v34 = vld [vmem:[#allocation6 + $0x628] sm:$0xff] }
 0xab4   :  { %4698 = vmatprep.subr.mxu0 %v7233_v32  ;;  %4769 = vmatprep.subr.mxu1 %v7234_v37  ;;  %v7294_v32 = vld [vmem:[#allocation6 + $0x638] sm:$0xff]  ;;  %v7295_v37 = vld [vmem:[#allocation6 + $0x620] sm:$0xff] }
 0xab5   :  { %4699 = vmatpush1.msra.mxu0 %v7235_v50  ;;  %4770 = vmatpush1.msra.mxu1 %v7236_v11  ;;  %v7296_v50 = vld [vmem:[#allocation6 + $0x630] sm:$0xff]  ;;  %v7297_v11 = vld [vmem:[#allocation6 + $0x5e8] sm:$0xff] }
 0xab6   :  { %4700 = vmatprep.subr.mxu0 %v7237_v7  ;;  %4771 = vmatprep.subr.mxu1 %v7238_v2  ;;  %v7298_v7 = vld [vmem:[#allocation6 + $0x5f8] sm:$0xff]  ;;  %v7299_v2 = vld [vmem:[#allocation6 + $0x5e0] sm:$0xff] }
 0xab7   :  { %4701 = vmatpush1.msra.mxu0 %v7239_v21  ;;  %4772 = vmatpush1.msra.mxu1 %v7240_v47  ;;  %v7300_v21 = vld [vmem:[#allocation6 + $0x5f0] sm:$0xff]  ;;  %v7301_v47 = vld [vmem:[#allocation6 + $0x5a8] sm:$0xff] }
 0xab8   :  { %4702 = vmatprep.subr.mxu0 %v7241_v30  ;;  %4773 = vmatprep.subr.mxu1 %v7242_v36  ;;  %v7302_v30 = vld [vmem:[#allocation6 + $0x5b8] sm:$0xff]  ;;  %v7303_v36 = vld [vmem:[#allocation6 + $0x5a0] sm:$0xff] }
 0xab9   :  { %4703 = vmatpush1.msra.mxu0 %v7243_v58  ;;  %4774 = vmatpush1.msra.mxu1 %v7244_v31  ;;  %v7304_v58 = vld [vmem:[#allocation6 + $0x5b0] sm:$0xff]  ;;  %v7305_v31 = vld [vmem:[#allocation6 + $0x568] sm:$0xff] }
 0xaba   :  { %4704 = vmatprep.subr.mxu0 %v7245_v24  ;;  %4775 = vmatprep.subr.mxu1 %v7246_v22  ;;  %v7306_v24 = vld [vmem:[#allocation6 + $0x578] sm:$0xff]  ;;  %v7307_v22 = vld [vmem:[#allocation6 + $0x560] sm:$0xff] }
 0xabb   :  { %4705 = vmatpush1.msra.mxu0 %v7247_v14  ;;  %4776 = vmatpush1.msra.mxu1 %v7248_v25  ;;  %v7308_v14 = vld [vmem:[#allocation6 + $0x570] sm:$0xff]  ;;  %v7309_v25 = vld [vmem:[#allocation6 + $0x528] sm:$0xff] }
 0xabc   :  { %4706 = vmatprep.subr.mxu0 %v7249_v9  ;;  %4777 = vmatprep.subr.mxu1 %v7250_v6  ;;  %v7310_v9 = vld [vmem:[#allocation6 + $0x538] sm:$0xff]  ;;  %v7311_v6 = vld [vmem:[#allocation6 + $0x520] sm:$0xff] }
 0xabd   :  { %4707 = vmatpush1.msra.mxu0 %v7251_v20  ;;  %4778 = vmatpush1.msra.mxu1 %v7252_v57  ;;  %v7312_v20 = vld [vmem:[#allocation6 + $0x530] sm:$0xff]  ;;  %v7313_v57 = vld [vmem:[#allocation6 + $0x4e8] sm:$0xff] }
 0xabe   :  { %4708 = vmatprep.subr.mxu0 %v7253_v18  ;;  %4779 = vmatprep.subr.mxu1 %v7254_v55  ;;  %v7314_v18 = vld [vmem:[#allocation6 + $0x4f8] sm:$0xff]  ;;  %v7315_v55 = vld [vmem:[#allocation6 + $0x4e0] sm:$0xff] }
 0xabf   :  { %4709 = vmatpush1.msra.mxu0 %v7255_v29  ;;  %4780 = vmatpush1.msra.mxu1 %v7256_v28  ;;  %v7316_v29 = vld [vmem:[#allocation6 + $0x4f0] sm:$0xff]  ;;  %v7317_v28 = vld [vmem:[#allocation6 + $0x4a8] sm:$0xff] }
 0xac0   :  { %4710 = vmatprep.subr.mxu0 %v7257_v49  ;;  %4781 = vmatprep.subr.mxu1 %v7258_v4  ;;  %v7318_v49 = vld [vmem:[#allocation6 + $0x4b8] sm:$0xff]  ;;  %v7319_v4 = vld [vmem:[#allocation6 + $0x4a0] sm:$0xff] }
 0xac1   :  { %4711 = vmatpush1.msra.mxu0 %v7259_v3  ;;  %4782 = vmatpush1.msra.mxu1 %v7260_v39  ;;  %v7320_v3 = vld [vmem:[#allocation6 + $0x4b0] sm:$0xff]  ;;  %v7321_v39 = vld [vmem:[#allocation6 + $0x468] sm:$0xff] }
 0xac2   :  { %4712 = vmatprep.subr.mxu0 %v7261_v8  ;;  %4783 = vmatprep.subr.mxu1 %v7262_v10  ;;  %v7322_v8 = vld [vmem:[#allocation6 + $0x478] sm:$0xff]  ;;  %v7323_v10 = vld [vmem:[#allocation6 + $0x460] sm:$0xff] }
 0xac3   :  { %4713 = vmatpush1.msra.mxu0 %v7263_v17  ;;  %4784 = vmatpush1.msra.mxu1 %v7264_v15  ;;  %v7324_v17 = vld [vmem:[#allocation6 + $0x470] sm:$0xff]  ;;  %v7325_v15 = vld [vmem:[#allocation6 + $0x428] sm:$0xff] }
 0xac4   :  { %4714 = vmatprep.subr.mxu0 %v7265_v19  ;;  %4785 = vmatprep.subr.mxu1 %v7266_v23  ;;  %v7326_v19 = vld [vmem:[#allocation6 + $0x438] sm:$0xff] }
 0xac5   :  { %4715 = vmatpush2.msra.mxu0 %v7267_v48  ;;  %4786 = vmatpush2.msra.mxu1 %v7268_v33  ;;  %v5655_v23 = vld [vmem:[%s11622_s9 + $0x38] sm:$0xff]  ;;  %v7327_v33 = vld [vmem:[#allocation6 + $0x420] sm:$0xff] }
 0xac6   :  { %4716 = vmatprep.subr.mxu0 %v7269_v62  ;;  %4787 = vmatprep.subr.mxu1 %v7270_v5  ;;  %v4883_v48 = vld [vmem:[%s11622_s9 + $0x18] sm:$0xff]  ;;  %v7328_v62 = vld [vmem:[#allocation6 + $0x430] sm:$0xff] }
 0xac7   :  { %4717 = vmatpush2.msra.mxu0 %v7271_v61  ;;  %4788 = vmatpush2.msra.mxu1 %v7272_v26  ;;  %v5654_v5 = vld [vmem:[%s11622_s9 + $0x30] sm:$0xff]  ;;  %v13340_v26 = vld [vmem:[#allocation12_spill] sm:$0xff] }
 0xac8   :  { %4718 = vmatprep.subr.mxu0 %v7273_v63  ;;  %4789 = vmatprep.subr.mxu1 %v7274_v54  ;;  %v4882_v61 = vld [vmem:[%s11622_s9 + $0x10] sm:$0xff]  ;;  %v13341_v63 = vld [vmem:[#allocation13_spill] sm:$0xff] }
 0xac9   :  { %4719 = vmatpush2.msra.mxu0 %v7275_v51  ;;  %4790 = vmatpush2.msra.mxu1 %v7276_v0  ;;  %v4881_v54 = vld [vmem:[%s11622_s9 + $0x8] sm:$0xff]  ;;  %v5652_v51 = vld [vmem:[%s11622_s9 + $0x20] sm:$0xff] }
 0xaca   :  { %4720 = vmatprep.subr.mxu0 %v7277_v52  ;;  %4791 = vmatprep.subr.mxu1 %v7278_v44  ;;  %v4880_v0 = vld [vmem:[%s11622_s9] sm:$0xff]  ;;  %v5671_v52 = vld [vmem:[%s11622_s9 + $0x58] sm:$0xff] }
 0xacb   :  { %4721 = vmatpush2.msra.mxu0 %v7279_v16  ;;  %4792 = vmatpush2.msra.mxu1 %v7280_v46  ;;  %v13342_v44 = vld [vmem:[#allocation15_spill] sm:$0xff]  ;;  %v5670_v16 = vld [vmem:[%s11622_s9 + $0x50] sm:$0xff] }
 0xacc   :  { %4722 = vmatprep.subr.mxu0 %v7281_v1  ;;  %4793 = vmatprep.subr.mxu1 %v7282_v56  ;;  %v13343_v46 = vld [vmem:[#allocation14_spill] sm:$0xff]  ;;  %v5669_v1 = vld [vmem:[%s11622_s9 + $0x48] sm:$0xff] }
 0xacd   :  { %4723 = vmatpush2.msra.mxu0 %v7283_v40  ;;  %4794 = vmatpush2.msra.mxu1 %v7284_v43  ;;  %v13344_v56 = vld [vmem:[#allocation17_spill] sm:$0xff]  ;;  %v13345_v40 = vld [vmem:[#allocation16_spill] sm:$0xff] }
 0xace   :  { %4724 = vmatprep.subr.mxu0 %v7285_v60  ;;  %4795 = vmatprep.subr.mxu1 %v7286_v12  ;;  %v5668_v43 = vld [vmem:[%s11622_s9 + $0x40] sm:$0xff]  ;;  %v13346_v60 = vld [vmem:[#allocation19_spill] sm:$0xff]  ;;  %v13347_v12 = vld [vmem:[#allocation82_spill] sm:$0xff] }
 0xacf   :  { %4725 = vmatpush2.msra.mxu0 %v7287_v38  ;;  %4796 = vmatpush2.msra.mxu1 %v7288_v41  ;;  %v13348_v38 = vld [vmem:[#allocation18_spill] sm:$0xff]  ;;  %v5296_v41 = vld [vmem:[#allocation7 + $0x1f8] sm:$0xff] }
 0xad0   :  { %4726 = vmatprep.subr.mxu0 %v7289_v45  ;;  %4797 = vmatprep.subr.mxu1 %v7290_v35  ;;  %v5280_v45 = vld [vmem:[#allocation7 + $0x178] sm:$0xff] }
 0xad1   :  { %4727 = vmatpush2.msra.mxu0 %v7291_v42  ;;  %4798 = vmatpush2.msra.mxu1 %v7292_v27  ;;  %v5264_v35 = vld [vmem:[#allocation7 + $0xf8] sm:$0xff]  ;;  %v5295_v42 = vld [vmem:[#allocation7 + $0x1f0] sm:$0xff] }
 0xad2   :  { %4728 = vmatprep.subr.mxu0 %v7293_v34  ;;  %4799 = vmatprep.subr.mxu1 %v7294_v32  ;;  %v5248_v27 = vld [vmem:[#allocation7 + $0x78] sm:$0xff]  ;;  %v5279_v34 = vld [vmem:[#allocation7 + $0x170] sm:$0xff] }
 0xad3   :  { %4729 = vmatpush2.msra.mxu0 %v7295_v37  ;;  %4800 = vmatpush2.msra.mxu1 %v7296_v50  ;;  %v5263_v32 = vld [vmem:[#allocation7 + $0xf0] sm:$0xff]  ;;  %v5294_v37 = vld [vmem:[#allocation7 + $0x1e8] sm:$0xff] }
 0xad4   :  { %4730 = vmatprep.subr.mxu0 %v7297_v11  ;;  %4801 = vmatprep.subr.mxu1 %v7298_v7  ;;  %v5247_v50 = vld [vmem:[#allocation7 + $0x70] sm:$0xff]  ;;  %v5278_v11 = vld [vmem:[#allocation7 + $0x168] sm:$0xff] }
 0xad5   :  { %4731 = vmatpush2.msra.mxu0 %v7299_v2  ;;  %4802 = vmatpush2.msra.mxu1 %v7300_v21  ;;  %v5262_v7 = vld [vmem:[#allocation7 + $0xe8] sm:$0xff]  ;;  %v5293_v2 = vld [vmem:[#allocation7 + $0x1e0] sm:$0xff] }
 0xad6   :  { %4732 = vmatprep.subr.mxu0 %v7301_v47  ;;  %4803 = vmatprep.subr.mxu1 %v7302_v30  ;;  %v5246_v21 = vld [vmem:[#allocation7 + $0x68] sm:$0xff]  ;;  %v5277_v47 = vld [vmem:[#allocation7 + $0x160] sm:$0xff] }
 0xad7   :  { %4733 = vmatpush2.msra.mxu0 %v7303_v36  ;;  %4804 = vmatpush2.msra.mxu1 %v7304_v58  ;;  %v5261_v30 = vld [vmem:[#allocation7 + $0xe0] sm:$0xff]  ;;  %v5292_v36 = vld [vmem:[#allocation7 + $0x1d8] sm:$0xff] }
 0xad8   :  { %4734 = vmatprep.subr.mxu0 %v7305_v31  ;;  %4805 = vmatprep.subr.mxu1 %v7306_v24  ;;  %v5245_v58 = vld [vmem:[#allocation7 + $0x60] sm:$0xff]  ;;  %v5276_v31 = vld [vmem:[#allocation7 + $0x158] sm:$0xff] }
 0xad9   :  { %4735 = vmatpush2.msra.mxu0 %v7307_v22  ;;  %4806 = vmatpush2.msra.mxu1 %v7308_v14  ;;  %v5260_v24 = vld [vmem:[#allocation7 + $0xd8] sm:$0xff]  ;;  %v5291_v22 = vld [vmem:[#allocation7 + $0x1d0] sm:$0xff] }
 0xada   :  { %4736 = vmatprep.subr.mxu0 %v7309_v25  ;;  %4807 = vmatprep.subr.mxu1 %v7310_v9  ;;  %v5244_v14 = vld [vmem:[#allocation7 + $0x58] sm:$0xff]  ;;  %v5275_v25 = vld [vmem:[#allocation7 + $0x150] sm:$0xff] }
 0xadb   :  { %4737 = vmatpush2.msra.mxu0 %v7311_v6  ;;  %4808 = vmatpush2.msra.mxu1 %v7312_v20  ;;  %v5259_v9 = vld [vmem:[#allocation7 + $0xd0] sm:$0xff]  ;;  %v5290_v6 = vld [vmem:[#allocation7 + $0x1c8] sm:$0xff] }
 0xadc   :  { %4738 = vmatprep.subr.mxu0 %v7313_v57  ;;  %4809 = vmatprep.subr.mxu1 %v7314_v18  ;;  %v5243_v20 = vld [vmem:[#allocation7 + $0x50] sm:$0xff]  ;;  %v5274_v57 = vld [vmem:[#allocation7 + $0x148] sm:$0xff] }
 0xadd   :  { %4739 = vmatpush2.msra.mxu0 %v7315_v55  ;;  %4810 = vmatpush2.msra.mxu1 %v7316_v29  ;;  %v5258_v18 = vld [vmem:[#allocation7 + $0xc8] sm:$0xff]  ;;  %v5289_v55 = vld [vmem:[#allocation7 + $0x1c0] sm:$0xff] }
 0xade   :  { %4740 = vmatprep.subr.mxu0 %v7317_v28  ;;  %4811 = vmatprep.subr.mxu1 %v7318_v49  ;;  %v5242_v29 = vld [vmem:[#allocation7 + $0x48] sm:$0xff]  ;;  %v5273_v28 = vld [vmem:[#allocation7 + $0x140] sm:$0xff] }
 0xadf   :  { %4741 = vmatpush2.msra.mxu0 %v7319_v4  ;;  %4812 = vmatpush2.msra.mxu1 %v7320_v3  ;;  %v5257_v49 = vld [vmem:[#allocation7 + $0xc0] sm:$0xff]  ;;  %v5288_v4 = vld [vmem:[#allocation7 + $0x1b8] sm:$0xff] }
 0xae0   :  { %4742 = vmatprep.subr.mxu0 %v7321_v39  ;;  %4813 = vmatprep.subr.mxu1 %v7322_v8  ;;  %v5241_v3 = vld [vmem:[#allocation7 + $0x40] sm:$0xff]  ;;  %v5272_v39 = vld [vmem:[#allocation7 + $0x138] sm:$0xff] }
 0xae1   :  { %4743 = vmatpush2.msra.mxu0 %v7323_v10  ;;  %4814 = vmatpush2.msra.mxu1 %v7324_v17  ;;  %v5256_v8 = vld [vmem:[#allocation7 + $0xb8] sm:$0xff]  ;;  %v5287_v10 = vld [vmem:[#allocation7 + $0x1b0] sm:$0xff] }
 0xae2   :  { %4744 = vmatprep.subr.mxu0 %v7325_v15  ;;  %4815 = vmatprep.subr.mxu1 %v7326_v19  ;;  %v5240_v17 = vld [vmem:[#allocation7 + $0x38] sm:$0xff]  ;;  %v5271_v15 = vld [vmem:[#allocation7 + $0x130] sm:$0xff] }
 0xae3   :  { %4745 = vmatpush2.msra.mxu0 %v7327_v33  ;;  %4816 = vmatpush2.msra.mxu1 %v7328_v62  ;;  %v5255_v19 = vld [vmem:[#allocation7 + $0xb0] sm:$0xff]  ;;  %v5270_v33 = vld [vmem:[#allocation7 + $0x128] sm:$0xff] }
 0xae4   :  { %4747 = vmatmul.mubr.f32.vlgmr.msra.gmra.mxu0 %v11475_v13  ;;  %4818 = vmatmul.mubr.f32.vlgmr.msra.gmra.mxu1 %v11475_v13  ;;  %v5653_v13 = vld [vmem:[%s11622_s9 + $0x28] sm:$0xff] }
 0xae5   :  { %5933 = vmatprep.subr.mxu0 %v5655_v23  ;;  %5950 = vmatprep.subr.mxu1 %v4883_v48  ;;  %v5254_v62 = vld [vmem:[#allocation7 + $0xa8] sm:$0xff] }
 0xae6   :  { %5934 = vmatpush3.msra.mxu0 %v5655_v23  ;;  %5941 = vmatprep.mubr.msk.f32.mxu0 %vm473_vm8, %v13340_v26  ;;  %v5286_v23 = vld [vmem:[#allocation7 + $0x1a8] sm:$0xff] }
 0xae7   :  { %5951 = vmatpush3.msra.mxu1 %v4883_v48  ;;  %5958 = vmatprep.mubr.msk.f32.mxu1 %vm473_vm8, %v13341_v63  ;;  %v5239_v48 = vld [vmem:[#allocation7 + $0x30] sm:$0xff]  ;;  %v5253_v63 = vld [vmem:[#allocation7 + $0xa0] sm:$0xff] }
 0xae8   :  { %5935 = vmatprep.subr.mxu0 %v5654_v5  ;;  %5952 = vmatprep.subr.mxu1 %v4882_v61 }
 0xae9   :  { %5936 = vmatpush3.msra.mxu0 %v5654_v5  ;;  %5953 = vmatpush3.msra.mxu1 %v4882_v61  ;;  %v5285_v5 = vld [vmem:[#allocation7 + $0x1a0] sm:$0xff]  ;;  %v5238_v61 = vld [vmem:[#allocation7 + $0x28] sm:$0xff] }
 0xaea   :  { %5937 = vmatprep.subr.mxu0 %v5653_v13  ;;  %5954 = vmatprep.subr.mxu1 %v4881_v54 }
 0xaeb   :  { %5938 = vmatpush3.msra.mxu0 %v5653_v13  ;;  %5955 = vmatpush3.msra.mxu1 %v4881_v54  ;;  %v5284_v13 = vld [vmem:[#allocation7 + $0x198] sm:$0xff]  ;;  %v5237_v54 = vld [vmem:[#allocation7 + $0x20] sm:$0xff] }
 0xaec   :  { %5939 = vmatprep.subr.mxu0 %v5652_v51  ;;  %5956 = vmatprep.subr.mxu1 %v4880_v0 }
 0xaed   :  { %5940 = vmatpush3.msra.mxu0 %v5652_v51  ;;  %5957 = vmatpush3.msra.mxu1 %v4880_v0  ;;  %v5268_v51 = vld [vmem:[#allocation7 + $0x118] sm:$0xff] }
 0xaee   :  { %5942 = vmatmul.mubr.msk.f32.vlgmr.msra.gmra.mxu0 %vm473_vm8, %v13342_v44  ;;  %5959 = vmatmul.mubr.msk.f32.vlgmr.msra.gmra.mxu1 %vm473_vm8, %v13340_v26  ;;  %v5269_v26 = vld [vmem:[#allocation7 + $0x120] sm:$0xff]  ;;  %v5252_v0 = vld [vmem:[#allocation7 + $0x98] sm:$0xff] }
 0xaef   :  { %5967 = vmatprep.subr.mxu0 %v5671_v52  ;;  %5944 = vmatprep.mubr.msk.f32.mxu0 %vm473_vm8, %v13343_v46 }
 0xaf0   :  { %5961 = vmatprep.mubr.msk.f32.mxu1 %vm473_vm8, %v13342_v44  ;;  %5968 = vmatpush3.msra.mxu0 %v5671_v52  ;;  %v5283_v52 = vld [vmem:[#allocation7 + $0x190] sm:$0xff] }
 0xaf1   :  { %5969 = vmatprep.subr.mxu0 %v5670_v16  ;;  %5758 = vmatprep.subr.mxu1 %v5264_v35  ;;  %v13349_v35 = vmov 0.0  }
 0xaf2   :  { %5945 = vmatmul.mubr.msk.f32.gmra.mxu0 %vm473_vm8, %v13344_v56  ;;  %5962 = vmatmul.mubr.msk.f32.gmra.mxu1 %vm473_vm8, %v13343_v46 }
 0xaf3   :  { %5970 = vmatpush3.msra.mxu0 %v5670_v16  ;;  %5947 = vmatprep.mubr.msk.f32.mxu0 %vm473_vm8, %v13345_v40  ;;  %v5267_v16 = vld [vmem:[#allocation7 + $0x110] sm:$0xff] }
 0xaf4   :  { %5964 = vmatprep.mubr.msk.f32.mxu1 %vm473_vm8, %v13344_v56  ;;  %5971 = vmatprep.subr.mxu0 %v5669_v1 }
 0xaf5   :  { %5972 = vmatpush3.msra.mxu0 %v5669_v1  ;;  %5759 = vmatpush3.msra.mxu1 %v5248_v27  ;;  %v5282_v1 = vld [vmem:[#allocation7 + $0x188] sm:$0xff] }
 0xaf6   :  { %5948 = vmatmul.mubr.msk.f32.gmra.mxu0 %vm473_vm8, %v13346_v60  ;;  %5965 = vmatmul.mubr.msk.f32.gmra.mxu1 %vm473_vm8, %v13345_v40 }
 0xaf7   :  { %5973 = vmatprep.subr.mxu0 %v5668_v43  ;;  %5975 = vmatprep.mubr.msk.f32.mxu0 %vm473_vm8, %v13342_v44  ;;  %v5236_v44 = vld [vmem:[#allocation7 + $0x18] sm:$0xff] }
 0xaf8   :  { %5384 = vmatprep.mubr.f32.mxu1 %v13347_v12  ;;  %5974 = vmatpush3.msra.mxu0 %v5668_v43  ;;  %v5250_v43 = vld [vmem:[#allocation7 + $0x88] sm:$0xff] }
 0xaf9   :  { %5793 = vmatprep.subr.mxu0 %v5296_v41  ;;  %5760 = vmatprep.subr.mxu1 %v5263_v32  ;;  %v5234_v12 = vld [vmem:[#allocation7 + $0x8] sm:$0xff]  ;;  %v5249_v41 = vld [vmem:[#allocation7 + $0x80] sm:$0xff] }
 0xafa   :  { %5976 = vmatmul.mubr.msk.f32.vlgmr.msra.gmra.mxu0 %vm473_vm8, %v13343_v46  ;;  %5761 = vmatpush3.msra.mxu1 %v5247_v50  ;;  %v5251_v46 = vld [vmem:[#allocation7 + $0x90] sm:$0xff]  ;;  %v13350_v32 = vld [vmem:[#allocation32_spill] sm:$0xff] }
 0xafb   :  { %5978 = vmatprep.mubr.msk.f32.mxu0 %vm473_vm8, %v13344_v56  ;;  %5794 = vmatpush3.msra.mxu0 %v5280_v45  ;;  %v5235_v56 = vld [vmem:[#allocation7 + $0x10] sm:$0xff]  ;;  %v5233_v45 = vld [vmem:[#allocation7] sm:$0xff] }
 0xafc   :  { %5795 = vmatprep.subr.mxu0 %v5295_v42  ;;  %5762 = vmatprep.subr.mxu1 %v5262_v7  ;;  %v13351_v50 = vld [vmem:[#allocation22_spill] sm:$0xff] }
 0xafd   :  { %5796 = vmatpush3.msra.mxu0 %v5279_v34  ;;  %5763 = vmatpush3.msra.mxu1 %v5246_v21 }
 0xafe   :  { %5979 = vmatmul.mubr.msk.f32.gmra.mxu0 %vm473_vm8, %v13345_v40  ;;  %5797 = vmatprep.subr.mxu0 %v5294_v37  ;;  %v5266_v40 = vld [vmem:[#allocation7 + $0x108] sm:$0xff] }
 0xaff   :  { %5981 = vmatprep.mubr.msk.f32.mxu0 %vm473_vm8, %v13346_v60  ;;  %5798 = vmatpush3.msra.mxu0 %v5278_v11  ;;  %v5281_v60 = vld [vmem:[#allocation7 + $0x180] sm:$0xff] }
 0xb00   :  { %5799 = vmatprep.subr.mxu0 %v5293_v2  ;;  %5764 = vmatprep.subr.mxu1 %v5261_v30  ;;  %v13352_v2 = vld [vmem:[#allocation34_spill] sm:$0xff]  ;;  %v13353_v30 = vld [vmem:[#allocation23_spill] sm:$0xff] }
 0xb01   :  { %5800 = vmatpush3.msra.mxu0 %v5277_v47  ;;  %5765 = vmatpush3.msra.mxu1 %v5245_v58 }
 0xb02   :  { %5982 = vmatmul.mubr.msk.f32.gmra.mxu0 %vm473_vm8, %v13348_v38  ;;  %5801 = vmatprep.subr.mxu0 %v5292_v36  ;;  %v5265_v38 = vld [vmem:[#allocation7 + $0x100] sm:$0xff] }
 0xb03   :  { %5802 = vmatpush3.msra.mxu0 %v5276_v31  ;;  %5766 = vmatprep.subr.mxu1 %v5260_v24 }
 0xb04   :  { %5803 = vmatprep.subr.mxu0 %v5291_v22  ;;  %5767 = vmatpush3.msra.mxu1 %v5244_v14 }
 0xb05   :  { %5804 = vmatpush3.msra.mxu0 %v5275_v25  ;;  %5768 = vmatprep.subr.mxu1 %v5259_v9 }
 0xb06   :  { %5805 = vmatprep.subr.mxu0 %v5290_v6  ;;  %5769 = vmatpush3.msra.mxu1 %v5243_v20 }
 0xb07   :  { %5806 = vmatpush3.msra.mxu0 %v5274_v57  ;;  %5770 = vmatprep.subr.mxu1 %v5258_v18 }
 0xb08   :  { %5807 = vmatprep.subr.mxu0 %v5289_v55  ;;  %5771 = vmatpush3.msra.mxu1 %v5242_v29 }
 0xb09   :  { %5808 = vmatpush3.msra.mxu0 %v5273_v28  ;;  %5772 = vmatprep.subr.mxu1 %v5257_v49  ;;  %v13354_v28 = vld [vmem:[#allocation60_spill] sm:$0xff] }
 0xb0a   :  { %5809 = vmatprep.subr.mxu0 %v5288_v4  ;;  %5773 = vmatpush3.msra.mxu1 %v5241_v3  ;;  %v13355_v4 = vld [vmem:[#allocation45_spill] sm:$0xff] }
 0xb0b   :  { %5810 = vmatpush3.msra.mxu0 %v5272_v39  ;;  %5774 = vmatprep.subr.mxu1 %v5256_v8 }
 0xb0c   :  { %5811 = vmatprep.subr.mxu0 %v5287_v10  ;;  %5775 = vmatpush3.msra.mxu1 %v5240_v17  ;;  %v13356_v17 = vld [vmem:[#allocation62_spill] sm:$0xff] }
 0xb0d   :  { %5812 = vmatpush3.msra.mxu0 %v5271_v15  ;;  %5776 = vmatprep.subr.mxu1 %v5255_v19  ;;  %v13357_v19 = vld [vmem:[#allocation47_spill] sm:$0xff] }
 0xb0e   :  { %5813 = vmatprep.subr.mxu0 %v5286_v23  ;;  %5777 = vmatpush3.msra.mxu1 %v5239_v48 }
 0xb0f   :  { %5814 = vmatpush3.msra.mxu0 %v5270_v33  ;;  %5778 = vmatprep.subr.mxu1 %v5254_v62 }
 0xb10   :  { %5815 = vmatprep.subr.mxu0 %v5285_v5  ;;  %5779 = vmatpush3.msra.mxu1 %v5238_v61 }
 0xb11   :  { %5816 = vmatpush3.msra.mxu0 %v5269_v26  ;;  %5780 = vmatprep.subr.mxu1 %v5253_v63 }
 0xb12   :  { %5817 = vmatprep.subr.mxu0 %v5284_v13  ;;  %5781 = vmatpush3.msra.mxu1 %v5237_v54 }
 0xb13   :  { %5818 = vmatpush3.msra.mxu0 %v5268_v51  ;;  %5782 = vmatprep.subr.mxu1 %v5252_v0 }
 0xb14   :  { %5819 = vmatprep.subr.mxu0 %v5283_v52  ;;  %5783 = vmatpush3.msra.mxu1 %v5236_v44 }
 0xb15   :  { %5820 = vmatpush3.msra.mxu0 %v5267_v16  ;;  %5784 = vmatprep.subr.mxu1 %v5251_v46 }
 0xb16   :  { %5821 = vmatprep.subr.mxu0 %v5282_v1  ;;  %5785 = vmatpush3.msra.mxu1 %v5235_v56 }
 0xb17   :  { %5822 = vmatpush3.msra.mxu0 %v5266_v40  ;;  %5786 = vmatprep.subr.mxu1 %v5250_v43 }
 0xb18   :  { %5823 = vmatprep.subr.mxu0 %v5281_v60  ;;  %5787 = vmatpush3.msra.mxu1 %v5234_v12 }
 0xb19   :  { %5824 = vmatpush3.msra.mxu0 %v5265_v38  ;;  %5788 = vmatprep.subr.mxu1 %v5249_v41 }
 0xb1a   :  { %5789 = vmatpush3.msra.mxu1 %v5233_v45 }
 0xb1b   :  { %5984 = vmatprep.subr.mxu1 %v13349_v35 }
 0xb63   :  { %v4606_v42 = vpop.f32.mrf.mxu0  ;;  %v4677_v27 = vpop.f32.mrf.mxu1 }
 0xb64   :  { %v4824_v37 = vadd.f32 %v4606_v42, %v13350_v32  ;;  %v4826_v11 = vadd.f32 %v4677_v27, %v13351_v50 }
 0xb65   :  { %v4608_v34 = vpop.f32.mrf.mxu0  ;;  %v4679_v7 = vpop.f32.mrf.mxu1 }
 0xb66   :  { %v4825_v21 = vadd.f32 %v4608_v34, %v13352_v2  ;;  %v5646_v47 = vmul.f32 -1.442695, %v4824_v37  ;;  %v4827_v36 = vadd.f32 %v4679_v7, %v13353_v30  ;;  %v5648_v58 = vmul.f32 -1.442695, %v4826_v11  ;;  %v5678_v7 = vld [vmem:[%s11623_s10] ss:$0 sm:$0xff] }
 0xb68   :  { %v5647_v31 = vmul.f32 -1.442695, %v4825_v21  ;;  %6289 = vpow2.f32 %v5646_v47  ;;  %v5649_v24 = vmul.f32 -1.442695, %v4827_v36 }
 0xb69   :  { %6291 = vpow2.f32 %v5648_v58 }
 0xb6a   :  { %6293 = vpow2.f32 %v5647_v31 }
 0xb6b   :  { %6295 = vpow2.f32 %v5649_v24 }
 0xb75   :  { %v6290_v22 = vpop.eup %6289 }
 0xb76   :  { %v6292_v14 = vpop.eup %6291  ;;  %v4838_v9 = vadd.f32 1.0, %v6290_v22 }
 0xb77   :  { %v6294_v25 = vpop.eup %6293  ;;  %v4850_v20 = vadd.f32 1.0, %v6292_v14 }
 0xb78   :  { %v6296_v6 = vpop.eup %6295  ;;  %v4839_v57 = vadd.f32 1.0, %v6294_v25  ;;  %6297 = vrcp.f32 %v4838_v9 }
 0xb79   :  { %v4851_v18 = vadd.f32 1.0, %v6296_v6  ;;  %6299 = vrcp.f32 %v4850_v20 }
 0xb7a   :  { %6301 = vrcp.f32 %v4839_v57 }
 0xb85   :  { %v6298_v26 = vpop.eup %6297 }
 0xb86   :  { %v6300_v63 = vpop.eup %6299 }
 0xb87   :  { %v6302_v54 = vpop.eup %6301  ;;  %v4870_v16 = vmul.f32 %v6300_v63, %v11468_v53 }
 0xba4   :  { %v4748_v55 = vpop.f32.mrf.mxu0  ;;  %v4819_v29 = vpop.f32.mrf.mxu1 }
 0xba5   :  { %v4828_v49 = vadd.f32 %v4748_v55, %v13354_v28  ;;  %v4830_v3 = vadd.f32 %v4819_v29, %v13355_v4 }
 0xba6   :  { %v4750_v39 = vpop.f32.mrf.mxu0  ;;  %v4821_v8 = vpop.f32.mrf.mxu1 }
 0xba7   :  { %6303 = vtanh.f32 %v4828_v49  ;;  %v5650_v10 = vmul.f32 -1.442695, %v4830_v3  ;;  %v4829_v15 = vadd.f32 %v4750_v39, %v13356_v17  ;;  %v4831_v23 = vadd.f32 %v4821_v8, %v13357_v19 }
 0xba8   :  { %6305 = vrcp.f32 %v4851_v18 }
 0xba9   :  { %6307 = vpow2.f32 %v5650_v10  ;;  %v5651_v48 = vmul.f32 -1.442695, %v4831_v23 }
 0xbaa   :  { %6309 = vtanh.f32 %v4829_v15 }
 0xbab   :  { %6311 = vpow2.f32 %v5651_v48 }
 0xbae   :  { %v5943_v33 = vpop.f32.mrf.mxu0  ;;  %v5960_v62 = vpop.f32.mrf.mxu1 }
 0xbaf   :  { %v5077_v34 = vadd.f32 %v5960_v62, %v5943_v33 }
 0xbb0   :  { %v4973_v5 = vpop.f32.mrf.mxu0  ;;  %v5071_v61 = vpop.f32.mrf.mxu1 }
 0xbb1   :  { %v5072_v53 = vadd.f32 %v5071_v61, %v4973_v5 }
 0xbb2   :  { %v5946_v13 = vpop.f32.mrf.mxu0  ;;  %v5963_v51 = vpop.f32.mrf.mxu1 }
 0xbb3   :  { %v5087_v21 = vadd.f32 %v5963_v51, %v5946_v13  ;;  %v13358_v13 = vld [vmem:[#allocation83_spill] sm:$0xff] }
 0xbb4   :  { %v6304_v0 = vpop.eup %6303  ;;  %v4983_v52 = vpop.f32.mrf.mxu0  ;;  %v5312_v51 = vld [vmem:[#allocation7 + $0x278] sm:$0xff] }
 0xbb5   :  { %v6306_v44 = vpop.eup %6305  ;;  %v4872_v46 = vmul.f32 %v6304_v0, %v6298_v26  ;;  %v5081_v12 = vpop.f32.mrf.mxu1  ;;  %v5311_v0 = vld [vmem:[#allocation7 + $0x270] sm:$0xff] }
 0xbb6   :  { %v6308_v1 = vpop.eup %6307  ;;  %v5949_v56 = vpop.f32.mrf.mxu0  ;;  %v4871_v41 = vmul.f32 %v6306_v44, %v11472_v59  ;;  %v5082_v30 = vadd.f32 %v5081_v12, %v4983_v52  ;;  %v5310_v52 = vld [vmem:[#allocation7 + $0x268] sm:$0xff]  ;;  %v5309_v44 = vld [vmem:[#allocation7 + $0x260] sm:$0xff] }
 0xbb7   :  { %v6310_v40 = vpop.eup %6309  ;;  %v4874_v43 = vadd.f32 %v4872_v46, %v4870_v16  ;;  %v4864_v60 = vadd.f32 1.0, %v6308_v1  ;;  %v5966_v50 = vpop.f32.mrf.mxu1  ;;  %v5308_v16 = vld [vmem:[#allocation7 + $0x258] sm:$0xff]  ;;  %v5307_v46 = vld [vmem:[#allocation7 + $0x250] sm:$0xff]  ;;  %v5306_v1 = vld [vmem:[#allocation7 + $0x248] sm:$0xff] }
 0xbb8   :  { %v6312_v38 = vpop.eup %6311  ;;  %v4873_v45 = vmul.f32 %v6310_v40, %v6302_v54  ;;  %v4993_v42 = vpop.f32.mrf.mxu0  ;;  %v5097_v14 = vadd.f32 %v5966_v50, %v5949_v56  ;;  %v5305_v56 = vld [vmem:[#allocation7 + $0x240] sm:$0xff]  ;;  %v5304_v40 = vld [vmem:[#allocation7 + $0x238] sm:$0xff] }
 0xbb9   :  { %6313 = vtanh.f32 %v4874_v43  ;;  %v4865_v27 = vadd.f32 1.0, %v6312_v38  ;;  %v5091_v36 = vpop.f32.mrf.mxu1  ;;  %v5303_v43 = vld [vmem:[#allocation7 + $0x230] sm:$0xff]  ;;  %v5301_v12 = vld [vmem:[#allocation7 + $0x220] sm:$0xff]  ;;  %v5300_v38 = vld [vmem:[#allocation7 + $0x218] sm:$0xff] }
 0xbba   :  { %6315 = vrcp.f32 %v4864_v60  ;;  %v4875_v32 = vadd.f32 %v4873_v45, %v4871_v41  ;;  %v5977_v37 = vpop.f32.mrf.mxu0  ;;  %v5092_v6 = vadd.f32 %v5091_v36, %v4993_v42  ;;  %v5302_v60 = vld [vmem:[#allocation7 + $0x228] sm:$0xff]  ;;  %v5299_v41 = vld [vmem:[#allocation7 + $0x210] sm:$0xff]  ;;  %v5297_v42 = vld [vmem:[#allocation7 + $0x200] sm:$0xff] }
 0xbbb   :  { %6317 = vrcp.f32 %v4865_v27  ;;  %v5204_v11 = vadd.f32 %v5977_v37, %v5077_v34  ;;  %v5298_v45 = vld [vmem:[#allocation7 + $0x208] sm:$0xff] }
 0xbbc   :  { %6319 = vtanh.f32 %v4875_v32  ;;  %v5174_v2 = vpop.f32.mrf.mxu0 }
 0xbbd   :  { %v5203_v59 = vadd.f32 %v5174_v2, %v5072_v53  ;;  %v5217_v58 = vadd.f32 %v5678_v7, %v5204_v11  ;;  %v5679_v53 = vld [vmem:[%s11625_s12] ss:$0 sm:$0xff] }
 0xbbe   :  { %v5980_v47 = vpop.f32.mrf.mxu0 }
 0xbbf   :  { %v5216_v31 = vadd.f32 %v5678_v7, %v5203_v59  ;;  %v5206_v24 = vadd.f32 %v5980_v47, %v5087_v21  ;;  %v5223_v57 = vmax.f32 %v5217_v58, 0.0 }
 0xbc0   :  { %v5184_v22 = vpop.f32.mrf.mxu0 }
 0xbc1   :  { %v5222_v25 = vmax.f32 %v5216_v31, 0.0  ;;  %v5205_v9 = vadd.f32 %v5184_v22, %v5082_v30  ;;  %v5219_v18 = vadd.f32 %v5678_v7, %v5206_v24 }
 0xbc2   :  { %v5983_v20 = vpop.f32.mrf.mxu0 }
 0xbc3   :  { %v5218_v55 = vadd.f32 %v5678_v7, %v5205_v9  ;;  %v5208_v29 = vadd.f32 %v5983_v20, %v5097_v14  ;;  %v5228_v49 = vmax.f32 %v5222_v25, %v5223_v57  ;;  %v5225_v10 = vmax.f32 %v5219_v18, 0.0 }
 0xbc4   :  { %v5194_v28 = vpop.f32.mrf.mxu0 }
 0xbc5   :  { %v5224_v4 = vmax.f32 %v5218_v55, 0.0  ;;  %v5207_v3 = vadd.f32 %v5194_v28, %v5092_v6  ;;  %v5221_v15 = vadd.f32 %v5678_v7, %v5208_v29 }
 0xbc6   :  { %v6314_v39 = vpop.eup %6313 }
 0xbc7   :  { %v6316_v8 = vpop.eup %6315  ;;  %v5229_v17 = vmax.f32 %v5228_v49, %v5224_v4  ;;  %v5220_v19 = vadd.f32 %v5678_v7, %v5207_v3  ;;  %v5227_v26 = vmax.f32 %v5221_v15, 0.0 }
 0xbc8   :  { %v6318_v23 = vpop.eup %6317  ;;  %v4878_v48 = vmul.f32 %v6316_v8, %v6314_v39 }
 0xbc9   :  { %v6320_v33 = vpop.eup %6319  ;;  %v5226_v62 = vmax.f32 %v5220_v19, 0.0  ;;  %v5230_v5 = vmax.f32 %v5229_v17, %v5225_v10 }
 0xbca   :  { %5454 = vmatprep.mubr.f32.mxu0 %v4878_v48  ;;  %v4879_v61 = vmul.f32 %v6320_v33, %v6318_v23 }
 0xbcb   :  { %v5231_v63 = vmax.f32 %v5230_v5, %v5226_v62  ;;  %5455 = vmatmul.mubr.f32.vlgmr.msra.gmra.mxu0 %v13358_v13 }
 0xbcd   :  { %v5232_v54 = vmax.f32 %v5231_v63, %v5227_v26 }
 0xbcf   :  { %5385 = vmatmul.mubr.f32.vlgmr.msra.gmra.mxu1 %v5232_v54 }
 0xbd0   :  { %5985 = vmatpush3.msra.mxu1 %v5312_v51  ;;  %6016 = vmatprep.mubr.msk.f32.mxu1 %vm7426_vm9, %v13349_v35 }
 0xbd1   :  { %5986 = vmatprep.subr.mxu1 %v13349_v35 }
 0xbd2   :  { %5987 = vmatpush3.msra.mxu1 %v5311_v0 }
 0xbd3   :  { %5988 = vmatprep.subr.mxu1 %v13349_v35 }
 0xbd4   :  { %5989 = vmatpush3.msra.mxu1 %v5310_v52 }
 0xbd5   :  { %5990 = vmatprep.subr.mxu1 %v13349_v35 }
 0xbd6   :  { %5991 = vmatpush3.msra.mxu1 %v5309_v44 }
 0xbd7   :  { %5992 = vmatprep.subr.mxu1 %v13349_v35 }
 0xbd8   :  { %5993 = vmatpush3.msra.mxu1 %v5308_v16 }
 0xbd9   :  { %5994 = vmatprep.subr.mxu1 %v13349_v35 }
 0xbda   :  { %5995 = vmatpush3.msra.mxu1 %v5307_v46 }
 0xbdb   :  { %5996 = vmatprep.subr.mxu1 %v13349_v35 }
 0xbdc   :  { %5997 = vmatpush3.msra.mxu1 %v5306_v1 }
 0xbdd   :  { %5998 = vmatprep.subr.mxu1 %v13349_v35 }
 0xbde   :  { %5999 = vmatpush3.msra.mxu1 %v5305_v56 }
 0xbdf   :  { %6000 = vmatprep.subr.mxu1 %v13349_v35 }
 0xbe0   :  { %6001 = vmatpush3.msra.mxu1 %v5304_v40 }
 0xbe1   :  { %6002 = vmatprep.subr.mxu1 %v13349_v35 }
 0xbe2   :  { %6003 = vmatpush3.msra.mxu1 %v5303_v43 }
 0xbe3   :  { %6004 = vmatprep.subr.mxu1 %v13349_v35 }
 0xbe4   :  { %6005 = vmatpush3.msra.mxu1 %v5302_v60 }
 0xbe5   :  { %6006 = vmatprep.subr.mxu1 %v13349_v35 }
 0xbe6   :  { %6007 = vmatpush3.msra.mxu1 %v5301_v12 }
 0xbe7   :  { %6008 = vmatprep.subr.mxu1 %v13349_v35 }
 0xbe8   :  { %6009 = vmatpush3.msra.mxu1 %v5300_v38 }
 0xbe9   :  { %6010 = vmatprep.subr.mxu1 %v13349_v35 }
 0xbea   :  { %6011 = vmatpush3.msra.mxu1 %v5299_v41 }
 0xbeb   :  { %6012 = vmatprep.subr.mxu1 %v13349_v35 }
 0xbec   :  { %6013 = vmatpush3.msra.mxu1 %v5298_v45 }
 0xbed   :  { %6014 = vmatprep.subr.mxu1 %v13349_v35 }
 0xbee   :  { %6015 = vmatpush3.msra.mxu1 %v5297_v42 }
 0xbef   :  { %6017 = vmatmul.mubr.f32.vlgmr.msra.gmra.mxu1 %v4879_v61 }
 0xc8b   :  { %v5825_v32 = vpop.f32.mrf.mxu0 }
 0xc8d   :  { %v5826_v50 = vpop.f32.mrf.mxu0 }
 0xc8e   :  { %v5827_v7 = vadd.f32 %v5826_v50, %v5825_v32 }
 0xc8f   :  { %v5790_v27 = vpop.f32.mrf.mxu1 }
 0xc91   :  { %v5791_v34 = vpop.f32.mrf.mxu1 }
 0xc92   :  { %v5792_v37 = vadd.f32 %v5791_v34, %v5790_v27 }
 0xc94   :  { %v5387_v11 = vadd.f32 %v5792_v37, %v5679_v53 }
 0xc96   :  { %v5457_v2 = vadd.f32 %v5827_v7, %v5387_v11 }
 0xcaf   :  { %v5526_v21 = vpop.f32.mrf.mxu1 }
 0xcb0   :  { %v5527_v59 = vadd.f32 %v5526_v21, %v5457_v2 }
 0xcb1   :  { %v6018_v47 = vpop.f32.mrf.mxu1 }
 0xcb2   :  { %5530 = vst [vmem:[%s11626_s13] sm:$0xff] %v5527_v59 }
 0xcb3   :  { %5535 = vsyncpa [#allocation3], 1 }
 0xcb4   :  { %5536 = vsyncpa [#allocation5], 1 }
 0xcb5   :  { %5537 = vsyncpa [#allocation8], 1 }

</bundles_post_ra>
